<compile_context>
chip_gen: v5e
topology: v5e:2x2
jax: 0.10.0
libtpu: 0.0.40
codegen_flags: <defaults>
</compile_context>

<pallas_src>
import functools
import math

import jax
import jax.numpy as jnp
from jax.experimental import pallas as pl
from jax.experimental.pallas import tpu as pltpu

LAYER_WGTS = (5.0, 15.0, 2.0)        # layer_wgts, fastai-style defaults
_VMEM_LIMIT = 48 * 1024 * 1024       # safe on v5e/v6e (128 MiB) and v7x (64 MiB)


# ----------------------------- Pallas kernels ------------------------------

def _conv_block_kernel(x_ref, w1_ref, b1_ref, w2_ref, b2_ref, o_ref,
                       mid_ref, p1_ref, p2_ref, *, H, W):
    """Fused [conv3x3 'same' + ReLU] x 2 for one batch element.

    x_ref  : (H+2, W+2, Cin)   zero-padded input (NHWC, channels on lanes)
    w1_ref : (9*Cin,  Cmid) bf16    b1_ref: (1, Cmid) f32
    w2_ref : (9*Cmid, Cout) bf16    b2_ref: (1, Cout) f32
    o_ref  : (H, W, Cout)
    mid_ref: (H+2, W+2, Cmid) f32  VMEM scratch (intermediate, zero halo)
    p1_ref : (H*W, 9*Cin)  f32     VMEM scratch (im2col for conv1)
    p2_ref : (H*W, 9*Cmid) f32     VMEM scratch (im2col for conv2)
    """
    Cin = x_ref.shape[-1]
    Cmid = mid_ref.shape[-1]
    Cout = o_ref.shape[-1]

    # ---- conv1: im2col into VMEM scratch, one wide bf16 MXU matmul ----
    for dy in range(3):
        for dx in range(3):
            t = dy * 3 + dx
            p1_ref[:, t * Cin:(t + 1) * Cin] = (
                x_ref[dy:dy + H, dx:dx + W, :].reshape(H * W, Cin))
    a1 = jnp.dot(p1_ref[...].astype(jnp.bfloat16), w1_ref[...],
                 preferred_element_type=jnp.float32)
    a1 = jnp.maximum(a1 + b1_ref[...], 0.0)

    # ---- keep intermediate activation in VMEM with a zero halo ('same') ----
    mid_ref[...] = jnp.zeros_like(mid_ref)
    mid_ref[1:1 + H, 1:1 + W, :] = a1.reshape(H, W, Cmid)

    # ---- conv2 ----
    for dy in range(3):
        for dx in range(3):
            t = dy * 3 + dx
            p2_ref[:, t * Cmid:(t + 1) * Cmid] = (
                mid_ref[dy:dy + H, dx:dx + W, :].reshape(H * W, Cmid))
    a2 = jnp.dot(p2_ref[...].astype(jnp.bfloat16), w2_ref[...],
                 preferred_element_type=jnp.float32)
    a2 = jnp.maximum(a2 + b2_ref[...], 0.0)
    o_ref[...] = a2.reshape(H, W, Cout)


def conv_block(x_nhwc, w1, b1, w2, b2):
    """x_nhwc (B,H,W,Cin); w1 (9*Cin,Cmid) bf16; w2 (9*Cmid,Cout) bf16."""
    B, H, W, Cin = x_nhwc.shape
    Cmid = w1.shape[-1]
    Cout = w2.shape[-1]
    xp = jnp.pad(x_nhwc, ((0, 0), (1, 1), (1, 1), (0, 0)))
    kern = functools.partial(_conv_block_kernel, H=H, W=W)
    return pl.pallas_call(
        kern,
        out_shape=jax.ShapeDtypeStruct((B, H, W, Cout), jnp.float32),
        grid=(B,),
        in_specs=[
            pl.BlockSpec((None, H + 2, W + 2, Cin), lambda i: (i, 0, 0, 0)),
            pl.BlockSpec((9 * Cin, Cmid), lambda i: (0, 0)),
            pl.BlockSpec((1, Cmid), lambda i: (0, 0)),
            pl.BlockSpec((9 * Cmid, Cout), lambda i: (0, 0)),
            pl.BlockSpec((1, Cout), lambda i: (0, 0)),
        ],
        out_specs=pl.BlockSpec((None, H, W, Cout), lambda i: (i, 0, 0, 0)),
        scratch_shapes=[
            pltpu.VMEM((H + 2, W + 2, Cmid), jnp.float32),
            pltpu.VMEM((H * W, 9 * Cin), jnp.float32),
            pltpu.VMEM((H * W, 9 * Cmid), jnp.float32),
        ],
        compiler_params=pltpu.CompilerParams(
            dimension_semantics=("parallel",),
            vmem_limit_bytes=_VMEM_LIMIT,
        ),
    )(xp, w1, b1, w2, b2)


def _l1_sum_kernel(a_ref, b_ref, o_ref):
    """Accumulate sum(|a - b|) into a (1,1) VMEM accumulator across the grid."""
    @pl.when(pl.program_id(0) == 0)
    def _():
        o_ref[...] = jnp.zeros_like(o_ref)
    s = jnp.sum(jnp.abs(a_ref[...] - b_ref[...]))
    o_ref[...] = o_ref[...] + s


def l1_mean(a, b):
    """mean(|a - b|) == F.l1_loss(a, b); leading axis is the batch grid."""
    B = a.shape[0]
    rest = tuple(a.shape[1:])
    idx = lambda i: (i,) + (0,) * len(rest)
    spec = pl.BlockSpec((None,) + rest, idx)
    tot = pl.pallas_call(
        _l1_sum_kernel,
        out_shape=jax.ShapeDtypeStruct((1, 1), jnp.float32),
        grid=(B,),
        in_specs=[spec, spec],
        out_specs=pl.BlockSpec((1, 1), lambda i: (0, 0)),
        compiler_params=pltpu.CompilerParams(dimension_semantics=("arbitrary",)),
    )(a, b)
    return tot[0, 0] / a.size


def _feat_gram_l1_kernel(fin_t_ref, fin_ref, fout_t_ref, fout_ref,
                         feat_o_ref, gram_o_ref, *, scale):
    """Per batch element: accumulate sum|f_in - f_out| and sum|G_in - G_out|.

    fin_ref/fout_ref   : (HW, C)   features (row-major pixels, channels on lanes)
    fin_t_ref/fout_t_ref: (C, HW)  pre-transposed copies (so the MXU matmul is a
                                   plain (C,HW)x(HW,C) contraction)
    G = X^T X * scale  with scale = 1/(C*H*W)  — matches torch gram_matrix.
    """
    @pl.when(pl.program_id(0) == 0)
    def _():
        feat_o_ref[...] = jnp.zeros_like(feat_o_ref)
        gram_o_ref[...] = jnp.zeros_like(gram_o_ref)
    fi = fin_ref[...]
    fo = fout_ref[...]
    feat_o_ref[...] = feat_o_ref[...] + jnp.sum(jnp.abs(fi - fo))
    gi = jnp.dot(fin_t_ref[...], fi, preferred_element_type=jnp.float32)
    go = jnp.dot(fout_t_ref[...], fo, preferred_element_type=jnp.float32)
    gram_o_ref[...] = gram_o_ref[...] + jnp.sum(jnp.abs(gi - go)) * scale


def feat_and_gram_l1(f_in_nhwc, f_out_nhwc):
    """Returns (mean|f_in-f_out|, mean|gram(f_in)-gram(f_out)|) for one level."""
    B, H, W, C = f_in_nhwc.shape
    HW = H * W
    fi = f_in_nhwc.reshape(B, HW, C)
    fo = f_out_nhwc.reshape(B, HW, C)
    fit = jnp.transpose(fi, (0, 2, 1))
    fot = jnp.transpose(fo, (0, 2, 1))
    kern = functools.partial(_feat_gram_l1_kernel, scale=1.0 / (C * H * W))
    spec_t = pl.BlockSpec((None, C, HW), lambda i: (i, 0, 0))
    spec = pl.BlockSpec((None, HW, C), lambda i: (i, 0, 0))
    acc = pl.BlockSpec((1, 1), lambda i: (0, 0))
    feat_tot, gram_tot = pl.pallas_call(
        kern,
        out_shape=(jax.ShapeDtypeStruct((1, 1), jnp.float32),
                   jax.ShapeDtypeStruct((1, 1), jnp.float32)),
        grid=(B,),
        in_specs=[spec_t, spec, spec_t, spec],
        out_specs=(acc, acc),
        compiler_params=pltpu.CompilerParams(dimension_semantics=("arbitrary",)),
    )(fit, fi, fot, fo)
    feat_l1 = feat_tot[0, 0] / (B * HW * C)
    gram_l1 = gram_tot[0, 0] / (B * C * C)
    return feat_l1, gram_l1


# --------------------- m_feat stand-in (feature network) -------------------

def init_feature_net(key):
    """3 VGG-style blocks: (3->16,16->16), (16->32,32->32), (32->64,64->64).
    Weights stored pre-reshaped to (9*Cin, Cout) in bf16 for the MXU."""
    chans = [(3, 16, 16), (16, 32, 32), (32, 64, 64)]
    params = []
    keys = jax.random.split(key, len(chans))
    for (cin, cmid, cout), k in zip(chans, keys):
        k1, k2, k3, k4 = jax.random.split(k, 4)
        b1 = 1.0 / math.sqrt(cin * 9)
        b2 = 1.0 / math.sqrt(cmid * 9)
        params.append({
            'w1': jax.random.uniform(k1, (3, 3, cin, cmid), jnp.float32,
                                     -b1, b1).reshape(9 * cin, cmid).astype(jnp.bfloat16),
            'b1': jax.random.uniform(k2, (1, cmid), jnp.float32, -b1, b1),
            'w2': jax.random.uniform(k3, (3, 3, cmid, cout), jnp.float32,
                                     -b2, b2).reshape(9 * cmid, cout).astype(jnp.bfloat16),
            'b2': jax.random.uniform(k4, (1, cout), jnp.float32, -b2, b2),
        })
    return params


def _maxpool2x2_nhwc(x):
    B, H, W, C = x.shape
    return x.reshape(B, H // 2, 2, W // 2, 2, C).max(axis=(2, 4))


def extract_features(net_params, x_nchw):
    """m_feat(x) with hooks on each block output (hook_outputs emulation)."""
    x = jnp.transpose(x_nchw, (0, 2, 3, 1))       # NHWC, channels on lanes
    feats = []
    for i, p in enumerate(net_params):
        x = conv_block(x, p['w1'], p['b1'], p['w2'], p['b2'])
        feats.append(x)                           # hooked layer output
        if i + 1 < len(net_params):
            x = _maxpool2x2_nhwc(x)
    return feats


# ------------------------------ FeatureLoss --------------------------------

def feature_loss(net_params, inp_nchw, tgt_nchw, wgts=LAYER_WGTS):
    """FeatureLoss.forward(input, target) -> scalar total loss."""
    out_feat = extract_features(net_params, tgt_nchw)   # make_features(target, clone=True)
    in_feat = extract_features(net_params, inp_nchw)    # make_features(input)

    losses = [l1_mean(inp_nchw, tgt_nchw)]               # 'pixel'
    feat_terms, gram_terms = [], []
    for f_in, f_out, w in zip(in_feat, out_feat, wgts):
        fl1, gl1 = feat_and_gram_l1(f_in, f_out)
        feat_terms.append(fl1 * w)                       # 'feat_i'
        gram_terms.append(gl1 * (w ** 2) * 5000.0)       # 'gram_i'
    losses = losses + feat_terms + gram_terms            # metric order: pixel, feat_*, gram_*
    return sum(losses)


if __name__ == "__main__":
    key = jax.random.PRNGKey(0)
    pkey, ikey, tkey = jax.random.split(key, 3)
    net = init_feature_net(pkey)
    x = jax.random.normal(ikey, (2, 3, 16, 16), jnp.float32)   # input  (NCHW)
    y = jax.random.normal(tkey, (2, 3, 16, 16), jnp.float32)   # target (NCHW)
    loss = jax.jit(feature_loss)(net, x, y)
    loss = jax.block_until_ready(loss)
    assert loss.shape == (), loss.shape
    assert bool(jnp.isfinite(loss))
    print("KERNEL_OK")
</pallas_src>

<mosaic_0001>
module attributes {stable_mosaic.version = 11 : i64} {
  func.func @_l1_sum_kernel(%arg0: i32, %arg1: memref<1x3x16x16xf32, #tpu.memory_space<vmem>>, %arg2: memref<1x3x16x16xf32, #tpu.memory_space<vmem>>, %arg3: memref<1x1xf32, #tpu.memory_space<vmem>>) attributes {dimension_semantics = [#tpu.dimension_semantics<arbitrary>], iteration_bounds = array<i64: 2>, scalar_prefetch = 0 : i64, scratch_operands = 0 : i64, tpu.core_type = #tpu.core_type<tc>, window_params = [{transform_indices = @transform_0, window_bounds = array<i64: 1, 3, 16, 16>}, {transform_indices = @transform_1, window_bounds = array<i64: 1, 3, 16, 16>}, {pipeline_mode = #tpu.pipeline_mode<synchronous>, transform_indices = @transform_2, window_bounds = array<i64: 1, 1>}]} {
    %c0_i32 = arith.constant 0 : i32
    %0 = arith.cmpi eq, %arg0, %c0_i32 : i32
    %1 = arith.extui %0 : i1 to i32
    %c0_i32_0 = arith.constant 0 : i32
    %2 = arith.cmpi ne, %1, %c0_i32_0 : i32
    scf.if %2 {
      %cst_12 = arith.constant 0.000000e+00 : f32
      %17 = vector.broadcast %cst_12 : f32 to vector<1x1xf32>
      %c0_13 = arith.constant 0 : index
      %c0_14 = arith.constant 0 : index
      %18 = vector.load %arg3[%c0_13, %c0_14] : memref<1x1xf32, #tpu.memory_space<vmem>>, vector<1x1xf32>
      tpu.vector_store %arg3[%c0_13, %c0_14], %17 {strides = array<i32>} : memref<1x1xf32, #tpu.memory_space<vmem>>, vector<1x1xf32>,
    } else {
    }
    %c0 = arith.constant 0 : index
    %c0_1 = arith.constant 0 : index
    %c0_2 = arith.constant 0 : index
    %c0_3 = arith.constant 0 : index
    %3 = vector.load %arg1[%c0, %c0_1, %c0_2, %c0_3] : memref<1x3x16x16xf32, #tpu.memory_space<vmem>>, vector<1x3x16x16xf32>
    %4 = vector.shape_cast %3 : vector<1x3x16x16xf32> to vector<3x16x16xf32>
    %c0_4 = arith.constant 0 : index
    %c0_5 = arith.constant 0 : index
    %c0_6 = arith.constant 0 : index
    %c0_7 = arith.constant 0 : index
    %5 = vector.load %arg2[%c0_4, %c0_5, %c0_6, %c0_7] : memref<1x3x16x16xf32, #tpu.memory_space<vmem>>, vector<1x3x16x16xf32>
    %6 = vector.shape_cast %5 : vector<1x3x16x16xf32> to vector<3x16x16xf32>
    %7 = arith.subf %4, %6 : vector<3x16x16xf32>
    %8 = math.absf %7 : vector<3x16x16xf32>
    %9 = vector.shape_cast %8 : vector<3x16x16xf32> to vector<1x3x16x16xf32>
    %cst = arith.constant dense<0.000000e+00> : vector<1xf32>
    %10 = vector.multi_reduction <add>, %9, %cst [1, 2, 3] : vector<1x3x16x16xf32> to vector<1xf32>
    %11 = vector.shape_cast %10 : vector<1xf32> to vector<1x1x1x1xf32>
    %12 = vector.extract %11[0, 0, 0, 0] : f32 from vector<1x1x1x1xf32>
    %c0_8 = arith.constant 0 : index
    %c0_9 = arith.constant 0 : index
    %13 = vector.load %arg3[%c0_8, %c0_9] : memref<1x1xf32, #tpu.memory_space<vmem>>, vector<1x1xf32>
    %14 = vector.broadcast %12 : f32 to vector<1x1xf32>
    %15 = arith.addf %13, %14 : vector<1x1xf32>
    %c0_10 = arith.constant 0 : index
    %c0_11 = arith.constant 0 : index
    %16 = vector.load %arg3[%c0_10, %c0_11] : memref<1x1xf32, #tpu.memory_space<vmem>>, vector<1x1xf32>
    tpu.vector_store %arg3[%c0_10, %c0_11], %15 {strides = array<i32>} : memref<1x1xf32, #tpu.memory_space<vmem>>, vector<1x1xf32>,
    return
  }
  func.func @transform_0(%arg0: i32) -> (i32, i32, i32, i32) {
    %c0_i32 = arith.constant 0 : i32
    %c0_i32_0 = arith.constant 0 : i32
    %c0_i32_1 = arith.constant 0 : i32
    %c0_i32_2 = arith.constant 0 : i32
    return %arg0, %c0_i32, %c0_i32_0, %c0_i32_1 : i32, i32, i32, i32
  }
  func.func @transform_1(%arg0: i32) -> (i32, i32, i32, i32) {
    %c0_i32 = arith.constant 0 : i32
    %c0_i32_0 = arith.constant 0 : i32
    %c0_i32_1 = arith.constant 0 : i32
    %c0_i32_2 = arith.constant 0 : i32
    return %arg0, %c0_i32, %c0_i32_0, %c0_i32_1 : i32, i32, i32, i32
  }
  func.func @transform_2(%arg0: i32) -> (i32, i32) {
    %c0_i32 = arith.constant 0 : i32
    %c0_i32_0 = arith.constant 0 : i32
    %c0_i32_1 = arith.constant 0 : i32
    return %c0_i32, %c0_i32_0 : i32, i32
  }
}

module attributes {stable_mosaic.version = 11 : i64} {
  func.func @_conv_block_kernel(%arg0: i32, %arg1: memref<1x18x18x3xf32, #tpu.memory_space<vmem>>, %arg2: memref<27x16xbf16, #tpu.memory_space<vmem>>, %arg3: memref<1x16xf32, #tpu.memory_space<vmem>>, %arg4: memref<144x16xbf16, #tpu.memory_space<vmem>>, %arg5: memref<1x16xf32, #tpu.memory_space<vmem>>, %arg6: memref<1x16x16x16xf32, #tpu.memory_space<vmem>>, %arg7: memref<18x18x16xf32, #tpu.memory_space<vmem>>, %arg8: memref<256x27xf32, #tpu.memory_space<vmem>>, %arg9: memref<256x144xf32, #tpu.memory_space<vmem>>) attributes {dimension_semantics = [#tpu.dimension_semantics<parallel>], iteration_bounds = array<i64: 2>, scalar_prefetch = 0 : i64, scratch_operands = 3 : i64, tpu.core_type = #tpu.core_type<tc>, window_params = [{transform_indices = @transform_0, window_bounds = array<i64: 1, 18, 18, 3>}, {pipeline_mode = #tpu.pipeline_mode<synchronous>, transform_indices = @transform_1, window_bounds = array<i64: 27, 16>}, {pipeline_mode = #tpu.pipeline_mode<synchronous>, transform_indices = @transform_2, window_bounds = array<i64: 1, 16>}, {pipeline_mode = #tpu.pipeline_mode<synchronous>, transform_indices = @transform_3, window_bounds = array<i64: 144, 16>}, {pipeline_mode = #tpu.pipeline_mode<synchronous>, transform_indices = @transform_4, window_bounds = array<i64: 1, 16>}, {transform_indices = @transform_5, window_bounds = array<i64: 1, 16, 16, 16>}]} {
    %c0 = arith.constant 0 : index
    %c0_0 = arith.constant 0 : index
    %c0_1 = arith.constant 0 : index
    %c0_2 = arith.constant 0 : index
    %0 = vector.load %arg1[%c0, %c0_0, %c0_1, %c0_2] : memref<1x18x18x3xf32, #tpu.memory_space<vmem>>, vector<1x16x16x3xf32>
    %1 = vector.shape_cast %0 : vector<1x16x16x3xf32> to vector<16x16x3xf32>
    %2 = vector.shape_cast %1 : vector<16x16x3xf32> to vector<256x3xf32>
    %c0_3 = arith.constant 0 : index
    %c0_4 = arith.constant 0 : index
    %3 = vector.load %arg8[%c0_3, %c0_4] : memref<256x27xf32, #tpu.memory_space<vmem>>, vector<256x3xf32>
    tpu.vector_store %arg8[%c0_3, %c0_4], %2 {strides = array<i32>} : memref<256x27xf32, #tpu.memory_space<vmem>>, vector<256x3xf32>,
    %c0_5 = arith.constant 0 : index
    %c0_6 = arith.constant 0 : index
    %c1 = arith.constant 1 : index
    %c0_7 = arith.constant 0 : index
    %4 = vector.load %arg1[%c0_5, %c0_6, %c1, %c0_7] : memref<1x18x18x3xf32, #tpu.memory_space<vmem>>, vector<1x16x16x3xf32>
    %5 = vector.shape_cast %4 : vector<1x16x16x3xf32> to vector<16x16x3xf32>
    %6 = vector.shape_cast %5 : vector<16x16x3xf32> to vector<256x3xf32>
    %c0_8 = arith.constant 0 : index
    %c3 = arith.constant 3 : index
    %7 = vector.load %arg8[%c0_8, %c3] : memref<256x27xf32, #tpu.memory_space<vmem>>, vector<256x3xf32>
    tpu.vector_store %arg8[%c0_8, %c3], %6 {strides = array<i32>} : memref<256x27xf32, #tpu.memory_space<vmem>>, vector<256x3xf32>,
    %c0_9 = arith.constant 0 : index
    %c0_10 = arith.constant 0 : index
    %c2 = arith.constant 2 : index
    %c0_11 = arith.constant 0 : index
    %8 = vector.load %arg1[%c0_9, %c0_10, %c2, %c0_11] : memref<1x18x18x3xf32, #tpu.memory_space<vmem>>, vector<1x16x16x3xf32>
    %9 = vector.shape_cast %8 : vector<1x16x16x3xf32> to vector<16x16x3xf32>
    %10 = vector.shape_cast %9 : vector<16x16x3xf32> to vector<256x3xf32>
    %c0_12 = arith.constant 0 : index
    %c6 = arith.constant 6 : index
    %11 = vector.load %arg8[%c0_12, %c6] : memref<256x27xf32, #tpu.memory_space<vmem>>, vector<256x3xf32>
    tpu.vector_store %arg8[%c0_12, %c6], %10 {strides = array<i32>} : memref<256x27xf32, #tpu.memory_space<vmem>>, vector<256x3xf32>,
    %c0_13 = arith.constant 0 : index
    %c1_14 = arith.constant 1 : index
    %c0_15 = arith.constant 0 : index
    %c0_16 = arith.constant 0 : index
    %12 = vector.load %arg1[%c0_13, %c1_14, %c0_15, %c0_16] : memref<1x18x18x3xf32, #tpu.memory_space<vmem>>, vector<1x16x16x3xf32>
    %13 = vector.shape_cast %12 : vector<1x16x16x3xf32> to vector<16x16x3xf32>
    %14 = vector.shape_cast %13 : vector<16x16x3xf32> to vector<256x3xf32>
    %c0_17 = arith.constant 0 : index
    %c9 = arith.constant 9 : index
    %15 = vector.load %arg8[%c0_17, %c9] : memref<256x27xf32, #tpu.memory_space<vmem>>, vector<256x3xf32>
    tpu.vector_store %arg8[%c0_17, %c9], %14 {strides = array<i32>} : memref<256x27xf32, #tpu.memory_space<vmem>>, vector<256x3xf32>,
    %c0_18 = arith.constant 0 : index
    %c1_19 = arith.constant 1 : index
    %c1_20 = arith.constant 1 : index
    %c0_21 = arith.constant 0 : index
    %16 = vector.load %arg1[%c0_18, %c1_19, %c1_20, %c0_21] : memref<1x18x18x3xf32, #tpu.memory_space<vmem>>, vector<1x16x16x3xf32>
    %17 = vector.shape_cast %16 : vector<1x16x16x3xf32> to vector<16x16x3xf32>
    %18 = vector.shape_cast %17 : vector<16x16x3xf32> to vector<256x3xf32>
    %c0_22 = arith.constant 0 : index
    %c12 = arith.constant 12 : index
    %19 = vector.load %arg8[%c0_22, %c12] : memref<256x27xf32, #tpu.memory_space<vmem>>, vector<256x3xf32>
    tpu.vector_store %arg8[%c0_22, %c12], %18 {strides = array<i32>} : memref<256x27xf32, #tpu.memory_space<vmem>>, vector<256x3xf32>,
    %c0_23 = arith.constant 0 : index
    %c1_24 = arith.constant 1 : index
    %c2_25 = arith.constant 2 : index
    %c0_26 = arith.constant 0 : index
    %20 = vector.load %arg1[%c0_23, %c1_24, %c2_25, %c0_26] : memref<1x18x18x3xf32, #tpu.memory_space<vmem>>, vector<1x16x16x3xf32>
    %21 = vector.shape_cast %20 : vector<1x16x16x3xf32> to vector<16x16x3xf32>
    %22 = vector.shape_cast %21 : vector<16x16x3xf32> to vector<256x3xf32>
    %c0_27 = arith.constant 0 : index
    %c15 = arith.constant 15 : index
    %23 = vector.load %arg8[%c0_27, %c15] : memref<256x27xf32, #tpu.memory_space<vmem>>, vector<256x3xf32>
    tpu.vector_store %arg8[%c0_27, %c15], %22 {strides = array<i32>} : memref<256x27xf32, #tpu.memory_space<vmem>>, vector<256x3xf32>,
    %c0_28 = arith.constant 0 : index
    %c2_29 = arith.constant 2 : index
    %c0_30 = arith.constant 0 : index
    %c0_31 = arith.constant 0 : index
    %24 = vector.load %arg1[%c0_28, %c2_29, %c0_30, %c0_31] : memref<1x18x18x3xf32, #tpu.memory_space<vmem>>, vector<1x16x16x3xf32>
    %25 = vector.shape_cast %24 : vector<1x16x16x3xf32> to vector<16x16x3xf32>
    %26 = vector.shape_cast %25 : vector<16x16x3xf32> to vector<256x3xf32>
    %c0_32 = arith.constant 0 : index
    %c18 = arith.constant 18 : index
    %27 = vector.load %arg8[%c0_32, %c18] : memref<256x27xf32, #tpu.memory_space<vmem>>, vector<256x3xf32>
    tpu.vector_store %arg8[%c0_32, %c18], %26 {strides = array<i32>} : memref<256x27xf32, #tpu.memory_space<vmem>>, vector<256x3xf32>,
    %c0_33 = arith.constant 0 : index
    %c2_34 = arith.constant 2 : index
    %c1_35 = arith.constant 1 : index
    %c0_36 = arith.constant 0 : index
    %28 = vector.load %arg1[%c0_33, %c2_34, %c1_35, %c0_36] : memref<1x18x18x3xf32, #tpu.memory_space<vmem>>, vector<1x16x16x3xf32>
    %29 = vector.shape_cast %28 : vector<1x16x16x3xf32> to vector<16x16x3xf32>
    %30 = vector.shape_cast %29 : vector<16x16x3xf32> to vector<256x3xf32>
    %c0_37 = arith.constant 0 : index
    %c21 = arith.constant 21 : index
    %31 = vector.load %arg8[%c0_37, %c21] : memref<256x27xf32, #tpu.memory_space<vmem>>, vector<256x3xf32>
    tpu.vector_store %arg8[%c0_37, %c21], %30 {strides = array<i32>} : memref<256x27xf32, #tpu.memory_space<vmem>>, vector<256x3xf32>,
    %c0_38 = arith.constant 0 : index
    %c2_39 = arith.constant 2 : index
    %c2_40 = arith.constant 2 : index
    %c0_41 = arith.constant 0 : index
    %32 = vector.load %arg1[%c0_38, %c2_39, %c2_40, %c0_41] : memref<1x18x18x3xf32, #tpu.memory_space<vmem>>, vector<1x16x16x3xf32>
    %33 = vector.shape_cast %32 : vector<1x16x16x3xf32> to vector<16x16x3xf32>
    %34 = vector.shape_cast %33 : vector<16x16x3xf32> to vector<256x3xf32>
    %c0_42 = arith.constant 0 : index
    %c24 = arith.constant 24 : index
    %35 = vector.load %arg8[%c0_42, %c24] : memref<256x27xf32, #tpu.memory_space<vmem>>, vector<256x3xf32>
    tpu.vector_store %arg8[%c0_42, %c24], %34 {strides = array<i32>} : memref<256x27xf32, #tpu.memory_space<vmem>>, vector<256x3xf32>,
    %c0_43 = arith.constant 0 : index
    %c0_44 = arith.constant 0 : index
    %36 = vector.load %arg8[%c0_43, %c0_44] : memref<256x27xf32, #tpu.memory_space<vmem>>, vector<256x27xf32>
    %37 = arith.truncf %36 : vector<256x27xf32> to vector<256x27xbf16>
    %c0_45 = arith.constant 0 : index
    %c0_46 = arith.constant 0 : index
    %38 = vector.load %arg2[%c0_45, %c0_46] : memref<27x16xbf16, #tpu.memory_space<vmem>>, vector<27x16xbf16>
    %cst = arith.constant dense<0.000000e+00> : vector<256x16xf32>
    %39 = tpu.matmul %37, %38, %cst {dimension_numbers = #tpu.dot_dimension_numbers<[1], [0], [0], [1], [0, 0, 1, 1], [], []>} : vector<256x27xbf16>, vector<27x16xbf16>, vector<256x16xf32> -> vector<256x16xf32>
    %c0_47 = arith.constant 0 : index
    %c0_48 = arith.constant 0 : index
    %40 = vector.load %arg3[%c0_47, %c0_48] : memref<1x16xf32, #tpu.memory_space<vmem>>, vector<1x16xf32>
    %41 = vector.broadcast %40 : vector<1x16xf32> to vector<256x16xf32>
    %42 = arith.addf %39, %41 : vector<256x16xf32>
    %cst_49 = arith.constant 0.000000e+00 : f32
    %43 = vector.broadcast %cst_49 : f32 to vector<256x16xf32>
    %44 = arith.maximumf %42, %43 : vector<256x16xf32>
    %cst_50 = arith.constant 0.000000e+00 : f32
    %45 = vector.broadcast %cst_50 : f32 to vector<18x18x16xf32>
    %c0_51 = arith.constant 0 : index
    %c0_52 = arith.constant 0 : index
    %c0_53 = arith.constant 0 : index
    %46 = vector.load %arg7[%c0_51, %c0_52, %c0_53] : memref<18x18x16xf32, #tpu.memory_space<vmem>>, vector<18x18x16xf32>
    tpu.vector_store %arg7[%c0_51, %c0_52, %c0_53], %45 {strides = array<i32>} : memref<18x18x16xf32, #tpu.memory_space<vmem>>, vector<18x18x16xf32>,
    %47 = vector.shape_cast %44 : vector<256x16xf32> to vector<16x16x16xf32>
    %c1_54 = arith.constant 1 : index
    %c1_55 = arith.constant 1 : index
    %c0_56 = arith.constant 0 : index
    %48 = vector.load %arg7[%c1_54, %c1_55, %c0_56] : memref<18x18x16xf32, #tpu.memory_space<vmem>>, vector<16x16x16xf32>
    tpu.vector_store %arg7[%c1_54, %c1_55, %c0_56], %47 {strides = array<i32>} : memref<18x18x16xf32, #tpu.memory_space<vmem>>, vector<16x16x16xf32>,
    %c0_57 = arith.constant 0 : index
    %c0_58 = arith.constant 0 : index
    %c0_59 = arith.constant 0 : index
    %49 = vector.load %arg7[%c0_57, %c0_58, %c0_59] : memref<18x18x16xf32, #tpu.memory_space<vmem>>, vector<16x16x16xf32>
    %50 = vector.shape_cast %49 : vector<16x16x16xf32> to vector<256x16xf32>
    %c0_60 = arith.constant 0 : index
    %c0_61 = arith.constant 0 : index
    %51 = vector.load %arg9[%c0_60, %c0_61] : memref<256x144xf32, #tpu.memory_space<vmem>>, vector<256x16xf32>
    tpu.vector_store %arg9[%c0_60, %c0_61], %50 {strides = array<i32>} : memref<256x144xf32, #tpu.memory_space<vmem>>, vector<256x16xf32>,
    %c0_62 = arith.constant 0 : index
    %c1_63 = arith.constant 1 : index
    %c0_64 = arith.constant 0 : index
    %52 = vector.load %arg7[%c0_62, %c1_63, %c0_64] : memref<18x18x16xf32, #tpu.memory_space<vmem>>, vector<16x16x16xf32>
    %53 = vector.shape_cast %52 : vector<16x16x16xf32> to vector<256x16xf32>
    %c0_65 = arith.constant 0 : index
    %c16 = arith.constant 16 : index
    %54 = vector.load %arg9[%c0_65, %c16] : memref<256x144xf32, #tpu.memory_space<vmem>>, vector<256x16xf32>
    tpu.vector_store %arg9[%c0_65, %c16], %53 {strides = array<i32>} : memref<256x144xf32, #tpu.memory_space<vmem>>, vector<256x16xf32>,
    %c0_66 = arith.constant 0 : index
    %c2_67 = arith.constant 2 : index
    %c0_68 = arith.constant 0 : index
    %55 = vector.load %arg7[%c0_66, %c2_67, %c0_68] : memref<18x18x16xf32, #tpu.memory_space<vmem>>, vector<16x16x16xf32>
    %56 = vector.shape_cast %55 : vector<16x16x16xf32> to vector<256x16xf32>
    %c0_69 = arith.constant 0 : index
    %c32 = arith.constant 32 : index
    %57 = vector.load %arg9[%c0_69, %c32] : memref<256x144xf32, #tpu.memory_space<vmem>>, vector<256x16xf32>
    tpu.vector_store %arg9[%c0_69, %c32], %56 {strides = array<i32>} : memref<256x144xf32, #tpu.memory_space<vmem>>, vector<256x16xf32>,
    %c1_70 = arith.constant 1 : index
    %c0_71 = arith.constant 0 : index
    %c0_72 = arith.constant 0 : index
    %58 = vector.load %arg7[%c1_70, %c0_71, %c0_72] : memref<18x18x16xf32, #tpu.memory_space<vmem>>, vector<16x16x16xf32>
    %59 = vector.shape_cast %58 : vector<16x16x16xf32> to vector<256x16xf32>
    %c0_73 = arith.constant 0 : index
    %c48 = arith.constant 48 : index
    %60 = vector.load %arg9[%c0_73, %c48] : memref<256x144xf32, #tpu.memory_space<vmem>>, vector<256x16xf32>
    tpu.vector_store %arg9[%c0_73, %c48], %59 {strides = array<i32>} : memref<256x144xf32, #tpu.memory_space<vmem>>, vector<256x16xf32>,
    %c1_74 = arith.constant 1 : index
    %c1_75 = arith.constant 1 : index
    %c0_76 = arith.constant 0 : index
    %61 = vector.load %arg7[%c1_74, %c1_75, %c0_76] : memref<18x18x16xf32, #tpu.memory_space<vmem>>, vector<16x16x16xf32>
    %62 = vector.shape_cast %61 : vector<16x16x16xf32> to vector<256x16xf32>
    %c0_77 = arith.constant 0 : index
    %c64 = arith.constant 64 : index
    %63 = vector.load %arg9[%c0_77, %c64] : memref<256x144xf32, #tpu.memory_space<vmem>>, vector<256x16xf32>
    tpu.vector_store %arg9[%c0_77, %c64], %62 {strides = array<i32>} : memref<256x144xf32, #tpu.memory_space<vmem>>, vector<256x16xf32>,
    %c1_78 = arith.constant 1 : index
    %c2_79 = arith.constant 2 : index
    %c0_80 = arith.constant 0 : index
    %64 = vector.load %arg7[%c1_78, %c2_79, %c0_80] : memref<18x18x16xf32, #tpu.memory_space<vmem>>, vector<16x16x16xf32>
    %65 = vector.shape_cast %64 : vector<16x16x16xf32> to vector<256x16xf32>
    %c0_81 = arith.constant 0 : index
    %c80 = arith.constant 80 : index
    %66 = vector.load %arg9[%c0_81, %c80] : memref<256x144xf32, #tpu.memory_space<vmem>>, vector<256x16xf32>
    tpu.vector_store %arg9[%c0_81, %c80], %65 {strides = array<i32>} : memref<256x144xf32, #tpu.memory_space<vmem>>, vector<256x16xf32>,
    %c2_82 = arith.constant 2 : index
    %c0_83 = arith.constant 0 : index
    %c0_84 = arith.constant 0 : index
    %67 = vector.load %arg7[%c2_82, %c0_83, %c0_84] : memref<18x18x16xf32, #tpu.memory_space<vmem>>, vector<16x16x16xf32>
    %68 = vector.shape_cast %67 : vector<16x16x16xf32> to vector<256x16xf32>
    %c0_85 = arith.constant 0 : index
    %c96 = arith.constant 96 : index
    %69 = vector.load %arg9[%c0_85, %c96] : memref<256x144xf32, #tpu.memory_space<vmem>>, vector<256x16xf32>
    tpu.vector_store %arg9[%c0_85, %c96], %68 {strides = array<i32>} : memref<256x144xf32, #tpu.memory_space<vmem>>, vector<256x16xf32>,
    %c2_86 = arith.constant 2 : index
    %c1_87 = arith.constant 1 : index
    %c0_88 = arith.constant 0 : index
    %70 = vector.load %arg7[%c2_86, %c1_87, %c0_88] : memref<18x18x16xf32, #tpu.memory_space<vmem>>, vector<16x16x16xf32>
    %71 = vector.shape_cast %70 : vector<16x16x16xf32> to vector<256x16xf32>
    %c0_89 = arith.constant 0 : index
    %c112 = arith.constant 112 : index
    %72 = vector.load %arg9[%c0_89, %c112] : memref<256x144xf32, #tpu.memory_space<vmem>>, vector<256x16xf32>
    tpu.vector_store %arg9[%c0_89, %c112], %71 {strides = array<i32>} : memref<256x144xf32, #tpu.memory_space<vmem>>, vector<256x16xf32>,
    %c2_90 = arith.constant 2 : index
    %c2_91 = arith.constant 2 : index
    %c0_92 = arith.constant 0 : index
    %73 = vector.load %arg7[%c2_90, %c2_91, %c0_92] : memref<18x18x16xf32, #tpu.memory_space<vmem>>, vector<16x16x16xf32>
    %74 = vector.shape_cast %73 : vector<16x16x16xf32> to vector<256x16xf32>
    %c0_93 = arith.constant 0 : index
    %c128 = arith.constant 128 : index
    %75 = vector.load %arg9[%c0_93, %c128] : memref<256x144xf32, #tpu.memory_space<vmem>>, vector<256x16xf32>
    tpu.vector_store %arg9[%c0_93, %c128], %74 {strides = array<i32>} : memref<256x144xf32, #tpu.memory_space<vmem>>, vector<256x16xf32>,
    %c0_94 = arith.constant 0 : index
    %c0_95 = arith.constant 0 : index
    %76 = vector.load %arg9[%c0_94, %c0_95] : memref<256x144xf32, #tpu.memory_space<vmem>>, vector<256x144xf32>
    %77 = arith.truncf %76 : vector<256x144xf32> to vector<256x144xbf16>
    %c0_96 = arith.constant 0 : index
    %c0_97 = arith.constant 0 : index
    %78 = vector.load %arg4[%c0_96, %c0_97] : memref<144x16xbf16, #tpu.memory_space<vmem>>, vector<144x16xbf16>
    %cst_98 = arith.constant dense<0.000000e+00> : vector<256x16xf32>
    %79 = tpu.matmul %77, %78, %cst_98 {dimension_numbers = #tpu.dot_dimension_numbers<[1], [0], [0], [1], [0, 0, 1, 1], [], []>} : vector<256x144xbf16>, vector<144x16xbf16>, vector<256x16xf32> -> vector<256x16xf32>
    %c0_99 = arith.constant 0 : index
    %c0_100 = arith.constant 0 : index
    %80 = vector.load %arg5[%c0_99, %c0_100] : memref<1x16xf32, #tpu.memory_space<vmem>>, vector<1x16xf32>
    %81 = vector.broadcast %80 : vector<1x16xf32> to vector<256x16xf32>
    %82 = arith.addf %79, %81 : vector<256x16xf32>
    %cst_101 = arith.constant 0.000000e+00 : f32
    %83 = vector.broadcast %cst_101 : f32 to vector<256x16xf32>
    %84 = arith.maximumf %82, %83 : vector<256x16xf32>
    %85 = vector.shape_cast %84 : vector<256x16xf32> to vector<16x16x16xf32>
    %c0_102 = arith.constant 0 : index
    %c0_103 = arith.constant 0 : index
    %c0_104 = arith.constant 0 : index
    %c0_105 = arith.constant 0 : index
    %86 = vector.load %arg6[%c0_102, %c0_103, %c0_104, %c0_105] : memref<1x16x16x16xf32, #tpu.memory_space<vmem>>, vector<1x16x16x16xf32>
    %87 = vector.shape_cast %86 : vector<1x16x16x16xf32> to vector<16x16x16xf32>
    %88 = vector.shape_cast %85 : vector<16x16x16xf32> to vector<1x16x16x16xf32>
    tpu.vector_store %arg6[%c0_102, %c0_103, %c0_104, %c0_105], %88 {strides = array<i32>} : memref<1x16x16x16xf32, #tpu.memory_space<vmem>>, vector<1x16x16x16xf32>,
    return
  }
  func.func @transform_0(%arg0: i32) -> (i32, i32, i32, i32) {
    %c0_i32 = arith.constant 0 : i32
    %c0_i32_0 = arith.constant 0 : i32
    %c0_i32_1 = arith.constant 0 : i32
    %c0_i32_2 = arith.constant 0 : i32
    return %arg0, %c0_i32, %c0_i32_0, %c0_i32_1 : i32, i32, i32, i32
  }
  func.func @transform_1(%arg0: i32) -> (i32, i32) {
    %c0_i32 = arith.constant 0 : i32
    %c0_i32_0 = arith.constant 0 : i32
    %c0_i32_1 = arith.constant 0 : i32
    return %c0_i32, %c0_i32_0 : i32, i32
  }
  func.func @transform_2(%arg0: i32) -> (i32, i32) {
    %c0_i32 = arith.constant 0 : i32
    %c0_i32_0 = arith.constant 0 : i32
    %c0_i32_1 = arith.constant 0 : i32
    return %c0_i32, %c0_i32_0 : i32, i32
  }
  func.func @transform_3(%arg0: i32) -> (i32, i32) {
    %c0_i32 = arith.constant 0 : i32
    %c0_i32_0 = arith.constant 0 : i32
    %c0_i32_1 = arith.constant 0 : i32
    return %c0_i32, %c0_i32_0 : i32, i32
  }
  func.func @transform_4(%arg0: i32) -> (i32, i32) {
    %c0_i32 = arith.constant 0 : i32
    %c0_i32_0 = arith.constant 0 : i32
    %c0_i32_1 = arith.constant 0 : i32
    return %c0_i32, %c0_i32_0 : i32, i32
  }
  func.func @transform_5(%arg0: i32) -> (i32, i32, i32, i32) {
    %c0_i32 = arith.constant 0 : i32
    %c0_i32_0 = arith.constant 0 : i32
    %c0_i32_1 = arith.constant 0 : i32
    %c0_i32_2 = arith.constant 0 : i32
    return %arg0, %c0_i32, %c0_i32_0, %c0_i32_1 : i32, i32, i32, i32
  }
}

module attributes {stable_mosaic.version = 11 : i64} {
  func.func @_feat_gram_l1_kernel(%arg0: i32, %arg1: memref<1x16x256xf32, #tpu.memory_space<vmem>>, %arg2: memref<1x256x16xf32, #tpu.memory_space<vmem>>, %arg3: memref<1x16x256xf32, #tpu.memory_space<vmem>>, %arg4: memref<1x256x16xf32, #tpu.memory_space<vmem>>, %arg5: memref<1x1xf32, #tpu.memory_space<vmem>>, %arg6: memref<1x1xf32, #tpu.memory_space<vmem>>) attributes {dimension_semantics = [#tpu.dimension_semantics<arbitrary>], iteration_bounds = array<i64: 2>, scalar_prefetch = 0 : i64, scratch_operands = 0 : i64, tpu.core_type = #tpu.core_type<tc>, window_params = [{transform_indices = @transform_0, window_bounds = array<i64: 1, 16, 256>}, {transform_indices = @transform_1, window_bounds = array<i64: 1, 256, 16>}, {transform_indices = @transform_2, window_bounds = array<i64: 1, 16, 256>}, {transform_indices = @transform_3, window_bounds = array<i64: 1, 256, 16>}, {pipeline_mode = #tpu.pipeline_mode<synchronous>, transform_indices = @transform_4, window_bounds = array<i64: 1, 1>}, {pipeline_mode = #tpu.pipeline_mode<synchronous>, transform_indices = @transform_5, window_bounds = array<i64: 1, 1>}]} {
    %c0_i32 = arith.constant 0 : i32
    %0 = arith.cmpi eq, %arg0, %c0_i32 : i32
    %1 = arith.extui %0 : i1 to i32
    %c0_i32_0 = arith.constant 0 : i32
    %2 = arith.cmpi ne, %1, %c0_i32_0 : i32
    scf.if %2 {
      %cst_24 = arith.constant 0.000000e+00 : f32
      %34 = vector.broadcast %cst_24 : f32 to vector<1x1xf32>
      %c0_25 = arith.constant 0 : index
      %c0_26 = arith.constant 0 : index
      %35 = vector.load %arg5[%c0_25, %c0_26] : memref<1x1xf32, #tpu.memory_space<vmem>>, vector<1x1xf32>
      tpu.vector_store %arg5[%c0_25, %c0_26], %34 {strides = array<i32>} : memref<1x1xf32, #tpu.memory_space<vmem>>, vector<1x1xf32>,
      %cst_27 = arith.constant 0.000000e+00 : f32
      %36 = vector.broadcast %cst_27 : f32 to vector<1x1xf32>
      %c0_28 = arith.constant 0 : index
      %c0_29 = arith.constant 0 : index
      %37 = vector.load %arg6[%c0_28, %c0_29] : memref<1x1xf32, #tpu.memory_space<vmem>>, vector<1x1xf32>
      tpu.vector_store %arg6[%c0_28, %c0_29], %36 {strides = array<i32>} : memref<1x1xf32, #tpu.memory_space<vmem>>, vector<1x1xf32>,
    } else {
    }
    %c0 = arith.constant 0 : index
    %c0_1 = arith.constant 0 : index
    %c0_2 = arith.constant 0 : index
    %3 = vector.load %arg2[%c0, %c0_1, %c0_2] : memref<1x256x16xf32, #tpu.memory_space<vmem>>, vector<1x256x16xf32>
    %4 = vector.shape_cast %3 : vector<1x256x16xf32> to vector<256x16xf32>
    %c0_3 = arith.constant 0 : index
    %c0_4 = arith.constant 0 : index
    %c0_5 = arith.constant 0 : index
    %5 = vector.load %arg4[%c0_3, %c0_4, %c0_5] : memref<1x256x16xf32, #tpu.memory_space<vmem>>, vector<1x256x16xf32>
    %6 = vector.shape_cast %5 : vector<1x256x16xf32> to vector<256x16xf32>
    %c0_6 = arith.constant 0 : index
    %c0_7 = arith.constant 0 : index
    %7 = vector.load %arg5[%c0_6, %c0_7] : memref<1x1xf32, #tpu.memory_space<vmem>>, vector<1x1xf32>
    %8 = arith.subf %4, %6 : vector<256x16xf32>
    %9 = math.absf %8 : vector<256x16xf32>
    %10 = vector.shape_cast %9 : vector<256x16xf32> to vector<1x256x16xf32>
    %cst = arith.constant dense<0.000000e+00> : vector<1xf32>
    %11 = vector.multi_reduction <add>, %10, %cst [1, 2] : vector<1x256x16xf32> to vector<1xf32>
    %12 = vector.shape_cast %11 : vector<1xf32> to vector<1x1x1xf32>
    %13 = vector.extract %12[0, 0, 0] : f32 from vector<1x1x1xf32>
    %14 = vector.broadcast %13 : f32 to vector<1x1xf32>
    %15 = arith.addf %7, %14 : vector<1x1xf32>
    %c0_8 = arith.constant 0 : index
    %c0_9 = arith.constant 0 : index
    %16 = vector.load %arg5[%c0_8, %c0_9] : memref<1x1xf32, #tpu.memory_space<vmem>>, vector<1x1xf32>
    tpu.vector_store %arg5[%c0_8, %c0_9], %15 {strides = array<i32>} : memref<1x1xf32, #tpu.memory_space<vmem>>, vector<1x1xf32>,
    %c0_10 = arith.constant 0 : index
    %c0_11 = arith.constant 0 : index
    %c0_12 = arith.constant 0 : index
    %17 = vector.load %arg1[%c0_10, %c0_11, %c0_12] : memref<1x16x256xf32, #tpu.memory_space<vmem>>, vector<1x16x256xf32>
    %18 = vector.shape_cast %17 : vector<1x16x256xf32> to vector<16x256xf32>
    %cst_13 = arith.constant dense<0.000000e+00> : vector<16x16xf32>
    %19 = tpu.matmul %18, %4, %cst_13 {dimension_numbers = #tpu.dot_dimension_numbers<[1], [0], [0], [1], [0, 0, 1, 1], [], []>} : vector<16x256xf32>, vector<256x16xf32>, vector<16x16xf32> -> vector<16x16xf32>
    %c0_14 = arith.constant 0 : index
    %c0_15 = arith.constant 0 : index
    %c0_16 = arith.constant 0 : index
    %20 = vector.load %arg3[%c0_14, %c0_15, %c0_16] : memref<1x16x256xf32, #tpu.memory_space<vmem>>, vector<1x16x256xf32>
    %21 = vector.shape_cast %20 : vector<1x16x256xf32> to vector<16x256xf32>
    %cst_17 = arith.constant dense<0.000000e+00> : vector<16x16xf32>
    %22 = tpu.matmul %21, %6, %cst_17 {dimension_numbers = #tpu.dot_dimension_numbers<[1], [0], [0], [1], [0, 0, 1, 1], [], []>} : vector<16x256xf32>, vector<256x16xf32>, vector<16x16xf32> -> vector<16x16xf32>
    %c0_18 = arith.constant 0 : index
    %c0_19 = arith.constant 0 : index
    %23 = vector.load %arg6[%c0_18, %c0_19] : memref<1x1xf32, #tpu.memory_space<vmem>>, vector<1x1xf32>
    %24 = arith.subf %19, %22 : vector<16x16xf32>
    %25 = math.absf %24 : vector<16x16xf32>
    %26 = vector.shape_cast %25 : vector<16x16xf32> to vector<1x16x16xf32>
    %cst_20 = arith.constant dense<0.000000e+00> : vector<1xf32>
    %27 = vector.multi_reduction <add>, %26, %cst_20 [1, 2] : vector<1x16x16xf32> to vector<1xf32>
    %28 = vector.shape_cast %27 : vector<1xf32> to vector<1x1x1xf32>
    %29 = vector.extract %28[0, 0, 0] : f32 from vector<1x1x1xf32>
    %cst_21 = arith.constant 2.44140625E-4 : f32
    %30 = arith.mulf %29, %cst_21 : f32
    %31 = vector.broadcast %30 : f32 to vector<1x1xf32>
    %32 = arith.addf %23, %31 : vector<1x1xf32>
    %c0_22 = arith.constant 0 : index
    %c0_23 = arith.constant 0 : index
    %33 = vector.load %arg6[%c0_22, %c0_23] : memref<1x1xf32, #tpu.memory_space<vmem>>, vector<1x1xf32>
    tpu.vector_store %arg6[%c0_22, %c0_23], %32 {strides = array<i32>} : memref<1x1xf32, #tpu.memory_space<vmem>>, vector<1x1xf32>,
    return
  }
  func.func @transform_0(%arg0: i32) -> (i32, i32, i32) {
    %c0_i32 = arith.constant 0 : i32
    %c0_i32_0 = arith.constant 0 : i32
    %c0_i32_1 = arith.constant 0 : i32
    return %arg0, %c0_i32, %c0_i32_0 : i32, i32, i32
  }
  func.func @transform_1(%arg0: i32) -> (i32, i32, i32) {
    %c0_i32 = arith.constant 0 : i32
    %c0_i32_0 = arith.constant 0 : i32
    %c0_i32_1 = arith.constant 0 : i32
    return %arg0, %c0_i32, %c0_i32_0 : i32, i32, i32
  }
  func.func @transform_2(%arg0: i32) -> (i32, i32, i32) {
    %c0_i32 = arith.constant 0 : i32
    %c0_i32_0 = arith.constant 0 : i32
    %c0_i32_1 = arith.constant 0 : i32
    return %arg0, %c0_i32, %c0_i32_0 : i32, i32, i32
  }
  func.func @transform_3(%arg0: i32) -> (i32, i32, i32) {
    %c0_i32 = arith.constant 0 : i32
    %c0_i32_0 = arith.constant 0 : i32
    %c0_i32_1 = arith.constant 0 : i32
    return %arg0, %c0_i32, %c0_i32_0 : i32, i32, i32
  }
  func.func @transform_4(%arg0: i32) -> (i32, i32) {
    %c0_i32 = arith.constant 0 : i32
    %c0_i32_0 = arith.constant 0 : i32
    %c0_i32_1 = arith.constant 0 : i32
    return %c0_i32, %c0_i32_0 : i32, i32
  }
  func.func @transform_5(%arg0: i32) -> (i32, i32) {
    %c0_i32 = arith.constant 0 : i32
    %c0_i32_0 = arith.constant 0 : i32
    %c0_i32_1 = arith.constant 0 : i32
    return %c0_i32, %c0_i32_0 : i32, i32
  }
}

module attributes {stable_mosaic.version = 11 : i64} {
  func.func @_conv_block_kernel(%arg0: i32, %arg1: memref<1x10x10x16xf32, #tpu.memory_space<vmem>>, %arg2: memref<144x32xbf16, #tpu.memory_space<vmem>>, %arg3: memref<1x32xf32, #tpu.memory_space<vmem>>, %arg4: memref<288x32xbf16, #tpu.memory_space<vmem>>, %arg5: memref<1x32xf32, #tpu.memory_space<vmem>>, %arg6: memref<1x8x8x32xf32, #tpu.memory_space<vmem>>, %arg7: memref<10x10x32xf32, #tpu.memory_space<vmem>>, %arg8: memref<64x144xf32, #tpu.memory_space<vmem>>, %arg9: memref<64x288xf32, #tpu.memory_space<vmem>>) attributes {dimension_semantics = [#tpu.dimension_semantics<parallel>], iteration_bounds = array<i64: 2>, scalar_prefetch = 0 : i64, scratch_operands = 3 : i64, tpu.core_type = #tpu.core_type<tc>, window_params = [{transform_indices = @transform_0, window_bounds = array<i64: 1, 10, 10, 16>}, {pipeline_mode = #tpu.pipeline_mode<synchronous>, transform_indices = @transform_1, window_bounds = array<i64: 144, 32>}, {pipeline_mode = #tpu.pipeline_mode<synchronous>, transform_indices = @transform_2, window_bounds = array<i64: 1, 32>}, {pipeline_mode = #tpu.pipeline_mode<synchronous>, transform_indices = @transform_3, window_bounds = array<i64: 288, 32>}, {pipeline_mode = #tpu.pipeline_mode<synchronous>, transform_indices = @transform_4, window_bounds = array<i64: 1, 32>}, {transform_indices = @transform_5, window_bounds = array<i64: 1, 8, 8, 32>}]} {
    %c0 = arith.constant 0 : index
    %c0_0 = arith.constant 0 : index
    %c0_1 = arith.constant 0 : index
    %c0_2 = arith.constant 0 : index
    %0 = vector.load %arg1[%c0, %c0_0, %c0_1, %c0_2] : memref<1x10x10x16xf32, #tpu.memory_space<vmem>>, vector<1x8x8x16xf32>
    %1 = vector.shape_cast %0 : vector<1x8x8x16xf32> to vector<8x8x16xf32>
    %2 = vector.shape_cast %1 : vector<8x8x16xf32> to vector<64x16xf32>
    %c0_3 = arith.constant 0 : index
    %c0_4 = arith.constant 0 : index
    %3 = vector.load %arg8[%c0_3, %c0_4] : memref<64x144xf32, #tpu.memory_space<vmem>>, vector<64x16xf32>
    tpu.vector_store %arg8[%c0_3, %c0_4], %2 {strides = array<i32>} : memref<64x144xf32, #tpu.memory_space<vmem>>, vector<64x16xf32>,
    %c0_5 = arith.constant 0 : index
    %c0_6 = arith.constant 0 : index
    %c1 = arith.constant 1 : index
    %c0_7 = arith.constant 0 : index
    %4 = vector.load %arg1[%c0_5, %c0_6, %c1, %c0_7] : memref<1x10x10x16xf32, #tpu.memory_space<vmem>>, vector<1x8x8x16xf32>
    %5 = vector.shape_cast %4 : vector<1x8x8x16xf32> to vector<8x8x16xf32>
    %6 = vector.shape_cast %5 : vector<8x8x16xf32> to vector<64x16xf32>
    %c0_8 = arith.constant 0 : index
    %c16 = arith.constant 16 : index
    %7 = vector.load %arg8[%c0_8, %c16] : memref<64x144xf32, #tpu.memory_space<vmem>>, vector<64x16xf32>
    tpu.vector_store %arg8[%c0_8, %c16], %6 {strides = array<i32>} : memref<64x144xf32, #tpu.memory_space<vmem>>, vector<64x16xf32>,
    %c0_9 = arith.constant 0 : index
    %c0_10 = arith.constant 0 : index
    %c2 = arith.constant 2 : index
    %c0_11 = arith.constant 0 : index
    %8 = vector.load %arg1[%c0_9, %c0_10, %c2, %c0_11] : memref<1x10x10x16xf32, #tpu.memory_space<vmem>>, vector<1x8x8x16xf32>
    %9 = vector.shape_cast %8 : vector<1x8x8x16xf32> to vector<8x8x16xf32>
    %10 = vector.shape_cast %9 : vector<8x8x16xf32> to vector<64x16xf32>
    %c0_12 = arith.constant 0 : index
    %c32 = arith.constant 32 : index
    %11 = vector.load %arg8[%c0_12, %c32] : memref<64x144xf32, #tpu.memory_space<vmem>>, vector<64x16xf32>
    tpu.vector_store %arg8[%c0_12, %c32], %10 {strides = array<i32>} : memref<64x144xf32, #tpu.memory_space<vmem>>, vector<64x16xf32>,
    %c0_13 = arith.constant 0 : index
    %c1_14 = arith.constant 1 : index
    %c0_15 = arith.constant 0 : index
    %c0_16 = arith.constant 0 : index
    %12 = vector.load %arg1[%c0_13, %c1_14, %c0_15, %c0_16] : memref<1x10x10x16xf32, #tpu.memory_space<vmem>>, vector<1x8x8x16xf32>
    %13 = vector.shape_cast %12 : vector<1x8x8x16xf32> to vector<8x8x16xf32>
    %14 = vector.shape_cast %13 : vector<8x8x16xf32> to vector<64x16xf32>
    %c0_17 = arith.constant 0 : index
    %c48 = arith.constant 48 : index
    %15 = vector.load %arg8[%c0_17, %c48] : memref<64x144xf32, #tpu.memory_space<vmem>>, vector<64x16xf32>
    tpu.vector_store %arg8[%c0_17, %c48], %14 {strides = array<i32>} : memref<64x144xf32, #tpu.memory_space<vmem>>, vector<64x16xf32>,
    %c0_18 = arith.constant 0 : index
    %c1_19 = arith.constant 1 : index
    %c1_20 = arith.constant 1 : index
    %c0_21 = arith.constant 0 : index
    %16 = vector.load %arg1[%c0_18, %c1_19, %c1_20, %c0_21] : memref<1x10x10x16xf32, #tpu.memory_space<vmem>>, vector<1x8x8x16xf32>
    %17 = vector.shape_cast %16 : vector<1x8x8x16xf32> to vector<8x8x16xf32>
    %18 = vector.shape_cast %17 : vector<8x8x16xf32> to vector<64x16xf32>
    %c0_22 = arith.constant 0 : index
    %c64 = arith.constant 64 : index
    %19 = vector.load %arg8[%c0_22, %c64] : memref<64x144xf32, #tpu.memory_space<vmem>>, vector<64x16xf32>
    tpu.vector_store %arg8[%c0_22, %c64], %18 {strides = array<i32>} : memref<64x144xf32, #tpu.memory_space<vmem>>, vector<64x16xf32>,
    %c0_23 = arith.constant 0 : index
    %c1_24 = arith.constant 1 : index
    %c2_25 = arith.constant 2 : index
    %c0_26 = arith.constant 0 : index
    %20 = vector.load %arg1[%c0_23, %c1_24, %c2_25, %c0_26] : memref<1x10x10x16xf32, #tpu.memory_space<vmem>>, vector<1x8x8x16xf32>
    %21 = vector.shape_cast %20 : vector<1x8x8x16xf32> to vector<8x8x16xf32>
    %22 = vector.shape_cast %21 : vector<8x8x16xf32> to vector<64x16xf32>
    %c0_27 = arith.constant 0 : index
    %c80 = arith.constant 80 : index
    %23 = vector.load %arg8[%c0_27, %c80] : memref<64x144xf32, #tpu.memory_space<vmem>>, vector<64x16xf32>
    tpu.vector_store %arg8[%c0_27, %c80], %22 {strides = array<i32>} : memref<64x144xf32, #tpu.memory_space<vmem>>, vector<64x16xf32>,
    %c0_28 = arith.constant 0 : index
    %c2_29 = arith.constant 2 : index
    %c0_30 = arith.constant 0 : index
    %c0_31 = arith.constant 0 : index
    %24 = vector.load %arg1[%c0_28, %c2_29, %c0_30, %c0_31] : memref<1x10x10x16xf32, #tpu.memory_space<vmem>>, vector<1x8x8x16xf32>
    %25 = vector.shape_cast %24 : vector<1x8x8x16xf32> to vector<8x8x16xf32>
    %26 = vector.shape_cast %25 : vector<8x8x16xf32> to vector<64x16xf32>
    %c0_32 = arith.constant 0 : index
    %c96 = arith.constant 96 : index
    %27 = vector.load %arg8[%c0_32, %c96] : memref<64x144xf32, #tpu.memory_space<vmem>>, vector<64x16xf32>
    tpu.vector_store %arg8[%c0_32, %c96], %26 {strides = array<i32>} : memref<64x144xf32, #tpu.memory_space<vmem>>, vector<64x16xf32>,
    %c0_33 = arith.constant 0 : index
    %c2_34 = arith.constant 2 : index
    %c1_35 = arith.constant 1 : index
    %c0_36 = arith.constant 0 : index
    %28 = vector.load %arg1[%c0_33, %c2_34, %c1_35, %c0_36] : memref<1x10x10x16xf32, #tpu.memory_space<vmem>>, vector<1x8x8x16xf32>
    %29 = vector.shape_cast %28 : vector<1x8x8x16xf32> to vector<8x8x16xf32>
    %30 = vector.shape_cast %29 : vector<8x8x16xf32> to vector<64x16xf32>
    %c0_37 = arith.constant 0 : index
    %c112 = arith.constant 112 : index
    %31 = vector.load %arg8[%c0_37, %c112] : memref<64x144xf32, #tpu.memory_space<vmem>>, vector<64x16xf32>
    tpu.vector_store %arg8[%c0_37, %c112], %30 {strides = array<i32>} : memref<64x144xf32, #tpu.memory_space<vmem>>, vector<64x16xf32>,
    %c0_38 = arith.constant 0 : index
    %c2_39 = arith.constant 2 : index
    %c2_40 = arith.constant 2 : index
    %c0_41 = arith.constant 0 : index
    %32 = vector.load %arg1[%c0_38, %c2_39, %c2_40, %c0_41] : memref<1x10x10x16xf32, #tpu.memory_space<vmem>>, vector<1x8x8x16xf32>
    %33 = vector.shape_cast %32 : vector<1x8x8x16xf32> to vector<8x8x16xf32>
    %34 = vector.shape_cast %33 : vector<8x8x16xf32> to vector<64x16xf32>
    %c0_42 = arith.constant 0 : index
    %c128 = arith.constant 128 : index
    %35 = vector.load %arg8[%c0_42, %c128] : memref<64x144xf32, #tpu.memory_space<vmem>>, vector<64x16xf32>
    tpu.vector_store %arg8[%c0_42, %c128], %34 {strides = array<i32>} : memref<64x144xf32, #tpu.memory_space<vmem>>, vector<64x16xf32>,
    %c0_43 = arith.constant 0 : index
    %c0_44 = arith.constant 0 : index
    %36 = vector.load %arg8[%c0_43, %c0_44] : memref<64x144xf32, #tpu.memory_space<vmem>>, vector<64x144xf32>
    %37 = arith.truncf %36 : vector<64x144xf32> to vector<64x144xbf16>
    %c0_45 = arith.constant 0 : index
    %c0_46 = arith.constant 0 : index
    %38 = vector.load %arg2[%c0_45, %c0_46] : memref<144x32xbf16, #tpu.memory_space<vmem>>, vector<144x32xbf16>
    %cst = arith.constant dense<0.000000e+00> : vector<64x32xf32>
    %39 = tpu.matmul %37, %38, %cst {dimension_numbers = #tpu.dot_dimension_numbers<[1], [0], [0], [1], [0, 0, 1, 1], [], []>} : vector<64x144xbf16>, vector<144x32xbf16>, vector<64x32xf32> -> vector<64x32xf32>
    %c0_47 = arith.constant 0 : index
    %c0_48 = arith.constant 0 : index
    %40 = vector.load %arg3[%c0_47, %c0_48] : memref<1x32xf32, #tpu.memory_space<vmem>>, vector<1x32xf32>
    %41 = vector.broadcast %40 : vector<1x32xf32> to vector<64x32xf32>
    %42 = arith.addf %39, %41 : vector<64x32xf32>
    %cst_49 = arith.constant 0.000000e+00 : f32
    %43 = vector.broadcast %cst_49 : f32 to vector<64x32xf32>
    %44 = arith.maximumf %42, %43 : vector<64x32xf32>
    %cst_50 = arith.constant 0.000000e+00 : f32
    %45 = vector.broadcast %cst_50 : f32 to vector<10x10x32xf32>
    %c0_51 = arith.constant 0 : index
    %c0_52 = arith.constant 0 : index
    %c0_53 = arith.constant 0 : index
    %46 = vector.load %arg7[%c0_51, %c0_52, %c0_53] : memref<10x10x32xf32, #tpu.memory_space<vmem>>, vector<10x10x32xf32>
    tpu.vector_store %arg7[%c0_51, %c0_52, %c0_53], %45 {strides = array<i32>} : memref<10x10x32xf32, #tpu.memory_space<vmem>>, vector<10x10x32xf32>,
    %47 = vector.shape_cast %44 : vector<64x32xf32> to vector<8x8x32xf32>
    %c1_54 = arith.constant 1 : index
    %c1_55 = arith.constant 1 : index
    %c0_56 = arith.constant 0 : index
    %48 = vector.load %arg7[%c1_54, %c1_55, %c0_56] : memref<10x10x32xf32, #tpu.memory_space<vmem>>, vector<8x8x32xf32>
    tpu.vector_store %arg7[%c1_54, %c1_55, %c0_56], %47 {strides = array<i32>} : memref<10x10x32xf32, #tpu.memory_space<vmem>>, vector<8x8x32xf32>,
    %c0_57 = arith.constant 0 : index
    %c0_58 = arith.constant 0 : index
    %c0_59 = arith.constant 0 : index
    %49 = vector.load %arg7[%c0_57, %c0_58, %c0_59] : memref<10x10x32xf32, #tpu.memory_space<vmem>>, vector<8x8x32xf32>
    %50 = vector.shape_cast %49 : vector<8x8x32xf32> to vector<64x32xf32>
    %c0_60 = arith.constant 0 : index
    %c0_61 = arith.constant 0 : index
    %51 = vector.load %arg9[%c0_60, %c0_61] : memref<64x288xf32, #tpu.memory_space<vmem>>, vector<64x32xf32>
    tpu.vector_store %arg9[%c0_60, %c0_61], %50 {strides = array<i32>} : memref<64x288xf32, #tpu.memory_space<vmem>>, vector<64x32xf32>,
    %c0_62 = arith.constant 0 : index
    %c1_63 = arith.constant 1 : index
    %c0_64 = arith.constant 0 : index
    %52 = vector.load %arg7[%c0_62, %c1_63, %c0_64] : memref<10x10x32xf32, #tpu.memory_space<vmem>>, vector<8x8x32xf32>
    %53 = vector.shape_cast %52 : vector<8x8x32xf32> to vector<64x32xf32>
    %c0_65 = arith.constant 0 : index
    %c32_66 = arith.constant 32 : index
    %54 = vector.load %arg9[%c0_65, %c32_66] : memref<64x288xf32, #tpu.memory_space<vmem>>, vector<64x32xf32>
    tpu.vector_store %arg9[%c0_65, %c32_66], %53 {strides = array<i32>} : memref<64x288xf32, #tpu.memory_space<vmem>>, vector<64x32xf32>,
    %c0_67 = arith.constant 0 : index
    %c2_68 = arith.constant 2 : index
    %c0_69 = arith.constant 0 : index
    %55 = vector.load %arg7[%c0_67, %c2_68, %c0_69] : memref<10x10x32xf32, #tpu.memory_space<vmem>>, vector<8x8x32xf32>
    %56 = vector.shape_cast %55 : vector<8x8x32xf32> to vector<64x32xf32>
    %c0_70 = arith.constant 0 : index
    %c64_71 = arith.constant 64 : index
    %57 = vector.load %arg9[%c0_70, %c64_71] : memref<64x288xf32, #tpu.memory_space<vmem>>, vector<64x32xf32>
    tpu.vector_store %arg9[%c0_70, %c64_71], %56 {strides = array<i32>} : memref<64x288xf32, #tpu.memory_space<vmem>>, vector<64x32xf32>,
    %c1_72 = arith.constant 1 : index
    %c0_73 = arith.constant 0 : index
    %c0_74 = arith.constant 0 : index
    %58 = vector.load %arg7[%c1_72, %c0_73, %c0_74] : memref<10x10x32xf32, #tpu.memory_space<vmem>>, vector<8x8x32xf32>
    %59 = vector.shape_cast %58 : vector<8x8x32xf32> to vector<64x32xf32>
    %c0_75 = arith.constant 0 : index
    %c96_76 = arith.constant 96 : index
    %60 = vector.load %arg9[%c0_75, %c96_76] : memref<64x288xf32, #tpu.memory_space<vmem>>, vector<64x32xf32>
    tpu.vector_store %arg9[%c0_75, %c96_76], %59 {strides = array<i32>} : memref<64x288xf32, #tpu.memory_space<vmem>>, vector<64x32xf32>,
    %c1_77 = arith.constant 1 : index
    %c1_78 = arith.constant 1 : index
    %c0_79 = arith.constant 0 : index
    %61 = vector.load %arg7[%c1_77, %c1_78, %c0_79] : memref<10x10x32xf32, #tpu.memory_space<vmem>>, vector<8x8x32xf32>
    %62 = vector.shape_cast %61 : vector<8x8x32xf32> to vector<64x32xf32>
    %c0_80 = arith.constant 0 : index
    %c128_81 = arith.constant 128 : index
    %63 = vector.load %arg9[%c0_80, %c128_81] : memref<64x288xf32, #tpu.memory_space<vmem>>, vector<64x32xf32>
    tpu.vector_store %arg9[%c0_80, %c128_81], %62 {strides = array<i32>} : memref<64x288xf32, #tpu.memory_space<vmem>>, vector<64x32xf32>,
    %c1_82 = arith.constant 1 : index
    %c2_83 = arith.constant 2 : index
    %c0_84 = arith.constant 0 : index
    %64 = vector.load %arg7[%c1_82, %c2_83, %c0_84] : memref<10x10x32xf32, #tpu.memory_space<vmem>>, vector<8x8x32xf32>
    %65 = vector.shape_cast %64 : vector<8x8x32xf32> to vector<64x32xf32>
    %c0_85 = arith.constant 0 : index
    %c160 = arith.constant 160 : index
    %66 = vector.load %arg9[%c0_85, %c160] : memref<64x288xf32, #tpu.memory_space<vmem>>, vector<64x32xf32>
    tpu.vector_store %arg9[%c0_85, %c160], %65 {strides = array<i32>} : memref<64x288xf32, #tpu.memory_space<vmem>>, vector<64x32xf32>,
    %c2_86 = arith.constant 2 : index
    %c0_87 = arith.constant 0 : index
    %c0_88 = arith.constant 0 : index
    %67 = vector.load %arg7[%c2_86, %c0_87, %c0_88] : memref<10x10x32xf32, #tpu.memory_space<vmem>>, vector<8x8x32xf32>
    %68 = vector.shape_cast %67 : vector<8x8x32xf32> to vector<64x32xf32>
    %c0_89 = arith.constant 0 : index
    %c192 = arith.constant 192 : index
    %69 = vector.load %arg9[%c0_89, %c192] : memref<64x288xf32, #tpu.memory_space<vmem>>, vector<64x32xf32>
    tpu.vector_store %arg9[%c0_89, %c192], %68 {strides = array<i32>} : memref<64x288xf32, #tpu.memory_space<vmem>>, vector<64x32xf32>,
    %c2_90 = arith.constant 2 : index
    %c1_91 = arith.constant 1 : index
    %c0_92 = arith.constant 0 : index
    %70 = vector.load %arg7[%c2_90, %c1_91, %c0_92] : memref<10x10x32xf32, #tpu.memory_space<vmem>>, vector<8x8x32xf32>
    %71 = vector.shape_cast %70 : vector<8x8x32xf32> to vector<64x32xf32>
    %c0_93 = arith.constant 0 : index
    %c224 = arith.constant 224 : index
    %72 = vector.load %arg9[%c0_93, %c224] : memref<64x288xf32, #tpu.memory_space<vmem>>, vector<64x32xf32>
    tpu.vector_store %arg9[%c0_93, %c224], %71 {strides = array<i32>} : memref<64x288xf32, #tpu.memory_space<vmem>>, vector<64x32xf32>,
    %c2_94 = arith.constant 2 : index
    %c2_95 = arith.constant 2 : index
    %c0_96 = arith.constant 0 : index
    %73 = vector.load %arg7[%c2_94, %c2_95, %c0_96] : memref<10x10x32xf32, #tpu.memory_space<vmem>>, vector<8x8x32xf32>
    %74 = vector.shape_cast %73 : vector<8x8x32xf32> to vector<64x32xf32>
    %c0_97 = arith.constant 0 : index
    %c256 = arith.constant 256 : index
    %75 = vector.load %arg9[%c0_97, %c256] : memref<64x288xf32, #tpu.memory_space<vmem>>, vector<64x32xf32>
    tpu.vector_store %arg9[%c0_97, %c256], %74 {strides = array<i32>} : memref<64x288xf32, #tpu.memory_space<vmem>>, vector<64x32xf32>,
    %c0_98 = arith.constant 0 : index
    %c0_99 = arith.constant 0 : index
    %76 = vector.load %arg9[%c0_98, %c0_99] : memref<64x288xf32, #tpu.memory_space<vmem>>, vector<64x288xf32>
    %77 = arith.truncf %76 : vector<64x288xf32> to vector<64x288xbf16>
    %c0_100 = arith.constant 0 : index
    %c0_101 = arith.constant 0 : index
    %78 = vector.load %arg4[%c0_100, %c0_101] : memref<288x32xbf16, #tpu.memory_space<vmem>>, vector<288x32xbf16>
    %cst_102 = arith.constant dense<0.000000e+00> : vector<64x32xf32>
    %79 = tpu.matmul %77, %78, %cst_102 {dimension_numbers = #tpu.dot_dimension_numbers<[1], [0], [0], [1], [0, 0, 1, 1], [], []>} : vector<64x288xbf16>, vector<288x32xbf16>, vector<64x32xf32> -> vector<64x32xf32>
    %c0_103 = arith.constant 0 : index
    %c0_104 = arith.constant 0 : index
    %80 = vector.load %arg5[%c0_103, %c0_104] : memref<1x32xf32, #tpu.memory_space<vmem>>, vector<1x32xf32>
    %81 = vector.broadcast %80 : vector<1x32xf32> to vector<64x32xf32>
    %82 = arith.addf %79, %81 : vector<64x32xf32>
    %cst_105 = arith.constant 0.000000e+00 : f32
    %83 = vector.broadcast %cst_105 : f32 to vector<64x32xf32>
    %84 = arith.maximumf %82, %83 : vector<64x32xf32>
    %85 = vector.shape_cast %84 : vector<64x32xf32> to vector<8x8x32xf32>
    %c0_106 = arith.constant 0 : index
    %c0_107 = arith.constant 0 : index
    %c0_108 = arith.constant 0 : index
    %c0_109 = arith.constant 0 : index
    %86 = vector.load %arg6[%c0_106, %c0_107, %c0_108, %c0_109] : memref<1x8x8x32xf32, #tpu.memory_space<vmem>>, vector<1x8x8x32xf32>
    %87 = vector.shape_cast %86 : vector<1x8x8x32xf32> to vector<8x8x32xf32>
    %88 = vector.shape_cast %85 : vector<8x8x32xf32> to vector<1x8x8x32xf32>
    tpu.vector_store %arg6[%c0_106, %c0_107, %c0_108, %c0_109], %88 {strides = array<i32>} : memref<1x8x8x32xf32, #tpu.memory_space<vmem>>, vector<1x8x8x32xf32>,
    return
  }
  func.func @transform_0(%arg0: i32) -> (i32, i32, i32, i32) {
    %c0_i32 = arith.constant 0 : i32
    %c0_i32_0 = arith.constant 0 : i32
    %c0_i32_1 = arith.constant 0 : i32
    %c0_i32_2 = arith.constant 0 : i32
    return %arg0, %c0_i32, %c0_i32_0, %c0_i32_1 : i32, i32, i32, i32
  }
  func.func @transform_1(%arg0: i32) -> (i32, i32) {
    %c0_i32 = arith.constant 0 : i32
    %c0_i32_0 = arith.constant 0 : i32
    %c0_i32_1 = arith.constant 0 : i32
    return %c0_i32, %c0_i32_0 : i32, i32
  }
  func.func @transform_2(%arg0: i32) -> (i32, i32) {
    %c0_i32 = arith.constant 0 : i32
    %c0_i32_0 = arith.constant 0 : i32
    %c0_i32_1 = arith.constant 0 : i32
    return %c0_i32, %c0_i32_0 : i32, i32
  }
  func.func @transform_3(%arg0: i32) -> (i32, i32) {
    %c0_i32 = arith.constant 0 : i32
    %c0_i32_0 = arith.constant 0 : i32
    %c0_i32_1 = arith.constant 0 : i32
    return %c0_i32, %c0_i32_0 : i32, i32
  }
  func.func @transform_4(%arg0: i32) -> (i32, i32) {
    %c0_i32 = arith.constant 0 : i32
    %c0_i32_0 = arith.constant 0 : i32
    %c0_i32_1 = arith.constant 0 : i32
    return %c0_i32, %c0_i32_0 : i32, i32
  }
  func.func @transform_5(%arg0: i32) -> (i32, i32, i32, i32) {
    %c0_i32 = arith.constant 0 : i32
    %c0_i32_0 = arith.constant 0 : i32
    %c0_i32_1 = arith.constant 0 : i32
    %c0_i32_2 = arith.constant 0 : i32
    return %arg0, %c0_i32, %c0_i32_0, %c0_i32_1 : i32, i32, i32, i32
  }
}

module attributes {stable_mosaic.version = 11 : i64} {
  func.func @_feat_gram_l1_kernel(%arg0: i32, %arg1: memref<1x32x64xf32, #tpu.memory_space<vmem>>, %arg2: memref<1x64x32xf32, #tpu.memory_space<vmem>>, %arg3: memref<1x32x64xf32, #tpu.memory_space<vmem>>, %arg4: memref<1x64x32xf32, #tpu.memory_space<vmem>>, %arg5: memref<1x1xf32, #tpu.memory_space<vmem>>, %arg6: memref<1x1xf32, #tpu.memory_space<vmem>>) attributes {dimension_semantics = [#tpu.dimension_semantics<arbitrary>], iteration_bounds = array<i64: 2>, scalar_prefetch = 0 : i64, scratch_operands = 0 : i64, tpu.core_type = #tpu.core_type<tc>, window_params = [{transform_indices = @transform_0, window_bounds = array<i64: 1, 32, 64>}, {transform_indices = @transform_1, window_bounds = array<i64: 1, 64, 32>}, {transform_indices = @transform_2, window_bounds = array<i64: 1, 32, 64>}, {transform_indices = @transform_3, window_bounds = array<i64: 1, 64, 32>}, {pipeline_mode = #tpu.pipeline_mode<synchronous>, transform_indices = @transform_4, window_bounds = array<i64: 1, 1>}, {pipeline_mode = #tpu.pipeline_mode<synchronous>, transform_indices = @transform_5, window_bounds = array<i64: 1, 1>}]} {
    %c0_i32 = arith.constant 0 : i32
    %0 = arith.cmpi eq, %arg0, %c0_i32 : i32
    %1 = arith.extui %0 : i1 to i32
    %c0_i32_0 = arith.constant 0 : i32
    %2 = arith.cmpi ne, %1, %c0_i32_0 : i32
    scf.if %2 {
      %cst_24 = arith.constant 0.000000e+00 : f32
      %34 = vector.broadcast %cst_24 : f32 to vector<1x1xf32>
      %c0_25 = arith.constant 0 : index
      %c0_26 = arith.constant 0 : index
      %35 = vector.load %arg5[%c0_25, %c0_26] : memref<1x1xf32, #tpu.memory_space<vmem>>, vector<1x1xf32>
      tpu.vector_store %arg5[%c0_25, %c0_26], %34 {strides = array<i32>} : memref<1x1xf32, #tpu.memory_space<vmem>>, vector<1x1xf32>,
      %cst_27 = arith.constant 0.000000e+00 : f32
      %36 = vector.broadcast %cst_27 : f32 to vector<1x1xf32>
      %c0_28 = arith.constant 0 : index
      %c0_29 = arith.constant 0 : index
      %37 = vector.load %arg6[%c0_28, %c0_29] : memref<1x1xf32, #tpu.memory_space<vmem>>, vector<1x1xf32>
      tpu.vector_store %arg6[%c0_28, %c0_29], %36 {strides = array<i32>} : memref<1x1xf32, #tpu.memory_space<vmem>>, vector<1x1xf32>,
    } else {
    }
    %c0 = arith.constant 0 : index
    %c0_1 = arith.constant 0 : index
    %c0_2 = arith.constant 0 : index
    %3 = vector.load %arg2[%c0, %c0_1, %c0_2] : memref<1x64x32xf32, #tpu.memory_space<vmem>>, vector<1x64x32xf32>
    %4 = vector.shape_cast %3 : vector<1x64x32xf32> to vector<64x32xf32>
    %c0_3 = arith.constant 0 : index
    %c0_4 = arith.constant 0 : index
    %c0_5 = arith.constant 0 : index
    %5 = vector.load %arg4[%c0_3, %c0_4, %c0_5] : memref<1x64x32xf32, #tpu.memory_space<vmem>>, vector<1x64x32xf32>
    %6 = vector.shape_cast %5 : vector<1x64x32xf32> to vector<64x32xf32>
    %c0_6 = arith.constant 0 : index
    %c0_7 = arith.constant 0 : index
    %7 = vector.load %arg5[%c0_6, %c0_7] : memref<1x1xf32, #tpu.memory_space<vmem>>, vector<1x1xf32>
    %8 = arith.subf %4, %6 : vector<64x32xf32>
    %9 = math.absf %8 : vector<64x32xf32>
    %10 = vector.shape_cast %9 : vector<64x32xf32> to vector<1x64x32xf32>
    %cst = arith.constant dense<0.000000e+00> : vector<1xf32>
    %11 = vector.multi_reduction <add>, %10, %cst [1, 2] : vector<1x64x32xf32> to vector<1xf32>
    %12 = vector.shape_cast %11 : vector<1xf32> to vector<1x1x1xf32>
    %13 = vector.extract %12[0, 0, 0] : f32 from vector<1x1x1xf32>
    %14 = vector.broadcast %13 : f32 to vector<1x1xf32>
    %15 = arith.addf %7, %14 : vector<1x1xf32>
    %c0_8 = arith.constant 0 : index
    %c0_9 = arith.constant 0 : index
    %16 = vector.load %arg5[%c0_8, %c0_9] : memref<1x1xf32, #tpu.memory_space<vmem>>, vector<1x1xf32>
    tpu.vector_store %arg5[%c0_8, %c0_9], %15 {strides = array<i32>} : memref<1x1xf32, #tpu.memory_space<vmem>>, vector<1x1xf32>,
    %c0_10 = arith.constant 0 : index
    %c0_11 = arith.constant 0 : index
    %c0_12 = arith.constant 0 : index
    %17 = vector.load %arg1[%c0_10, %c0_11, %c0_12] : memref<1x32x64xf32, #tpu.memory_space<vmem>>, vector<1x32x64xf32>
    %18 = vector.shape_cast %17 : vector<1x32x64xf32> to vector<32x64xf32>
    %cst_13 = arith.constant dense<0.000000e+00> : vector<32x32xf32>
    %19 = tpu.matmul %18, %4, %cst_13 {dimension_numbers = #tpu.dot_dimension_numbers<[1], [0], [0], [1], [0, 0, 1, 1], [], []>} : vector<32x64xf32>, vector<64x32xf32>, vector<32x32xf32> -> vector<32x32xf32>
    %c0_14 = arith.constant 0 : index
    %c0_15 = arith.constant 0 : index
    %c0_16 = arith.constant 0 : index
    %20 = vector.load %arg3[%c0_14, %c0_15, %c0_16] : memref<1x32x64xf32, #tpu.memory_space<vmem>>, vector<1x32x64xf32>
    %21 = vector.shape_cast %20 : vector<1x32x64xf32> to vector<32x64xf32>
    %cst_17 = arith.constant dense<0.000000e+00> : vector<32x32xf32>
    %22 = tpu.matmul %21, %6, %cst_17 {dimension_numbers = #tpu.dot_dimension_numbers<[1], [0], [0], [1], [0, 0, 1, 1], [], []>} : vector<32x64xf32>, vector<64x32xf32>, vector<32x32xf32> -> vector<32x32xf32>
    %c0_18 = arith.constant 0 : index
    %c0_19 = arith.constant 0 : index
    %23 = vector.load %arg6[%c0_18, %c0_19] : memref<1x1xf32, #tpu.memory_space<vmem>>, vector<1x1xf32>
    %24 = arith.subf %19, %22 : vector<32x32xf32>
    %25 = math.absf %24 : vector<32x32xf32>
    %26 = vector.shape_cast %25 : vector<32x32xf32> to vector<1x32x32xf32>
    %cst_20 = arith.constant dense<0.000000e+00> : vector<1xf32>
    %27 = vector.multi_reduction <add>, %26, %cst_20 [1, 2] : vector<1x32x32xf32> to vector<1xf32>
    %28 = vector.shape_cast %27 : vector<1xf32> to vector<1x1x1xf32>
    %29 = vector.extract %28[0, 0, 0] : f32 from vector<1x1x1xf32>
    %cst_21 = arith.constant 4.8828125E-4 : f32
    %30 = arith.mulf %29, %cst_21 : f32
    %31 = vector.broadcast %30 : f32 to vector<1x1xf32>
    %32 = arith.addf %23, %31 : vector<1x1xf32>
    %c0_22 = arith.constant 0 : index
    %c0_23 = arith.constant 0 : index
    %33 = vector.load %arg6[%c0_22, %c0_23] : memref<1x1xf32, #tpu.memory_space<vmem>>, vector<1x1xf32>
    tpu.vector_store %arg6[%c0_22, %c0_23], %32 {strides = array<i32>} : memref<1x1xf32, #tpu.memory_space<vmem>>, vector<1x1xf32>,
    return
  }
  func.func @transform_0(%arg0: i32) -> (i32, i32, i32) {
    %c0_i32 = arith.constant 0 : i32
    %c0_i32_0 = arith.constant 0 : i32
    %c0_i32_1 = arith.constant 0 : i32
    return %arg0, %c0_i32, %c0_i32_0 : i32, i32, i32
  }
  func.func @transform_1(%arg0: i32) -> (i32, i32, i32) {
    %c0_i32 = arith.constant 0 : i32
    %c0_i32_0 = arith.constant 0 : i32
    %c0_i32_1 = arith.constant 0 : i32
    return %arg0, %c0_i32, %c0_i32_0 : i32, i32, i32
  }
  func.func @transform_2(%arg0: i32) -> (i32, i32, i32) {
    %c0_i32 = arith.constant 0 : i32
    %c0_i32_0 = arith.constant 0 : i32
    %c0_i32_1 = arith.constant 0 : i32
    return %arg0, %c0_i32, %c0_i32_0 : i32, i32, i32
  }
  func.func @transform_3(%arg0: i32) -> (i32, i32, i32) {
    %c0_i32 = arith.constant 0 : i32
    %c0_i32_0 = arith.constant 0 : i32
    %c0_i32_1 = arith.constant 0 : i32
    return %arg0, %c0_i32, %c0_i32_0 : i32, i32, i32
  }
  func.func @transform_4(%arg0: i32) -> (i32, i32) {
    %c0_i32 = arith.constant 0 : i32
    %c0_i32_0 = arith.constant 0 : i32
    %c0_i32_1 = arith.constant 0 : i32
    return %c0_i32, %c0_i32_0 : i32, i32
  }
  func.func @transform_5(%arg0: i32) -> (i32, i32) {
    %c0_i32 = arith.constant 0 : i32
    %c0_i32_0 = arith.constant 0 : i32
    %c0_i32_1 = arith.constant 0 : i32
    return %c0_i32, %c0_i32_0 : i32, i32
  }
}

module attributes {stable_mosaic.version = 11 : i64} {
  func.func @_conv_block_kernel(%arg0: i32, %arg1: memref<1x6x6x32xf32, #tpu.memory_space<vmem>>, %arg2: memref<288x64xbf16, #tpu.memory_space<vmem>>, %arg3: memref<1x64xf32, #tpu.memory_space<vmem>>, %arg4: memref<576x64xbf16, #tpu.memory_space<vmem>>, %arg5: memref<1x64xf32, #tpu.memory_space<vmem>>, %arg6: memref<1x4x4x64xf32, #tpu.memory_space<vmem>>, %arg7: memref<6x6x64xf32, #tpu.memory_space<vmem>>, %arg8: memref<16x288xf32, #tpu.memory_space<vmem>>, %arg9: memref<16x576xf32, #tpu.memory_space<vmem>>) attributes {dimension_semantics = [#tpu.dimension_semantics<parallel>], iteration_bounds = array<i64: 2>, scalar_prefetch = 0 : i64, scratch_operands = 3 : i64, tpu.core_type = #tpu.core_type<tc>, window_params = [{transform_indices = @transform_0, window_bounds = array<i64: 1, 6, 6, 32>}, {pipeline_mode = #tpu.pipeline_mode<synchronous>, transform_indices = @transform_1, window_bounds = array<i64: 288, 64>}, {pipeline_mode = #tpu.pipeline_mode<synchronous>, transform_indices = @transform_2, window_bounds = array<i64: 1, 64>}, {pipeline_mode = #tpu.pipeline_mode<synchronous>, transform_indices = @transform_3, window_bounds = array<i64: 576, 64>}, {pipeline_mode = #tpu.pipeline_mode<synchronous>, transform_indices = @transform_4, window_bounds = array<i64: 1, 64>}, {transform_indices = @transform_5, window_bounds = array<i64: 1, 4, 4, 64>}]} {
    %c0 = arith.constant 0 : index
    %c0_0 = arith.constant 0 : index
    %c0_1 = arith.constant 0 : index
    %c0_2 = arith.constant 0 : index
    %0 = vector.load %arg1[%c0, %c0_0, %c0_1, %c0_2] : memref<1x6x6x32xf32, #tpu.memory_space<vmem>>, vector<1x4x4x32xf32>
    %1 = vector.shape_cast %0 : vector<1x4x4x32xf32> to vector<4x4x32xf32>
    %2 = vector.shape_cast %1 : vector<4x4x32xf32> to vector<16x32xf32>
    %c0_3 = arith.constant 0 : index
    %c0_4 = arith.constant 0 : index
    %3 = vector.load %arg8[%c0_3, %c0_4] : memref<16x288xf32, #tpu.memory_space<vmem>>, vector<16x32xf32>
    tpu.vector_store %arg8[%c0_3, %c0_4], %2 {strides = array<i32>} : memref<16x288xf32, #tpu.memory_space<vmem>>, vector<16x32xf32>,
    %c0_5 = arith.constant 0 : index
    %c0_6 = arith.constant 0 : index
    %c1 = arith.constant 1 : index
    %c0_7 = arith.constant 0 : index
    %4 = vector.load %arg1[%c0_5, %c0_6, %c1, %c0_7] : memref<1x6x6x32xf32, #tpu.memory_space<vmem>>, vector<1x4x4x32xf32>
    %5 = vector.shape_cast %4 : vector<1x4x4x32xf32> to vector<4x4x32xf32>
    %6 = vector.shape_cast %5 : vector<4x4x32xf32> to vector<16x32xf32>
    %c0_8 = arith.constant 0 : index
    %c32 = arith.constant 32 : index
    %7 = vector.load %arg8[%c0_8, %c32] : memref<16x288xf32, #tpu.memory_space<vmem>>, vector<16x32xf32>
    tpu.vector_store %arg8[%c0_8, %c32], %6 {strides = array<i32>} : memref<16x288xf32, #tpu.memory_space<vmem>>, vector<16x32xf32>,
    %c0_9 = arith.constant 0 : index
    %c0_10 = arith.constant 0 : index
    %c2 = arith.constant 2 : index
    %c0_11 = arith.constant 0 : index
    %8 = vector.load %arg1[%c0_9, %c0_10, %c2, %c0_11] : memref<1x6x6x32xf32, #tpu.memory_space<vmem>>, vector<1x4x4x32xf32>
    %9 = vector.shape_cast %8 : vector<1x4x4x32xf32> to vector<4x4x32xf32>
    %10 = vector.shape_cast %9 : vector<4x4x32xf32> to vector<16x32xf32>
    %c0_12 = arith.constant 0 : index
    %c64 = arith.constant 64 : index
    %11 = vector.load %arg8[%c0_12, %c64] : memref<16x288xf32, #tpu.memory_space<vmem>>, vector<16x32xf32>
    tpu.vector_store %arg8[%c0_12, %c64], %10 {strides = array<i32>} : memref<16x288xf32, #tpu.memory_space<vmem>>, vector<16x32xf32>,
    %c0_13 = arith.constant 0 : index
    %c1_14 = arith.constant 1 : index
    %c0_15 = arith.constant 0 : index
    %c0_16 = arith.constant 0 : index
    %12 = vector.load %arg1[%c0_13, %c1_14, %c0_15, %c0_16] : memref<1x6x6x32xf32, #tpu.memory_space<vmem>>, vector<1x4x4x32xf32>
    %13 = vector.shape_cast %12 : vector<1x4x4x32xf32> to vector<4x4x32xf32>
    %14 = vector.shape_cast %13 : vector<4x4x32xf32> to vector<16x32xf32>
    %c0_17 = arith.constant 0 : index
    %c96 = arith.constant 96 : index
    %15 = vector.load %arg8[%c0_17, %c96] : memref<16x288xf32, #tpu.memory_space<vmem>>, vector<16x32xf32>
    tpu.vector_store %arg8[%c0_17, %c96], %14 {strides = array<i32>} : memref<16x288xf32, #tpu.memory_space<vmem>>, vector<16x32xf32>,
    %c0_18 = arith.constant 0 : index
    %c1_19 = arith.constant 1 : index
    %c1_20 = arith.constant 1 : index
    %c0_21 = arith.constant 0 : index
    %16 = vector.load %arg1[%c0_18, %c1_19, %c1_20, %c0_21] : memref<1x6x6x32xf32, #tpu.memory_space<vmem>>, vector<1x4x4x32xf32>
    %17 = vector.shape_cast %16 : vector<1x4x4x32xf32> to vector<4x4x32xf32>
    %18 = vector.shape_cast %17 : vector<4x4x32xf32> to vector<16x32xf32>
    %c0_22 = arith.constant 0 : index
    %c128 = arith.constant 128 : index
    %19 = vector.load %arg8[%c0_22, %c128] : memref<16x288xf32, #tpu.memory_space<vmem>>, vector<16x32xf32>
    tpu.vector_store %arg8[%c0_22, %c128], %18 {strides = array<i32>} : memref<16x288xf32, #tpu.memory_space<vmem>>, vector<16x32xf32>,
    %c0_23 = arith.constant 0 : index
    %c1_24 = arith.constant 1 : index
    %c2_25 = arith.constant 2 : index
    %c0_26 = arith.constant 0 : index
    %20 = vector.load %arg1[%c0_23, %c1_24, %c2_25, %c0_26] : memref<1x6x6x32xf32, #tpu.memory_space<vmem>>, vector<1x4x4x32xf32>
    %21 = vector.shape_cast %20 : vector<1x4x4x32xf32> to vector<4x4x32xf32>
    %22 = vector.shape_cast %21 : vector<4x4x32xf32> to vector<16x32xf32>
    %c0_27 = arith.constant 0 : index
    %c160 = arith.constant 160 : index
    %23 = vector.load %arg8[%c0_27, %c160] : memref<16x288xf32, #tpu.memory_space<vmem>>, vector<16x32xf32>
    tpu.vector_store %arg8[%c0_27, %c160], %22 {strides = array<i32>} : memref<16x288xf32, #tpu.memory_space<vmem>>, vector<16x32xf32>,
    %c0_28 = arith.constant 0 : index
    %c2_29 = arith.constant 2 : index
    %c0_30 = arith.constant 0 : index
    %c0_31 = arith.constant 0 : index
    %24 = vector.load %arg1[%c0_28, %c2_29, %c0_30, %c0_31] : memref<1x6x6x32xf32, #tpu.memory_space<vmem>>, vector<1x4x4x32xf32>
    %25 = vector.shape_cast %24 : vector<1x4x4x32xf32> to vector<4x4x32xf32>
    %26 = vector.shape_cast %25 : vector<4x4x32xf32> to vector<16x32xf32>
    %c0_32 = arith.constant 0 : index
    %c192 = arith.constant 192 : index
    %27 = vector.load %arg8[%c0_32, %c192] : memref<16x288xf32, #tpu.memory_space<vmem>>, vector<16x32xf32>
    tpu.vector_store %arg8[%c0_32, %c192], %26 {strides = array<i32>} : memref<16x288xf32, #tpu.memory_space<vmem>>, vector<16x32xf32>,
    %c0_33 = arith.constant 0 : index
    %c2_34 = arith.constant 2 : index
    %c1_35 = arith.constant 1 : index
    %c0_36 = arith.constant 0 : index
    %28 = vector.load %arg1[%c0_33, %c2_34, %c1_35, %c0_36] : memref<1x6x6x32xf32, #tpu.memory_space<vmem>>, vector<1x4x4x32xf32>
    %29 = vector.shape_cast %28 : vector<1x4x4x32xf32> to vector<4x4x32xf32>
    %30 = vector.shape_cast %29 : vector<4x4x32xf32> to vector<16x32xf32>
    %c0_37 = arith.constant 0 : index
    %c224 = arith.constant 224 : index
    %31 = vector.load %arg8[%c0_37, %c224] : memref<16x288xf32, #tpu.memory_space<vmem>>, vector<16x32xf32>
    tpu.vector_store %arg8[%c0_37, %c224], %30 {strides = array<i32>} : memref<16x288xf32, #tpu.memory_space<vmem>>, vector<16x32xf32>,
    %c0_38 = arith.constant 0 : index
    %c2_39 = arith.constant 2 : index
    %c2_40 = arith.constant 2 : index
    %c0_41 = arith.constant 0 : index
    %32 = vector.load %arg1[%c0_38, %c2_39, %c2_40, %c0_41] : memref<1x6x6x32xf32, #tpu.memory_space<vmem>>, vector<1x4x4x32xf32>
    %33 = vector.shape_cast %32 : vector<1x4x4x32xf32> to vector<4x4x32xf32>
    %34 = vector.shape_cast %33 : vector<4x4x32xf32> to vector<16x32xf32>
    %c0_42 = arith.constant 0 : index
    %c256 = arith.constant 256 : index
    %35 = vector.load %arg8[%c0_42, %c256] : memref<16x288xf32, #tpu.memory_space<vmem>>, vector<16x32xf32>
    tpu.vector_store %arg8[%c0_42, %c256], %34 {strides = array<i32>} : memref<16x288xf32, #tpu.memory_space<vmem>>, vector<16x32xf32>,
    %c0_43 = arith.constant 0 : index
    %c0_44 = arith.constant 0 : index
    %36 = vector.load %arg8[%c0_43, %c0_44] : memref<16x288xf32, #tpu.memory_space<vmem>>, vector<16x288xf32>
    %37 = arith.truncf %36 : vector<16x288xf32> to vector<16x288xbf16>
    %c0_45 = arith.constant 0 : index
    %c0_46 = arith.constant 0 : index
    %38 = vector.load %arg2[%c0_45, %c0_46] : memref<288x64xbf16, #tpu.memory_space<vmem>>, vector<288x64xbf16>
    %cst = arith.constant dense<0.000000e+00> : vector<16x64xf32>
    %39 = tpu.matmul %37, %38, %cst {dimension_numbers = #tpu.dot_dimension_numbers<[1], [0], [0], [1], [0, 0, 1, 1], [], []>} : vector<16x288xbf16>, vector<288x64xbf16>, vector<16x64xf32> -> vector<16x64xf32>
    %c0_47 = arith.constant 0 : index
    %c0_48 = arith.constant 0 : index
    %40 = vector.load %arg3[%c0_47, %c0_48] : memref<1x64xf32, #tpu.memory_space<vmem>>, vector<1x64xf32>
    %41 = vector.broadcast %40 : vector<1x64xf32> to vector<16x64xf32>
    %42 = arith.addf %39, %41 : vector<16x64xf32>
    %cst_49 = arith.constant 0.000000e+00 : f32
    %43 = vector.broadcast %cst_49 : f32 to vector<16x64xf32>
    %44 = arith.maximumf %42, %43 : vector<16x64xf32>
    %cst_50 = arith.constant 0.000000e+00 : f32
    %45 = vector.broadcast %cst_50 : f32 to vector<6x6x64xf32>
    %c0_51 = arith.constant 0 : index
    %c0_52 = arith.constant 0 : index
    %c0_53 = arith.constant 0 : index
    %46 = vector.load %arg7[%c0_51, %c0_52, %c0_53] : memref<6x6x64xf32, #tpu.memory_space<vmem>>, vector<6x6x64xf32>
    tpu.vector_store %arg7[%c0_51, %c0_52, %c0_53], %45 {strides = array<i32>} : memref<6x6x64xf32, #tpu.memory_space<vmem>>, vector<6x6x64xf32>,
    %47 = vector.shape_cast %44 : vector<16x64xf32> to vector<4x4x64xf32>
    %c1_54 = arith.constant 1 : index
    %c1_55 = arith.constant 1 : index
    %c0_56 = arith.constant 0 : index
    %48 = vector.load %arg7[%c1_54, %c1_55, %c0_56] : memref<6x6x64xf32, #tpu.memory_space<vmem>>, vector<4x4x64xf32>
    tpu.vector_store %arg7[%c1_54, %c1_55, %c0_56], %47 {strides = array<i32>} : memref<6x6x64xf32, #tpu.memory_space<vmem>>, vector<4x4x64xf32>,
    %c0_57 = arith.constant 0 : index
    %c0_58 = arith.constant 0 : index
    %c0_59 = arith.constant 0 : index
    %49 = vector.load %arg7[%c0_57, %c0_58, %c0_59] : memref<6x6x64xf32, #tpu.memory_space<vmem>>, vector<4x4x64xf32>
    %50 = vector.shape_cast %49 : vector<4x4x64xf32> to vector<16x64xf32>
    %c0_60 = arith.constant 0 : index
    %c0_61 = arith.constant 0 : index
    %51 = vector.load %arg9[%c0_60, %c0_61] : memref<16x576xf32, #tpu.memory_space<vmem>>, vector<16x64xf32>
    tpu.vector_store %arg9[%c0_60, %c0_61], %50 {strides = array<i32>} : memref<16x576xf32, #tpu.memory_space<vmem>>, vector<16x64xf32>,
    %c0_62 = arith.constant 0 : index
    %c1_63 = arith.constant 1 : index
    %c0_64 = arith.constant 0 : index
    %52 = vector.load %arg7[%c0_62, %c1_63, %c0_64] : memref<6x6x64xf32, #tpu.memory_space<vmem>>, vector<4x4x64xf32>
    %53 = vector.shape_cast %52 : vector<4x4x64xf32> to vector<16x64xf32>
    %c0_65 = arith.constant 0 : index
    %c64_66 = arith.constant 64 : index
    %54 = vector.load %arg9[%c0_65, %c64_66] : memref<16x576xf32, #tpu.memory_space<vmem>>, vector<16x64xf32>
    tpu.vector_store %arg9[%c0_65, %c64_66], %53 {strides = array<i32>} : memref<16x576xf32, #tpu.memory_space<vmem>>, vector<16x64xf32>,
    %c0_67 = arith.constant 0 : index
    %c2_68 = arith.constant 2 : index
    %c0_69 = arith.constant 0 : index
    %55 = vector.load %arg7[%c0_67, %c2_68, %c0_69] : memref<6x6x64xf32, #tpu.memory_space<vmem>>, vector<4x4x64xf32>
    %56 = vector.shape_cast %55 : vector<4x4x64xf32> to vector<16x64xf32>
    %c0_70 = arith.constant 0 : index
    %c128_71 = arith.constant 128 : index
    %57 = vector.load %arg9[%c0_70, %c128_71] : memref<16x576xf32, #tpu.memory_space<vmem>>, vector<16x64xf32>
    tpu.vector_store %arg9[%c0_70, %c128_71], %56 {strides = array<i32>} : memref<16x576xf32, #tpu.memory_space<vmem>>, vector<16x64xf32>,
    %c1_72 = arith.constant 1 : index
    %c0_73 = arith.constant 0 : index
    %c0_74 = arith.constant 0 : index
    %58 = vector.load %arg7[%c1_72, %c0_73, %c0_74] : memref<6x6x64xf32, #tpu.memory_space<vmem>>, vector<4x4x64xf32>
    %59 = vector.shape_cast %58 : vector<4x4x64xf32> to vector<16x64xf32>
    %c0_75 = arith.constant 0 : index
    %c192_76 = arith.constant 192 : index
    %60 = vector.load %arg9[%c0_75, %c192_76] : memref<16x576xf32, #tpu.memory_space<vmem>>, vector<16x64xf32>
    tpu.vector_store %arg9[%c0_75, %c192_76], %59 {strides = array<i32>} : memref<16x576xf32, #tpu.memory_space<vmem>>, vector<16x64xf32>,
    %c1_77 = arith.constant 1 : index
    %c1_78 = arith.constant 1 : index
    %c0_79 = arith.constant 0 : index
    %61 = vector.load %arg7[%c1_77, %c1_78, %c0_79] : memref<6x6x64xf32, #tpu.memory_space<vmem>>, vector<4x4x64xf32>
    %62 = vector.shape_cast %61 : vector<4x4x64xf32> to vector<16x64xf32>
    %c0_80 = arith.constant 0 : index
    %c256_81 = arith.constant 256 : index
    %63 = vector.load %arg9[%c0_80, %c256_81] : memref<16x576xf32, #tpu.memory_space<vmem>>, vector<16x64xf32>
    tpu.vector_store %arg9[%c0_80, %c256_81], %62 {strides = array<i32>} : memref<16x576xf32, #tpu.memory_space<vmem>>, vector<16x64xf32>,
    %c1_82 = arith.constant 1 : index
    %c2_83 = arith.constant 2 : index
    %c0_84 = arith.constant 0 : index
    %64 = vector.load %arg7[%c1_82, %c2_83, %c0_84] : memref<6x6x64xf32, #tpu.memory_space<vmem>>, vector<4x4x64xf32>
    %65 = vector.shape_cast %64 : vector<4x4x64xf32> to vector<16x64xf32>
    %c0_85 = arith.constant 0 : index
    %c320 = arith.constant 320 : index
    %66 = vector.load %arg9[%c0_85, %c320] : memref<16x576xf32, #tpu.memory_space<vmem>>, vector<16x64xf32>
    tpu.vector_store %arg9[%c0_85, %c320], %65 {strides = array<i32>} : memref<16x576xf32, #tpu.memory_space<vmem>>, vector<16x64xf32>,
    %c2_86 = arith.constant 2 : index
    %c0_87 = arith.constant 0 : index
    %c0_88 = arith.constant 0 : index
    %67 = vector.load %arg7[%c2_86, %c0_87, %c0_88] : memref<6x6x64xf32, #tpu.memory_space<vmem>>, vector<4x4x64xf32>
    %68 = vector.shape_cast %67 : vector<4x4x64xf32> to vector<16x64xf32>
    %c0_89 = arith.constant 0 : index
    %c384 = arith.constant 384 : index
    %69 = vector.load %arg9[%c0_89, %c384] : memref<16x576xf32, #tpu.memory_space<vmem>>, vector<16x64xf32>
    tpu.vector_store %arg9[%c0_89, %c384], %68 {strides = array<i32>} : memref<16x576xf32, #tpu.memory_space<vmem>>, vector<16x64xf32>,
    %c2_90 = arith.constant 2 : index
    %c1_91 = arith.constant 1 : index
    %c0_92 = arith.constant 0 : index
    %70 = vector.load %arg7[%c2_90, %c1_91, %c0_92] : memref<6x6x64xf32, #tpu.memory_space<vmem>>, vector<4x4x64xf32>
    %71 = vector.shape_cast %70 : vector<4x4x64xf32> to vector<16x64xf32>
    %c0_93 = arith.constant 0 : index
    %c448 = arith.constant 448 : index
    %72 = vector.load %arg9[%c0_93, %c448] : memref<16x576xf32, #tpu.memory_space<vmem>>, vector<16x64xf32>
    tpu.vector_store %arg9[%c0_93, %c448], %71 {strides = array<i32>} : memref<16x576xf32, #tpu.memory_space<vmem>>, vector<16x64xf32>,
    %c2_94 = arith.constant 2 : index
    %c2_95 = arith.constant 2 : index
    %c0_96 = arith.constant 0 : index
    %73 = vector.load %arg7[%c2_94, %c2_95, %c0_96] : memref<6x6x64xf32, #tpu.memory_space<vmem>>, vector<4x4x64xf32>
    %74 = vector.shape_cast %73 : vector<4x4x64xf32> to vector<16x64xf32>
    %c0_97 = arith.constant 0 : index
    %c512 = arith.constant 512 : index
    %75 = vector.load %arg9[%c0_97, %c512] : memref<16x576xf32, #tpu.memory_space<vmem>>, vector<16x64xf32>
    tpu.vector_store %arg9[%c0_97, %c512], %74 {strides = array<i32>} : memref<16x576xf32, #tpu.memory_space<vmem>>, vector<16x64xf32>,
    %c0_98 = arith.constant 0 : index
    %c0_99 = arith.constant 0 : index
    %76 = vector.load %arg9[%c0_98, %c0_99] : memref<16x576xf32, #tpu.memory_space<vmem>>, vector<16x576xf32>
    %77 = arith.truncf %76 : vector<16x576xf32> to vector<16x576xbf16>
    %c0_100 = arith.constant 0 : index
    %c0_101 = arith.constant 0 : index
    %78 = vector.load %arg4[%c0_100, %c0_101] : memref<576x64xbf16, #tpu.memory_space<vmem>>, vector<576x64xbf16>
    %cst_102 = arith.constant dense<0.000000e+00> : vector<16x64xf32>
    %79 = tpu.matmul %77, %78, %cst_102 {dimension_numbers = #tpu.dot_dimension_numbers<[1], [0], [0], [1], [0, 0, 1, 1], [], []>} : vector<16x576xbf16>, vector<576x64xbf16>, vector<16x64xf32> -> vector<16x64xf32>
    %c0_103 = arith.constant 0 : index
    %c0_104 = arith.constant 0 : index
    %80 = vector.load %arg5[%c0_103, %c0_104] : memref<1x64xf32, #tpu.memory_space<vmem>>, vector<1x64xf32>
    %81 = vector.broadcast %80 : vector<1x64xf32> to vector<16x64xf32>
    %82 = arith.addf %79, %81 : vector<16x64xf32>
    %cst_105 = arith.constant 0.000000e+00 : f32
    %83 = vector.broadcast %cst_105 : f32 to vector<16x64xf32>
    %84 = arith.maximumf %82, %83 : vector<16x64xf32>
    %85 = vector.shape_cast %84 : vector<16x64xf32> to vector<4x4x64xf32>
    %c0_106 = arith.constant 0 : index
    %c0_107 = arith.constant 0 : index
    %c0_108 = arith.constant 0 : index
    %c0_109 = arith.constant 0 : index
    %86 = vector.load %arg6[%c0_106, %c0_107, %c0_108, %c0_109] : memref<1x4x4x64xf32, #tpu.memory_space<vmem>>, vector<1x4x4x64xf32>
    %87 = vector.shape_cast %86 : vector<1x4x4x64xf32> to vector<4x4x64xf32>
    %88 = vector.shape_cast %85 : vector<4x4x64xf32> to vector<1x4x4x64xf32>
    tpu.vector_store %arg6[%c0_106, %c0_107, %c0_108, %c0_109], %88 {strides = array<i32>} : memref<1x4x4x64xf32, #tpu.memory_space<vmem>>, vector<1x4x4x64xf32>,
    return
  }
  func.func @transform_0(%arg0: i32) -> (i32, i32, i32, i32) {
    %c0_i32 = arith.constant 0 : i32
    %c0_i32_0 = arith.constant 0 : i32
    %c0_i32_1 = arith.constant 0 : i32
    %c0_i32_2 = arith.constant 0 : i32
    return %arg0, %c0_i32, %c0_i32_0, %c0_i32_1 : i32, i32, i32, i32
  }
  func.func @transform_1(%arg0: i32) -> (i32, i32) {
    %c0_i32 = arith.constant 0 : i32
    %c0_i32_0 = arith.constant 0 : i32
    %c0_i32_1 = arith.constant 0 : i32
    return %c0_i32, %c0_i32_0 : i32, i32
  }
  func.func @transform_2(%arg0: i32) -> (i32, i32) {
    %c0_i32 = arith.constant 0 : i32
    %c0_i32_0 = arith.constant 0 : i32
    %c0_i32_1 = arith.constant 0 : i32
    return %c0_i32, %c0_i32_0 : i32, i32
  }
  func.func @transform_3(%arg0: i32) -> (i32, i32) {
    %c0_i32 = arith.constant 0 : i32
    %c0_i32_0 = arith.constant 0 : i32
    %c0_i32_1 = arith.constant 0 : i32
    return %c0_i32, %c0_i32_0 : i32, i32
  }
  func.func @transform_4(%arg0: i32) -> (i32, i32) {
    %c0_i32 = arith.constant 0 : i32
    %c0_i32_0 = arith.constant 0 : i32
    %c0_i32_1 = arith.constant 0 : i32
    return %c0_i32, %c0_i32_0 : i32, i32
  }
  func.func @transform_5(%arg0: i32) -> (i32, i32, i32, i32) {
    %c0_i32 = arith.constant 0 : i32
    %c0_i32_0 = arith.constant 0 : i32
    %c0_i32_1 = arith.constant 0 : i32
    %c0_i32_2 = arith.constant 0 : i32
    return %arg0, %c0_i32, %c0_i32_0, %c0_i32_1 : i32, i32, i32, i32
  }
}

module attributes {stable_mosaic.version = 11 : i64} {
  func.func @_feat_gram_l1_kernel(%arg0: i32, %arg1: memref<1x64x16xf32, #tpu.memory_space<vmem>>, %arg2: memref<1x16x64xf32, #tpu.memory_space<vmem>>, %arg3: memref<1x64x16xf32, #tpu.memory_space<vmem>>, %arg4: memref<1x16x64xf32, #tpu.memory_space<vmem>>, %arg5: memref<1x1xf32, #tpu.memory_space<vmem>>, %arg6: memref<1x1xf32, #tpu.memory_space<vmem>>) attributes {dimension_semantics = [#tpu.dimension_semantics<arbitrary>], iteration_bounds = array<i64: 2>, scalar_prefetch = 0 : i64, scratch_operands = 0 : i64, tpu.core_type = #tpu.core_type<tc>, window_params = [{transform_indices = @transform_0, window_bounds = array<i64: 1, 64, 16>}, {transform_indices = @transform_1, window_bounds = array<i64: 1, 16, 64>}, {transform_indices = @transform_2, window_bounds = array<i64: 1, 64, 16>}, {transform_indices = @transform_3, window_bounds = array<i64: 1, 16, 64>}, {pipeline_mode = #tpu.pipeline_mode<synchronous>, transform_indices = @transform_4, window_bounds = array<i64: 1, 1>}, {pipeline_mode = #tpu.pipeline_mode<synchronous>, transform_indices = @transform_5, window_bounds = array<i64: 1, 1>}]} {
    %c0_i32 = arith.constant 0 : i32
    %0 = arith.cmpi eq, %arg0, %c0_i32 : i32
    %1 = arith.extui %0 : i1 to i32
    %c0_i32_0 = arith.constant 0 : i32
    %2 = arith.cmpi ne, %1, %c0_i32_0 : i32
    scf.if %2 {
      %cst_24 = arith.constant 0.000000e+00 : f32
      %34 = vector.broadcast %cst_24 : f32 to vector<1x1xf32>
      %c0_25 = arith.constant 0 : index
      %c0_26 = arith.constant 0 : index
      %35 = vector.load %arg5[%c0_25, %c0_26] : memref<1x1xf32, #tpu.memory_space<vmem>>, vector<1x1xf32>
      tpu.vector_store %arg5[%c0_25, %c0_26], %34 {strides = array<i32>} : memref<1x1xf32, #tpu.memory_space<vmem>>, vector<1x1xf32>,
      %cst_27 = arith.constant 0.000000e+00 : f32
      %36 = vector.broadcast %cst_27 : f32 to vector<1x1xf32>
      %c0_28 = arith.constant 0 : index
      %c0_29 = arith.constant 0 : index
      %37 = vector.load %arg6[%c0_28, %c0_29] : memref<1x1xf32, #tpu.memory_space<vmem>>, vector<1x1xf32>
      tpu.vector_store %arg6[%c0_28, %c0_29], %36 {strides = array<i32>} : memref<1x1xf32, #tpu.memory_space<vmem>>, vector<1x1xf32>,
    } else {
    }
    %c0 = arith.constant 0 : index
    %c0_1 = arith.constant 0 : index
    %c0_2 = arith.constant 0 : index
    %3 = vector.load %arg2[%c0, %c0_1, %c0_2] : memref<1x16x64xf32, #tpu.memory_space<vmem>>, vector<1x16x64xf32>
    %4 = vector.shape_cast %3 : vector<1x16x64xf32> to vector<16x64xf32>
    %c0_3 = arith.constant 0 : index
    %c0_4 = arith.constant 0 : index
    %c0_5 = arith.constant 0 : index
    %5 = vector.load %arg4[%c0_3, %c0_4, %c0_5] : memref<1x16x64xf32, #tpu.memory_space<vmem>>, vector<1x16x64xf32>
    %6 = vector.shape_cast %5 : vector<1x16x64xf32> to vector<16x64xf32>
    %c0_6 = arith.constant 0 : index
    %c0_7 = arith.constant 0 : index
    %7 = vector.load %arg5[%c0_6, %c0_7] : memref<1x1xf32, #tpu.memory_space<vmem>>, vector<1x1xf32>
    %8 = arith.subf %4, %6 : vector<16x64xf32>
    %9 = math.absf %8 : vector<16x64xf32>
    %10 = vector.shape_cast %9 : vector<16x64xf32> to vector<1x16x64xf32>
    %cst = arith.constant dense<0.000000e+00> : vector<1xf32>
    %11 = vector.multi_reduction <add>, %10, %cst [1, 2] : vector<1x16x64xf32> to vector<1xf32>
    %12 = vector.shape_cast %11 : vector<1xf32> to vector<1x1x1xf32>
    %13 = vector.extract %12[0, 0, 0] : f32 from vector<1x1x1xf32>
    %14 = vector.broadcast %13 : f32 to vector<1x1xf32>
    %15 = arith.addf %7, %14 : vector<1x1xf32>
    %c0_8 = arith.constant 0 : index
    %c0_9 = arith.constant 0 : index
    %16 = vector.load %arg5[%c0_8, %c0_9] : memref<1x1xf32, #tpu.memory_space<vmem>>, vector<1x1xf32>
    tpu.vector_store %arg5[%c0_8, %c0_9], %15 {strides = array<i32>} : memref<1x1xf32, #tpu.memory_space<vmem>>, vector<1x1xf32>,
    %c0_10 = arith.constant 0 : index
    %c0_11 = arith.constant 0 : index
    %c0_12 = arith.constant 0 : index
    %17 = vector.load %arg1[%c0_10, %c0_11, %c0_12] : memref<1x64x16xf32, #tpu.memory_space<vmem>>, vector<1x64x16xf32>
    %18 = vector.shape_cast %17 : vector<1x64x16xf32> to vector<64x16xf32>
    %cst_13 = arith.constant dense<0.000000e+00> : vector<64x64xf32>
    %19 = tpu.matmul %18, %4, %cst_13 {dimension_numbers = #tpu.dot_dimension_numbers<[1], [0], [0], [1], [0, 0, 1, 1], [], []>} : vector<64x16xf32>, vector<16x64xf32>, vector<64x64xf32> -> vector<64x64xf32>
    %c0_14 = arith.constant 0 : index
    %c0_15 = arith.constant 0 : index
    %c0_16 = arith.constant 0 : index
    %20 = vector.load %arg3[%c0_14, %c0_15, %c0_16] : memref<1x64x16xf32, #tpu.memory_space<vmem>>, vector<1x64x16xf32>
    %21 = vector.shape_cast %20 : vector<1x64x16xf32> to vector<64x16xf32>
    %cst_17 = arith.constant dense<0.000000e+00> : vector<64x64xf32>
    %22 = tpu.matmul %21, %6, %cst_17 {dimension_numbers = #tpu.dot_dimension_numbers<[1], [0], [0], [1], [0, 0, 1, 1], [], []>} : vector<64x16xf32>, vector<16x64xf32>, vector<64x64xf32> -> vector<64x64xf32>
    %c0_18 = arith.constant 0 : index
    %c0_19 = arith.constant 0 : index
    %23 = vector.load %arg6[%c0_18, %c0_19] : memref<1x1xf32, #tpu.memory_space<vmem>>, vector<1x1xf32>
    %24 = arith.subf %19, %22 : vector<64x64xf32>
    %25 = math.absf %24 : vector<64x64xf32>
    %26 = vector.shape_cast %25 : vector<64x64xf32> to vector<1x64x64xf32>
    %cst_20 = arith.constant dense<0.000000e+00> : vector<1xf32>
    %27 = vector.multi_reduction <add>, %26, %cst_20 [1, 2] : vector<1x64x64xf32> to vector<1xf32>
    %28 = vector.shape_cast %27 : vector<1xf32> to vector<1x1x1xf32>
    %29 = vector.extract %28[0, 0, 0] : f32 from vector<1x1x1xf32>
    %cst_21 = arith.constant 9.765625E-4 : f32
    %30 = arith.mulf %29, %cst_21 : f32
    %31 = vector.broadcast %30 : f32 to vector<1x1xf32>
    %32 = arith.addf %23, %31 : vector<1x1xf32>
    %c0_22 = arith.constant 0 : index
    %c0_23 = arith.constant 0 : index
    %33 = vector.load %arg6[%c0_22, %c0_23] : memref<1x1xf32, #tpu.memory_space<vmem>>, vector<1x1xf32>
    tpu.vector_store %arg6[%c0_22, %c0_23], %32 {strides = array<i32>} : memref<1x1xf32, #tpu.memory_space<vmem>>, vector<1x1xf32>,
    return
  }
  func.func @transform_0(%arg0: i32) -> (i32, i32, i32) {
    %c0_i32 = arith.constant 0 : i32
    %c0_i32_0 = arith.constant 0 : i32
    %c0_i32_1 = arith.constant 0 : i32
    return %arg0, %c0_i32, %c0_i32_0 : i32, i32, i32
  }
  func.func @transform_1(%arg0: i32) -> (i32, i32, i32) {
    %c0_i32 = arith.constant 0 : i32
    %c0_i32_0 = arith.constant 0 : i32
    %c0_i32_1 = arith.constant 0 : i32
    return %arg0, %c0_i32, %c0_i32_0 : i32, i32, i32
  }
  func.func @transform_2(%arg0: i32) -> (i32, i32, i32) {
    %c0_i32 = arith.constant 0 : i32
    %c0_i32_0 = arith.constant 0 : i32
    %c0_i32_1 = arith.constant 0 : i32
    return %arg0, %c0_i32, %c0_i32_0 : i32, i32, i32
  }
  func.func @transform_3(%arg0: i32) -> (i32, i32, i32) {
    %c0_i32 = arith.constant 0 : i32
    %c0_i32_0 = arith.constant 0 : i32
    %c0_i32_1 = arith.constant 0 : i32
    return %arg0, %c0_i32, %c0_i32_0 : i32, i32, i32
  }
  func.func @transform_4(%arg0: i32) -> (i32, i32) {
    %c0_i32 = arith.constant 0 : i32
    %c0_i32_0 = arith.constant 0 : i32
    %c0_i32_1 = arith.constant 0 : i32
    return %c0_i32, %c0_i32_0 : i32, i32
  }
  func.func @transform_5(%arg0: i32) -> (i32, i32) {
    %c0_i32 = arith.constant 0 : i32
    %c0_i32_0 = arith.constant 0 : i32
    %c0_i32_1 = arith.constant 0 : i32
    return %c0_i32, %c0_i32_0 : i32, i32
  }
}

</mosaic_0001>

<bundles_post_ra>
// kernel: feature_loss.16
= control target key start
LH: loop header
LB: loop body
LE: loop exit
PB: predicated region body
PF: predicated region fallthrough
CT: control target
= control target key end

     0   :  { %7 = vsyncpa [#allocation3], 0  ;;  %s687_s0 = inlined_call_operand.hbm [shape: f32[2,3,16,16], index: 0, kind: input, shape index: {}]   ;;  %s688_s1 = inlined_call_operand.hbm [shape: f32[2,3,16,16], index: 1, kind: input, shape index: {}]   ;;  %s689_s2 = inlined_call_operand.hbm [shape: f32[1,1], index: 2, kind: output, shape index: {}]  }
   0x1   :  { %9 = vsyncpa [#allocation3 + $0x1], 0 }
   0x2   :  { %10 = vsyncpa [#allocation6], 0 }
   0x3   :  { %12 = vsyncpa [#allocation6 + $0x1], 0 }
   0x4   :  { %13 = vsyncpa [#allocation4], 0  ;;  %s555_s9 = smov 0   ;;  %s557_s10 = smov 0  }
   0x5   :  { %s559_s11 = smov 0   ;;  %s561_s12 = smov 0  }
   0x6 LB: > { %s574_s13 = sadd.s32 4294967295, %s534_s12   ;;  %s577_s14 = sadd.s32 1, %s534_s12   ;;  %s534_s12 = sphi %s561_s12, %s696_s12   ;;  %s530_s11 = sphi %s559_s11, %s695_s11   ;;  %s526_s10 = sphi %s557_s10, %s694_s10   ;;  %s522_s9 = sphi %s555_s9, %s693_s9  }
   0x7   : > { %s23_s15 = ssub.s32 %s534_s12, %s577_s14  ;;  %s26_s16 = sadd.s32 1, %s530_s11 }
   0x8   : > { %p24_p0 = scmp.eq.s32.totalorder %s23_s15, 0  ;;  %p33_p1 = scmp.ne.s32.totalorder %s530_s11, %s526_s10 }
   0x9   : > { %p34_p2 = scmp.eq.s32.totalorder %s534_s12, 0  ;;  %p39_p3 = scmp.ne.s32.totalorder %s526_s10, %s522_s9 }
   0xa   : > { %s587_s17 = scalar_select %p24_p0, %s530_s11, %s26_s16  }
   0xb   : > { %p35_p4 = por %p34_p2, %p33_p1  ;;  %p40_p5 = scmp.eq.s32.totalorder %s574_s13, 0 }
   0xc   : > { %p365_p6 = scmp.lt.s32.totalorder %s534_s12, 2  ;;  %s596_s19 = sand.u32 1, %s530_s11  }
   0xd   : > { %p591_p7 = por %p40_p5, %p39_p3  ;;  %s343_s20 = smul.u32 48, %s596_s19 }
   0xe   : > { %s344_s21 = smul.u32 48, %s534_s12  ;;  %p600_p8 = pnand %p365_p6, %p35_p4 }
   0xf   : > { %s114_s26 = scalar_lea.vmem [#allocation2], %s343_s20  ;;  %p337_p9 = scmp.ge.s32.totalorder %s534_s12, 1 }
  0x10   : > { %s119_s25 = scalar_lea.hbm %s687_s0, %s344_s21  ;;  %s122_s27 = sshll.u32 %s114_s26, 4  ;;  %s123_s27 = int_to_ptr.vmem [resolvable:$true] %s122_s27 }
  0x11   : > { %s120_s28 = sshll.u32 %s119_s25, 4  ;;  %s111_s29 = scalar_lea.sflag [#allocation3], %s596_s19  ;;  %s121_s28 = int_to_ptr.hbm [resolvable:$true] %s120_s28 }
  0x12   : > { %s404_s30 = sshra.s32 %s121_s28, 4  ;;  %p408_p11 = pneg %p600_p8  ;;  %s405_s30 = int_to_ptr.hbm [resolvable:$true] %s404_s30 }
  0x13   : > { %s406_s3 = scalar_lea.hbm %s405_s30, 48  ;;  %s411_s6 = scalar_lea.hbm %s687_s0, 96 }
  0x14   : > { %p407_p10 = scmp.ne.s32.totalorder %s405_s30, %s406_s3  ;;  %p412_p0 = scmp.lt.s32.totalorder %s405_s30, %s687_s0 }
  0x15   : > { %p413_p1 = scmp.lt.s32.totalorder %s411_s6, %s406_s3 }
  0x16   : > { %p409_p12 = pnand %p408_p11, %p407_p10 }
  0x17   : > { %p414_p2 = por %p413_p1, %p412_p0 }
  0x18   : > { %p410_p13 = pneg %p409_p12 }
  0x1a   : > { %p415_p3 = pnand %p414_p2, %p410_p13 }
  0x1c   : > { %418 = shalt.err (!%p415_p3)
}
  0x1d   : > { %s536_s9 = smov 128   ;;  %s537_s15 = smov 8  }
  0x1e   : > { %361 = dma.hbm_to_vmem [thread:$0]  (!%p600_p8), %s121_s28, 768, %s123_s27, %s111_s29, %s536_s9, %s536_s9, %s537_s15  }
  0x1f   : > { %p152_p4 = scmp.lt.s32.totalorder %s534_s12, 3  ;;  %s141_s24 = scalar_lea.hbm %s688_s1, %s344_s21 }
  0x20   : > { %s142_s26 = sshll.u32 %s141_s24, 4  ;;  %s136_s30 = scalar_lea.vmem [#allocation5], %s343_s20  ;;  %s143_s26 = int_to_ptr.hbm [resolvable:$true] %s142_s26 }
  0x21   : > { %p634_p5 = pnand %p337_p9, %p152_p4  ;;  %s144_s3 = sshll.u32 %s136_s30, 4  ;;  %s145_s3 = int_to_ptr.vmem [resolvable:$true] %s144_s3 }
  0x22   : > { %s133_s4 = scalar_lea.sflag [#allocation6], %s596_s19  ;;  %s434_s5 = sshra.s32 %s143_s26, 4  ;;  %s435_s5 = int_to_ptr.hbm [resolvable:$true] %s434_s5 }
  0x23   : > { %s436_s27 = scalar_lea.hbm %s435_s5, 48  ;;  %s441_s28 = scalar_lea.hbm %s688_s1, 96 }
  0x24   : > { %p437_p6 = scmp.ne.s32.totalorder %s435_s5, %s436_s27  ;;  %p442_p9 = scmp.lt.s32.totalorder %s435_s5, %s688_s1 }
  0x25   : > { %p443_p13 = scmp.lt.s32.totalorder %s441_s28, %s436_s27 }
  0x26   : > { %p439_p10 = pnand %p437_p6, %p408_p11 }
  0x27   : > { %p444_p0 = por %p443_p13, %p442_p9 }
  0x28   : > { %p440_p12 = pneg %p439_p10 }
  0x2a   : > { %p445_p1 = pnand %p444_p0, %p440_p12 }
  0x2c   : > { %448 = shalt.err (!%p445_p1)
}
  0x2d   : > { %364 = dma.hbm_to_vmem [thread:$0]  (!%p600_p8), %s143_s26, 768, %s145_s3, %s133_s4, %s536_s9, %s536_s9, %s537_s15  }
  0x2e   : > { %156 = sbr.rel (%p634_p5) target bundleno = 266 (0x10a), region = 28  ;;  %s158_s19 = sand.u32 (!%p634_p5), 1, %s526_s10  }
  0x2f   : > { %s347_s20 = smul.u32 (!%p634_p5), 48, %s158_s19  ;;  %s159_s7 = scalar_lea.sflag (!%p634_p5), [#allocation3], %s158_s19 }
  0x31   : > { %s162_s8 = scalar_lea.vmem (!%p634_p5), [#allocation2], %s347_s20 }
  0x33   : > { %509 = dma.done.wait (%p591_p7), %s159_s7, 768  }
  0x34   : > { %511 = vsyncadd (%p591_p7), %s159_s7, 4294966528  ;;  %s169_s16 = scalar_lea.sflag [#allocation6], %s158_s19  ;;  %s172_s23 = scalar_lea.vmem [#allocation5], %s347_s20 }
  0x35   : > { %513 = dma.done.wait (%p591_p7), %s169_s16, 768  }
  0x36   : > { %515 = vsyncadd (%p591_p7), %s169_s16, 4294966528  ;;  %p338_p8 = scmp.ne.s32.totalorder %s574_s13, 0 }
  0x38   : > { %197 = sbr.rel (%p338_p8) target bundleno = 63 (0x3f), region = 40 }
  0x3d   : > { %vm198_vm0 = vcmask 0   ;;  %v538_v0 = vmov 0.0  }
  0x3e   : > { %199 = vst.msk [vmem:[#allocation7] sm:$0x1] %vm198_vm0, %v538_v0 }
  0x3f PF: > { %v200_v1 = vld [vmem:[%s162_s8] sm:$0xff]  ;;  %v201_v2 = vld [vmem:[%s162_s8 + $0x8] sm:$0xff]  ;;  %v202_v3 = vld [vmem:[%s162_s8 + $0x10] sm:$0xff]  ;;  %vm224_vm1 = vcmask 130048   ;;  %s539_s18 = smov [#allocation7]   ;;  %s258_s24 = sshll.u32 %s689_s2, 4  ;;  %s259_s24 = int_to_ptr.hbm [resolvable:$true] %s258_s24 }
  0x40   : > { %v203_v4 = vld [vmem:[%s162_s8 + $0x18] sm:$0xff]  ;;  %v204_v5 = vld [vmem:[%s162_s8 + $0x20] sm:$0xff]  ;;  %v205_v6 = vld [vmem:[%s162_s8 + $0x28] sm:$0xff]  ;;  %s256_s22 = sshll.u32 %s539_s18, 4  ;;  %vm248_vm2 = vcmask 0   ;;  %p366_p7 = scmp.eq.s32.totalorder %s574_s13, 1  ;;  %s257_s22 = int_to_ptr.vmem [resolvable:$true] %s256_s22 }
  0x41   : > { %v206_v7 = vld [vmem:[%s172_s23] sm:$0xff]  ;;  %v207_v8 = vld [vmem:[%s172_s23 + $0x8] sm:$0xff]  ;;  %v208_v9 = vld [vmem:[%s172_s23 + $0x10] sm:$0xff] }
  0x42   : > { %v209_v10 = vld [vmem:[%s172_s23 + $0x18] sm:$0xff]  ;;  %v210_v11 = vld [vmem:[%s172_s23 + $0x20] sm:$0xff]  ;;  %v211_v12 = vld [vmem:[%s172_s23 + $0x28] sm:$0xff]  ;;  %v212_v13 = vsub.f32 %v200_v1, %v206_v7  ;;  %v213_v14 = vsub.f32 %v201_v2, %v207_v8  ;;  %v214_v15 = vsub.f32 %v202_v3, %v208_v9 }
  0x43   : > { %v215_v16 = vsub.f32 %v203_v4, %v209_v10  ;;  %v216_v17 = vsub.f32 %v204_v5, %v210_v11  ;;  %v217_v18 = vsub.f32 %v205_v6, %v211_v12 }
  0x44   : > { %v218_v19 = vand.u32 2147483647, %v212_v13  ;;  %v219_v20 = vand.u32 2147483647, %v213_v14  ;;  %v220_v21 = vand.u32 2147483647, %v214_v15 }
  0x45   : > { %v221_v22 = vand.u32 2147483647, %v215_v16  ;;  %v222_v23 = vand.u32 2147483647, %v216_v17  ;;  %v223_v28 = vand.u32 2147483647, %v217_v18 }
  0x46   : > { %v225_v24 = vsel %vm224_vm1, %v218_v19, 0.0  ;;  %v226_v25 = vsel %vm224_vm1, %v219_v20, 0.0  ;;  %v228_v26 = vsel %vm224_vm1, %v220_v21, 0.0  ;;  %v245_v43 = vld [vmem:[#allocation7] sm:$0x1] }
  0x47   : > { %v227_v27 = vadd.f32 %v226_v25, %v225_v24  ;;  %v230_v29 = vsel %vm224_vm1, %v221_v22, 0.0  ;;  %v232_v31 = vsel %vm224_vm1, %v222_v23, 0.0  ;;  %v234_v33 = vsel %vm224_vm1, %v223_v28, 0.0 }
  0x49   : > { %v229_v30 = vadd.f32 %v228_v26, %v227_v27 }
  0x4b   : > { %v231_v32 = vadd.f32 %v230_v29, %v229_v30 }
  0x4d   : > { %v233_v34 = vadd.f32 %v232_v31, %v231_v32 }
  0x4f   : > { %v235_v35 = vadd.f32 %v234_v33, %v233_v34 }
  0x51   : > { %236 = vadd.xlane.f32.xlu0 %v235_v35 }
  0xc4   : > { %v237_v36 = vpop.xlane.xlu0 %236 }
  0xc5   : > { %v238_v37 = vrot.slane %v237_v36, 4 }
  0xc7   : > { %v239_v38 = vadd.f32 %v238_v37, %v237_v36 }
  0xc9   : > { %v240_v39 = vrot.slane %v239_v38, 2 }
  0xcb   : > { %v241_v40 = vadd.f32 %v240_v39, %v239_v38 }
  0xcd   : > { %v242_v41 = vrot.slane %v241_v40, 1 }
  0xcf   : > { %v243_v42 = vadd.f32 %v242_v41, %v241_v40 }
  0xd1   : > { %348 = vpush %v243_v42 }
 0x102   : > { %s349_s25 = spop %348 }
 0x103   : > { %v246_v44 = vstv %s349_s25 }
 0x104   : > { %v247_v45 = vadd.f32 %v246_v44, %v245_v43 }
 0x106   : > { %249 = vst.msk [vmem:[#allocation7] sm:$0x1] %vm248_vm2, %v247_v45 }
 0x107   : > { %355 = dma.vmem_to_hbm [thread:$0]  (%p366_p7), %s257_s22, 16, %s259_s24, [#allocation4]  }
 0x108   : > { %517 = dma.done.wait (%p366_p7), [#allocation4], 16  }
 0x109   : > { %519 = vsyncadd (%p366_p7), [#allocation4], 4294967280 }
 0x10a PF: > { %p16_p11 = scmp.ge.s32.totalorder %s577_s14, 4   ;;  %s693_s9 = smov %s526_s10 }
 0x10b   : > { %s694_s10 = smov %s530_s11  ;;  %s695_s11 = smov %s587_s17 }
 0x10c   : > { %s696_s12 = smov %s577_s14  ;;  %18 = sbr.rel (!%p16_p11) target bundleno = 6 (0x6), region = 82 }
 0x111   :  { %272 = vsyncpa [#allocation3], 1 }
 0x112   :  { %274 = vsyncpa [#allocation3 + $0x1], 1 }
 0x113   :  { %275 = vsyncpa [#allocation6], 1 }
 0x114   :  { %277 = vsyncpa [#allocation6 + $0x1], 1 }
 0x115   :  { %278 = vsyncpa [#allocation4], 1 }
 0x116   :  { %280 = vsyncpa [#allocation4 + $0x1], 1 }

// kernel: feature_loss.17
= control target key start
LH: loop header
LB: loop body
LE: loop exit
PB: predicated region body
PF: predicated region fallthrough
CT: control target
= control target key end

     0   :  { %11 = vsyncpa [#allocation3], 0  ;;  %s1309_s0 = inlined_call_operand.vmem [shape: f32[2,16,256], index: 0, kind: input, shape index: {}]   ;;  %s1310_s1 = inlined_call_operand.vmem [shape: f32[2,256,16], index: 1, kind: input, shape index: {}]   ;;  %s1311_s2 = inlined_call_operand.vmem [shape: f32[2,16,256], index: 2, kind: input, shape index: {}]   ;;  %s1312_s3 = inlined_call_operand.vmem [shape: f32[2,256,16], index: 3, kind: input, shape index: {}]   ;;  %s1313_s4 = inlined_call_operand.hbm [shape: f32[1,1], index: 4, kind: output, shape index: {0}]   ;;  %s1314_s5 = inlined_call_operand.hbm [shape: f32[1,1], index: 5, kind: output, shape index: {1}]  }
   0x1   :  { %12 = vsyncpa [#allocation5], 0  ;;  %s867_s18 = smov 0  }
   0x2 LB: > { %s873_s19 = sadd.s32 4294967295, %s832_s18   ;;  %p715_p0 = scmp.ge.s32.totalorder %s832_s18, 1  ;;  %s832_s18 = sphi %s867_s18, %s18_s18  }
   0x3   : > { %p212_p1 = scmp.lt.s32.totalorder %s832_s18, 3 }
   0x5   : > { %p213_p2 = pnand %p715_p0, %p212_p1 }
   0x7   : > { %216 = sbr.rel (%p213_p2) target bundleno = 394 (0x18a), region = 36 }
   0xc   : > { %p250_p3 = scmp.lt.s32.totalorder %s873_s19, 1  ;;  %p724_p4 = scmp.ne.s32.totalorder %s873_s19, 0 }
   0xe   : > { %s251_s20 = scalar_select %p250_p3, %s873_s19, 1 }
   0xf   : > { %273 = sbr.rel (%p724_p4) target bundleno = 23 (0x17), region = 40 }
  0x10   : > { %s731_s21 = sshll.u32 %s251_s20, 5  ;;  %s732_s22 = sshll.u32 %s251_s20, 8 }
  0x11   : > { %s882_s25 = scalar_lea.vmem %s1309_s0, %s731_s21  ;;  %s887_s28 = scalar_lea.vmem %s1310_s1, %s732_s22 }
  0x12   : > { %s892_s6 = scalar_lea.vmem %s1311_s2, %s731_s21  ;;  %s897_s9 = scalar_lea.vmem %s1312_s3, %s732_s22 }
  0x14   : > { %vm274_vm0 = vcmask 0   ;;  %v834_v0 = vmov 0.0  }
  0x15   : > { %275 = vst.msk [vmem:[#allocation2] sm:$0x1] %vm274_vm0, %v834_v0 }
  0x16   : > { %276 = vst.msk [vmem:[#allocation4] sm:$0x1] %vm274_vm0, %v834_v0 }
  0x17 PF: > { %v901_v1 = vld [vmem:[%s897_s9 + $0x78] sm:$0xff]  ;;  %v907_v3 = vld [vmem:[%s897_s9 + $0x70] sm:$0xff]  ;;  %v915_v5 = vld [vmem:[%s897_s9 + $0x68] sm:$0xff]  ;;  %vm406_vm1 = vcmask 130048   ;;  %s835_s10 = smov [#allocation2]   ;;  %s612_s14 = sshll.u32 %s1313_s4, 4  ;;  %s613_s14 = int_to_ptr.hbm [resolvable:$true] %s612_s14 }
  0x18   : > { %v904_v2 = vld [vmem:[%s897_s9 + $0xf8] sm:$0xff]  ;;  %537 = vmatpush.msra.mxu2 %v901_v1  ;;  %v912_v4 = vld [vmem:[%s897_s9 + $0xf0] sm:$0xff]  ;;  %v918_v6 = vld [vmem:[%s897_s9 + $0xe8] sm:$0xff]  ;;  %s610_s11 = sshll.u32 %s835_s10, 4  ;;  %p747_p5 = scmp.eq.s32.totalorder %s873_s19, 1  ;;  %vm481_vm2 = vcmask 0   ;;  %s611_s11 = int_to_ptr.vmem [resolvable:$true] %s610_s11 }
  0x19   : > { %1324 = vst [vmem:[#allocation8_spill] sm:$0xff] %v904_v2  ;;  %560 = vmatpush.msra.mxu3 %v904_v2  ;;  %v921_v7 = vld [vmem:[%s887_s28 + $0x78] sm:$0xff]  ;;  %v933_v11 = vld [vmem:[%s887_s28 + $0x70] sm:$0xff]  ;;  %v941_v13 = vld [vmem:[%s897_s9 + $0x60] sm:$0xff]  ;;  %s624_s21 = sshll.u32 %s1314_s5, 4  ;;  %s836_s23 = smov [#allocation4]   ;;  %s625_s21 = int_to_ptr.hbm [resolvable:$true] %s624_s21 }
  0x1a   : > { %1325 = vst [vmem:[#allocation9_spill] sm:$0xff] %v912_v4  ;;  %v924_v8 = vld [vmem:[%s887_s28 + $0xf8] sm:$0xff]  ;;  %538 = vmatpush.msra.mxu2 %v907_v3  ;;  %v936_v12 = vld [vmem:[%s887_s28 + $0xf0] sm:$0xff]  ;;  %487 = vmatpush.msra.mxu0 %v921_v7  ;;  %v944_v14 = vld [vmem:[%s897_s9 + $0xe0] sm:$0xff]  ;;  %s622_s24 = sshll.u32 %s836_s23, 4  ;;  %s623_s24 = int_to_ptr.vmem [resolvable:$true] %s622_s24 }
  0x1b   : > { %1326 = vst [vmem:[#allocation10_spill] sm:$0xff] %v918_v6  ;;  %561 = vmatpush.msra.mxu3 %v912_v4  ;;  %510 = vmatpush.msra.mxu1 %v924_v8  ;;  %v951_v17 = vld [vmem:[%s887_s28 + $0x68] sm:$0xff]  ;;  %v963_v20 = vld [vmem:[%s897_s9 + $0x58] sm:$0xff]  ;;  %v971_v23 = vld [vmem:[%s887_s28 + $0x60] sm:$0xff] }
  0x1c   : > { %1327 = vst [vmem:[#allocation11_spill] sm:$0xff] %v924_v8  ;;  %539 = vmatpush.msra.mxu2 %v915_v5  ;;  %v958_v19 = vld [vmem:[%s887_s28 + $0xe8] sm:$0xff]  ;;  %488 = vmatpush.msra.mxu0 %v933_v11  ;;  %v966_v21 = vld [vmem:[%s897_s9 + $0xd8] sm:$0xff]  ;;  %v976_v24 = vld [vmem:[%s897_s9 + $0x50] sm:$0xff] }
  0x1d   : > { %1328 = vst [vmem:[#allocation12_spill] sm:$0xff] %v936_v12  ;;  %562 = vmatpush.msra.mxu3 %v918_v6  ;;  %511 = vmatpush.msra.mxu1 %v936_v12  ;;  %v981_v26 = vld [vmem:[%s887_s28 + $0xe0] sm:$0xff]  ;;  %v986_v27 = vld [vmem:[%s897_s9 + $0xd0] sm:$0xff]  ;;  %v991_v29 = vld [vmem:[%s887_s28 + $0x58] sm:$0xff] }
  0x1e   : > { %1329 = vst [vmem:[#allocation13_spill] sm:$0xff] %v944_v14  ;;  %540 = vmatpush.msra.mxu2 %v941_v13  ;;  %489 = vmatpush.msra.mxu0 %v951_v17  ;;  %v994_v30 = vld [vmem:[%s887_s28 + $0xd8] sm:$0xff]  ;;  %v1003_v33 = vld [vmem:[%s887_s28 + $0x50] sm:$0xff]  ;;  %v1011_v35 = vld [vmem:[%s897_s9 + $0x48] sm:$0xff] }
  0x1f   : > { %1330 = vst [vmem:[#allocation14_spill] sm:$0xff] %v958_v19  ;;  %563 = vmatpush.msra.mxu3 %v944_v14  ;;  %512 = vmatpush.msra.mxu1 %v958_v19  ;;  %v1006_v34 = vld [vmem:[%s887_s28 + $0xd0] sm:$0xff]  ;;  %v1014_v36 = vld [vmem:[%s897_s9 + $0xc8] sm:$0xff]  ;;  %v1033_v42 = vld [vmem:[%s897_s9 + $0x40] sm:$0xff] }
  0x20   : > { %1331 = vst [vmem:[#allocation15_spill] sm:$0xff] %v966_v21  ;;  %541 = vmatpush.msra.mxu2 %v963_v20  ;;  %490 = vmatpush.msra.mxu0 %v971_v23  ;;  %v1021_v39 = vld [vmem:[%s887_s28 + $0x48] sm:$0xff]  ;;  %v1036_v43 = vld [vmem:[%s897_s9 + $0xc0] sm:$0xff]  ;;  %v1048_v46 = vld [vmem:[%s897_s9 + $0x38] sm:$0xff] }
  0x21   : > { %1332 = vst [vmem:[#allocation16_spill] sm:$0xff] %v981_v26  ;;  %564 = vmatpush.msra.mxu3 %v966_v21  ;;  %513 = vmatpush.msra.mxu1 %v981_v26  ;;  %v1028_v41 = vld [vmem:[%s887_s28 + $0xc8] sm:$0xff]  ;;  %v1043_v45 = vld [vmem:[%s887_s28 + $0x40] sm:$0xff]  ;;  %v1051_v47 = vld [vmem:[%s897_s9 + $0xb8] sm:$0xff] }
  0x22   : > { %542 = vmatpush.msra.mxu2 %v976_v24  ;;  %491 = vmatpush.msra.mxu0 %v991_v29  ;;  %v1056_v49 = vld [vmem:[%s887_s28 + $0xc0] sm:$0xff]  ;;  %v1063_v51 = vld [vmem:[%s887_s28 + $0xb8] sm:$0xff]  ;;  %v1068_v52 = vld [vmem:[%s897_s9 + $0x30] sm:$0xff] }
  0x23   : > { %565 = vmatpush.msra.mxu3 %v986_v27  ;;  %514 = vmatpush.msra.mxu1 %v994_v30  ;;  %v1071_v53 = vld [vmem:[%s897_s9 + $0xb0] sm:$0xff]  ;;  %v1078_v55 = vld [vmem:[%s887_s28 + $0x38] sm:$0xff]  ;;  %v1086_v57 = vld [vmem:[%s897_s9 + $0x28] sm:$0xff] }
  0x24   : > { %543 = vmatpush.msra.mxu2 %v1011_v35  ;;  %492 = vmatpush.msra.mxu0 %v1003_v33  ;;  %v1081_v56 = vld [vmem:[%s887_s28 + $0xb0] sm:$0xff]  ;;  %v1089_v58 = vld [vmem:[%s897_s9 + $0xa8] sm:$0xff]  ;;  %v313_v62 = vld [vmem:[%s897_s9 + $0x20] sm:$0xff] }
  0x25   : > { %566 = vmatpush.msra.mxu3 %v1014_v36  ;;  %515 = vmatpush.msra.mxu1 %v1006_v34  ;;  %v1096_v60 = vld [vmem:[%s887_s28 + $0x30] sm:$0xff]  ;;  %v1099_v61 = vld [vmem:[%s887_s28 + $0xa8] sm:$0xff]  ;;  %v1105_v63 = vld [vmem:[%s897_s9 + $0xa0] sm:$0xff] }
  0x26   : > { %544 = vmatpush.msra.mxu2 %v1033_v42  ;;  %493 = vmatpush.msra.mxu0 %v1021_v39  ;;  %v1110_v10 = vld [vmem:[%s887_s28 + $0xa0] sm:$0xff]  ;;  %v312_v16 = vld [vmem:[%s897_s9 + $0x18] sm:$0xff]  ;;  %v1116_v22 = vld [vmem:[%s887_s28 + $0x28] sm:$0xff] }
  0x27   : > { %567 = vmatpush.msra.mxu3 %v1036_v43  ;;  %516 = vmatpush.msra.mxu1 %v1028_v41  ;;  %v1123_v32 = vld [vmem:[%s897_s9 + $0x98] sm:$0xff]  ;;  %v311_v38 = vld [vmem:[%s897_s9 + $0x10] sm:$0xff]  ;;  %v281_v54 = vld [vmem:[%s887_s28 + $0x20] sm:$0xff]  ;;  %v347_v14 = vsub.f32 %v1116_v22, %v1086_v57 }
  0x28   : > { %545 = vmatpush.msra.mxu2 %v1048_v46  ;;  %494 = vmatpush.msra.mxu0 %v1043_v45  ;;  %v1127_v44 = vld [vmem:[%s887_s28 + $0x98] sm:$0xff]  ;;  %v1131_v50 = vld [vmem:[%s897_s9 + $0x90] sm:$0xff]  ;;  %v310_v59 = vld [vmem:[%s897_s9 + $0x8] sm:$0xff]  ;;  %v346_v4 = vsub.f32 %v281_v54, %v313_v62 }
  0x29   : > { %568 = vmatpush.msra.mxu3 %v1051_v47  ;;  %517 = vmatpush.msra.mxu1 %v1056_v49  ;;  %v1140_v28 = vld [vmem:[%s897_s9 + $0x88] sm:$0xff]  ;;  %v280_v9 = vld [vmem:[%s887_s28 + $0x18] sm:$0xff]  ;;  %v279_v15 = vld [vmem:[%s887_s28 + $0x10] sm:$0xff] }
  0x2a   : > { %546 = vmatpush.msra.mxu2 %v1068_v52  ;;  %495 = vmatpush.msra.mxu0 %v1078_v55  ;;  %v345_v18 = vsub.f32 %v280_v9, %v312_v16  ;;  %v344_v25 = vsub.f32 %v279_v15, %v311_v38  ;;  %v1146_v31 = vld [vmem:[%s887_s28 + $0x90] sm:$0xff]  ;;  %v278_v37 = vld [vmem:[%s887_s28 + $0x8] sm:$0xff]  ;;  %v309_v0 = vld [vmem:[%s897_s9] sm:$0xff] }
  0x2b   : > { %569 = vmatpush.msra.mxu3 %v1071_v53  ;;  %518 = vmatpush.msra.mxu1 %v1063_v51  ;;  %v1150_v40 = vld [vmem:[%s887_s28 + $0x88] sm:$0xff]  ;;  %v343_v2 = vsub.f32 %v278_v37, %v310_v59  ;;  %v1162_v19 = vld [vmem:[%s897_s9 + $0x80] sm:$0xff] }
  0x2c   : > { %547 = vmatpush.msra.mxu2 %v1086_v57  ;;  %496 = vmatpush.msra.mxu0 %v1096_v60  ;;  %v376_v12 = vand.u32 2147483647, %v344_v25  ;;  %v377_v8 = vand.u32 2147483647, %v345_v18  ;;  %v534_v26 = vld [vmem:[%s892_s6 + $0x8] sm:$0xff] }
  0x2d   : > { %570 = vmatpush.msra.mxu3 %v1089_v58  ;;  %519 = vmatpush.msra.mxu1 %v1081_v56  ;;  %v375_v48 = vand.u32 2147483647, %v343_v2  ;;  %v348_v2 = vsub.f32 %v1096_v60, %v1068_v52  ;;  %v378_v25 = vand.u32 2147483647, %v346_v4  ;;  %v483_v4 = vld [vmem:[%s882_s25] sm:$0xff]  ;;  %v484_v57 = vld [vmem:[%s882_s25 + $0x8] sm:$0xff]  ;;  %v1333_v60 = vsub.f32 %v1043_v45, %v1033_v42 }
  0x2e   : > { %548 = vmatpush.msra.mxu2 %v313_v62  ;;  %497 = vmatpush.msra.mxu0 %v1116_v22  ;;  %v410_v18 = vsel %vm406_vm1, %v376_v12, 0.0  ;;  %v412_v52 = vsel %vm406_vm1, %v377_v8, 0.0 }
  0x2f   : > { %571 = vmatpush.msra.mxu3 %v1105_v63  ;;  %520 = vmatpush.msra.mxu1 %v1099_v61  ;;  %v382_v62 = vand.u32 2147483647, %v1333_v60 }
  0x30   : > { %549 = vmatpush.msra.mxu2 %v312_v16  ;;  %498 = vmatpush.msra.mxu0 %v281_v54  ;;  %v277_v16 = vld [vmem:[%s887_s28] sm:$0xff]  ;;  %v379_v54 = vand.u32 2147483647, %v347_v14 }
  0x31   : > { %572 = vmatpush.msra.mxu3 %v1123_v32  ;;  %521 = vmatpush.msra.mxu1 %v1110_v10  ;;  %v342_v6 = vsub.f32 %v277_v16, %v309_v0  ;;  %v422_v42 = vsel %vm406_vm1, %v382_v62, 0.0 }
  0x32   : > { %550 = vmatpush.msra.mxu2 %v311_v38  ;;  %499 = vmatpush.msra.mxu0 %v280_v9  ;;  %v533_v38 = vld [vmem:[%s892_s6] sm:$0xff]  ;;  %v408_v9 = vsel %vm406_vm1, %v375_v48, 0.0  ;;  %v349_v48 = vsub.f32 %v1078_v55, %v1048_v46  ;;  %v416_v8 = vsel %vm406_vm1, %v379_v54, 0.0  ;;  %v535_v46 = vld [vmem:[%s892_s6 + $0x10] sm:$0xff]  ;;  %v1336_v54 = vsub.f32 %v991_v29, %v963_v20 }
  0x33   : > { %573 = vmatpush.msra.mxu3 %v1131_v50  ;;  %522 = vmatpush.msra.mxu1 %v1127_v44  ;;  %v374_v21 = vand.u32 2147483647, %v342_v6  ;;  %v1339_v20 = vsub.f32 %v933_v11, %v907_v3  ;;  %v1341_v3 = vsub.f32 %v1150_v40, %v1140_v28 }
  0x34   : > { %551 = vmatpush.msra.mxu2 %v310_v59  ;;  %500 = vmatpush.msra.mxu0 %v279_v15  ;;  %v293_v15 = vld [vmem:[%s887_s28 + $0x80] sm:$0xff]  ;;  %v380_v59 = vand.u32 2147483647, %v348_v2  ;;  %v381_v14 = vand.u32 2147483647, %v349_v48 }
  0x35   : > { %574 = vmatpush.msra.mxu3 %v1140_v28  ;;  %523 = vmatpush.msra.mxu1 %v1146_v31  ;;  %v407_v22 = vsel %vm406_vm1, %v374_v21, 0.0  ;;  %v414_v21 = vsel %vm406_vm1, %v378_v25, 0.0  ;;  %v485_v25 = vld [vmem:[%s882_s25 + $0x10] sm:$0xff]  ;;  %v388_v29 = vand.u32 2147483647, %v1339_v20 }
  0x36   : > { %552 = vmatpush.msra.mxu2 %v309_v0  ;;  %v409_v6 = vadd.f32 %v408_v9, %v407_v22  ;;  %501 = vmatpush.msra.mxu0 %v278_v37  ;;  %v536_v37 = vld [vmem:[%s892_s6 + $0x18] sm:$0xff]  ;;  %v418_v0 = vsel %vm406_vm1, %v380_v59, 0.0  ;;  %v420_v2 = vsel %vm406_vm1, %v381_v14, 0.0  ;;  %v391_v11 = vand.u32 2147483647, %v1341_v3 }
  0x37   : > { %575 = vmatpush.msra.mxu3 %v1162_v19  ;;  %553 = vmatmul.f32.vlgmr.msra.gmra.mxu2 %v533_v38  ;;  %v1362_v3 = vld [vmem:[#allocation11_spill] sm:$0xff] }
  0x38   : > { %576 = vmatmul.f32.vlgmr.msra.gmra.mxu3 %v534_v26  ;;  %524 = vmatpush.msra.mxu1 %v1150_v40  ;;  %v411_v12 = vadd.f32 %v410_v18, %v409_v6  ;;  %v486_v18 = vld [vmem:[%s882_s25 + $0x18] sm:$0xff]  ;;  %v1335_v6 = vsub.f32 %v1003_v33, %v976_v24  ;;  %v1338_v33 = vsub.f32 %v951_v17, %v915_v5  ;;  %v434_v17 = vsel %vm406_vm1, %v388_v29, 0.0 }
  0x39   : > { %502 = vmatpush.msra.mxu0 %v277_v16  ;;  %v1334_v16 = vsub.f32 %v1021_v39, %v1011_v35 }
  0x3a   : > { %525 = vmatpush.msra.mxu1 %v293_v15  ;;  %v413_v26 = vadd.f32 %v412_v52, %v411_v12  ;;  %503 = vmatmul.f32.vlgmr.msra.gmra.mxu0 %v483_v4  ;;  %v384_v48 = vand.u32 2147483647, %v1335_v6  ;;  %v385_v52 = vand.u32 2147483647, %v1336_v54  ;;  %v1337_v4 = vsub.f32 %v971_v23, %v941_v13 }
  0x3b   : > { %526 = vmatmul.f32.vlgmr.msra.gmra.mxu1 %v484_v57  ;;  %v383_v9 = vand.u32 2147483647, %v1334_v16  ;;  %v387_v59 = vand.u32 2147483647, %v1338_v33  ;;  %v1340_v23 = vsub.f32 %v921_v7, %v901_v1 }
  0x3c   : > { %v415_v55 = vadd.f32 %v414_v21, %v413_v26  ;;  %v386_v57 = vand.u32 2147483647, %v1337_v4  ;;  %v426_v12 = vsel %vm406_vm1, %v384_v48, 0.0  ;;  %v428_v21 = vsel %vm406_vm1, %v385_v52, 0.0 }
  0x3d   : > { %v424_v35 = vsel %vm406_vm1, %v383_v9, 0.0  ;;  %v440_v9 = vsel %vm406_vm1, %v391_v11, 0.0  ;;  %v1363_v11 = vld [vmem:[#allocation8_spill] sm:$0xff] }
  0x3e   : > { %v417_v38 = vadd.f32 %v416_v8, %v415_v55  ;;  %v430_v14 = vsel %vm406_vm1, %v386_v57, 0.0  ;;  %v358_v8 = vsub.f32 %v293_v15, %v1162_v19  ;;  %v1342_v19 = vsub.f32 %v1146_v31, %v1131_v50 }
  0x3f   : > { %556 = vmatmul.f32.gmra.mxu2 %v535_v46  ;;  %v389_v46 = vand.u32 2147483647, %v1340_v23  ;;  %v1345_v31 = vsub.f32 %v1099_v61, %v1089_v58  ;;  %v1347_v58 = vsub.f32 %v1063_v51, %v1051_v47  ;;  %v1350_v57 = vsub.f32 %v1006_v34, %v986_v27  ;;  %v1351_v47 = vld [vmem:[#allocation15_spill] sm:$0xff]  ;;  %v1357_v27 = vld [vmem:[#allocation10_spill] sm:$0xff] }
  0x40   : > { %579 = vmatmul.f32.gmra.mxu3 %v536_v37  ;;  %v419_v22 = vadd.f32 %v418_v0, %v417_v38  ;;  %v432_v37 = vsel %vm406_vm1, %v387_v59, 0.0  ;;  %v390_v55 = vand.u32 2147483647, %v358_v8  ;;  %v392_v15 = vand.u32 2147483647, %v1342_v19 }
  0x41   : > { %v436_v62 = vsel %vm406_vm1, %v389_v46, 0.0  ;;  %v1343_v38 = vsub.f32 %v1127_v44, %v1123_v32  ;;  %v395_v50 = vand.u32 2147483647, %v1345_v31  ;;  %v1346_v32 = vsub.f32 %v1081_v56, %v1071_v53 }
  0x42   : > { %v421_v45 = vadd.f32 %v420_v2, %v419_v22  ;;  %506 = vmatmul.f32.gmra.mxu0 %v485_v25  ;;  %v438_v1 = vsel %vm406_vm1, %v390_v55, 0.0  ;;  %v1344_v25 = vsub.f32 %v1110_v10, %v1105_v63  ;;  %v442_v40 = vsel %vm406_vm1, %v392_v15, 0.0 }
  0x43   : > { %529 = vmatmul.f32.gmra.mxu1 %v486_v18  ;;  %v393_v16 = vand.u32 2147483647, %v1343_v38  ;;  %v396_v44 = vand.u32 2147483647, %v1346_v32  ;;  %v448_v10 = vsel %vm406_vm1, %v395_v50, 0.0  ;;  %v1349_v53 = vsub.f32 %v1028_v41, %v1014_v36 }
  0x44   : > { %v423_v39 = vadd.f32 %v422_v42, %v421_v45  ;;  %v394_v28 = vand.u32 2147483647, %v1344_v25  ;;  %v397_v61 = vand.u32 2147483647, %v1347_v58  ;;  %v1352_v51 = vsub.f32 %v994_v30, %v1351_v47 }
  0x45   : > { %v444_v22 = vsel %vm406_vm1, %v393_v16, 0.0  ;;  %v450_v45 = vsel %vm406_vm1, %v396_v44, 0.0  ;;  %v399_v56 = vand.u32 2147483647, %v1349_v53 }
  0x46   : > { %v425_v24 = vadd.f32 %v424_v35, %v423_v39  ;;  %v446_v48 = vsel %vm406_vm1, %v394_v28, 0.0  ;;  %v1348_v35 = vsub.f32 %v1056_v49, %v1036_v43  ;;  %v452_v4 = vsel %vm406_vm1, %v397_v61, 0.0 }
  0x47   : > { %v401_v59 = vand.u32 2147483647, %v1352_v51  ;;  %v456_v43 = vsel %vm406_vm1, %v399_v56, 0.0 }
  0x48   : > { %v427_v26 = vadd.f32 %v426_v12, %v425_v24  ;;  %v398_v39 = vand.u32 2147483647, %v1348_v35  ;;  %v400_v12 = vand.u32 2147483647, %v1350_v57 }
  0x4a   : > { %v429_v13 = vadd.f32 %v428_v21, %v427_v26  ;;  %v454_v24 = vsel %vm406_vm1, %v398_v39, 0.0  ;;  %v1353_v21 = vld [vmem:[#allocation16_spill] sm:$0xff]  ;;  %v1354_v26 = vld [vmem:[#allocation13_spill] sm:$0xff]  ;;  %v458_v20 = vsel %vm406_vm1, %v400_v12, 0.0 }
  0x4b   : > { %v1355_v36 = vsub.f32 %v1353_v21, %v1354_v26  ;;  %v583_v26 = vld [vmem:[#allocation4] sm:$0x1] }
  0x4c   : > { %v431_v5 = vadd.f32 %v430_v14, %v429_v13  ;;  %v1356_v14 = vld [vmem:[#allocation14_spill] sm:$0xff]  ;;  %v460_v13 = vsel %vm406_vm1, %v401_v59, 0.0 }
  0x4d   : > { %v402_v41 = vand.u32 2147483647, %v1355_v36  ;;  %v1358_v34 = vsub.f32 %v1356_v14, %v1357_v27 }
  0x4e   : > { %v433_v60 = vadd.f32 %v432_v37, %v431_v5  ;;  %v1359_v37 = vld [vmem:[#allocation12_spill] sm:$0xff]  ;;  %v1360_v5 = vld [vmem:[#allocation9_spill] sm:$0xff] }
  0x4f   : > { %v403_v8 = vand.u32 2147483647, %v1358_v34  ;;  %v462_v30 = vsel %vm406_vm1, %v402_v41, 0.0 }
  0x50   : > { %v435_v0 = vadd.f32 %v434_v17, %v433_v60  ;;  %v1361_v17 = vsub.f32 %v1359_v37, %v1360_v5 }
  0x51   : > { %v464_v60 = vsel %vm406_vm1, %v403_v8, 0.0 }
  0x52   : > { %v437_v7 = vadd.f32 %v436_v62, %v435_v0  ;;  %v404_v55 = vand.u32 2147483647, %v1361_v17  ;;  %v1364_v0 = vsub.f32 %v1362_v3, %v1363_v11 }
  0x54   : > { %v439_v2 = vadd.f32 %v438_v1, %v437_v7  ;;  %v405_v19 = vand.u32 2147483647, %v1364_v0  ;;  %v466_v1 = vsel %vm406_vm1, %v404_v55, 0.0 }
  0x56   : > { %v441_v18 = vadd.f32 %v440_v9, %v439_v2  ;;  %v468_v38 = vsel %vm406_vm1, %v405_v19, 0.0 }
  0x58   : > { %v443_v6 = vadd.f32 %v442_v40, %v441_v18 }
  0x5a   : > { %v445_v42 = vadd.f32 %v444_v22, %v443_v6 }
  0x5c   : > { %v447_v63 = vadd.f32 %v446_v48, %v445_v42 }
  0x5e   : > { %v449_v54 = vadd.f32 %v448_v10, %v447_v63 }
  0x60   : > { %v451_v52 = vadd.f32 %v450_v45, %v449_v54 }
  0x62   : > { %v453_v33 = vadd.f32 %v452_v4, %v451_v52 }
  0x64   : > { %v455_v49 = vadd.f32 %v454_v24, %v453_v33 }
  0x66   : > { %v457_v29 = vadd.f32 %v456_v43, %v455_v49  ;;  %v341_v43 = vld [vmem:[#allocation2] sm:$0x1] }
  0x68   : > { %v459_v23 = vadd.f32 %v458_v20, %v457_v29 }
  0x6a   : > { %v461_v46 = vadd.f32 %v460_v13, %v459_v23 }
  0x6c   : > { %v463_v62 = vadd.f32 %v462_v30, %v461_v46 }
  0x6e   : > { %v465_v15 = vadd.f32 %v464_v60, %v463_v62 }
  0x70   : > { %v467_v7 = vadd.f32 %v466_v1, %v465_v15 }
  0x72   : > { %v469_v16 = vadd.f32 %v468_v38, %v467_v7 }
  0x74   : > { %470 = vadd.xlane.f32.xlu0 %v469_v16 }
  0xb7   : > { %v504_v9 = vpop.f32.mrf.mxu0 }
  0xb8   : > { %v527_v2 = vpop.f32.mrf.mxu1 }
  0xb9   : > { %v528_v40 = vadd.f32 %v527_v2, %v504_v9 }
  0xba   : > { %v554_v25 = vpop.f32.mrf.mxu2 }
  0xbb   : > { %v577_v28 = vpop.f32.mrf.mxu3 }
  0xbc   : > { %v578_v18 = vadd.f32 %v577_v28, %v554_v25 }
  0xbe   : > { %v584_v22 = vsub.f32 %v528_v40, %v578_v18 }
  0xbf   : > { %v507_v31 = vpop.f32.mrf.mxu0 }
  0xc0   : > { %v530_v50 = vpop.f32.mrf.mxu1  ;;  %v586_v42 = vand.u32 2147483647, %v584_v22 }
  0xc1   : > { %v531_v6 = vadd.f32 %v530_v50, %v507_v31 }
  0xc2   : > { %v557_v32 = vpop.f32.mrf.mxu2  ;;  %v588_v45 = vsel %vm406_vm1, %v586_v42, 0.0 }
  0xc3   : > { %v580_v44 = vpop.f32.mrf.mxu3 }
  0xc4   : > { %v581_v48 = vadd.f32 %v580_v44, %v557_v32 }
  0xc6   : > { %v585_v10 = vsub.f32 %v531_v6, %v581_v48 }
  0xc8   : > { %v587_v63 = vand.u32 2147483647, %v585_v10 }
  0xca   : > { %v589_v54 = vsel %vm406_vm1, %v587_v63, 0.0 }
  0xcb   : > { %v590_v52 = vadd.f32 %v589_v54, %v588_v45 }
  0xcd   : > { %591 = vadd.xlane.f32.xlu0 %v590_v52 }
  0xe7   : > { %v471_v58 = vpop.xlane.xlu0 %470 }
  0xe8   : > { %v472_v61 = vrot.slane %v471_v58, 4 }
  0xea   : > { %v473_v35 = vadd.f32 %v472_v61, %v471_v58 }
  0xec   : > { %v474_v39 = vrot.slane %v473_v35, 2 }
  0xee   : > { %v475_v53 = vadd.f32 %v474_v39, %v473_v35 }
  0xf0   : > { %v476_v56 = vrot.slane %v475_v53, 1 }
  0xf2   : > { %v477_v4 = vadd.f32 %v476_v56, %v475_v53 }
  0xf4   : > { %735 = vpush %v477_v4 }
 0x125   : > { %s736_s15 = spop %735 }
 0x126   : > { %v479_v49 = vstv %s736_s15 }
 0x127   : > { %v480_v21 = vadd.f32 %v479_v49, %v341_v43 }
 0x129   : > { %482 = vst.msk [vmem:[#allocation2] sm:$0x1] %vm481_vm2, %v480_v21 }
 0x12a   : > { %740 = dma.vmem_to_hbm [thread:$0]  (%p747_p5), %s611_s11, 16, %s613_s14, [#allocation3]  }
 0x140   : > { %v592_v57 = vpop.xlane.xlu0 %591 }
 0x141   : > { %v593_v12 = vrot.slane %v592_v57, 4 }
 0x143   : > { %v594_v24 = vadd.f32 %v593_v12, %v592_v57 }
 0x145   : > { %v595_v33 = vrot.slane %v594_v24, 2 }
 0x147   : > { %v596_v47 = vadd.f32 %v595_v33, %v594_v24 }
 0x149   : > { %v597_v51 = vrot.slane %v596_v47, 1 }
 0x14b   : > { %v598_v59 = vadd.f32 %v597_v51, %v596_v47 }
 0x14d   : > { %737 = vpush %v598_v59 }
 0x17e   : > { %s738_s16 = spop %737 }
 0x17f   : > { %s600_s22 = smul.f32 0.00024414063, %s738_s16 }
 0x181   : > { %v601_v36 = vstv %s600_s22 }
 0x182   : > { %v602_v41 = vadd.f32 %v601_v36, %v583_v26 }
 0x184   : > { %603 = vst.msk [vmem:[#allocation4] sm:$0x1] %vm481_vm2, %v602_v41 }
 0x185   : > { %742 = dma.vmem_to_hbm [thread:$0]  (%p747_p5), %s623_s24, 16, %s625_s21, [#allocation5]  }
 0x186   : > { %823 = dma.done.wait (%p747_p5), [#allocation3], 16  }
 0x187   : > { %825 = vsyncadd (%p747_p5), [#allocation3], 4294967280 }
 0x188   : > { %827 = dma.done.wait (%p747_p5), [#allocation5], 16  }
 0x189   : > { %829 = vsyncadd (%p747_p5), [#allocation5], 4294967280 }
 0x18a PF: > { %s18_s18 = sadd.s32 1, %s832_s18  }
 0x18b   : > { %p15_p6 = scmp.ge.s32.totalorder %s18_s18, 4  }
 0x18d   :  { %17 = sbr.rel (!%p15_p6) target bundleno = 2 (0x2), region = 84 }
 0x192   :  { %643 = vsyncpa [#allocation3], 1 }
 0x193   :  { %645 = vsyncpa [#allocation3 + $0x1], 1 }
 0x194   :  { %646 = vsyncpa [#allocation5], 1 }

// kernel: feature_loss.18
= control target key start
LH: loop header
LB: loop body
LE: loop exit
PB: predicated region body
PF: predicated region fallthrough
CT: control target
= control target key end

     0   :  { %11 = vsyncpa [#allocation3], 0  ;;  %s904_s0 = inlined_call_operand.vmem [shape: f32[2,32,64], index: 0, kind: input, shape index: {}]   ;;  %s905_s1 = inlined_call_operand.vmem [shape: f32[2,64,32], index: 1, kind: input, shape index: {}]   ;;  %s906_s2 = inlined_call_operand.vmem [shape: f32[2,32,64], index: 2, kind: input, shape index: {}]   ;;  %s907_s3 = inlined_call_operand.vmem [shape: f32[2,64,32], index: 3, kind: input, shape index: {}]   ;;  %s908_s4 = inlined_call_operand.hbm [shape: f32[1,1], index: 4, kind: output, shape index: {0}]   ;;  %s909_s5 = inlined_call_operand.hbm [shape: f32[1,1], index: 5, kind: output, shape index: {1}]  }
   0x1   :  { %12 = vsyncpa [#allocation5], 0  ;;  %s746_s18 = smov 0  }
   0x2 LB: > { %s752_s19 = sadd.s32 4294967295, %s711_s18   ;;  %p570_p0 = scmp.ge.s32.totalorder %s711_s18, 1  ;;  %s711_s18 = sphi %s746_s18, %s18_s18  }
   0x3   : > { %p212_p1 = scmp.lt.s32.totalorder %s711_s18, 3 }
   0x5   : > { %p213_p2 = pnand %p570_p0, %p212_p1 }
   0x6   : > { %p250_p3 = scmp.lt.s32.totalorder (!%p213_p2), %s752_s19, 1  ;;  %p579_p4 = scmp.ne.s32.totalorder (!%p213_p2), %s752_s19, 0 }
   0x7   : > { %216 = sbr.rel (%p213_p2) target bundleno = 375 (0x177), region = 36 }
   0xc   : > { %s251_s20 = scalar_select %p250_p3, %s752_s19, 1 }
   0xd   : > { %273 = sbr.rel (%p579_p4) target bundleno = 21 (0x15), region = 40 }
   0xe   : > { %s594_s21 = sshll.u32 %s251_s20, 5  ;;  %s595_s22 = sshll.u32 %s251_s20, 6 }
   0xf   : > { %s761_s25 = scalar_lea.vmem %s904_s0, %s594_s21  ;;  %s766_s28 = scalar_lea.vmem %s905_s1, %s595_s22 }
  0x10   : > { %s771_s6 = scalar_lea.vmem %s906_s2, %s594_s21  ;;  %s776_s9 = scalar_lea.vmem %s907_s3, %s595_s22 }
  0x12   : > { %vm274_vm0 = vcmask 0   ;;  %v713_v0 = vmov 0.0  }
  0x13   : > { %275 = vst.msk [vmem:[#allocation2] sm:$0x1] %vm274_vm0, %v713_v0 }
  0x14   : > { %276 = vst.msk [vmem:[#allocation4] sm:$0x1] %vm274_vm0, %v713_v0 }
  0x15 PF: > { %v780_v1 = vld [vmem:[%s766_s28 + $0x38] sm:$0xff]  ;;  %v786_v3 = vld [vmem:[%s766_s28 + $0x30] sm:$0xff]  ;;  %v794_v5 = vld [vmem:[%s766_s28 + $0x28] sm:$0xff]  ;;  %vm310_vm1 = vcmask 261120   ;;  %vm343_vm2 = vcmask 523264   ;;  %s714_s10 = smov [#allocation2]  }
  0x16   : > { %v783_v2 = vld [vmem:[%s776_s9 + $0x38] sm:$0xff]  ;;  %364 = vmatpush.msra.mxu0 %v780_v1  ;;  %598 = vmatpush.msra.mxu2 %v780_v1  ;;  %v791_v4 = vld [vmem:[%s776_s9 + $0x30] sm:$0xff]  ;;  %v797_v6 = vld [vmem:[%s776_s9 + $0x28] sm:$0xff]  ;;  %s465_s11 = sshll.u32 %s714_s10, 4  ;;  %s467_s14 = sshll.u32 %s908_s4, 4  ;;  %vm337_vm3 = vcmask 0   ;;  %s466_s11 = int_to_ptr.vmem [resolvable:$true] %s465_s11  ;;  %s468_s14 = int_to_ptr.hbm [resolvable:$true] %s467_s14 }
  0x17   : > { %409 = vmatpush.msra.mxu1 %v783_v2  ;;  %606 = vmatpush.msra.mxu3 %v783_v2  ;;  %v300_v7 = vsub.f32 %v786_v3, %v791_v4  ;;  %v299_v8 = vsub.f32 %v794_v5, %v797_v6  ;;  %v806_v9 = vld [vmem:[%s766_s28 + $0x20] sm:$0xff]  ;;  %v812_v11 = vld [vmem:[%s766_s28 + $0x18] sm:$0xff]  ;;  %v279_v14 = vld [vmem:[%s766_s28 + $0x10] sm:$0xff]  ;;  %v301_v48 = vsub.f32 %v780_v1, %v783_v2  ;;  %p626_p5 = scmp.eq.s32.totalorder %s752_s19, 1  ;;  %s479_s21 = sshll.u32 %s909_s5, 4  ;;  %s480_s21 = int_to_ptr.hbm [resolvable:$true] %s479_s21 }
  0x18   : > { %v809_v10 = vld [vmem:[%s776_s9 + $0x20] sm:$0xff]  ;;  %365 = vmatpush.msra.mxu0 %v786_v3  ;;  %599 = vmatpush.msra.mxu2 %v786_v3  ;;  %v819_v13 = vld [vmem:[%s776_s9 + $0x18] sm:$0xff]  ;;  %v287_v15 = vld [vmem:[%s776_s9 + $0x10] sm:$0xff]  ;;  %s715_s23 = smov [#allocation4]  }
  0x19   : > { %v298_v12 = vsub.f32 %v806_v9, %v809_v10  ;;  %410 = vmatpush.msra.mxu1 %v791_v4  ;;  %607 = vmatpush.msra.mxu3 %v791_v4  ;;  %v297_v16 = vsub.f32 %v812_v11, %v819_v13  ;;  %v296_v17 = vsub.f32 %v279_v14, %v287_v15  ;;  %v278_v18 = vld [vmem:[%s766_s28 + $0x8] sm:$0xff]  ;;  %v277_v21 = vld [vmem:[%s766_s28] sm:$0xff]  ;;  %v341_v33 = vld [vmem:[%s761_s25 + $0x10] sm:$0xff]  ;;  %v307_v43 = vand.u32 2147483647, %v299_v8  ;;  %s477_s24 = sshll.u32 %s715_s23, 4  ;;  %s478_s24 = int_to_ptr.vmem [resolvable:$true] %s477_s24 }
  0x1a   : > { %v286_v19 = vld [vmem:[%s776_s9 + $0x8] sm:$0xff]  ;;  %366 = vmatpush.msra.mxu0 %v794_v5  ;;  %600 = vmatpush.msra.mxu2 %v794_v5  ;;  %v285_v22 = vld [vmem:[%s776_s9] sm:$0xff]  ;;  %v387_v35 = vld [vmem:[%s771_s6 + $0x10] sm:$0xff]  ;;  %v308_v46 = vand.u32 2147483647, %v300_v7 }
  0x1b   : > { %v295_v20 = vsub.f32 %v278_v18, %v286_v19  ;;  %411 = vmatpush.msra.mxu1 %v797_v6  ;;  %608 = vmatpush.msra.mxu3 %v797_v6  ;;  %v304_v23 = vand.u32 2147483647, %v296_v17  ;;  %v294_v24 = vsub.f32 %v277_v21, %v285_v22  ;;  %v339_v32 = vld [vmem:[%s761_s25] sm:$0xff]  ;;  %v340_v36 = vld [vmem:[%s761_s25 + $0x8] sm:$0xff]  ;;  %v342_v37 = vld [vmem:[%s761_s25 + $0x18] sm:$0xff]  ;;  %v320_v49 = vsel %vm310_vm1, %v307_v43, 0.0 }
  0x1c   : > { %367 = vmatpush.msra.mxu0 %v806_v9  ;;  %601 = vmatpush.msra.mxu2 %v806_v9  ;;  %v385_v34 = vld [vmem:[%s771_s6] sm:$0xff]  ;;  %v386_v38 = vld [vmem:[%s771_s6 + $0x8] sm:$0xff]  ;;  %v388_v39 = vld [vmem:[%s771_s6 + $0x18] sm:$0xff]  ;;  %v305_v40 = vand.u32 2147483647, %v297_v16  ;;  %v322_v52 = vsel %vm310_vm1, %v308_v46, 0.0 }
  0x1d   : > { %v303_v25 = vand.u32 2147483647, %v295_v20  ;;  %412 = vmatpush.msra.mxu1 %v809_v10  ;;  %609 = vmatpush.msra.mxu3 %v809_v10  ;;  %v302_v26 = vand.u32 2147483647, %v294_v24  ;;  %v314_v28 = vsel %vm310_vm1, %v304_v23, 0.0 }
  0x1e   : > { %368 = vmatpush.msra.mxu0 %v812_v11  ;;  %602 = vmatpush.msra.mxu2 %v812_v11  ;;  %v306_v41 = vand.u32 2147483647, %v298_v12  ;;  %v316_v42 = vsel %vm310_vm1, %v305_v40, 0.0  ;;  %v309_v51 = vand.u32 2147483647, %v301_v48 }
  0x1f   : > { %v312_v27 = vsel %vm310_vm1, %v303_v25, 0.0  ;;  %413 = vmatpush.msra.mxu1 %v819_v13  ;;  %610 = vmatpush.msra.mxu3 %v819_v13  ;;  %v311_v29 = vsel %vm310_vm1, %v302_v26, 0.0 }
  0x20   : > { %369 = vmatpush.msra.mxu0 %v279_v14  ;;  %603 = vmatpush.msra.mxu2 %v279_v14  ;;  %v313_v30 = vadd.f32 %v312_v27, %v311_v29  ;;  %v318_v44 = vsel %vm310_vm1, %v306_v41, 0.0  ;;  %v324_v54 = vsel %vm310_vm1, %v309_v51, 0.0  ;;  %v293_v29 = vld [vmem:[#allocation2] sm:$0x1] }
  0x21   : > { %414 = vmatpush.msra.mxu1 %v287_v15  ;;  %611 = vmatpush.msra.mxu3 %v287_v15 }
  0x22   : > { %370 = vmatpush.msra.mxu0 %v278_v18  ;;  %604 = vmatpush.msra.mxu2 %v278_v18  ;;  %v315_v31 = vadd.f32 %v314_v28, %v313_v30 }
  0x23   : > { %415 = vmatpush.msra.mxu1 %v286_v19  ;;  %612 = vmatpush.msra.mxu3 %v286_v19 }
  0x24   : > { %371 = vmatpush.msra.mxu0 %v277_v21  ;;  %605 = vmatpush.msra.mxu2 %v277_v21  ;;  %v317_v45 = vadd.f32 %v316_v42, %v315_v31 }
  0x25   : > { %416 = vmatpush.msra.mxu1 %v285_v22  ;;  %613 = vmatpush.msra.mxu3 %v285_v22 }
  0x26   : > { %580 = vmatmul.msk.f32.vlgmr.msra.gmra.mxu0 %vm343_vm2, %v339_v32  ;;  %582 = vmatmul.msk.f32.vlgmr.msra.gmra.mxu2 %vm343_vm2, %v341_v33  ;;  %v319_v47 = vadd.f32 %v318_v44, %v317_v45  ;;  %v430_v32 = vld [vmem:[#allocation4] sm:$0x1] }
  0x27   : > { %584 = vmatmul.msk.f32.vlgmr.msra.gmra.mxu1 %vm343_vm2, %v385_v34  ;;  %586 = vmatmul.msk.f32.vlgmr.msra.gmra.mxu3 %vm343_vm2, %v387_v35 }
  0x28   : > { %v321_v50 = vadd.f32 %v320_v49, %v319_v47 }
  0x2a   : > { %v323_v53 = vadd.f32 %v322_v52, %v321_v50 }
  0x2c   : > { %v325_v55 = vadd.f32 %v324_v54, %v323_v53 }
  0x2e   : > { %581 = vmatmul.msk.f32.gmra.mxu0 %vm343_vm2, %v340_v36  ;;  %583 = vmatmul.msk.f32.gmra.mxu2 %vm343_vm2, %v342_v37 }
  0x2f   : > { %585 = vmatmul.msk.f32.gmra.mxu1 %vm343_vm2, %v386_v38  ;;  %587 = vmatmul.msk.f32.gmra.mxu3 %vm343_vm2, %v388_v39 }
  0x30   : > { %326 = vadd.xlane.f32.xlu0 %v325_v55 }
  0xa3   : > { %v373_v56 = vpop.f32.mrf.mxu0  ;;  %v327_v15 = vpop.xlane.xlu0 %326 }
  0xa4   : > { %v418_v57 = vpop.f32.mrf.mxu1  ;;  %v328_v16 = vrot.slane %v327_v15, 4 }
  0xa5   : > { %v431_v58 = vsub.f32 %v373_v56, %v418_v57 }
  0xa6   : > { %v329_v17 = vadd.f32 %v328_v16, %v327_v15 }
  0xa7   : > { %v435_v63 = vand.u32 2147483647, %v431_v58 }
  0xa8   : > { %v330_v18 = vrot.slane %v329_v17, 2 }
  0xa9   : > { %v379_v59 = vpop.f32.mrf.mxu2  ;;  %v439_v3 = vsel %vm310_vm1, %v435_v63, 0.0 }
  0xaa   : > { %v424_v60 = vpop.f32.mrf.mxu3  ;;  %v331_v19 = vadd.f32 %v330_v18, %v329_v17 }
  0xab   : > { %v376_v61 = vpop.f32.mrf.mxu0  ;;  %v433_v0 = vsub.f32 %v379_v59, %v424_v60 }
  0xac   : > { %v421_v62 = vpop.f32.mrf.mxu1  ;;  %v332_v20 = vrot.slane %v331_v19, 1 }
  0xad   : > { %v432_v1 = vsub.f32 %v376_v61, %v421_v62  ;;  %v437_v4 = vand.u32 2147483647, %v433_v0 }
  0xae   : > { %v333_v21 = vadd.f32 %v332_v20, %v331_v19 }
  0xaf   : > { %v436_v2 = vand.u32 2147483647, %v432_v1  ;;  %v442_v10 = vsel %vm310_vm1, %v437_v4, 0.0 }
  0xb0   : > { %614 = vpush %v333_v21 }
  0xb1   : > { %v440_v5 = vsel %vm310_vm1, %v436_v2, 0.0  ;;  %v382_v6 = vpop.f32.mrf.mxu2 }
  0xb2   : > { %v441_v7 = vadd.f32 %v440_v5, %v439_v3  ;;  %v427_v8 = vpop.f32.mrf.mxu3 }
  0xb3   : > { %v434_v9 = vsub.f32 %v382_v6, %v427_v8 }
  0xb4   : > { %v443_v12 = vadd.f32 %v442_v10, %v441_v7 }
  0xb5   : > { %v438_v11 = vand.u32 2147483647, %v434_v9 }
  0xb7   : > { %v444_v13 = vsel %vm310_vm1, %v438_v11, 0.0 }
  0xb8   : > { %v445_v14 = vadd.f32 %v444_v13, %v443_v12 }
  0xba   : > { %446 = vadd.xlane.f32.xlu0 %v445_v14 }
  0xe1   : > { %s615_s15 = spop %614 }
  0xe2   : > { %v335_v30 = vstv %s615_s15 }
  0xe3   : > { %v336_v31 = vadd.f32 %v335_v30, %v293_v29 }
  0xe5   : > { %338 = vst.msk [vmem:[#allocation2] sm:$0x1] %vm337_vm3, %v336_v31 }
  0xe6   : > { %619 = dma.vmem_to_hbm [thread:$0]  (%p626_p5), %s466_s11, 16, %s468_s14, [#allocation3]  }
 0x12d   : > { %v447_v22 = vpop.xlane.xlu0 %446 }
 0x12e   : > { %v448_v23 = vrot.slane %v447_v22, 4 }
 0x130   : > { %v449_v24 = vadd.f32 %v448_v23, %v447_v22 }
 0x132   : > { %v450_v25 = vrot.slane %v449_v24, 2 }
 0x134   : > { %v451_v26 = vadd.f32 %v450_v25, %v449_v24 }
 0x136   : > { %v452_v27 = vrot.slane %v451_v26, 1 }
 0x138   : > { %v453_v28 = vadd.f32 %v452_v27, %v451_v26 }
 0x13a   : > { %616 = vpush %v453_v28 }
 0x16b   : > { %s617_s16 = spop %616 }
 0x16c   : > { %s455_s22 = smul.f32 0.00048828125, %s617_s16 }
 0x16e   : > { %v456_v33 = vstv %s455_s22 }
 0x16f   : > { %v457_v34 = vadd.f32 %v456_v33, %v430_v32 }
 0x171   : > { %458 = vst.msk [vmem:[#allocation4] sm:$0x1] %vm337_vm3, %v457_v34 }
 0x172   : > { %621 = dma.vmem_to_hbm [thread:$0]  (%p626_p5), %s478_s24, 16, %s480_s21, [#allocation5]  }
 0x173   : > { %702 = dma.done.wait (%p626_p5), [#allocation3], 16  }
 0x174   : > { %704 = vsyncadd (%p626_p5), [#allocation3], 4294967280 }
 0x175   : > { %706 = dma.done.wait (%p626_p5), [#allocation5], 16  }
 0x176   : > { %708 = vsyncadd (%p626_p5), [#allocation5], 4294967280 }
 0x177 PF: > { %s18_s18 = sadd.s32 1, %s711_s18  }
 0x178   : > { %p15_p6 = scmp.ge.s32.totalorder %s18_s18, 4  }
 0x17a   :  { %17 = sbr.rel (!%p15_p6) target bundleno = 2 (0x2), region = 84 }
 0x17f   :  { %498 = vsyncpa [#allocation3], 1 }
 0x180   :  { %500 = vsyncpa [#allocation3 + $0x1], 1 }
 0x181   :  { %501 = vsyncpa [#allocation5], 1 }

// kernel: feature_loss.14
= control target key start
LH: loop header
LB: loop body
LE: loop exit
PB: predicated region body
PF: predicated region fallthrough
CT: control target
= control target key end

     0   :  { %s1775_s18 = smov 0   ;;  %s2232_s0 = inlined_call_operand.vmem [shape: f32[2,10,10,16], index: 0, kind: input, shape index: {}]   ;;  %s2233_s1 = inlined_call_operand.vmem [shape: bf16[144,32], index: 1, kind: input, shape index: {}]   ;;  %s2234_s2 = inlined_call_operand.vmem [shape: f32[1,32], index: 2, kind: input, shape index: {}]   ;;  %s2235_s3 = inlined_call_operand.vmem [shape: bf16[288,32], index: 3, kind: input, shape index: {}]   ;;  %s2236_s4 = inlined_call_operand.vmem [shape: f32[1,32], index: 4, kind: input, shape index: {}]   ;;  %s2237_s5 = inlined_call_operand.vmem [shape: f32[2,8,8,32], index: 5, kind: output, shape index: {}]  }
   0x1 LB: > { %s1507_s19 = sadd.s32 4294967295, %s1735_s18   ;;  %p1511_p0 = scmp.ge.s32.totalorder %s1735_s18, 1  ;;  %s1735_s18 = sphi %s1775_s18, %s15_s18  }
   0x2   : > { %p187_p1 = scmp.lt.s32.totalorder %s1735_s18, 3 }
   0x4   : > { %p188_p2 = pnand %p1511_p0, %p187_p1 }
   0x5   : > { %p215_p3 = scmp.lt.s32.totalorder (!%p188_p2), %s1507_s19, 1  ;;  %s1737_s24 = smov (!%p188_p2), 32  }
   0x6   : > { %191 = sbr.rel (%p188_p2) target bundleno = 723 (0x2d3), region = 40  ;;  %s1738_s25 = smov (!%p188_p2), 16  }
   0x7   : > { %s1739_s26 = smov (!%p188_p2), 48   ;;  %s1740_s27 = smov (!%p188_p2), 64  }
   0x8   : > { %s1741_s28 = smov (!%p188_p2), 80   ;;  %s1742_s29 = smov (!%p188_p2), 96  }
   0x9   : > { %s1743_s30 = smov (!%p188_p2), 112  }
   0xb   : > { %s2239_s19 = smov (!%p215_p3, %s1507_s19), 1  ;;  %vm234_vm0 = vcmask 130048   ;;  %v1689_v23 = vld [vmem:[%s2233_s1 + $0x38] sm:$0xff]  ;;  %v1688_v25 = vld [vmem:[%s2233_s1 + $0x30] sm:$0xff]  ;;  %v1687_v27 = vld [vmem:[%s2233_s1 + $0x28] sm:$0xff]  ;;  %vm283_vm1 = vcmask 261248  }
   0xc   : > { %s1710_s20 = smul.u32 160, %s2239_s19  ;;  %716 = vmatpush.bf16.msra.mxu0 %v1689_v23  ;;  %v1686_v29 = vld [vmem:[%s2233_s1 + $0x20] sm:$0xff]  ;;  %v1685_v32 = vld [vmem:[%s2233_s1 + $0x18] sm:$0xff]  ;;  %v1684_v33 = vld [vmem:[%s2233_s1 + $0x10] sm:$0xff]  ;;  %vm332_vm2 = vcmask 392448   ;;  %vm382_vm3 = vcmask 523648  }
   0xd   : > { %v1683_v37 = vld [vmem:[%s2233_s1 + $0x8] sm:$0xff]  ;;  %v1682_v38 = vld [vmem:[%s2233_s1] sm:$0xff]  ;;  %vm431_vm4 = vcmask 654848   ;;  %vm480_vm5 = vcmask 786048   ;;  %vm530_vm6 = vcmask 917248   ;;  %vm579_vm7 = vcmask 1048448  }
   0xe   : > { %s1789_s23 = scalar_lea.vmem %s2232_s0, %s1710_s20  ;;  %v1690_v42 = vld [vmem:[%s2233_s1 + $0x40] sm:$0xff]  ;;  %vm782_vm8 = vcmask 261120   ;;  %vm784_vm9 = vcmask 254976   ;;  %vm869_vm10 = vcmask 523520   ;;  %vm918_vm11 = vcmask 785920  }
   0xf   : > { %v292_v0 = vld [vmem:[%s1789_s23 + $0x2] sm:$0xff]  ;;  %v1515_v2 = vld [vmem:[%s1789_s23 + $0x10] sm:$0xff]  ;;  %752 = vmatpush.bf16.msra.mxu1 %v1690_v42  ;;  %1709 = vmatpush.bf16.msra.mxu2 %v1690_v42  ;;  %vm967_vm12 = vcmask 1048320  }
  0x10   : > { %v243_v1 = vld [vmem:[%s1789_s23 + $0x1] sm:$0xff]  ;;  %308 = vrot.lane.b32.xlu1 %v292_v0, %s1737_s24  ;;  %358 = vrot.lane.b32.xlu2 %v1515_v2, %s1739_s26  ;;  %v293_v3 = vld [vmem:[%s1789_s23 + $0x12] sm:$0xff]  ;;  %236 = vst.msk [vmem:[#allocation3 + $0x10] sm:$0xff] %vm234_vm0, %v1515_v2 }
  0x11   : > { %259 = vrot.lane.b32.xlu0 %v243_v1, %s1738_s25  ;;  %v244_v4 = vld [vmem:[%s1789_s23 + $0x11] sm:$0xff]  ;;  %v1539_v5 = vld [vmem:[%s1789_s23 + $0x20] sm:$0xff]  ;;  %717 = vmatpush.bf16.msra.mxu0 %v1688_v25 }
  0x12   : > { %v1524_v6 = vld [vmem:[%s1789_s23 + $0x21] sm:$0xff]  ;;  %v1517_v8 = vld [vmem:[%s1789_s23 + $0x30] sm:$0xff]  ;;  %237 = vst.msk [vmem:[#allocation3 + $0x20] sm:$0xff] %vm234_vm0, %v1539_v5 }
  0x13   : > { %v1532_v7 = vld [vmem:[%s1789_s23 + $0x22] sm:$0xff]  ;;  %v1548_v9 = vld [vmem:[%s1789_s23 + $0x31] sm:$0xff]  ;;  %238 = vst.msk [vmem:[#allocation3 + $0x30] sm:$0xff] %vm234_vm0, %v1517_v8 }
  0x14   : > { %v1533_v10 = vld [vmem:[%s1789_s23 + $0x32] sm:$0xff]  ;;  %v1518_v11 = vld [vmem:[%s1789_s23 + $0x40] sm:$0xff]  ;;  %596 = vst.msk [vmem:[#allocation3 + $0x8] sm:$0xff] %vm234_vm0, %v1532_v7 }
  0x15   : > { %v1526_v12 = vld [vmem:[%s1789_s23 + $0x41] sm:$0xff]  ;;  %v1542_v14 = vld [vmem:[%s1789_s23 + $0x50] sm:$0xff]  ;;  %597 = vst.msk [vmem:[#allocation3 + $0x18] sm:$0xff] %vm234_vm0, %v1533_v10  ;;  %718 = vmatpush.bf16.msra.mxu0 %v1687_v27 }
  0x16   : > { %v296_v13 = vld [vmem:[%s1789_s23 + $0x42] sm:$0xff]  ;;  %v1550_v15 = vld [vmem:[%s1789_s23 + $0x51] sm:$0xff]  ;;  %239 = vst.msk [vmem:[#allocation3 + $0x40] sm:$0xff] %vm234_vm0, %v1518_v11 }
  0x17   : > { %v297_v16 = vld [vmem:[%s1789_s23 + $0x52] sm:$0xff]  ;;  %v226_v17 = vld [vmem:[%s1789_s23] sm:$0xff]  ;;  %240 = vst.msk [vmem:[#allocation3 + $0x50] sm:$0xff] %vm234_vm0, %v1542_v14 }
  0x18   : > { %310 = vrot.lane.b32.xlu1 %v293_v3, %s1737_s24  ;;  %360 = vrot.lane.b32.xlu2 %v1539_v5, %s1739_s26  ;;  %235 = vst.msk [vmem:[#allocation3] sm:$0xff] %vm234_vm0, %v226_v17  ;;  %v1520_v18 = vld [vmem:[%s1789_s23 + $0x60] sm:$0xff]  ;;  %v1859_v22 = vld [vmem:[%s1789_s23 + $0x72] sm:$0xff] }
  0x19   : > { %261 = vrot.lane.b32.xlu0 %v244_v4, %s1738_s25  ;;  %v1551_v19 = vld [vmem:[%s1789_s23 + $0x61] sm:$0xff]  ;;  %598 = vst.msk [vmem:[#allocation3 + $0x28] sm:$0xff] %vm234_vm0, %v296_v13  ;;  %v1544_v24 = vld [vmem:[%s1789_s23 + $0x70] sm:$0xff]  ;;  %719 = vmatpush.bf16.msra.mxu0 %v1686_v29 }
  0x1a   : > { %v1536_v20 = vld [vmem:[%s1789_s23 + $0x62] sm:$0xff]  ;;  %599 = vst.msk [vmem:[#allocation3 + $0x38] sm:$0xff] %vm234_vm0, %v297_v16  ;;  %v250_v30 = vld [vmem:[%s1789_s23 + $0x71] sm:$0xff] }
  0x1b   : > { %600 = vst.msk [vmem:[#allocation3 + $0x48] sm:$0xff] %vm234_vm0, %v1536_v20  ;;  %v1538_v28 = vld [vmem:[%s1789_s23 + $0x82] sm:$0xff]  ;;  %v1546_v51 = vld [vmem:[%s1789_s23 + $0x90] sm:$0xff] }
  0x1c   : > { %601 = vst.msk [vmem:[#allocation3 + $0x58] sm:$0xff] %vm234_vm0, %v1859_v22  ;;  %v1545_v39 = vld [vmem:[%s1789_s23 + $0x80] sm:$0xff]  ;;  %v605_v45 = vld [vmem:[#allocation3 + $0x8] sm:$0xff]  ;;  %v607_v46 = vld [vmem:[#allocation3 + $0x18] sm:$0xff] }
  0x1d   : > { %242 = vst.msk [vmem:[#allocation3 + $0x70] sm:$0xff] %vm234_vm0, %v1544_v24  ;;  %720 = vmatpush.bf16.msra.mxu0 %v1685_v32  ;;  %v1530_v44 = vld [vmem:[%s1789_s23 + $0x81] sm:$0xff]  ;;  %v621_v47 = vpack.c.bf16 %v607_v46, %v605_v45  ;;  %v1554_v55 = vld [vmem:[%s1789_s23 + $0x91] sm:$0xff] }
  0x1e   : > { %241 = vst.msk [vmem:[#allocation3 + $0x60] sm:$0xff] %vm234_vm0, %v1520_v18  ;;  %v1562_v29 = vld [vmem:[%s1789_s23 + $0x92] sm:$0xff] }
  0x1f   : > { %602 = vst.msk [vmem:[#allocation3 + $0x68] sm:$0xff] %vm234_vm0, %v1538_v28  ;;  %1599 = vmatmul.msk.bf16.vlgmr.msra.gmra.mxu1 %vm234_vm0, %v621_v47 }
  0x20   : > { %409 = vrot.lane.b32.xlu1 %v1524_v6, %s1740_s27  ;;  %456 = vrot.lane.b32.xlu2 %v293_v3, %s1741_s28  ;;  %603 = vst.msk [vmem:[#allocation3 + $0x78] sm:$0xff] %vm234_vm0, %v1562_v29 }
  0x21   : > { %407 = vrot.lane.b32.xlu0 %v244_v4, %s1740_s27  ;;  %721 = vmatpush.bf16.msra.mxu0 %v1684_v33  ;;  %v609_v4 = vld [vmem:[#allocation3 + $0x28] sm:$0xff] }
  0x25   : > { %722 = vmatpush.bf16.msra.mxu0 %v1683_v37 }
  0x26   : > { %v617_v33 = vld [vmem:[#allocation3 + $0x68] sm:$0xff] }
  0x28   : > { %506 = vrot.lane.b32.xlu1 %v1539_v5, %s1742_s29  ;;  %508 = vrot.lane.b32.xlu2 %v1517_v8, %s1742_s29  ;;  %v611_v5 = vld [vmem:[#allocation3 + $0x38] sm:$0xff] }
  0x29   : > { %458 = vrot.lane.b32.xlu0 %v1532_v7, %s1741_s28  ;;  %723 = vmatpush.bf16.msra.mxu0 %v1682_v38 }
  0x30   : > { %557 = vrot.lane.b32.xlu1 %v1548_v9, %s1743_s30  ;;  %263 = vrot.lane.b32.xlu2 %v1524_v6, %s1738_s25 }
  0x31   : > { %555 = vrot.lane.b32.xlu0 %v1524_v6, %s1743_s30  ;;  %v623_v6 = vpack.c.bf16 %v611_v5, %v609_v4 }
  0x33   : > { %1600 = vmatmul.msk.bf16.gmra.mxu1 %vm234_vm0, %v623_v6 }
  0x38   : > { %312 = vrot.lane.b32.xlu1 %v1532_v7, %s1737_s24  ;;  %314 = vrot.lane.b32.xlu2 %v1533_v10, %s1737_s24 }
  0x39   : > { %265 = vrot.lane.b32.xlu0 %v1548_v9, %s1738_s25 }
  0x40   : > { %364 = vrot.lane.b32.xlu1 %v1518_v11, %s1739_s26  ;;  %411 = vrot.lane.b32.xlu2 %v1548_v9, %s1740_s27 }
  0x41   : > { %362 = vrot.lane.b32.xlu0 %v1517_v8, %s1739_s26 }
  0x48   : > { %460 = vrot.lane.b32.xlu1 %v1533_v10, %s1741_s28  ;;  %462 = vrot.lane.b32.xlu2 %v296_v13, %s1741_s28 }
  0x49   : > { %413 = vrot.lane.b32.xlu0 %v1526_v12, %s1740_s27 }
  0x50   : > { %512 = vrot.lane.b32.xlu1 %v1542_v14, %s1742_s29  ;;  %559 = vrot.lane.b32.xlu2 %v1526_v12, %s1743_s30 }
  0x51   : > { %510 = vrot.lane.b32.xlu0 %v1518_v11, %s1742_s29 }
  0x58   : > { %267 = vrot.lane.b32.xlu1 %v1526_v12, %s1738_s25  ;;  %269 = vrot.lane.b32.xlu2 %v1550_v15, %s1738_s25 }
  0x59   : > { %561 = vrot.lane.b32.xlu0 %v1550_v15, %s1743_s30 }
  0x60   : > { %318 = vrot.lane.b32.xlu1 %v297_v16, %s1737_s24  ;;  %366 = vrot.lane.b32.xlu2 %v1542_v14, %s1739_s26  ;;  %v613_v14 = vld [vmem:[#allocation3 + $0x48] sm:$0xff] }
  0x61   : > { %316 = vrot.lane.b32.xlu0 %v296_v13, %s1737_s24 }
  0x68   : > { %415 = vrot.lane.b32.xlu1 %v1550_v15, %s1740_s27  ;;  %417 = vrot.lane.b32.xlu2 %v1551_v19, %s1740_s27  ;;  %v615_v15 = vld [vmem:[#allocation3 + $0x58] sm:$0xff] }
  0x69   : > { %368 = vrot.lane.b32.xlu0 %v1520_v18, %s1739_s26 }
  0x6a   : > { %v359_v21 = vpop.permute.xlu2 %358 }
  0x70   : > { %466 = vrot.lane.b32.xlu1 %v1536_v20, %s1741_s28  ;;  %514 = vrot.lane.b32.xlu2 %v1520_v18, %s1742_s29 }
  0x71   : > { %464 = vrot.lane.b32.xlu0 %v297_v16, %s1741_s28  ;;  %v625_v16 = vpack.c.bf16 %v615_v15, %v613_v14 }
  0x72   : > { %v361_v26 = vpop.permute.xlu2 %360 }
  0x73   : > { %1601 = vmatmul.msk.bf16.vlgmr.msra.gmra.mxu2 %vm234_vm0, %v625_v16 }
  0x78   : > { %563 = vrot.lane.b32.xlu1 %v1551_v19, %s1743_s30  ;;  %565 = vrot.lane.b32.xlu2 %v250_v30, %s1743_s30 }
  0x79   : > { %516 = vrot.lane.b32.xlu0 %v1544_v24, %s1742_s29 }
  0x7a   : > { %v457_v31 = vpop.permute.xlu2 %456 }
  0x80   : > { %273 = vrot.lane.b32.xlu1 %v250_v30, %s1738_s25  ;;  %320 = vrot.lane.b32.xlu2 %v1536_v20, %s1737_s24 }
  0x81   : > { %271 = vrot.lane.b32.xlu0 %v1551_v19, %s1738_s25 }
  0x82   : > { %v309_v34 = vpop.permute.xlu1 %308  ;;  %v509_v36 = vpop.permute.xlu2 %508 }
  0x83   : > { %v260_v35 = vpop.permute.xlu0 %259 }
  0x84   : > { %284 = vst.msk [vmem:[#allocation3] sm:$0xff] %vm283_vm1, %v260_v35 }
  0x85   : > { %333 = vst.msk [vmem:[#allocation3] sm:$0xff] %vm332_vm2, %v309_v34  ;;  %v619_v34 = vld [vmem:[#allocation3 + $0x78] sm:$0xff] }
  0x86   : > { %383 = vst.msk [vmem:[#allocation3] sm:$0xff] %vm382_vm3, %v359_v21  ;;  %v627_v35 = vpack.c.bf16 %v619_v34, %v617_v33 }
  0x88   : > { %370 = vrot.lane.b32.xlu1 %v1544_v24, %s1739_s26  ;;  %372 = vrot.lane.b32.xlu2 %v1545_v39, %s1739_s26 }
  0x89   : > { %322 = vrot.lane.b32.xlu0 %v1859_v22, %s1737_s24  ;;  %1602 = vmatmul.msk.bf16.gmra.mxu2 %vm234_vm0, %v627_v35 }
  0x8a   : > { %v311_v40 = vpop.permute.xlu1 %310  ;;  %v264_v43 = vpop.permute.xlu2 %263 }
  0x8b   : > { %v262_v41 = vpop.permute.xlu0 %261  ;;  %286 = vst.msk [vmem:[#allocation3 + $0x20] sm:$0xff] %vm283_vm1, %v264_v43 }
  0x8c   : > { %285 = vst.msk [vmem:[#allocation3 + $0x10] sm:$0xff] %vm283_vm1, %v262_v41 }
  0x8d   : > { %334 = vst.msk [vmem:[#allocation3 + $0x10] sm:$0xff] %vm332_vm2, %v311_v40 }
  0x8e   : > { %384 = vst.msk [vmem:[#allocation3 + $0x10] sm:$0xff] %vm382_vm3, %v361_v26 }
  0x90   : > { %421 = vrot.lane.b32.xlu1 %v1530_v44, %s1740_s27  ;;  %468 = vrot.lane.b32.xlu2 %v1859_v22, %s1741_s28 }
  0x91   : > { %419 = vrot.lane.b32.xlu0 %v250_v30, %s1740_s27 }
  0x92   : > { %v410_v48 = vpop.permute.xlu1 %409  ;;  %v315_v50 = vpop.permute.xlu2 %314 }
  0x93   : > { %v408_v49 = vpop.permute.xlu0 %407  ;;  %433 = vst.msk [vmem:[#allocation3 + $0x10] sm:$0xff] %vm431_vm4, %v410_v48 }
  0x94   : > { %432 = vst.msk [vmem:[#allocation3] sm:$0xff] %vm431_vm4, %v408_v49 }
  0x95   : > { %481 = vst.msk [vmem:[#allocation3] sm:$0xff] %vm480_vm5, %v457_v31 }
  0x98   : > { %518 = vrot.lane.b32.xlu1 %v1545_v39, %s1742_s29  ;;  %520 = vrot.lane.b32.xlu2 %v1546_v51, %s1742_s29 }
  0x99   : > { %470 = vrot.lane.b32.xlu0 %v1538_v28, %s1741_s28 }
  0x9a   : > { %v507_v52 = vpop.permute.xlu1 %506  ;;  %v412_v54 = vpop.permute.xlu2 %411 }
  0x9b   : > { %v459_v53 = vpop.permute.xlu0 %458  ;;  %531 = vst.msk [vmem:[#allocation3] sm:$0xff] %vm530_vm6, %v507_v52 }
  0x9c   : > { %482 = vst.msk [vmem:[#allocation3 + $0x10] sm:$0xff] %vm480_vm5, %v459_v53 }
  0x9d   : > { %532 = vst.msk [vmem:[#allocation3 + $0x10] sm:$0xff] %vm530_vm6, %v509_v36 }
  0xa0   : > { %569 = vrot.lane.b32.xlu1 %v1554_v55, %s1743_s30 }
  0xa1   : > { %567 = vrot.lane.b32.xlu0 %v1530_v44, %s1743_s30 }
  0xa2   : > { %v558_v56 = vpop.permute.xlu1 %557  ;;  %v463_v58 = vpop.permute.xlu2 %462 }
  0xa3   : > { %v556_v57 = vpop.permute.xlu0 %555  ;;  %581 = vst.msk [vmem:[#allocation3 + $0x10] sm:$0xff] %vm579_vm7, %v558_v56 }
  0xa4   : > { %580 = vst.msk [vmem:[#allocation3] sm:$0xff] %vm579_vm7, %v556_v57 }
  0xaa   : > { %v313_v59 = vpop.permute.xlu1 %312  ;;  %v606_v61 = vld [vmem:[#allocation3 + $0x10] sm:$0xff]  ;;  %v560_v0 = vpop.permute.xlu2 %559 }
  0xab   : > { %v266_v60 = vpop.permute.xlu0 %265  ;;  %335 = vst.msk [vmem:[#allocation3 + $0x20] sm:$0xff] %vm332_vm2, %v313_v59  ;;  %v604_v62 = vld [vmem:[#allocation3] sm:$0xff]  ;;  %v754_v59 = vpop.f32.mrf.mxu1 }
  0xac   : > { %287 = vst.msk [vmem:[#allocation3 + $0x30] sm:$0xff] %vm283_vm1, %v266_v60  ;;  %v620_v63 = vpack.c.bf16 %v606_v61, %v604_v62 }
  0xad   : > { %336 = vst.msk [vmem:[#allocation3 + $0x30] sm:$0xff] %vm332_vm2, %v315_v50  ;;  %v1744_v50 = vmov 0.0  }
  0xae   : > { %724 = vmatmul.bf16.vlgmr.msra.gmra.mxu0 %v620_v63  ;;  %786 = vst.msk [vmem:[#allocation2 + $0x10] sm:$0xff] %vm782_vm8, %v1744_v50 }
  0xaf   : > { %787 = vst.msk [vmem:[#allocation2 + $0x18] sm:$0x3] %vm784_vm9, %v1744_v50 }
  0xb0   : > { %783 = vst.msk [vmem:[#allocation2] sm:$0xff] %vm782_vm8, %v1744_v50 }
  0xb1   : > { %785 = vst.msk [vmem:[#allocation2 + $0x8] sm:$0x3] %vm784_vm9, %v1744_v50 }
  0xb2   : > { %v365_v1 = vpop.permute.xlu1 %364  ;;  %v270_v3 = vpop.permute.xlu2 %269  ;;  %788 = vst.msk [vmem:[#allocation2 + $0x20] sm:$0xff] %vm782_vm8, %v1744_v50 }
  0xb3   : > { %v363_v2 = vpop.permute.xlu0 %362  ;;  %386 = vst.msk [vmem:[#allocation3 + $0x30] sm:$0xff] %vm382_vm3, %v365_v1  ;;  %v756_v1 = vpop.f32.mrf.mxu1 }
  0xb4   : > { %385 = vst.msk [vmem:[#allocation3 + $0x20] sm:$0xff] %vm382_vm3, %v363_v2 }
  0xb5   : > { %434 = vst.msk [vmem:[#allocation3 + $0x20] sm:$0xff] %vm431_vm4, %v412_v54 }
  0xb6   : > { %289 = vst.msk [vmem:[#allocation3 + $0x50] sm:$0xff] %vm283_vm1, %v270_v3 }
  0xb7   : > { %789 = vst.msk [vmem:[#allocation2 + $0x28] sm:$0x3] %vm784_vm9, %v1744_v50 }
  0xb8   : > { %790 = vst.msk [vmem:[#allocation2 + $0x30] sm:$0xff] %vm782_vm8, %v1744_v50  ;;  %v829_v53 = vld [vmem:[#allocation2 + $0x1] sm:$0xff] }
  0xb9   : > { %791 = vst.msk [vmem:[#allocation2 + $0x38] sm:$0x3] %vm784_vm9, %v1744_v50  ;;  %845 = vrot.lane.b32.xlu2 %v829_v53, %s1737_s24  ;;  %v878_v54 = vld [vmem:[#allocation2 + $0x2] sm:$0xff] }
  0xba   : > { %v461_v7 = vpop.permute.xlu1 %460  ;;  %v367_v11 = vpop.permute.xlu2 %366  ;;  %792 = vst.msk [vmem:[#allocation2 + $0x40] sm:$0xff] %vm782_vm8, %v1744_v50  ;;  %894 = vrot.lane.b32.xlu1 %v878_v54, %s1740_s27 }
  0xbb   : > { %v414_v8 = vpop.permute.xlu0 %413  ;;  %483 = vst.msk [vmem:[#allocation3 + $0x20] sm:$0xff] %vm480_vm5, %v461_v7 }
  0xbc   : > { %435 = vst.msk [vmem:[#allocation3 + $0x30] sm:$0xff] %vm431_vm4, %v414_v8 }
  0xbd   : > { %484 = vst.msk [vmem:[#allocation3 + $0x30] sm:$0xff] %vm480_vm5, %v463_v58  ;;  %v2010_v58 = vld [vmem:[%s2234_s2] ss:$0 sm:$0xff] }
  0xbe   : > { %793 = vst.msk [vmem:[#allocation2 + $0x48] sm:$0x3] %vm784_vm9, %v1744_v50 }
  0xbf   : > { %794 = vst.msk [vmem:[#allocation2 + $0x50] sm:$0xff] %vm782_vm8, %v1744_v50 }
  0xc0   : > { %795 = vst.msk [vmem:[#allocation2 + $0x58] sm:$0x3] %vm784_vm9, %v1744_v50 }
  0xc1   : > { %796 = vst.msk [vmem:[#allocation2 + $0x60] sm:$0xff] %vm782_vm8, %v1744_v50 }
  0xc2   : > { %v513_v9 = vpop.permute.xlu1 %512  ;;  %v418_v17 = vpop.permute.xlu2 %417  ;;  %797 = vst.msk [vmem:[#allocation2 + $0x68] sm:$0x3] %vm784_vm9, %v1744_v50 }
  0xc3   : > { %v511_v10 = vpop.permute.xlu0 %510  ;;  %534 = vst.msk [vmem:[#allocation3 + $0x30] sm:$0xff] %vm530_vm6, %v513_v9 }
  0xc4   : > { %533 = vst.msk [vmem:[#allocation3 + $0x20] sm:$0xff] %vm530_vm6, %v511_v10 }
  0xc5   : > { %582 = vst.msk [vmem:[#allocation3 + $0x20] sm:$0xff] %vm579_vm7, %v560_v0 }
  0xc6   : > { %798 = vst.msk [vmem:[#allocation2 + $0x70] sm:$0xff] %vm782_vm8, %v1744_v50 }
  0xc7   : > { %799 = vst.msk [vmem:[#allocation2 + $0x78] sm:$0x3] %vm784_vm9, %v1744_v50 }
  0xc8   : > { %800 = vst.msk [vmem:[#allocation2 + $0x80] sm:$0xff] %vm782_vm8, %v1744_v50 }
  0xc9   : > { %801 = vst.msk [vmem:[#allocation2 + $0x88] sm:$0x3] %vm784_vm9, %v1744_v50 }
  0xca   : > { %v268_v12 = vpop.permute.xlu1 %267  ;;  %v515_v23 = vpop.permute.xlu2 %514  ;;  %802 = vst.msk [vmem:[#allocation2 + $0x90] sm:$0xff] %vm782_vm8, %v1744_v50 }
  0xcb   : > { %v562_v13 = vpop.permute.xlu0 %561  ;;  %288 = vst.msk [vmem:[#allocation3 + $0x40] sm:$0xff] %vm283_vm1, %v268_v12  ;;  %v1707_v12 = vld [vmem:[%s2235_s3 + $0x80] sm:$0xff] }
  0xcc   : > { %583 = vst.msk [vmem:[#allocation3 + $0x30] sm:$0xff] %vm579_vm7, %v562_v13  ;;  %v608_v18 = vld [vmem:[#allocation3 + $0x20] sm:$0xff]  ;;  %v759_v13 = vpop.f32.mrf.mxu1 }
  0xcd   : > { %803 = vst.msk [vmem:[#allocation2 + $0x98] sm:$0x3] %vm784_vm9, %v1744_v50 }
  0xd2   : > { %v319_v19 = vpop.permute.xlu1 %318  ;;  %v566_v28 = vpop.permute.xlu2 %565 }
  0xd3   : > { %v317_v20 = vpop.permute.xlu0 %316  ;;  %338 = vst.msk [vmem:[#allocation3 + $0x50] sm:$0xff] %vm332_vm2, %v319_v19  ;;  %v610_v21 = vld [vmem:[#allocation3 + $0x30] sm:$0xff] }
  0xd4   : > { %337 = vst.msk [vmem:[#allocation3 + $0x40] sm:$0xff] %vm332_vm2, %v317_v20  ;;  %v622_v22 = vpack.c.bf16 %v610_v21, %v608_v18  ;;  %v761_v19 = vpop.f32.mrf.mxu1 }
  0xd5   : > { %387 = vst.msk [vmem:[#allocation3 + $0x40] sm:$0xff] %vm382_vm3, %v367_v11  ;;  %v1708_v11 = vld [vmem:[%s2235_s3 + $0x88] sm:$0xff] }
  0xd6   : > { %729 = vmatmul.bf16.gmra.mxu0 %v622_v22  ;;  %1413 = vmatpush.bf16.msrb.mxu1 %v1708_v11 }
  0xda   : > { %v416_v24 = vpop.permute.xlu1 %415  ;;  %v321_v32 = vpop.permute.xlu2 %320  ;;  %1414 = vmatpush.bf16.msrb.mxu1 %v1707_v12 }
  0xdb   : > { %v369_v25 = vpop.permute.xlu0 %368  ;;  %436 = vst.msk [vmem:[#allocation3 + $0x40] sm:$0xff] %vm431_vm4, %v416_v24 }
  0xdc   : > { %388 = vst.msk [vmem:[#allocation3 + $0x50] sm:$0xff] %vm382_vm3, %v369_v25 }
  0xdd   : > { %437 = vst.msk [vmem:[#allocation3 + $0x50] sm:$0xff] %vm431_vm4, %v418_v17 }
  0xe2   : > { %v467_v26 = vpop.permute.xlu1 %466  ;;  %v373_v41 = vpop.permute.xlu2 %372 }
  0xe3   : > { %v465_v27 = vpop.permute.xlu0 %464  ;;  %486 = vst.msk [vmem:[#allocation3 + $0x50] sm:$0xff] %vm480_vm5, %v467_v26 }
  0xe4   : > { %485 = vst.msk [vmem:[#allocation3 + $0x40] sm:$0xff] %vm480_vm5, %v465_v27 }
  0xe5   : > { %535 = vst.msk [vmem:[#allocation3 + $0x40] sm:$0xff] %vm530_vm6, %v515_v23 }
  0xea   : > { %v564_v30 = vpop.permute.xlu1 %563  ;;  %v469_v44 = vpop.permute.xlu2 %468 }
  0xeb   : > { %v517_v31 = vpop.permute.xlu0 %516  ;;  %584 = vst.msk [vmem:[#allocation3 + $0x40] sm:$0xff] %vm579_vm7, %v564_v30 }
  0xec   : > { %536 = vst.msk [vmem:[#allocation3 + $0x50] sm:$0xff] %vm530_vm6, %v517_v31 }
  0xed   : > { %585 = vst.msk [vmem:[#allocation3 + $0x50] sm:$0xff] %vm579_vm7, %v566_v28 }
  0xf2   : > { %v274_v36 = vpop.permute.xlu1 %273  ;;  %v612_v38 = vld [vmem:[#allocation3 + $0x40] sm:$0xff]  ;;  %v521_v47 = vpop.permute.xlu2 %520 }
  0xf3   : > { %v272_v37 = vpop.permute.xlu0 %271  ;;  %291 = vst.msk [vmem:[#allocation3 + $0x70] sm:$0xff] %vm283_vm1, %v274_v36 }
  0xf4   : > { %290 = vst.msk [vmem:[#allocation3 + $0x60] sm:$0xff] %vm283_vm1, %v272_v37  ;;  %v614_v39 = vld [vmem:[#allocation3 + $0x50] sm:$0xff] }
  0xf5   : > { %v624_v40 = vpack.c.bf16 %v614_v39, %v612_v38  ;;  %339 = vst.msk [vmem:[#allocation3 + $0x60] sm:$0xff] %vm332_vm2, %v321_v32  ;;  %v813_v32 = vld [vmem:[#allocation2] sm:$0xff] }
  0xf6   : > { %821 = vst.msk [vmem:[#allocation4] sm:$0xff] %vm782_vm8, %v813_v32  ;;  %v764_v33 = vpop.f32.mrf.mxu2 }
  0xf7   : > { %734 = vmatmul.bf16.gmra.mxu0 %v624_v40 }
  0xfa   : > { %v371_v42 = vpop.permute.xlu1 %370 }
  0xfb   : > { %v323_v43 = vpop.permute.xlu0 %322  ;;  %389 = vst.msk [vmem:[#allocation3 + $0x60] sm:$0xff] %vm382_vm3, %v371_v42 }
  0xfc   : > { %340 = vst.msk [vmem:[#allocation3 + $0x70] sm:$0xff] %vm332_vm2, %v323_v43  ;;  %v1698_v43 = vld [vmem:[%s2235_s3 + $0x38] sm:$0xff] }
  0xfd   : > { %390 = vst.msk [vmem:[#allocation3 + $0x70] sm:$0xff] %vm382_vm3, %v373_v41  ;;  %1349 = vmatpush.bf16.msrb.mxu2 %v1698_v43 }
  0xfe   : > { %v766_v40 = vpop.f32.mrf.mxu2 }
 0x102   : > { %v422_v45 = vpop.permute.xlu1 %421 }
 0x103   : > { %v420_v46 = vpop.permute.xlu0 %419  ;;  %439 = vst.msk [vmem:[#allocation3 + $0x70] sm:$0xff] %vm431_vm4, %v422_v45 }
 0x104   : > { %438 = vst.msk [vmem:[#allocation3 + $0x60] sm:$0xff] %vm431_vm4, %v420_v46 }
 0x105   : > { %487 = vst.msk [vmem:[#allocation3 + $0x60] sm:$0xff] %vm480_vm5, %v469_v44 }
 0x10a   : > { %v519_v48 = vpop.permute.xlu1 %518 }
 0x10b   : > { %v471_v49 = vpop.permute.xlu0 %470  ;;  %537 = vst.msk [vmem:[#allocation3 + $0x60] sm:$0xff] %vm530_vm6, %v519_v48  ;;  %v1697_v48 = vld [vmem:[%s2235_s3 + $0x30] sm:$0xff] }
 0x10c   : > { %488 = vst.msk [vmem:[#allocation3 + $0x70] sm:$0xff] %vm480_vm5, %v471_v49  ;;  %1350 = vmatpush.bf16.msrb.mxu2 %v1697_v48  ;;  %v1696_v49 = vld [vmem:[%s2235_s3 + $0x28] sm:$0xff] }
 0x10d   : > { %538 = vst.msk [vmem:[#allocation3 + $0x70] sm:$0xff] %vm530_vm6, %v521_v47 }
 0x110   : > { %1351 = vmatpush.bf16.msrb.mxu2 %v1696_v49 }
 0x112   : > { %v570_v51 = vpop.permute.xlu1 %569 }
 0x113   : > { %v568_v52 = vpop.permute.xlu0 %567  ;;  %587 = vst.msk [vmem:[#allocation3 + $0x70] sm:$0xff] %vm579_vm7, %v570_v51  ;;  %v846_v34 = vpop.permute.xlu2 %845 }
 0x114   : > { %586 = vst.msk [vmem:[#allocation3 + $0x60] sm:$0xff] %vm579_vm7, %v568_v52 }
 0x115   : > { %870 = vst.msk [vmem:[#allocation4] sm:$0xff] %vm869_vm10, %v846_v34 }
 0x11a   : > { %v618_v55 = vld [vmem:[#allocation3 + $0x70] sm:$0xff] }
 0x11b   : > { %v616_v56 = vld [vmem:[#allocation3 + $0x60] sm:$0xff] }
 0x11c   : > { %v626_v57 = vpack.c.bf16 %v618_v55, %v616_v56  ;;  %v1695_v55 = vld [vmem:[%s2235_s3 + $0x20] sm:$0xff] }
 0x11d   : > { %1352 = vmatpush.bf16.msrb.mxu2 %v1695_v55 }
 0x11e   : > { %739 = vmatmul.bf16.gmra.mxu0 %v626_v57 }
 0x12b   : > { %v725_v60 = vpop.f32.mrf.mxu0 }
 0x12c   : > { %v726_v61 = vadd.f32 %v2010_v58, %v725_v60  ;;  %v895_v57 = vpop.permute.xlu1 %894  ;;  %v1693_v60 = vld [vmem:[%s2235_s3 + $0x10] sm:$0xff] }
 0x12d   : > { %919 = vst.msk [vmem:[#allocation4] sm:$0xff] %vm918_vm11, %v895_v57 }
 0x12e   : > { %v755_v62 = vadd.f32 %v754_v59, %v726_v61  ;;  %v1694_v59 = vld [vmem:[%s2235_s3 + $0x18] sm:$0xff] }
 0x12f   : > { %1353 = vmatpush.bf16.msrb.mxu2 %v1694_v59  ;;  %v1144_v61 = vld [vmem:[#allocation2 + $0x92] sm:$0xff] }
 0x130   : > { %v774_v63 = vmax.f32 %v755_v62, 0.0  ;;  %1152 = vst.msk [vmem:[#allocation4 + $0xb8] sm:$0xff] %vm782_vm8, %v1144_v61 }
 0x132   : > { %805 = vst.msk [vmem:[#allocation2 + $0x11] sm:$0xff] %vm782_vm8, %v774_v63  ;;  %v1692_v63 = vld [vmem:[%s2235_s3 + $0x8] sm:$0xff] }
 0x133   : > { %v727_v0 = vpop.f32.mrf.mxu0  ;;  %1354 = vmatpush.bf16.msrb.mxu2 %v1693_v60 }
 0x134   : > { %v728_v2 = vadd.f32 %v2010_v58, %v727_v0  ;;  %v769_v0 = vpop.f32.mrf.mxu2 }
 0x136   : > { %v757_v3 = vadd.f32 %v756_v1, %v728_v2  ;;  %v1691_v2 = vld [vmem:[%s2235_s3] sm:$0xff] }
 0x137   : > { %1355 = vmatpush.bf16.msrb.mxu2 %v1692_v63 }
 0x138   : > { %v775_v4 = vmax.f32 %v757_v3, 0.0 }
 0x139   : > { %v879_v5 = vld [vmem:[#allocation2 + $0x12] sm:$0xff] }
 0x13a   : > { %v830_v6 = vld [vmem:[#allocation2 + $0x11] sm:$0xff]  ;;  %806 = vst.msk [vmem:[#allocation2 + $0x21] sm:$0xff] %vm782_vm8, %v775_v4  ;;  %896 = vrot.lane.b32.xlu2 %v879_v5, %s1740_s27 }
 0x13b   : > { %v927_v7 = vld [vmem:[#allocation2 + $0x10] sm:$0xff]  ;;  %847 = vrot.lane.b32.xlu0 %v830_v6, %s1737_s24  ;;  %984 = vst.msk [vmem:[#allocation4 + $0x8] sm:$0xff] %vm782_vm8, %v830_v6  ;;  %1356 = vmatpush.bf16.msrb.mxu2 %v1691_v2 }
 0x13c   : > { %822 = vst.msk [vmem:[#allocation4 + $0x18] sm:$0xff] %vm782_vm8, %v927_v7  ;;  %v771_v12 = vpop.f32.mrf.mxu2 }
 0x141   : > { %v1137_v8 = vld [vmem:[#allocation2 + $0x22] sm:$0xff] }
 0x142   : > { %v928_v9 = vld [vmem:[#allocation2 + $0x20] sm:$0xff]  ;;  %1145 = vst.msk [vmem:[#allocation4 + $0x10] sm:$0xff] %vm782_vm8, %v1137_v8  ;;  %1008 = vrot.lane.b32.xlu2 %v879_v5, %s1737_s24 }
 0x143   : > { %v831_v10 = vld [vmem:[#allocation2 + $0x21] sm:$0xff]  ;;  %945 = vrot.lane.b32.xlu1 %v928_v9, %s1742_s29  ;;  %943 = vrot.lane.b32.xlu0 %v927_v7, %s1742_s29  ;;  %823 = vst.msk [vmem:[#allocation4 + $0x30] sm:$0xff] %vm782_vm8, %v928_v9  ;;  %v1706_v7 = vld [vmem:[%s2235_s3 + $0x78] sm:$0xff] }
 0x144   : > { %985 = vst.msk [vmem:[#allocation4 + $0x20] sm:$0xff] %vm782_vm8, %v831_v10  ;;  %1378 = vmatpush.bf16.msra.mxu3 %v1706_v7 }
 0x149   : > { %v1155_v26 = vld [vmem:[#allocation4 + $0x10] sm:$0xff] }
 0x14a   : > { %849 = vrot.lane.b32.xlu2 %v831_v10, %s1737_s24 }
 0x14b   : > { %1057 = vrot.lane.b32.xlu1 %v928_v9, %s1740_s27  ;;  %1010 = vrot.lane.b32.xlu0 %v1137_v8, %s1737_s24  ;;  %v1705_v9 = vld [vmem:[%s2235_s3 + $0x70] sm:$0xff] }
 0x14c   : > { %1379 = vmatpush.bf16.msra.mxu3 %v1705_v9 }
 0x153   : > { %898 = vrot.lane.b32.xlu1 %v1137_v8, %s1740_s27  ;;  %1105 = vrot.lane.b32.xlu0 %v831_v10, %s1742_s29  ;;  %v730_v14 = vpop.f32.mrf.mxu0 }
 0x154   : > { %v731_v15 = vadd.f32 %v2010_v58, %v730_v14  ;;  %v1704_v14 = vld [vmem:[%s2235_s3 + $0x68] sm:$0xff] }
 0x155   : > { %1380 = vmatpush.bf16.msra.mxu3 %v1704_v14 }
 0x156   : > { %v760_v16 = vadd.f32 %v759_v13, %v731_v15 }
 0x158   : > { %v776_v17 = vmax.f32 %v760_v16, 0.0 }
 0x15a   : > { %807 = vst.msk [vmem:[#allocation2 + $0x31] sm:$0xff] %vm782_vm8, %v776_v17 }
 0x15b   : > { %v732_v18 = vpop.f32.mrf.mxu0 }
 0x15c   : > { %v733_v20 = vadd.f32 %v2010_v58, %v732_v18 }
 0x15e   : > { %v762_v21 = vadd.f32 %v761_v19, %v733_v20  ;;  %v1702_v20 = vld [vmem:[%s2235_s3 + $0x58] sm:$0xff] }
 0x160   : > { %v777_v22 = vmax.f32 %v762_v21, 0.0 }
 0x161   : > { %v1138_v23 = vld [vmem:[#allocation2 + $0x32] sm:$0xff] }
 0x162   : > { %v1090_v24 = vld [vmem:[#allocation2 + $0x31] sm:$0xff]  ;;  %1146 = vst.msk [vmem:[#allocation4 + $0x28] sm:$0xff] %vm782_vm8, %v1138_v23 }
 0x163   : > { %v1042_v25 = vld [vmem:[#allocation2 + $0x30] sm:$0xff]  ;;  %1107 = vrot.lane.b32.xlu1 %v1090_v24, %s1742_s29  ;;  %808 = vst.msk [vmem:[#allocation2 + $0x41] sm:$0xff] %vm782_vm8, %v777_v22  ;;  %851 = vrot.lane.b32.xlu0 %v1090_v24, %s1737_s24 }
 0x164   : > { %1059 = vrot.lane.b32.xlu2 %v1042_v25, %s1740_s27  ;;  %986 = vst.msk [vmem:[#allocation4 + $0x38] sm:$0xff] %vm782_vm8, %v1090_v24 }
 0x165   : > { %824 = vst.msk [vmem:[#allocation4 + $0x48] sm:$0xff] %vm782_vm8, %v1042_v25 }
 0x169   : > { %v1158_v27 = vld [vmem:[#allocation4 + $0x28] sm:$0xff] }
 0x16a   : > { %v930_v28 = vld [vmem:[#allocation2 + $0x40] sm:$0xff]  ;;  %v1179_v29 = vpack.c.bf16 %v1158_v27, %v1155_v26  ;;  %v1701_v27 = vld [vmem:[%s2235_s3 + $0x50] sm:$0xff] }
 0x16b   : > { %v995_v30 = vld [vmem:[#allocation2 + $0x42] sm:$0xff]  ;;  %949 = vrot.lane.b32.xlu1 %v930_v28, %s1742_s29  ;;  %947 = vrot.lane.b32.xlu0 %v1042_v25, %s1742_s29  ;;  %825 = vst.msk [vmem:[#allocation4 + $0x60] sm:$0xff] %vm782_vm8, %v930_v28 }
 0x16c   : > { %900 = vrot.lane.b32.xlu2 %v1138_v23, %s1740_s27  ;;  %v833_v31 = vld [vmem:[#allocation2 + $0x41] sm:$0xff]  ;;  %1147 = vst.msk [vmem:[#allocation4 + $0x40] sm:$0xff] %vm782_vm8, %v995_v30  ;;  %1675 = vmatmul.msk.bf16.vlgmr.msrb.gmra.mxu1 %vm782_vm8, %v1179_v29 }
 0x16d   : > { %987 = vst.msk [vmem:[#allocation4 + $0x50] sm:$0xff] %vm782_vm8, %v833_v31 }
 0x173   : > { %1061 = vrot.lane.b32.xlu1 %v930_v28, %s1740_s27  ;;  %1014 = vrot.lane.b32.xlu0 %v995_v30, %s1737_s24  ;;  %v1161_v51 = vld [vmem:[#allocation4 + $0x40] sm:$0xff] }
 0x174   : > { %1012 = vrot.lane.b32.xlu2 %v1138_v23, %s1737_s24  ;;  %v735_v35 = vpop.f32.mrf.mxu0 }
 0x175   : > { %v736_v36 = vadd.f32 %v2010_v58, %v735_v35 }
 0x177   : > { %v765_v37 = vadd.f32 %v764_v33, %v736_v36 }
 0x179   : > { %v778_v38 = vmax.f32 %v765_v37, 0.0 }
 0x17b   : > { %809 = vst.msk [vmem:[#allocation2 + $0x51] sm:$0xff] %vm782_vm8, %v778_v38  ;;  %902 = vrot.lane.b32.xlu1 %v995_v30, %s1740_s27  ;;  %1109 = vrot.lane.b32.xlu0 %v833_v31, %s1742_s29  ;;  %v1700_v30 = vld [vmem:[%s2235_s3 + $0x48] sm:$0xff]  ;;  %v1096_v38 = vld [vmem:[#allocation2 + $0x91] sm:$0xff] }
 0x17c   : > { %853 = vrot.lane.b32.xlu2 %v833_v31, %s1737_s24  ;;  %v737_v39 = vpop.f32.mrf.mxu0  ;;  %v1699_v31 = vld [vmem:[%s2235_s3 + $0x40] sm:$0xff] }
 0x17d   : > { %v738_v41 = vadd.f32 %v2010_v58, %v737_v39  ;;  %v1048_v39 = vld [vmem:[#allocation2 + $0x90] sm:$0xff] }
 0x17f   : > { %v767_v42 = vadd.f32 %v766_v40, %v738_v41  ;;  %v1176_v41 = vld [vmem:[#allocation4 + $0xb8] sm:$0xff] }
 0x181   : > { %v779_v44 = vmax.f32 %v767_v42, 0.0 }
 0x182   : > { %v1092_v45 = vld [vmem:[#allocation2 + $0x51] sm:$0xff] }
 0x183   : > { %v1044_v46 = vld [vmem:[#allocation2 + $0x50] sm:$0xff]  ;;  %810 = vst.msk [vmem:[#allocation2 + $0x61] sm:$0xff] %vm782_vm8, %v779_v44  ;;  %1111 = vrot.lane.b32.xlu1 %v1092_v45, %s1742_s29  ;;  %855 = vrot.lane.b32.xlu0 %v1092_v45, %s1737_s24 }
 0x184   : > { %v883_v47 = vld [vmem:[#allocation2 + $0x52] sm:$0xff]  ;;  %1063 = vrot.lane.b32.xlu2 %v1044_v46, %s1740_s27  ;;  %988 = vst.msk [vmem:[#allocation4 + $0x68] sm:$0xff] %vm782_vm8, %v1092_v45 }
 0x185   : > { %1148 = vst.msk [vmem:[#allocation4 + $0x58] sm:$0xff] %vm782_vm8, %v883_v47 }
 0x186   : > { %826 = vst.msk [vmem:[#allocation4 + $0x78] sm:$0xff] %vm782_vm8, %v1044_v46 }
 0x18a   : > { %v932_v50 = vld [vmem:[#allocation2 + $0x60] sm:$0xff] }
 0x18b   : > { %v997_v52 = vld [vmem:[#allocation2 + $0x62] sm:$0xff]  ;;  %953 = vrot.lane.b32.xlu1 %v932_v50, %s1742_s29  ;;  %951 = vrot.lane.b32.xlu0 %v1044_v46, %s1742_s29  ;;  %827 = vst.msk [vmem:[#allocation4 + $0x90] sm:$0xff] %vm782_vm8, %v932_v50 }
 0x18c   : > { %904 = vrot.lane.b32.xlu2 %v883_v47, %s1740_s27  ;;  %v1164_v53 = vld [vmem:[#allocation4 + $0x58] sm:$0xff]  ;;  %v835_v54 = vld [vmem:[#allocation2 + $0x61] sm:$0xff]  ;;  %1149 = vst.msk [vmem:[#allocation4 + $0x70] sm:$0xff] %vm782_vm8, %v997_v52 }
 0x18d   : > { %v1182_v56 = vpack.c.bf16 %v1164_v53, %v1161_v51  ;;  %989 = vst.msk [vmem:[#allocation4 + $0x80] sm:$0xff] %vm782_vm8, %v835_v54 }
 0x18f   : > { %1676 = vmatmul.msk.bf16.gmra.mxu1 %vm782_vm8, %v1182_v56 }
 0x193   : > { %1065 = vrot.lane.b32.xlu1 %v932_v50, %s1740_s27  ;;  %1018 = vrot.lane.b32.xlu0 %v997_v52, %s1737_s24  ;;  %v1167_v24 = vld [vmem:[#allocation4 + $0x70] sm:$0xff] }
 0x194   : > { %1016 = vrot.lane.b32.xlu2 %v883_v47, %s1737_s24  ;;  %v897_v62 = vpop.permute.xlu2 %896 }
 0x19b   : > { %v740_v1 = vpop.f32.mrf.mxu0  ;;  %906 = vrot.lane.b32.xlu1 %v997_v52, %s1740_s27  ;;  %1113 = vrot.lane.b32.xlu0 %v835_v54, %s1742_s29 }
 0x19c   : > { %857 = vrot.lane.b32.xlu2 %v835_v54, %s1737_s24  ;;  %v741_v3 = vadd.f32 %v2010_v58, %v740_v1  ;;  %v1009_v4 = vpop.permute.xlu2 %1008 }
 0x19d   : > { %1032 = vst.msk [vmem:[#allocation4 + $0x8] sm:$0xff] %vm869_vm10, %v1009_v4 }
 0x19e   : > { %v770_v5 = vadd.f32 %v769_v0, %v741_v3 }
 0x1a0   : > { %v780_v6 = vmax.f32 %v770_v5, 0.0 }
 0x1a2   : > { %811 = vst.msk [vmem:[#allocation2 + $0x71] sm:$0xff] %vm782_vm8, %v780_v6 }
 0x1a3   : > { %v742_v8 = vpop.f32.mrf.mxu0 }
 0x1a4   : > { %v743_v10 = vadd.f32 %v2010_v58, %v742_v8  ;;  %v850_v11 = vpop.permute.xlu2 %849  ;;  %v1703_v58 = vld [vmem:[%s2235_s3 + $0x60] sm:$0xff] }
 0x1a5   : > { %872 = vst.msk [vmem:[#allocation4 + $0x30] sm:$0xff] %vm869_vm10, %v850_v11  ;;  %1381 = vmatpush.bf16.msra.mxu3 %v1703_v58 }
 0x1a6   : > { %v772_v13 = vadd.f32 %v771_v12, %v743_v10 }
 0x1a8   : > { %v781_v15 = vmax.f32 %v772_v13, 0.0 }
 0x1a9   : > { %v1094_v16 = vld [vmem:[#allocation2 + $0x71] sm:$0xff]  ;;  %1382 = vmatpush.bf16.msra.mxu3 %v1702_v20 }
 0x1aa   : > { %v1046_v17 = vld [vmem:[#allocation2 + $0x70] sm:$0xff]  ;;  %812 = vst.msk [vmem:[#allocation2 + $0x81] sm:$0xff] %vm782_vm8, %v781_v15  ;;  %1115 = vrot.lane.b32.xlu1 %v1094_v16, %s1742_s29  ;;  %859 = vrot.lane.b32.xlu0 %v1094_v16, %s1737_s24 }
 0x1ab   : > { %v885_v18 = vld [vmem:[#allocation2 + $0x72] sm:$0xff]  ;;  %1067 = vrot.lane.b32.xlu2 %v1046_v17, %s1740_s27  ;;  %990 = vst.msk [vmem:[#allocation4 + $0x98] sm:$0xff] %vm782_vm8, %v1094_v16 }
 0x1ac   : > { %1150 = vst.msk [vmem:[#allocation4 + $0x88] sm:$0xff] %vm782_vm8, %v885_v18 }
 0x1ad   : > { %v848_v19 = vpop.permute.xlu0 %847  ;;  %828 = vst.msk [vmem:[#allocation4 + $0xa8] sm:$0xff] %vm782_vm8, %v1046_v17  ;;  %1383 = vmatpush.bf16.msra.mxu3 %v1701_v27 }
 0x1ae   : > { %871 = vst.msk [vmem:[#allocation4 + $0x18] sm:$0xff] %vm869_vm10, %v848_v19 }
 0x1af   : > { %920 = vst.msk [vmem:[#allocation4 + $0x18] sm:$0xff] %vm918_vm11, %v897_v62 }
 0x1b1   : > { %v934_v21 = vld [vmem:[#allocation2 + $0x80] sm:$0xff]  ;;  %1384 = vmatpush.bf16.msra.mxu3 %v1700_v30 }
 0x1b2   : > { %v999_v22 = vld [vmem:[#allocation2 + $0x82] sm:$0xff]  ;;  %957 = vrot.lane.b32.xlu1 %v934_v21, %s1742_s29  ;;  %955 = vrot.lane.b32.xlu0 %v1046_v17, %s1742_s29 }
 0x1b3   : > { %v1095_v23 = vld [vmem:[#allocation2 + $0x81] sm:$0xff]  ;;  %908 = vrot.lane.b32.xlu2 %v885_v18, %s1740_s27  ;;  %1151 = vst.msk [vmem:[#allocation4 + $0xa0] sm:$0xff] %vm782_vm8, %v999_v22 }
 0x1b4   : > { %v1170_v25 = vld [vmem:[#allocation4 + $0x88] sm:$0xff]  ;;  %991 = vst.msk [vmem:[#allocation4 + $0xb0] sm:$0xff] %vm782_vm8, %v1095_v23 }
 0x1b5   : > { %v1185_v26 = vpack.c.bf16 %v1170_v25, %v1167_v24  ;;  %v946_v28 = vpop.permute.xlu1 %945  ;;  %v944_v29 = vpop.permute.xlu0 %943  ;;  %1385 = vmatpush.bf16.msra.mxu3 %v1699_v31 }
 0x1b6   : > { %969 = vst.msk [vmem:[#allocation4 + $0x18] sm:$0xff] %vm967_vm12, %v946_v28 }
 0x1b7   : > { %1677 = vmatmul.msk.bf16.gmra.mxu1 %vm782_vm8, %v1185_v26  ;;  %968 = vst.msk [vmem:[#allocation4] sm:$0xff] %vm967_vm12, %v944_v29 }
 0x1ba   : > { %1069 = vrot.lane.b32.xlu1 %v934_v21, %s1740_s27  ;;  %1022 = vrot.lane.b32.xlu0 %v999_v22, %s1737_s24  ;;  %v1173_v40 = vld [vmem:[#allocation4 + $0xa0] sm:$0xff] }
 0x1bb   : > { %1020 = vrot.lane.b32.xlu2 %v885_v18, %s1737_s24  ;;  %v1188_v42 = vpack.c.bf16 %v1176_v41, %v1173_v40 }
 0x1bd   : > { %v1058_v32 = vpop.permute.xlu1 %1057  ;;  %v1156_v34 = vld [vmem:[#allocation4 + $0x18] sm:$0xff]  ;;  %v1011_v35 = vpop.permute.xlu0 %1010 }
 0x1be   : > { %v1060_v33 = vpop.permute.xlu2 %1059  ;;  %1081 = vst.msk [vmem:[#allocation4 + $0x8] sm:$0xff] %vm918_vm11, %v1058_v32  ;;  %v1153_v36 = vld [vmem:[#allocation4] sm:$0xff] }
 0x1bf   : > { %1033 = vst.msk [vmem:[#allocation4 + $0x20] sm:$0xff] %vm869_vm10, %v1011_v35  ;;  %v1177_v37 = vpack.c.bf16 %v1156_v34, %v1153_v36 }
 0x1c0   : > { %1082 = vst.msk [vmem:[#allocation4 + $0x20] sm:$0xff] %vm918_vm11, %v1060_v33 }
 0x1c1   : > { %1357 = vmatmul.bf16.vlgmr.msrb.gmra.mxu2 %v1177_v37 }
 0x1c2   : > { %1119 = vrot.lane.b32.xlu1 %v1096_v38, %s1742_s29  ;;  %1117 = vrot.lane.b32.xlu0 %v1095_v23, %s1742_s29  ;;  %v1728_v38 = vld [vmem:[%s2236_s4] ss:$0 sm:$0xff]  ;;  %s1681_s29 = sshll.u32 %s2239_s19, 6 }
 0x1c3   : > { %1071 = vrot.lane.b32.xlu2 %v1048_v39, %s1740_s27  ;;  %s2211_s23 = scalar_lea.vmem %s2237_s5, %s1681_s29 }
 0x1c5   : > { %v899_v43 = vpop.permute.xlu1 %898  ;;  %v1106_v45 = vpop.permute.xlu0 %1105 }
 0x1c6   : > { %v901_v44 = vpop.permute.xlu2 %900  ;;  %921 = vst.msk [vmem:[#allocation4 + $0x30] sm:$0xff] %vm918_vm11, %v899_v43 }
 0x1c7   : > { %1678 = vmatmul.msk.bf16.gmra.mxu1 %vm782_vm8, %v1188_v42  ;;  %1129 = vst.msk [vmem:[#allocation4 + $0x8] sm:$0xff] %vm967_vm12, %v1106_v45 }
 0x1ce   : > { %v1013_v46 = vpop.permute.xlu2 %1012  ;;  %v1154_v50 = vld [vmem:[#allocation4 + $0x8] sm:$0xff] }
 0x1cf   : > { %1034 = vst.msk [vmem:[#allocation4 + $0x38] sm:$0xff] %vm869_vm10, %v1013_v46 }
 0x1d5   : > { %v1108_v47 = vpop.permute.xlu1 %1107  ;;  %v852_v49 = vpop.permute.xlu0 %851 }
 0x1d6   : > { %v854_v48 = vpop.permute.xlu2 %853  ;;  %1130 = vst.msk [vmem:[#allocation4 + $0x20] sm:$0xff] %vm967_vm12, %v1108_v47 }
 0x1d7   : > { %874 = vst.msk [vmem:[#allocation4 + $0x60] sm:$0xff] %vm869_vm10, %v854_v48 }
 0x1d8   : > { %873 = vst.msk [vmem:[#allocation4 + $0x48] sm:$0xff] %vm869_vm10, %v852_v49 }
 0x1d9   : > { %922 = vst.msk [vmem:[#allocation4 + $0x48] sm:$0xff] %vm918_vm11, %v901_v44 }
 0x1dd   : > { %v1157_v51 = vld [vmem:[#allocation4 + $0x20] sm:$0xff]  ;;  %v950_v52 = vpop.permute.xlu1 %949  ;;  %v948_v53 = vpop.permute.xlu0 %947 }
 0x1de   : > { %v1178_v54 = vpack.c.bf16 %v1157_v51, %v1154_v50  ;;  %971 = vst.msk [vmem:[#allocation4 + $0x48] sm:$0xff] %vm967_vm12, %v950_v52  ;;  %v1064_v55 = vpop.permute.xlu2 %1063 }
 0x1df   : > { %970 = vst.msk [vmem:[#allocation4 + $0x30] sm:$0xff] %vm967_vm12, %v948_v53 }
 0x1e0   : > { %1386 = vmatmul.bf16.vlgmr.msra.gmra.mxu3 %v1178_v54 }
 0x1e5   : > { %v1062_v56 = vpop.permute.xlu1 %1061  ;;  %v1015_v57 = vpop.permute.xlu0 %1014  ;;  %v1162_v59 = vld [vmem:[#allocation4 + $0x48] sm:$0xff] }
 0x1e6   : > { %1083 = vst.msk [vmem:[#allocation4 + $0x38] sm:$0xff] %vm918_vm11, %v1062_v56  ;;  %v905_v60 = vpop.permute.xlu2 %904  ;;  %v1159_v61 = vld [vmem:[#allocation4 + $0x30] sm:$0xff] }
 0x1e7   : > { %1035 = vst.msk [vmem:[#allocation4 + $0x50] sm:$0xff] %vm869_vm10, %v1015_v57  ;;  %v1180_v62 = vpack.c.bf16 %v1162_v59, %v1159_v61 }
 0x1e8   : > { %1084 = vst.msk [vmem:[#allocation4 + $0x50] sm:$0xff] %vm918_vm11, %v1064_v55 }
 0x1e9   : > { %1362 = vmatmul.bf16.gmra.mxu2 %v1180_v62  ;;  %v1416_v40 = vpop.f32.mrf.mxu1 }
 0x1ed   : > { %v903_v63 = vpop.permute.xlu1 %902  ;;  %v1110_v0 = vpop.permute.xlu0 %1109 }
 0x1ee   : > { %923 = vst.msk [vmem:[#allocation4 + $0x60] sm:$0xff] %vm918_vm11, %v903_v63  ;;  %v1017_v1 = vpop.permute.xlu2 %1016 }
 0x1ef   : > { %1131 = vst.msk [vmem:[#allocation4 + $0x38] sm:$0xff] %vm967_vm12, %v1110_v0 }
 0x1f0   : > { %1036 = vst.msk [vmem:[#allocation4 + $0x68] sm:$0xff] %vm869_vm10, %v1017_v1 }
 0x1f1   : > { %v1418_v49 = vpop.f32.mrf.mxu1 }
 0x1f5   : > { %v1112_v2 = vpop.permute.xlu1 %1111  ;;  %v856_v4 = vpop.permute.xlu0 %855 }
 0x1f6   : > { %1132 = vst.msk [vmem:[#allocation4 + $0x50] sm:$0xff] %vm967_vm12, %v1112_v2  ;;  %v858_v3 = vpop.permute.xlu2 %857  ;;  %v1160_v6 = vld [vmem:[#allocation4 + $0x38] sm:$0xff] }
 0x1f7   : > { %876 = vst.msk [vmem:[#allocation4 + $0x90] sm:$0xff] %vm869_vm10, %v858_v3 }
 0x1f8   : > { %875 = vst.msk [vmem:[#allocation4 + $0x78] sm:$0xff] %vm869_vm10, %v856_v4 }
 0x1f9   : > { %924 = vst.msk [vmem:[#allocation4 + $0x78] sm:$0xff] %vm918_vm11, %v905_v60 }
 0x1fd   : > { %v954_v5 = vpop.permute.xlu1 %953  ;;  %v1163_v7 = vld [vmem:[#allocation4 + $0x50] sm:$0xff]  ;;  %v952_v8 = vpop.permute.xlu0 %951 }
 0x1fe   : > { %973 = vst.msk [vmem:[#allocation4 + $0x78] sm:$0xff] %vm967_vm12, %v954_v5  ;;  %v1181_v9 = vpack.c.bf16 %v1163_v7, %v1160_v6 }
 0x1ff   : > { %972 = vst.msk [vmem:[#allocation4 + $0x60] sm:$0xff] %vm967_vm12, %v952_v8 }
 0x200   : > { %1391 = vmatmul.bf16.gmra.mxu3 %v1181_v9 }
 0x205   : > { %v1068_v10 = vpop.permute.xlu2 %1067  ;;  %v1066_v11 = vpop.permute.xlu1 %1065  ;;  %v1168_v12 = vld [vmem:[#allocation4 + $0x78] sm:$0xff] }
 0x206   : > { %1085 = vst.msk [vmem:[#allocation4 + $0x68] sm:$0xff] %vm918_vm11, %v1066_v11  ;;  %v1019_v13 = vpop.permute.xlu0 %1018  ;;  %v1165_v14 = vld [vmem:[#allocation4 + $0x60] sm:$0xff] }
 0x207   : > { %1037 = vst.msk [vmem:[#allocation4 + $0x80] sm:$0xff] %vm869_vm10, %v1019_v13  ;;  %v1183_v15 = vpack.c.bf16 %v1168_v12, %v1165_v14 }
 0x208   : > { %1086 = vst.msk [vmem:[#allocation4 + $0x80] sm:$0xff] %vm918_vm11, %v1068_v10 }
 0x209   : > { %1367 = vmatmul.bf16.gmra.mxu2 %v1183_v15 }
 0x20c   : > { %v1421_v54 = vpop.f32.mrf.mxu1 }
 0x20d   : > { %v909_v16 = vpop.permute.xlu2 %908  ;;  %v907_v17 = vpop.permute.xlu1 %906 }
 0x20e   : > { %925 = vst.msk [vmem:[#allocation4 + $0x90] sm:$0xff] %vm918_vm11, %v907_v17  ;;  %v1114_v18 = vpop.permute.xlu0 %1113 }
 0x20f   : > { %1133 = vst.msk [vmem:[#allocation4 + $0x68] sm:$0xff] %vm967_vm12, %v1114_v18 }
 0x214   : > { %v1423_v0 = vpop.f32.mrf.mxu1 }
 0x215   : > { %v1021_v58 = vpop.permute.xlu2 %1020 }
 0x216   : > { %1038 = vst.msk [vmem:[#allocation4 + $0x98] sm:$0xff] %vm869_vm10, %v1021_v58  ;;  %v1166_v22 = vld [vmem:[#allocation4 + $0x68] sm:$0xff] }
 0x21c   : > { %v1116_v19 = vpop.permute.xlu1 %1115  ;;  %v860_v20 = vpop.permute.xlu0 %859 }
 0x21d   : > { %1134 = vst.msk [vmem:[#allocation4 + $0x80] sm:$0xff] %vm967_vm12, %v1116_v19  ;;  %v1072_v28 = vpop.permute.xlu2 %1071 }
 0x21e   : > { %877 = vst.msk [vmem:[#allocation4 + $0xa8] sm:$0xff] %vm869_vm10, %v860_v20 }
 0x21f   : > { %926 = vst.msk [vmem:[#allocation4 + $0xa8] sm:$0xff] %vm918_vm11, %v909_v16 }
 0x224   : > { %v958_v21 = vpop.permute.xlu1 %957  ;;  %v1169_v23 = vld [vmem:[#allocation4 + $0x80] sm:$0xff]  ;;  %v956_v24 = vpop.permute.xlu0 %955 }
 0x225   : > { %975 = vst.msk [vmem:[#allocation4 + $0xa8] sm:$0xff] %vm967_vm12, %v958_v21  ;;  %v1184_v25 = vpack.c.bf16 %v1169_v23, %v1166_v22 }
 0x226   : > { %974 = vst.msk [vmem:[#allocation4 + $0x90] sm:$0xff] %vm967_vm12, %v956_v24 }
 0x227   : > { %1396 = vmatmul.bf16.gmra.mxu3 %v1184_v25 }
 0x22c   : > { %v1070_v26 = vpop.permute.xlu1 %1069  ;;  %v1174_v27 = vld [vmem:[#allocation4 + $0xa8] sm:$0xff]  ;;  %v1023_v29 = vpop.permute.xlu0 %1022 }
 0x22d   : > { %1087 = vst.msk [vmem:[#allocation4 + $0x98] sm:$0xff] %vm918_vm11, %v1070_v26  ;;  %v1171_v30 = vld [vmem:[#allocation4 + $0x90] sm:$0xff] }
 0x22e   : > { %1039 = vst.msk [vmem:[#allocation4 + $0xb0] sm:$0xff] %vm869_vm10, %v1023_v29  ;;  %v1186_v31 = vpack.c.bf16 %v1174_v27, %v1171_v30 }
 0x22f   : > { %1088 = vst.msk [vmem:[#allocation4 + $0xb0] sm:$0xff] %vm918_vm11, %v1072_v28 }
 0x230   : > { %1372 = vmatmul.bf16.gmra.mxu2 %v1186_v31 }
 0x234   : > { %v1120_v32 = vpop.permute.xlu1 %1119  ;;  %v1118_v33 = vpop.permute.xlu0 %1117 }
 0x235   : > { %1136 = vst.msk [vmem:[#allocation4 + $0xb0] sm:$0xff] %vm967_vm12, %v1120_v32  ;;  %v1426_v5 = vpop.f32.mrf.mxu1 }
 0x236   : > { %1135 = vst.msk [vmem:[#allocation4 + $0x98] sm:$0xff] %vm967_vm12, %v1118_v33 }
 0x23c   : > { %v1175_v34 = vld [vmem:[#allocation4 + $0xb0] sm:$0xff] }
 0x23d   : > { %v1172_v35 = vld [vmem:[#allocation4 + $0x98] sm:$0xff]  ;;  %v1428_v14 = vpop.f32.mrf.mxu1 }
 0x23e   : > { %v1187_v36 = vpack.c.bf16 %v1175_v34, %v1172_v35 }
 0x240   : > { %1401 = vmatmul.bf16.gmra.mxu3 %v1187_v36 }
 0x244   : > { %v1358_v37 = vpop.f32.mrf.mxu2 }
 0x245   : > { %v1359_v39 = vadd.f32 %v1728_v38, %v1358_v37  ;;  %v1431_v58 = vpop.f32.mrf.mxu1 }
 0x24c   : > { %v1360_v44 = vpop.f32.mrf.mxu2 }
 0x24d   : > { %v1361_v46 = vadd.f32 %v1728_v38, %v1360_v44  ;;  %v1433_v27 = vpop.f32.mrf.mxu1 }
 0x263   : > { %v1387_v41 = vpop.f32.mrf.mxu3 }
 0x264   : > { %v1388_v42 = vadd.f32 %v1387_v41, %v1359_v39 }
 0x266   : > { %v1417_v43 = vadd.f32 %v1416_v40, %v1388_v42 }
 0x268   : > { %v1436_v45 = vmax.f32 %v1417_v43, 0.0 }
 0x26a   : > { %1444 = vst.msk [vmem:[%s2211_s23] sm:$0xff] %vm782_vm8, %v1436_v45 }
 0x26b   : > { %v1389_v47 = vpop.f32.mrf.mxu3 }
 0x26c   : > { %v1390_v48 = vadd.f32 %v1389_v47, %v1361_v46  ;;  %v1363_v52 = vpop.f32.mrf.mxu2 }
 0x26d   : > { %v1364_v53 = vadd.f32 %v1728_v38, %v1363_v52 }
 0x26e   : > { %v1419_v50 = vadd.f32 %v1418_v49, %v1390_v48 }
 0x270   : > { %v1437_v51 = vmax.f32 %v1419_v50, 0.0 }
 0x272   : > { %1445 = vst.msk [vmem:[%s2211_s23 + $0x8] sm:$0xff] %vm782_vm8, %v1437_v51 }
 0x274   : > { %v1365_v59 = vpop.f32.mrf.mxu2 }
 0x275   : > { %v1366_v61 = vadd.f32 %v1728_v38, %v1365_v59 }
 0x283   : > { %v1392_v55 = vpop.f32.mrf.mxu3 }
 0x284   : > { %v1393_v56 = vadd.f32 %v1392_v55, %v1364_v53 }
 0x286   : > { %v1422_v57 = vadd.f32 %v1421_v54, %v1393_v56 }
 0x288   : > { %v1438_v60 = vmax.f32 %v1422_v57, 0.0 }
 0x28a   : > { %1446 = vst.msk [vmem:[%s2211_s23 + $0x10] sm:$0xff] %vm782_vm8, %v1438_v60 }
 0x28b   : > { %v1394_v62 = vpop.f32.mrf.mxu3 }
 0x28c   : > { %v1395_v63 = vadd.f32 %v1394_v62, %v1366_v61  ;;  %v1368_v3 = vpop.f32.mrf.mxu2 }
 0x28d   : > { %v1369_v4 = vadd.f32 %v1728_v38, %v1368_v3 }
 0x28e   : > { %v1424_v1 = vadd.f32 %v1423_v0, %v1395_v63 }
 0x290   : > { %v1439_v2 = vmax.f32 %v1424_v1, 0.0 }
 0x292   : > { %1447 = vst.msk [vmem:[%s2211_s23 + $0x18] sm:$0xff] %vm782_vm8, %v1439_v2 }
 0x294   : > { %v1370_v9 = vpop.f32.mrf.mxu2 }
 0x295   : > { %v1371_v11 = vadd.f32 %v1728_v38, %v1370_v9 }
 0x2aa   : > { %v1397_v6 = vpop.f32.mrf.mxu3 }
 0x2ab   : > { %v1398_v7 = vadd.f32 %v1397_v6, %v1369_v4 }
 0x2ad   : > { %v1427_v8 = vadd.f32 %v1426_v5, %v1398_v7 }
 0x2af   : > { %v1440_v10 = vmax.f32 %v1427_v8, 0.0 }
 0x2b1   : > { %1448 = vst.msk [vmem:[%s2211_s23 + $0x20] sm:$0xff] %vm782_vm8, %v1440_v10 }
 0x2b2   : > { %v1399_v12 = vpop.f32.mrf.mxu3 }
 0x2b3   : > { %v1400_v13 = vadd.f32 %v1399_v12, %v1371_v11  ;;  %v1373_v17 = vpop.f32.mrf.mxu2 }
 0x2b4   : > { %v1374_v18 = vadd.f32 %v1728_v38, %v1373_v17 }
 0x2b5   : > { %v1429_v15 = vadd.f32 %v1428_v14, %v1400_v13 }
 0x2b7   : > { %v1441_v16 = vmax.f32 %v1429_v15, 0.0 }
 0x2b9   : > { %1449 = vst.msk [vmem:[%s2211_s23 + $0x28] sm:$0xff] %vm782_vm8, %v1441_v16 }
 0x2bb   : > { %v1375_v22 = vpop.f32.mrf.mxu2 }
 0x2bc   : > { %v1376_v24 = vadd.f32 %v1728_v38, %v1375_v22 }
 0x2c3   : > { %v1402_v19 = vpop.f32.mrf.mxu3 }
 0x2c4   : > { %v1403_v20 = vadd.f32 %v1402_v19, %v1374_v18 }
 0x2c6   : > { %v1432_v21 = vadd.f32 %v1431_v58, %v1403_v20 }
 0x2c8   : > { %v1442_v23 = vmax.f32 %v1432_v21, 0.0 }
 0x2ca   : > { %1450 = vst.msk [vmem:[%s2211_s23 + $0x30] sm:$0xff] %vm782_vm8, %v1442_v23 }
 0x2cb   : > { %v1404_v25 = vpop.f32.mrf.mxu3 }
 0x2cc   : > { %v1405_v26 = vadd.f32 %v1404_v25, %v1376_v24 }
 0x2ce   : > { %v1434_v28 = vadd.f32 %v1433_v27, %v1405_v26 }
 0x2d0   : > { %v1443_v29 = vmax.f32 %v1434_v28, 0.0 }
 0x2d2   : > { %1451 = vst.msk [vmem:[%s2211_s23 + $0x38] sm:$0xff] %vm782_vm8, %v1443_v29 }
 0x2d3 PF: > { %s15_s18 = sadd.s32 1, %s1735_s18  }
 0x2d4   : > { %p12_p4 = scmp.ge.s32.totalorder %s15_s18, 4  }
 0x2d6   :  { %14 = sbr.rel (!%p12_p4) target bundleno = 1 (0x1), region = 74 }

// kernel: feature_loss.19
= control target key start
LH: loop header
LB: loop body
LE: loop exit
PB: predicated region body
PF: predicated region fallthrough
CT: control target
= control target key end

     0   :  { %11 = vsyncpa [#allocation3], 0  ;;  %s871_s0 = inlined_call_operand.vmem [shape: f32[2,64,16], index: 0, kind: input, shape index: {}]   ;;  %s872_s1 = inlined_call_operand.vmem [shape: f32[2,16,64], index: 1, kind: input, shape index: {}]   ;;  %s873_s2 = inlined_call_operand.vmem [shape: f32[2,64,16], index: 2, kind: input, shape index: {}]   ;;  %s874_s3 = inlined_call_operand.vmem [shape: f32[2,16,64], index: 3, kind: input, shape index: {}]   ;;  %s875_s4 = inlined_call_operand.hbm [shape: f32[1,1], index: 4, kind: output, shape index: {0}]   ;;  %s876_s5 = inlined_call_operand.hbm [shape: f32[1,1], index: 5, kind: output, shape index: {1}]  }
   0x1   :  { %12 = vsyncpa [#allocation5], 0  ;;  %s778_s18 = smov 0  }
   0x2 LB: > { %s784_s19 = sadd.s32 4294967295, %s743_s18   ;;  %p606_p0 = scmp.ge.s32.totalorder %s743_s18, 1  ;;  %s743_s18 = sphi %s778_s18, %s18_s18  }
   0x3   : > { %p212_p1 = scmp.lt.s32.totalorder %s743_s18, 3 }
   0x5   : > { %p213_p2 = pnand %p606_p0, %p212_p1 }
   0x6   : > { %p250_p3 = scmp.lt.s32.totalorder (!%p213_p2), %s784_s19, 1  ;;  %p615_p4 = scmp.ne.s32.totalorder (!%p213_p2), %s784_s19, 0 }
   0x7   : > { %216 = sbr.rel (%p213_p2) target bundleno = 380 (0x17c), region = 36 }
   0xc   : > { %s251_s20 = scalar_select %p250_p3, %s784_s19, 1 }
   0xd   : > { %273 = sbr.rel (%p615_p4) target bundleno = 21 (0x15), region = 40 }
   0xe   : > { %s638_s21 = sshll.u32 %s251_s20, 6  ;;  %s639_s22 = sshll.u32 %s251_s20, 4 }
   0xf   : > { %s793_s25 = scalar_lea.vmem %s871_s0, %s638_s21  ;;  %s259_s28 = scalar_lea.vmem %s872_s1, %s639_s22 }
  0x10   : > { %s801_s6 = scalar_lea.vmem %s873_s2, %s638_s21  ;;  %s269_s9 = scalar_lea.vmem %s874_s3, %s639_s22 }
  0x12   : > { %vm274_vm0 = vcmask 0   ;;  %v745_v0 = vmov 0.0  }
  0x13   : > { %275 = vst.msk [vmem:[#allocation2] sm:$0x1] %vm274_vm0, %v745_v0 }
  0x14   : > { %276 = vst.msk [vmem:[#allocation4] sm:$0x1] %vm274_vm0, %v745_v0 }
  0x15 PF: > { %v278_v1 = vld [vmem:[%s259_s28 + $0x8] sm:$0xff]  ;;  %v277_v3 = vld [vmem:[%s259_s28] sm:$0xff]  ;;  %vm311_vm1 = vcmask 130048   ;;  %v305_v13 = vld [vmem:[%s793_s25 + $0x10] sm:$0xff]  ;;  %vm286_vm2 = vcmask 523264   ;;  %s746_s10 = smov [#allocation2]  }
  0x16   : > { %v280_v2 = vld [vmem:[%s269_s9 + $0x8] sm:$0xff]  ;;  %350 = vmatpush.msra.mxu0 %v278_v1  ;;  %v279_v4 = vld [vmem:[%s269_s9] sm:$0xff]  ;;  %642 = vmatpush.msra.mxu2 %v278_v1  ;;  %v379_v14 = vld [vmem:[%s801_s6 + $0x10] sm:$0xff]  ;;  %s501_s11 = sshll.u32 %s746_s10, 4  ;;  %s503_s14 = sshll.u32 %s875_s4, 4  ;;  %vm301_vm3 = vcmask 0   ;;  %s502_s11 = int_to_ptr.vmem [resolvable:$true] %s501_s11  ;;  %s504_s14 = int_to_ptr.hbm [resolvable:$true] %s503_s14 }
  0x17   : > { %423 = vmatpush.msra.mxu1 %v280_v2  ;;  %v303_v5 = vld [vmem:[%s793_s25] sm:$0xff]  ;;  %644 = vmatpush.msra.mxu3 %v280_v2  ;;  %v304_v9 = vld [vmem:[%s793_s25 + $0x8] sm:$0xff]  ;;  %v309_v15 = vld [vmem:[%s793_s25 + $0x30] sm:$0xff]  ;;  %v282_v21 = vsub.f32 %v277_v3, %v279_v4  ;;  %v283_v22 = vsub.f32 %v278_v1, %v280_v2  ;;  %p658_p5 = scmp.eq.s32.totalorder %s784_s19, 1  ;;  %s515_s21 = sshll.u32 %s876_s5, 4  ;;  %s516_s21 = int_to_ptr.hbm [resolvable:$true] %s515_s21 }
  0x18   : > { %v377_v6 = vld [vmem:[%s801_s6] sm:$0xff]  ;;  %351 = vmatpush.msra.mxu0 %v277_v3  ;;  %643 = vmatpush.msra.mxu2 %v277_v3  ;;  %v378_v10 = vld [vmem:[%s801_s6 + $0x8] sm:$0xff]  ;;  %v383_v16 = vld [vmem:[%s801_s6 + $0x30] sm:$0xff]  ;;  %s747_s23 = smov [#allocation4]  }
  0x19   : > { %424 = vmatpush.msra.mxu1 %v279_v4  ;;  %v307_v7 = vld [vmem:[%s793_s25 + $0x20] sm:$0xff]  ;;  %616 = vmatmul.msk.f32.vlgmr.msra.gmra.mxu0 %vm311_vm1, %v303_v5  ;;  %v308_v11 = vld [vmem:[%s793_s25 + $0x28] sm:$0xff]  ;;  %v306_v17 = vld [vmem:[%s793_s25 + $0x18] sm:$0xff]  ;;  %v284_v23 = vand.u32 2147483647, %v282_v21  ;;  %s513_s24 = sshll.u32 %s747_s23, 4  ;;  %s514_s24 = int_to_ptr.vmem [resolvable:$true] %s513_s24 }
  0x1a   : > { %v381_v8 = vld [vmem:[%s801_s6 + $0x20] sm:$0xff]  ;;  %624 = vmatmul.msk.f32.vlgmr.msra.gmra.mxu1 %vm311_vm1, %v377_v6  ;;  %645 = vmatpush.msra.mxu3 %v279_v4  ;;  %v382_v12 = vld [vmem:[%s801_s6 + $0x28] sm:$0xff]  ;;  %v380_v18 = vld [vmem:[%s801_s6 + $0x18] sm:$0xff]  ;;  %v285_v24 = vand.u32 2147483647, %v283_v22 }
  0x1b   : > { %620 = vmatmul.msk.f32.vlgmr.msra.gmra.mxu2 %vm311_vm1, %v307_v7  ;;  %628 = vmatmul.msk.f32.vlgmr.msra.gmra.mxu3 %vm311_vm1, %v381_v8  ;;  %v310_v19 = vld [vmem:[%s793_s25 + $0x38] sm:$0xff]  ;;  %v287_v25 = vsel %vm286_vm2, %v284_v23, 0.0 }
  0x1c   : > { %v384_v20 = vld [vmem:[%s801_s6 + $0x38] sm:$0xff]  ;;  %v288_v26 = vsel %vm286_vm2, %v285_v24, 0.0 }
  0x1d   : > { %v289_v27 = vadd.f32 %v288_v26, %v287_v25  ;;  %v281_v25 = vld [vmem:[#allocation2] sm:$0x1] }
  0x1f   : > { %290 = vadd.xlane.f32.xlu0 %v289_v27 }
  0x21   : > { %617 = vmatmul.msk.f32.gmra.mxu0 %vm311_vm1, %v304_v9 }
  0x22   : > { %625 = vmatmul.msk.f32.gmra.mxu1 %vm311_vm1, %v378_v10 }
  0x23   : > { %621 = vmatmul.msk.f32.gmra.mxu2 %vm311_vm1, %v308_v11  ;;  %629 = vmatmul.msk.f32.gmra.mxu3 %vm311_vm1, %v382_v12 }
  0x29   : > { %618 = vmatmul.msk.f32.gmra.mxu0 %vm311_vm1, %v305_v13 }
  0x2a   : > { %626 = vmatmul.msk.f32.gmra.mxu1 %vm311_vm1, %v379_v14 }
  0x2b   : > { %622 = vmatmul.msk.f32.gmra.mxu2 %vm311_vm1, %v309_v15  ;;  %630 = vmatmul.msk.f32.gmra.mxu3 %vm311_vm1, %v383_v16 }
  0x31   : > { %619 = vmatmul.msk.f32.gmra.mxu0 %vm311_vm1, %v306_v17 }
  0x32   : > { %627 = vmatmul.msk.f32.gmra.mxu1 %vm311_vm1, %v380_v18 }
  0x33   : > { %623 = vmatmul.msk.f32.gmra.mxu2 %vm311_vm1, %v310_v19  ;;  %631 = vmatmul.msk.f32.gmra.mxu3 %vm311_vm1, %v384_v20 }
  0x92   : > { %v291_v11 = vpop.xlane.xlu0 %290 }
  0x93   : > { %v292_v12 = vrot.slane %v291_v11, 4 }
  0x95   : > { %v293_v13 = vadd.f32 %v292_v12, %v291_v11 }
  0x96   : > { %v353_v28 = vpop.f32.mrf.mxu0 }
  0x97   : > { %v426_v29 = vpop.f32.mrf.mxu1  ;;  %v294_v14 = vrot.slane %v293_v13, 2 }
  0x98   : > { %v451_v39 = vsub.f32 %v353_v28, %v426_v29  ;;  %v450_v28 = vld [vmem:[#allocation4] sm:$0x1] }
  0x99   : > { %v295_v15 = vadd.f32 %v294_v14, %v293_v13 }
  0x9a   : > { %v459_v42 = vand.u32 2147483647, %v451_v39 }
  0x9b   : > { %v296_v16 = vrot.slane %v295_v15, 1 }
  0x9c   : > { %v467_v50 = vsel %vm286_vm2, %v459_v42, 0.0 }
  0x9d   : > { %v297_v17 = vadd.f32 %v296_v16, %v295_v15 }
  0x9e   : > { %v356_v30 = vpop.f32.mrf.mxu0  ;;  %v365_v31 = vpop.f32.mrf.mxu2 }
  0x9f   : > { %v429_v32 = vpop.f32.mrf.mxu1  ;;  %v438_v33 = vpop.f32.mrf.mxu3  ;;  %646 = vpush %v297_v17 }
  0xa0   : > { %v452_v34 = vsub.f32 %v356_v30, %v429_v32  ;;  %v455_v45 = vsub.f32 %v365_v31, %v438_v33 }
  0xa2   : > { %v460_v41 = vand.u32 2147483647, %v452_v34  ;;  %v463_v55 = vand.u32 2147483647, %v455_v45 }
  0xa4   : > { %v468_v44 = vsel %vm286_vm2, %v460_v41, 0.0  ;;  %v474_v62 = vsel %vm286_vm2, %v463_v55, 0.0 }
  0xa5   : > { %v469_v54 = vadd.f32 %v468_v44, %v467_v50 }
  0xa6   : > { %v359_v35 = vpop.f32.mrf.mxu0  ;;  %v368_v36 = vpop.f32.mrf.mxu2 }
  0xa7   : > { %v432_v37 = vpop.f32.mrf.mxu1  ;;  %v441_v38 = vpop.f32.mrf.mxu3 }
  0xa8   : > { %v453_v40 = vsub.f32 %v359_v35, %v432_v37  ;;  %v456_v52 = vsub.f32 %v368_v36, %v441_v38 }
  0xaa   : > { %v461_v43 = vand.u32 2147483647, %v453_v40  ;;  %v464_v59 = vand.u32 2147483647, %v456_v52 }
  0xac   : > { %v470_v51 = vsel %vm286_vm2, %v461_v43, 0.0  ;;  %v476_v3 = vsel %vm286_vm2, %v464_v59, 0.0 }
  0xad   : > { %v471_v58 = vadd.f32 %v470_v51, %v469_v54 }
  0xae   : > { %v362_v46 = vpop.f32.mrf.mxu0  ;;  %v371_v47 = vpop.f32.mrf.mxu2 }
  0xaf   : > { %v435_v48 = vpop.f32.mrf.mxu1  ;;  %v444_v49 = vpop.f32.mrf.mxu3 }
  0xb0   : > { %v454_v53 = vsub.f32 %v362_v46, %v435_v48  ;;  %v457_v57 = vsub.f32 %v371_v47, %v444_v49 }
  0xb2   : > { %v462_v56 = vand.u32 2147483647, %v454_v53  ;;  %v465_v63 = vand.u32 2147483647, %v457_v57 }
  0xb4   : > { %v472_v60 = vsel %vm286_vm2, %v462_v56, 0.0  ;;  %v478_v6 = vsel %vm286_vm2, %v465_v63, 0.0 }
  0xb5   : > { %v473_v61 = vadd.f32 %v472_v60, %v471_v58 }
  0xb6   : > { %v374_v0 = vpop.f32.mrf.mxu2 }
  0xb7   : > { %v475_v1 = vadd.f32 %v474_v62, %v473_v61  ;;  %v447_v2 = vpop.f32.mrf.mxu3 }
  0xb8   : > { %v458_v4 = vsub.f32 %v374_v0, %v447_v2 }
  0xb9   : > { %v477_v5 = vadd.f32 %v476_v3, %v475_v1 }
  0xba   : > { %v466_v7 = vand.u32 2147483647, %v458_v4 }
  0xbb   : > { %v479_v8 = vadd.f32 %v478_v6, %v477_v5 }
  0xbc   : > { %v480_v9 = vsel %vm286_vm2, %v466_v7, 0.0 }
  0xbd   : > { %v481_v10 = vadd.f32 %v480_v9, %v479_v8 }
  0xbf   : > { %482 = vadd.xlane.f32.xlu0 %v481_v10 }
  0xd0   : > { %s647_s15 = spop %646 }
  0xd1   : > { %v299_v26 = vstv %s647_s15 }
  0xd2   : > { %v300_v27 = vadd.f32 %v299_v26, %v281_v25 }
  0xd4   : > { %302 = vst.msk [vmem:[#allocation2] sm:$0x1] %vm301_vm3, %v300_v27 }
  0xd5   : > { %651 = dma.vmem_to_hbm [thread:$0]  (%p658_p5), %s502_s11, 16, %s504_s14, [#allocation3]  }
 0x132   : > { %v483_v18 = vpop.xlane.xlu0 %482 }
 0x133   : > { %v484_v19 = vrot.slane %v483_v18, 4 }
 0x135   : > { %v485_v20 = vadd.f32 %v484_v19, %v483_v18 }
 0x137   : > { %v486_v21 = vrot.slane %v485_v20, 2 }
 0x139   : > { %v487_v22 = vadd.f32 %v486_v21, %v485_v20 }
 0x13b   : > { %v488_v23 = vrot.slane %v487_v22, 1 }
 0x13d   : > { %v489_v24 = vadd.f32 %v488_v23, %v487_v22 }
 0x13f   : > { %648 = vpush %v489_v24 }
 0x170   : > { %s649_s16 = spop %648 }
 0x171   : > { %s491_s22 = smul.f32 0.0009765625, %s649_s16 }
 0x173   : > { %v492_v29 = vstv %s491_s22 }
 0x174   : > { %v493_v30 = vadd.f32 %v492_v29, %v450_v28 }
 0x176   : > { %494 = vst.msk [vmem:[#allocation4] sm:$0x1] %vm301_vm3, %v493_v30 }
 0x177   : > { %653 = dma.vmem_to_hbm [thread:$0]  (%p658_p5), %s514_s24, 16, %s516_s21, [#allocation5]  }
 0x178   : > { %734 = dma.done.wait (%p658_p5), [#allocation3], 16  }
 0x179   : > { %736 = vsyncadd (%p658_p5), [#allocation3], 4294967280 }
 0x17a   : > { %738 = dma.done.wait (%p658_p5), [#allocation5], 16  }
 0x17b   : > { %740 = vsyncadd (%p658_p5), [#allocation5], 4294967280 }
 0x17c PF: > { %s18_s18 = sadd.s32 1, %s743_s18  }
 0x17d   : > { %p15_p6 = scmp.ge.s32.totalorder %s18_s18, 4  }
 0x17f   :  { %17 = sbr.rel (!%p15_p6) target bundleno = 2 (0x2), region = 84 }
 0x184   :  { %534 = vsyncpa [#allocation3], 1 }
 0x185   :  { %536 = vsyncpa [#allocation3 + $0x1], 1 }
 0x186   :  { %537 = vsyncpa [#allocation5], 1 }

// kernel: feature_loss.13
= control target key start
LH: loop header
LB: loop body
LE: loop exit
PB: predicated region body
PF: predicated region fallthrough
CT: control target
= control target key end

     0   :  { %s4553_s18 = smov 0   ;;  %s6949_s0 = inlined_call_operand.vmem [shape: f32[2,18,18,3], index: 0, kind: input, shape index: {}]   ;;  %s6950_s1 = inlined_call_operand.vmem [shape: bf16[27,16], index: 1, kind: input, shape index: {}]   ;;  %s6951_s2 = inlined_call_operand.vmem [shape: f32[1,16], index: 2, kind: input, shape index: {}]   ;;  %s6952_s3 = inlined_call_operand.vmem [shape: bf16[144,16], index: 3, kind: input, shape index: {}]   ;;  %s6953_s4 = inlined_call_operand.vmem [shape: f32[1,16], index: 4, kind: input, shape index: {}]   ;;  %s6954_s5 = inlined_call_operand.vmem [shape: f32[2,16,16,16], index: 5, kind: output, shape index: {}]  }
   0x1 LB: > { %s4167_s19 = sadd.s32 4294967295, %s4504_s18   ;;  %p4171_p0 = scmp.ge.s32.totalorder %s4504_s18, 1  ;;  %s4504_s18 = sphi %s4553_s18, %s15_s18  }
   0x2   : > { %p187_p1 = scmp.lt.s32.totalorder %s4504_s18, 3 }
   0x4   : > { %p188_p2 = pnand %p4171_p0, %p187_p1 }
   0x6   : > { %191 = sbr.rel (%p188_p2) target bundleno = 1868 (0x74c), region = 40 }
   0xb   : > { %p215_p3 = scmp.lt.s32.totalorder %s4167_s19, 1  ;;  %s4506_s24 = smov 3   ;;  %vm258_vm0 = vcmask 23552   ;;  %vm451_vm1 = vcmask 48152   ;;  %vm644_vm2 = vcmask 72752   ;;  %vm838_vm3 = vcmask 97352  }
   0xc   : > { %s4507_s25 = smov 6   ;;  %s4508_s26 = smov 9   ;;  %vm1031_vm4 = vcmask 121952   ;;  %vm1224_vm5 = vcmask 146552   ;;  %vm1418_vm6 = vcmask 171152   ;;  %vm1611_vm7 = vcmask 195752  }
   0xd   : > { %s7071_s19 = smov (!%p215_p3, %s4167_s19), 1  ;;  %s4509_s27 = smov 12   ;;  %vm1953_vm8 = vcmask 1044480   ;;  %vm1804_vm9 = vcmask 220352   ;;  %vm1954_vm10 = vcmask 1045504   ;;  %vm1904_vm11 = vcmask 220160  }
   0xe   : > { %s4468_s20 = smul.u32 432, %s7071_s19  ;;  %s4510_s28 = smov 15   ;;  %vm2081_vm12 = vcmask 130048   ;;  %vm2084_vm13 = vcmask 123904   ;;  %vm2394_vm14 = vcmask 261248   ;;  %vm2587_vm15 = vcmask 392448  }
   0xf   : > { %s4511_s29 = smov 18   ;;  %s4512_s30 = smov 21  }
  0x10   : > { %s4567_s23 = scalar_lea.vmem %s6949_s0, %s4468_s20  ;;  %s4513_s6 = smov 24  }
  0x11   : > { %v291_v0 = vld [vmem:[%s4567_s23 + $0x1] sm:$0xff]  ;;  %v4571_v1 = vld [vmem:[%s4567_s23 + $0x19] sm:$0xff]  ;;  %v4577_v2 = vld [vmem:[%s4567_s23 + $0x31] sm:$0xff]  ;;  %s4516_s13 = smov 16   ;;  %s4517_s20 = smov 32  }
  0x12   : > { %355 = vrot.lane.b32.xlu0 %v291_v0, %s4506_s24  ;;  %359 = vrot.lane.b32.xlu1 %v4571_v1, %s4506_s24  ;;  %v292_v3 = vld [vmem:[%s4567_s23 + $0x9] sm:$0xff]  ;;  %v4583_v4 = vld [vmem:[%s4567_s23 + $0x21] sm:$0xff]  ;;  %s4518_s21 = smov 48  }
  0x13   : > { %363 = vrot.lane.b32.xlu2 %v4577_v2, %s4506_s24  ;;  %v4586_v5 = vld [vmem:[%s4567_s23 + $0x39] sm:$0xff]  ;;  %v4594_v6 = vld [vmem:[%s4567_s23 + $0x49] sm:$0xff]  ;;  %v4597_v7 = vld [vmem:[%s4567_s23 + $0x51] sm:$0xff] }
  0x14   : > { %v4600_v8 = vld [vmem:[%s4567_s23 + $0x61] sm:$0xff]  ;;  %v4609_v9 = vld [vmem:[%s4567_s23 + $0x69] sm:$0xff]  ;;  %v4612_v10 = vld [vmem:[%s4567_s23 + $0x79] sm:$0xff] }
  0x15   : > { %v4615_v11 = vld [vmem:[%s4567_s23 + $0x81] sm:$0xff]  ;;  %v4624_v12 = vld [vmem:[%s4567_s23 + $0x91] sm:$0xff]  ;;  %v4627_v13 = vld [vmem:[%s4567_s23 + $0x99] sm:$0xff] }
  0x16   : > { %v4630_v14 = vld [vmem:[%s4567_s23 + $0xa9] sm:$0xff]  ;;  %v4639_v15 = vld [vmem:[%s4567_s23 + $0xb1] sm:$0xff]  ;;  %v4642_v16 = vld [vmem:[%s4567_s23 + $0xc1] sm:$0xff] }
  0x17   : > { %v4645_v17 = vld [vmem:[%s4567_s23 + $0xc9] sm:$0xff]  ;;  %v4654_v18 = vld [vmem:[%s4567_s23 + $0xd9] sm:$0xff]  ;;  %v4657_v19 = vld [vmem:[%s4567_s23 + $0xe1] sm:$0xff] }
  0x18   : > { %v4660_v20 = vld [vmem:[%s4567_s23 + $0xf1] sm:$0xff]  ;;  %v4669_v21 = vld [vmem:[%s4567_s23 + $0xf9] sm:$0xff]  ;;  %v4672_v22 = vld [vmem:[%s4567_s23 + $0x109] sm:$0xff] }
  0x19   : > { %v4675_v23 = vld [vmem:[%s4567_s23 + $0x111] sm:$0xff]  ;;  %v4684_v24 = vld [vmem:[%s4567_s23 + $0x121] sm:$0xff]  ;;  %v4687_v25 = vld [vmem:[%s4567_s23 + $0x129] sm:$0xff] }
  0x1a   : > { %357 = vrot.lane.b32.xlu0 %v292_v3, %s4506_s24  ;;  %361 = vrot.lane.b32.xlu1 %v4583_v4, %s4506_s24  ;;  %v4690_v26 = vld [vmem:[%s4567_s23 + $0x139] sm:$0xff]  ;;  %v4699_v27 = vld [vmem:[%s4567_s23 + $0x141] sm:$0xff] }
  0x1b   : > { %365 = vrot.lane.b32.xlu2 %v4586_v5, %s4506_s24  ;;  %v4702_v28 = vld [vmem:[%s4567_s23 + $0x151] sm:$0xff]  ;;  %v4705_v29 = vld [vmem:[%s4567_s23 + $0x159] sm:$0xff]  ;;  %v4714_v30 = vld [vmem:[%s4567_s23 + $0x169] sm:$0xff] }
  0x1c   : > { %v4717_v31 = vld [vmem:[%s4567_s23 + $0x171] sm:$0xff]  ;;  %v484_v32 = vld [vmem:[%s4567_s23 + $0x2] sm:$0xff]  ;;  %v4729_v35 = vld [vmem:[%s4567_s23 + $0x1a] sm:$0xff] }
  0x1d   : > { %v226_v33 = vld [vmem:[%s4567_s23] sm:$0xff]  ;;  %v485_v34 = vld [vmem:[%s4567_s23 + $0xa] sm:$0xff]  ;;  %v4747_v40 = vld [vmem:[%s4567_s23 + $0x32] sm:$0xff] }
  0x1e   : > { %259 = vst.msk [vmem:[#allocation3] sm:$0xff] %vm258_vm0, %v226_v33  ;;  %v4732_v36 = vld [vmem:[%s4567_s23 + $0x22] sm:$0xff]  ;;  %v4738_v37 = vld [vmem:[%s4567_s23 + $0x30] sm:$0xff]  ;;  %v4750_v41 = vld [vmem:[%s4567_s23 + $0x3a] sm:$0xff] }
  0x1f   : > { %6996 = vst [vmem:[#allocation5_spill] sm:$0xff] %v4732_v36  ;;  %v227_v38 = vld [vmem:[%s4567_s23 + $0x8] sm:$0xff]  ;;  %v4761_v43 = vld [vmem:[%s4567_s23 + $0x38] sm:$0xff]  ;;  %v4792_v50 = vld [vmem:[%s4567_s23 + $0x60] sm:$0xff] }
  0x20   : > { %263 = vst.msk [vmem:[#allocation3 + $0x20] sm:$0xff] %vm258_vm0, %v4738_v37  ;;  %v4754_v42 = vld [vmem:[%s4567_s23 + $0x4a] sm:$0xff]  ;;  %v4764_v44 = vld [vmem:[%s4567_s23 + $0x18] sm:$0xff]  ;;  %v4781_v48 = vld [vmem:[%s4567_s23 + $0x62] sm:$0xff] }
  0x21   : > { %260 = vst.msk [vmem:[#allocation3 + $0x8] sm:$0xff] %vm258_vm0, %v227_v38  ;;  %v4769_v45 = vld [vmem:[%s4567_s23 + $0x48] sm:$0xff]  ;;  %v4778_v47 = vld [vmem:[%s4567_s23 + $0x52] sm:$0xff]  ;;  %v4795_v51 = vld [vmem:[%s4567_s23 + $0x20] sm:$0xff] }
  0x22   : > { %367 = vrot.lane.b32.xlu0 %v4594_v6, %s4506_s24  ;;  %369 = vrot.lane.b32.xlu1 %v4597_v7, %s4506_s24  ;;  %6997 = vst [vmem:[#allocation6_spill] sm:$0xff] %v4747_v40  ;;  %v4785_v49 = vld [vmem:[%s4567_s23 + $0x6a] sm:$0xff]  ;;  %v4809_v54 = vld [vmem:[%s4567_s23 + $0x7a] sm:$0xff] }
  0x23   : > { %371 = vrot.lane.b32.xlu2 %v4600_v8, %s4506_s24  ;;  %6998 = vst [vmem:[#allocation7_spill] sm:$0xff] %v4750_v41  ;;  %v4800_v52 = vld [vmem:[%s4567_s23 + $0x68] sm:$0xff]  ;;  %v4816_v56 = vld [vmem:[%s4567_s23 + $0x92] sm:$0xff]  ;;  %v4823_v57 = vld [vmem:[%s4567_s23 + $0x80] sm:$0xff] }
  0x24   : > { %6999 = vst [vmem:[#allocation8_spill] sm:$0xff] %v4754_v42  ;;  %v4812_v55 = vld [vmem:[%s4567_s23 + $0x82] sm:$0xff]  ;;  %v4826_v58 = vld [vmem:[%s4567_s23 + $0x50] sm:$0xff]  ;;  %v4840_v63 = vld [vmem:[%s4567_s23 + $0x9a] sm:$0xff] }
  0x25   : > { %264 = vst.msk [vmem:[#allocation3 + $0x28] sm:$0xff] %vm258_vm0, %v4761_v43  ;;  %v4836_v61 = vld [vmem:[%s4567_s23 + $0x90] sm:$0xff]  ;;  %v4859_v33 = vld [vmem:[%s4567_s23 + $0x78] sm:$0xff] }
  0x26   : > { %261 = vst.msk [vmem:[#allocation3 + $0x10] sm:$0xff] %vm258_vm0, %v4764_v44  ;;  %v4843_v0 = vld [vmem:[%s4567_s23 + $0xaa] sm:$0xff]  ;;  %v4849_v3 = vld [vmem:[%s4567_s23 + $0xb2] sm:$0xff] }
  0x27   : > { %265 = vst.msk [vmem:[#allocation3 + $0x30] sm:$0xff] %vm258_vm0, %v4769_v45 }
  0x28   : > { %7000 = vst [vmem:[#allocation9_spill] sm:$0xff] %v4778_v47 }
  0x29   : > { %7001 = vst [vmem:[#allocation10_spill] sm:$0xff] %v4781_v48 }
  0x2a   : > { %373 = vrot.lane.b32.xlu0 %v4609_v9, %s4506_s24  ;;  %375 = vrot.lane.b32.xlu1 %v4612_v10, %s4506_s24  ;;  %7002 = vst [vmem:[#allocation11_spill] sm:$0xff] %v4785_v49 }
  0x2b   : > { %377 = vrot.lane.b32.xlu2 %v4615_v11, %s4506_s24  ;;  %267 = vst.msk [vmem:[#allocation3 + $0x40] sm:$0xff] %vm258_vm0, %v4792_v50 }
  0x2c   : > { %262 = vst.msk [vmem:[#allocation3 + $0x18] sm:$0xff] %vm258_vm0, %v4795_v51 }
  0x2d   : > { %268 = vst.msk [vmem:[#allocation3 + $0x48] sm:$0xff] %vm258_vm0, %v4800_v52 }
  0x2e   : > { %7003 = vst [vmem:[#allocation12_spill] sm:$0xff] %v4809_v54 }
  0x2f   : > { %7004 = vst [vmem:[#allocation13_spill] sm:$0xff] %v4812_v55 }
  0x30   : > { %7005 = vst [vmem:[#allocation14_spill] sm:$0xff] %v4816_v56 }
  0x31   : > { %270 = vst.msk [vmem:[#allocation3 + $0x58] sm:$0xff] %vm258_vm0, %v4823_v57 }
  0x32   : > { %379 = vrot.lane.b32.xlu0 %v4624_v12, %s4506_s24  ;;  %381 = vrot.lane.b32.xlu1 %v4627_v13, %s4506_s24  ;;  %266 = vst.msk [vmem:[#allocation3 + $0x38] sm:$0xff] %vm258_vm0, %v4826_v58 }
  0x33   : > { %383 = vrot.lane.b32.xlu2 %v4630_v14, %s4506_s24  ;;  %7006 = vst [vmem:[#allocation15_spill] sm:$0xff] %v4840_v63 }
  0x34   : > { %7007 = vst [vmem:[#allocation16_spill] sm:$0xff] %v4843_v0 }
  0x35   : > { %271 = vst.msk [vmem:[#allocation3 + $0x60] sm:$0xff] %vm258_vm0, %v4836_v61 }
  0x36   : > { %7008 = vst [vmem:[#allocation17_spill] sm:$0xff] %v4849_v3 }
  0x37   : > { %269 = vst.msk [vmem:[#allocation3 + $0x50] sm:$0xff] %vm258_vm0, %v4859_v33 }
  0x3a   : > { %385 = vrot.lane.b32.xlu0 %v4639_v15, %s4506_s24  ;;  %387 = vrot.lane.b32.xlu1 %v4642_v16, %s4506_s24 }
  0x3b   : > { %389 = vrot.lane.b32.xlu2 %v4645_v17, %s4506_s24 }
  0x42   : > { %391 = vrot.lane.b32.xlu0 %v4654_v18, %s4506_s24  ;;  %393 = vrot.lane.b32.xlu1 %v4657_v19, %s4506_s24 }
  0x43   : > { %395 = vrot.lane.b32.xlu2 %v4660_v20, %s4506_s24 }
  0x4a   : > { %397 = vrot.lane.b32.xlu0 %v4669_v21, %s4506_s24  ;;  %399 = vrot.lane.b32.xlu1 %v4672_v22, %s4506_s24 }
  0x4b   : > { %401 = vrot.lane.b32.xlu2 %v4675_v23, %s4506_s24 }
  0x52   : > { %403 = vrot.lane.b32.xlu0 %v4684_v24, %s4506_s24  ;;  %405 = vrot.lane.b32.xlu1 %v4687_v25, %s4506_s24 }
  0x53   : > { %407 = vrot.lane.b32.xlu2 %v4690_v26, %s4506_s24 }
  0x5a   : > { %409 = vrot.lane.b32.xlu0 %v4699_v27, %s4506_s24  ;;  %411 = vrot.lane.b32.xlu1 %v4702_v28, %s4506_s24 }
  0x5b   : > { %413 = vrot.lane.b32.xlu2 %v4705_v29, %s4506_s24 }
  0x62   : > { %415 = vrot.lane.b32.xlu0 %v4714_v30, %s4506_s24  ;;  %417 = vrot.lane.b32.xlu1 %v4717_v31, %s4506_s24  ;;  %s4519_s24 = smov 64  }
  0x63   : > { %548 = vrot.lane.b32.xlu2 %v484_v32, %s4507_s25  ;;  %v4856_v32 = vld [vmem:[%s4567_s23 + $0xa8] sm:$0xff] }
  0x64   : > { %273 = vst.msk [vmem:[#allocation3 + $0x70] sm:$0xff] %vm258_vm0, %v4856_v32 }
  0x6a   : > { %550 = vrot.lane.b32.xlu0 %v485_v34, %s4507_s25  ;;  %552 = vrot.lane.b32.xlu1 %v4729_v35, %s4507_s25 }
  0x6b   : > { %554 = vrot.lane.b32.xlu2 %v4732_v36, %s4507_s25  ;;  %v5038_v36 = vld [vmem:[%s4567_s23 + $0x172] sm:$0xff] }
  0x6c   : > { %7024 = vst [vmem:[#allocation33_spill] sm:$0xff] %v5038_v36 }
  0x6d   : > { %v364_v39 = vpop.permute.xlu2 %363 }
  0x6e   : > { %456 = vst.msk [vmem:[#allocation3 + $0x20] sm:$0xff] %vm451_vm1, %v364_v39  ;;  %v4869_v39 = vld [vmem:[%s4567_s23 + $0xb0] sm:$0xff] }
  0x6f   : > { %274 = vst.msk [vmem:[#allocation3 + $0x78] sm:$0xff] %vm258_vm0, %v4869_v39 }
  0x72   : > { %556 = vrot.lane.b32.xlu0 %v4747_v40, %s4507_s25  ;;  %558 = vrot.lane.b32.xlu1 %v4750_v41, %s4507_s25  ;;  %v5008_v41 = vld [vmem:[%s4567_s23 + $0x15a] sm:$0xff] }
  0x73   : > { %560 = vrot.lane.b32.xlu2 %v4754_v42, %s4507_s25  ;;  %v5005_v42 = vld [vmem:[%s4567_s23 + $0x152] sm:$0xff]  ;;  %7022 = vst [vmem:[#allocation31_spill] sm:$0xff] %v5008_v41 }
  0x74   : > { %7021 = vst [vmem:[#allocation30_spill] sm:$0xff] %v5005_v42 }
  0x75   : > { %v366_v46 = vpop.permute.xlu2 %365 }
  0x76   : > { %457 = vst.msk [vmem:[#allocation3 + $0x28] sm:$0xff] %vm451_vm1, %v366_v46 }
  0x7a   : > { %562 = vrot.lane.b32.xlu0 %v4778_v47, %s4507_s25  ;;  %564 = vrot.lane.b32.xlu1 %v4781_v48, %s4507_s25  ;;  %v4975_v48 = vld [vmem:[%s4567_s23 + $0x13a] sm:$0xff] }
  0x7b   : > { %566 = vrot.lane.b32.xlu2 %v4785_v49, %s4507_s25  ;;  %v4972_v49 = vld [vmem:[%s4567_s23 + $0x12a] sm:$0xff]  ;;  %7019 = vst [vmem:[#allocation28_spill] sm:$0xff] %v4975_v48 }
  0x7c   : > { %7018 = vst [vmem:[#allocation27_spill] sm:$0xff] %v4972_v49 }
  0x7d   : > { %v372_v53 = vpop.permute.xlu2 %371 }
  0x7e   : > { %460 = vst.msk [vmem:[#allocation3 + $0x40] sm:$0xff] %vm451_vm1, %v372_v53  ;;  %v4873_v53 = vld [vmem:[%s4567_s23 + $0xc2] sm:$0xff] }
  0x7f   : > { %7009 = vst [vmem:[#allocation18_spill] sm:$0xff] %v4873_v53 }
  0x82   : > { %568 = vrot.lane.b32.xlu0 %v4809_v54, %s4507_s25  ;;  %570 = vrot.lane.b32.xlu1 %v4812_v55, %s4507_s25  ;;  %v4942_v55 = vld [vmem:[%s4567_s23 + $0x112] sm:$0xff] }
  0x83   : > { %572 = vrot.lane.b32.xlu2 %v4816_v56, %s4507_s25  ;;  %v4939_v56 = vld [vmem:[%s4567_s23 + $0x10a] sm:$0xff]  ;;  %7016 = vst [vmem:[#allocation25_spill] sm:$0xff] %v4942_v55 }
  0x84   : > { %v356_v59 = vpop.permute.xlu0 %355  ;;  %v360_v60 = vpop.permute.xlu1 %359  ;;  %7015 = vst [vmem:[#allocation24_spill] sm:$0xff] %v4939_v56 }
  0x85   : > { %452 = vst.msk [vmem:[#allocation3] sm:$0xff] %vm451_vm1, %v356_v59  ;;  %v378_v62 = vpop.permute.xlu2 %377  ;;  %v4876_v59 = vld [vmem:[%s4567_s23 + $0xca] sm:$0xff] }
  0x86   : > { %454 = vst.msk [vmem:[#allocation3 + $0x10] sm:$0xff] %vm451_vm1, %v360_v60  ;;  %v4882_v60 = vld [vmem:[%s4567_s23 + $0xda] sm:$0xff] }
  0x87   : > { %463 = vst.msk [vmem:[#allocation3 + $0x58] sm:$0xff] %vm451_vm1, %v378_v62  ;;  %v4889_v62 = vld [vmem:[%s4567_s23 + $0xc8] sm:$0xff] }
  0x88   : > { %7010 = vst [vmem:[#allocation19_spill] sm:$0xff] %v4876_v59 }
  0x89   : > { %7011 = vst [vmem:[#allocation20_spill] sm:$0xff] %v4882_v60 }
  0x8a   : > { %574 = vrot.lane.b32.xlu0 %v4840_v63, %s4507_s25  ;;  %576 = vrot.lane.b32.xlu1 %v4843_v0, %s4507_s25  ;;  %276 = vst.msk [vmem:[#allocation3 + $0x88] sm:$0xff] %vm258_vm0, %v4889_v62  ;;  %v4909_v0 = vld [vmem:[%s4567_s23 + $0xf2] sm:$0xff] }
  0x8b   : > { %578 = vrot.lane.b32.xlu2 %v4849_v3, %s4507_s25  ;;  %v4906_v3 = vld [vmem:[%s4567_s23 + $0xe2] sm:$0xff]  ;;  %7013 = vst [vmem:[#allocation22_spill] sm:$0xff] %v4909_v0 }
  0x8c   : > { %v358_v34 = vpop.permute.xlu0 %357  ;;  %v362_v38 = vpop.permute.xlu1 %361  ;;  %7012 = vst [vmem:[#allocation21_spill] sm:$0xff] %v4906_v3 }
  0x8d   : > { %453 = vst.msk [vmem:[#allocation3 + $0x8] sm:$0xff] %vm451_vm1, %v358_v34  ;;  %v384_v46 = vpop.permute.xlu2 %383  ;;  %v4892_v34 = vld [vmem:[%s4567_s23 + $0x98] sm:$0xff] }
  0x8e   : > { %455 = vst.msk [vmem:[#allocation3 + $0x18] sm:$0xff] %vm451_vm1, %v362_v38 }
  0x8f   : > { %466 = vst.msk [vmem:[#allocation3 + $0x70] sm:$0xff] %vm451_vm1, %v384_v46 }
  0x90   : > { %272 = vst.msk [vmem:[#allocation3 + $0x68] sm:$0xff] %vm258_vm0, %v4892_v34 }
  0x92   : > { %580 = vrot.lane.b32.xlu0 %v4873_v53, %s4507_s25  ;;  %582 = vrot.lane.b32.xlu1 %v4876_v59, %s4507_s25  ;;  %v4902_v59 = vld [vmem:[%s4567_s23 + $0xd8] sm:$0xff] }
  0x93   : > { %584 = vrot.lane.b32.xlu2 %v4882_v60, %s4507_s25  ;;  %277 = vst.msk [vmem:[#allocation3 + $0x90] sm:$0xff] %vm258_vm0, %v4902_v59  ;;  %v4915_v60 = vld [vmem:[%s4567_s23 + $0xfa] sm:$0xff] }
  0x94   : > { %v368_v38 = vpop.permute.xlu0 %367  ;;  %v370_v46 = vpop.permute.xlu1 %369  ;;  %7014 = vst [vmem:[#allocation23_spill] sm:$0xff] %v4915_v60 }
  0x95   : > { %458 = vst.msk [vmem:[#allocation3 + $0x30] sm:$0xff] %vm451_vm1, %v368_v38  ;;  %v390_v53 = vpop.permute.xlu2 %389  ;;  %v4922_v38 = vld [vmem:[%s4567_s23 + $0xf0] sm:$0xff] }
  0x96   : > { %459 = vst.msk [vmem:[#allocation3 + $0x38] sm:$0xff] %vm451_vm1, %v370_v46  ;;  %v4925_v46 = vld [vmem:[%s4567_s23 + $0xc0] sm:$0xff] }
  0x97   : > { %469 = vst.msk [vmem:[#allocation3 + $0x88] sm:$0xff] %vm451_vm1, %v390_v53 }
  0x98   : > { %279 = vst.msk [vmem:[#allocation3 + $0xa0] sm:$0xff] %vm258_vm0, %v4922_v38 }
  0x99   : > { %275 = vst.msk [vmem:[#allocation3 + $0x80] sm:$0xff] %vm258_vm0, %v4925_v46 }
  0x9a   : > { %586 = vrot.lane.b32.xlu0 %v4906_v3, %s4507_s25  ;;  %588 = vrot.lane.b32.xlu1 %v4909_v0, %s4507_s25  ;;  %v4935_v0 = vld [vmem:[%s4567_s23 + $0xf8] sm:$0xff] }
  0x9b   : > { %590 = vrot.lane.b32.xlu2 %v4915_v60, %s4507_s25  ;;  %280 = vst.msk [vmem:[#allocation3 + $0xa8] sm:$0xff] %vm258_vm0, %v4935_v0  ;;  %v4948_v60 = vld [vmem:[%s4567_s23 + $0x122] sm:$0xff] }
  0x9c   : > { %v374_v53 = vpop.permute.xlu0 %373  ;;  %v376_v63 = vpop.permute.xlu1 %375  ;;  %7017 = vst [vmem:[#allocation26_spill] sm:$0xff] %v4948_v60 }
  0x9d   : > { %461 = vst.msk [vmem:[#allocation3 + $0x48] sm:$0xff] %vm451_vm1, %v374_v53  ;;  %v396_v3 = vpop.permute.xlu2 %395  ;;  %v4958_v53 = vld [vmem:[%s4567_s23 + $0xe0] sm:$0xff] }
  0x9e   : > { %462 = vst.msk [vmem:[#allocation3 + $0x50] sm:$0xff] %vm451_vm1, %v376_v63  ;;  %v4955_v63 = vld [vmem:[%s4567_s23 + $0x110] sm:$0xff] }
  0x9f   : > { %472 = vst.msk [vmem:[#allocation3 + $0xa0] sm:$0xff] %vm451_vm1, %v396_v3 }
  0xa0   : > { %282 = vst.msk [vmem:[#allocation3 + $0xb8] sm:$0xff] %vm258_vm0, %v4955_v63 }
  0xa1   : > { %278 = vst.msk [vmem:[#allocation3 + $0x98] sm:$0xff] %vm258_vm0, %v4958_v53 }
  0xa2   : > { %592 = vrot.lane.b32.xlu0 %v4939_v56, %s4507_s25  ;;  %594 = vrot.lane.b32.xlu1 %v4942_v55, %s4507_s25  ;;  %v4968_v55 = vld [vmem:[%s4567_s23 + $0x120] sm:$0xff] }
  0xa3   : > { %596 = vrot.lane.b32.xlu2 %v4948_v60, %s4507_s25  ;;  %283 = vst.msk [vmem:[#allocation3 + $0xc0] sm:$0xff] %vm258_vm0, %v4968_v55  ;;  %v4981_v60 = vld [vmem:[%s4567_s23 + $0x142] sm:$0xff] }
  0xa4   : > { %v380_v3 = vpop.permute.xlu0 %379  ;;  %v382_v54 = vpop.permute.xlu1 %381  ;;  %7020 = vst [vmem:[#allocation29_spill] sm:$0xff] %v4981_v60 }
  0xa5   : > { %464 = vst.msk [vmem:[#allocation3 + $0x60] sm:$0xff] %vm451_vm1, %v380_v3  ;;  %v402_v56 = vpop.permute.xlu2 %401  ;;  %v4991_v3 = vld [vmem:[%s4567_s23 + $0x108] sm:$0xff] }
  0xa6   : > { %465 = vst.msk [vmem:[#allocation3 + $0x68] sm:$0xff] %vm451_vm1, %v382_v54  ;;  %v4988_v54 = vld [vmem:[%s4567_s23 + $0x138] sm:$0xff] }
  0xa7   : > { %475 = vst.msk [vmem:[#allocation3 + $0xb8] sm:$0xff] %vm451_vm1, %v402_v56 }
  0xa8   : > { %285 = vst.msk [vmem:[#allocation3 + $0xd0] sm:$0xff] %vm258_vm0, %v4988_v54 }
  0xa9   : > { %281 = vst.msk [vmem:[#allocation3 + $0xb0] sm:$0xff] %vm258_vm0, %v4991_v3 }
  0xaa   : > { %598 = vrot.lane.b32.xlu0 %v4972_v49, %s4507_s25  ;;  %600 = vrot.lane.b32.xlu1 %v4975_v48, %s4507_s25  ;;  %v5001_v48 = vld [vmem:[%s4567_s23 + $0x140] sm:$0xff] }
  0xab   : > { %602 = vrot.lane.b32.xlu2 %v4981_v60, %s4507_s25  ;;  %286 = vst.msk [vmem:[#allocation3 + $0xd8] sm:$0xff] %vm258_vm0, %v5001_v48  ;;  %v5014_v60 = vld [vmem:[%s4567_s23 + $0x16a] sm:$0xff] }
  0xac   : > { %v386_v56 = vpop.permute.xlu0 %385  ;;  %v388_v47 = vpop.permute.xlu1 %387  ;;  %7023 = vst [vmem:[#allocation32_spill] sm:$0xff] %v5014_v60 }
  0xad   : > { %467 = vst.msk [vmem:[#allocation3 + $0x78] sm:$0xff] %vm451_vm1, %v386_v56  ;;  %v408_v49 = vpop.permute.xlu2 %407  ;;  %v5024_v56 = vld [vmem:[%s4567_s23 + $0x128] sm:$0xff] }
  0xae   : > { %468 = vst.msk [vmem:[#allocation3 + $0x80] sm:$0xff] %vm451_vm1, %v388_v47  ;;  %v5021_v47 = vld [vmem:[%s4567_s23 + $0x158] sm:$0xff] }
  0xaf   : > { %478 = vst.msk [vmem:[#allocation3 + $0xd0] sm:$0xff] %vm451_vm1, %v408_v49 }
  0xb0   : > { %288 = vst.msk [vmem:[#allocation3 + $0xe8] sm:$0xff] %vm258_vm0, %v5021_v47 }
  0xb1   : > { %284 = vst.msk [vmem:[#allocation3 + $0xc8] sm:$0xff] %vm258_vm0, %v5024_v56 }
  0xb2   : > { %604 = vrot.lane.b32.xlu0 %v5005_v42, %s4507_s25  ;;  %606 = vrot.lane.b32.xlu1 %v5008_v41, %s4507_s25  ;;  %v5034_v42 = vld [vmem:[%s4567_s23 + $0x168] sm:$0xff] }
  0xb3   : > { %608 = vrot.lane.b32.xlu2 %v5014_v60, %s4507_s25  ;;  %289 = vst.msk [vmem:[#allocation3 + $0xf0] sm:$0xff] %vm258_vm0, %v5034_v42 }
  0xb4   : > { %v392_v49 = vpop.permute.xlu0 %391  ;;  %v394_v40 = vpop.permute.xlu1 %393 }
  0xb5   : > { %470 = vst.msk [vmem:[#allocation3 + $0x90] sm:$0xff] %vm451_vm1, %v392_v49  ;;  %v414_v41 = vpop.permute.xlu2 %413  ;;  %v5048_v49 = vld [vmem:[%s4567_s23 + $0x150] sm:$0xff] }
  0xb6   : > { %471 = vst.msk [vmem:[#allocation3 + $0x98] sm:$0xff] %vm451_vm1, %v394_v40 }
  0xb7   : > { %481 = vst.msk [vmem:[#allocation3 + $0xe8] sm:$0xff] %vm451_vm1, %v414_v41 }
  0xb8   : > { %287 = vst.msk [vmem:[#allocation3 + $0xe0] sm:$0xff] %vm258_vm0, %v5048_v49 }
  0xba   : > { %610 = vrot.lane.b32.xlu0 %v5038_v36, %s4507_s25  ;;  %742 = vrot.lane.b32.xlu1 %v4764_v44, %s4508_s26  ;;  %v5062_v44 = vld [vmem:[%s4567_s23 + $0x170] sm:$0xff]  ;;  %s4520_s25 = smov 96  }
  0xbb   : > { %744 = vrot.lane.b32.xlu2 %v4795_v51, %s4508_s26  ;;  %290 = vst.msk [vmem:[#allocation3 + $0xf8] sm:$0xff] %vm258_vm0, %v5062_v44  ;;  %vm2780_vm0 = vcmask 523648  }
  0xbc   : > { %v398_v40 = vpop.permute.xlu0 %397  ;;  %v400_v60 = vpop.permute.xlu1 %399 }
  0xbd   : > { %473 = vst.msk [vmem:[#allocation3 + $0xa8] sm:$0xff] %vm451_vm1, %v398_v40  ;;  %v549_v41 = vpop.permute.xlu2 %548 }
  0xbe   : > { %474 = vst.msk [vmem:[#allocation3 + $0xb0] sm:$0xff] %vm451_vm1, %v400_v60 }
  0xbf   : > { %645 = vst.msk [vmem:[#allocation3] sm:$0xff] %vm644_vm2, %v549_v41 }
  0xc2   : > { %746 = vrot.lane.b32.xlu0 %v4738_v37, %s4508_s26  ;;  %748 = vrot.lane.b32.xlu1 %v4761_v43, %s4508_s26 }
  0xc3   : > { %750 = vrot.lane.b32.xlu2 %v4769_v45, %s4508_s26 }
  0xc4   : > { %v404_v51 = vpop.permute.xlu0 %403  ;;  %v406_v36 = vpop.permute.xlu1 %405 }
  0xc5   : > { %476 = vst.msk [vmem:[#allocation3 + $0xc0] sm:$0xff] %vm451_vm1, %v404_v51  ;;  %v555_v60 = vpop.permute.xlu2 %554 }
  0xc6   : > { %477 = vst.msk [vmem:[#allocation3 + $0xc8] sm:$0xff] %vm451_vm1, %v406_v36 }
  0xc7   : > { %648 = vst.msk [vmem:[#allocation3 + $0x18] sm:$0xff] %vm644_vm2, %v555_v60 }
  0xca   : > { %752 = vrot.lane.b32.xlu0 %v4826_v58, %s4508_s26  ;;  %754 = vrot.lane.b32.xlu1 %v4792_v50, %s4508_s26 }
  0xcb   : > { %756 = vrot.lane.b32.xlu2 %v4800_v52, %s4508_s26 }
  0xcc   : > { %v410_v37 = vpop.permute.xlu0 %409  ;;  %v412_v43 = vpop.permute.xlu1 %411 }
  0xcd   : > { %479 = vst.msk [vmem:[#allocation3 + $0xd8] sm:$0xff] %vm451_vm1, %v410_v37  ;;  %v561_v40 = vpop.permute.xlu2 %560 }
  0xce   : > { %480 = vst.msk [vmem:[#allocation3 + $0xe0] sm:$0xff] %vm451_vm1, %v412_v43 }
  0xcf   : > { %651 = vst.msk [vmem:[#allocation3 + $0x30] sm:$0xff] %vm644_vm2, %v561_v40 }
  0xd2   : > { %758 = vrot.lane.b32.xlu0 %v4859_v33, %s4508_s26  ;;  %760 = vrot.lane.b32.xlu1 %v4823_v57, %s4508_s26 }
  0xd3   : > { %762 = vrot.lane.b32.xlu2 %v4836_v61, %s4508_s26 }
  0xd4   : > { %v416_v36 = vpop.permute.xlu0 %415  ;;  %v418_v50 = vpop.permute.xlu1 %417 }
  0xd5   : > { %482 = vst.msk [vmem:[#allocation3 + $0xf0] sm:$0xff] %vm451_vm1, %v416_v36  ;;  %v567_v41 = vpop.permute.xlu2 %566 }
  0xd6   : > { %483 = vst.msk [vmem:[#allocation3 + $0xf8] sm:$0xff] %vm451_vm1, %v418_v50  ;;  %vm2973_vm1 = vcmask 654848  }
  0xd7   : > { %654 = vst.msk [vmem:[#allocation3 + $0x48] sm:$0xff] %vm644_vm2, %v567_v41 }
  0xda   : > { %764 = vrot.lane.b32.xlu0 %v4892_v34, %s4508_s26  ;;  %766 = vrot.lane.b32.xlu1 %v4856_v32, %s4508_s26 }
  0xdb   : > { %768 = vrot.lane.b32.xlu2 %v4869_v39, %s4508_s26 }
  0xdc   : > { %v551_v51 = vpop.permute.xlu0 %550  ;;  %v553_v57 = vpop.permute.xlu1 %552 }
  0xdd   : > { %646 = vst.msk [vmem:[#allocation3 + $0x8] sm:$0xff] %vm644_vm2, %v551_v51  ;;  %v573_v60 = vpop.permute.xlu2 %572 }
  0xde   : > { %647 = vst.msk [vmem:[#allocation3 + $0x10] sm:$0xff] %vm644_vm2, %v553_v57 }
  0xdf   : > { %657 = vst.msk [vmem:[#allocation3 + $0x60] sm:$0xff] %vm644_vm2, %v573_v60 }
  0xe2   : > { %770 = vrot.lane.b32.xlu0 %v4925_v46, %s4508_s26  ;;  %772 = vrot.lane.b32.xlu1 %v4889_v62, %s4508_s26 }
  0xe3   : > { %774 = vrot.lane.b32.xlu2 %v4902_v59, %s4508_s26 }
  0xe4   : > { %v557_v37 = vpop.permute.xlu0 %556  ;;  %v559_v32 = vpop.permute.xlu1 %558 }
  0xe5   : > { %649 = vst.msk [vmem:[#allocation3 + $0x20] sm:$0xff] %vm644_vm2, %v557_v37  ;;  %v579_v43 = vpop.permute.xlu2 %578 }
  0xe6   : > { %650 = vst.msk [vmem:[#allocation3 + $0x28] sm:$0xff] %vm644_vm2, %v559_v32 }
  0xe7   : > { %660 = vst.msk [vmem:[#allocation3 + $0x78] sm:$0xff] %vm644_vm2, %v579_v43  ;;  %v5143_v43 = vld [vmem:[%s4567_s23 + $0x180] sm:$0xff] }
  0xea   : > { %776 = vrot.lane.b32.xlu0 %v4958_v53, %s4508_s26  ;;  %778 = vrot.lane.b32.xlu1 %v4922_v38, %s4508_s26 }
  0xeb   : > { %780 = vrot.lane.b32.xlu2 %v4935_v0, %s4508_s26 }
  0xec   : > { %v563_v40 = vpop.permute.xlu0 %562  ;;  %v565_v62 = vpop.permute.xlu1 %564 }
  0xed   : > { %652 = vst.msk [vmem:[#allocation3 + $0x38] sm:$0xff] %vm644_vm2, %v563_v40  ;;  %v585_v36 = vpop.permute.xlu2 %584  ;;  %v5147_v40 = vld [vmem:[%s4567_s23 + $0x188] sm:$0xff] }
  0xee   : > { %653 = vst.msk [vmem:[#allocation3 + $0x40] sm:$0xff] %vm644_vm2, %v565_v62 }
  0xef   : > { %663 = vst.msk [vmem:[#allocation3 + $0x90] sm:$0xff] %vm644_vm2, %v585_v36 }
  0xf2   : > { %782 = vrot.lane.b32.xlu0 %v4991_v3, %s4508_s26  ;;  %784 = vrot.lane.b32.xlu1 %v4955_v63, %s4508_s26 }
  0xf3   : > { %786 = vrot.lane.b32.xlu2 %v4968_v55, %s4508_s26 }
  0xf4   : > { %v569_v50 = vpop.permute.xlu0 %568  ;;  %v571_v38 = vpop.permute.xlu1 %570 }
  0xf5   : > { %655 = vst.msk [vmem:[#allocation3 + $0x50] sm:$0xff] %vm644_vm2, %v569_v50  ;;  %v591_v41 = vpop.permute.xlu2 %590 }
  0xf6   : > { %656 = vst.msk [vmem:[#allocation3 + $0x58] sm:$0xff] %vm644_vm2, %v571_v38 }
  0xf7   : > { %666 = vst.msk [vmem:[#allocation3 + $0xa8] sm:$0xff] %vm644_vm2, %v591_v41 }
  0xfa   : > { %788 = vrot.lane.b32.xlu0 %v5024_v56, %s4508_s26  ;;  %790 = vrot.lane.b32.xlu1 %v4988_v54, %s4508_s26 }
  0xfb   : > { %792 = vrot.lane.b32.xlu2 %v5001_v48, %s4508_s26 }
  0xfc   : > { %v575_v63 = vpop.permute.xlu0 %574  ;;  %v577_v51 = vpop.permute.xlu1 %576 }
  0xfd   : > { %658 = vst.msk [vmem:[#allocation3 + $0x68] sm:$0xff] %vm644_vm2, %v575_v63  ;;  %v597_v57 = vpop.permute.xlu2 %596 }
  0xfe   : > { %659 = vst.msk [vmem:[#allocation3 + $0x70] sm:$0xff] %vm644_vm2, %v577_v51  ;;  %v5248_v51 = vld [vmem:[%s4567_s23 + $0x181] sm:$0xff] }
  0xff   : > { %669 = vst.msk [vmem:[#allocation3 + $0xc0] sm:$0xff] %vm644_vm2, %v597_v57  ;;  %v5251_v57 = vld [vmem:[%s4567_s23 + $0x189] sm:$0xff] }
 0x102   : > { %794 = vrot.lane.b32.xlu0 %v5048_v49, %s4508_s26  ;;  %796 = vrot.lane.b32.xlu1 %v5021_v47, %s4508_s26 }
 0x103   : > { %798 = vrot.lane.b32.xlu2 %v5034_v42, %s4508_s26 }
 0x104   : > { %v581_v60 = vpop.permute.xlu0 %580  ;;  %v583_v37 = vpop.permute.xlu1 %582 }
 0x105   : > { %661 = vst.msk [vmem:[#allocation3 + $0x80] sm:$0xff] %vm644_vm2, %v581_v60  ;;  %v603_v32 = vpop.permute.xlu2 %602  ;;  %v7025_v60 = vld [vmem:[#allocation5_spill] sm:$0xff] }
 0x106   : > { %662 = vst.msk [vmem:[#allocation3 + $0x88] sm:$0xff] %vm644_vm2, %v583_v37  ;;  %v7026_v37 = vld [vmem:[#allocation6_spill] sm:$0xff] }
 0x107   : > { %672 = vst.msk [vmem:[#allocation3 + $0xd8] sm:$0xff] %vm644_vm2, %v603_v32 }
 0x10a   : > { %800 = vrot.lane.b32.xlu0 %v5062_v44, %s4508_s26  ;;  %802 = vrot.lane.b32.xlu1 %v5143_v43, %s4508_s26 }
 0x10b   : > { %804 = vrot.lane.b32.xlu2 %v5147_v40, %s4508_s26  ;;  %s4521_s26 = smov 80  }
 0x10c   : > { %v587_v62 = vpop.permute.xlu0 %586  ;;  %v589_v36 = vpop.permute.xlu1 %588 }
 0x10d   : > { %664 = vst.msk [vmem:[#allocation3 + $0x98] sm:$0xff] %vm644_vm2, %v587_v62  ;;  %v609_v50 = vpop.permute.xlu2 %608 }
 0x10e   : > { %665 = vst.msk [vmem:[#allocation3 + $0xa0] sm:$0xff] %vm644_vm2, %v589_v36  ;;  %v7027_v36 = vld [vmem:[#allocation7_spill] sm:$0xff] }
 0x10f   : > { %675 = vst.msk [vmem:[#allocation3 + $0xf0] sm:$0xff] %vm644_vm2, %v609_v50  ;;  %v7028_v50 = vld [vmem:[#allocation8_spill] sm:$0xff] }
 0x112   : > { %935 = vrot.lane.b32.xlu0 %v4571_v1, %s4509_s27  ;;  %937 = vrot.lane.b32.xlu1 %v4583_v4, %s4509_s27 }
 0x113   : > { %939 = vrot.lane.b32.xlu2 %v4577_v2, %s4509_s27 }
 0x114   : > { %v593_v38 = vpop.permute.xlu0 %592  ;;  %v595_v41 = vpop.permute.xlu1 %594 }
 0x115   : > { %667 = vst.msk [vmem:[#allocation3 + $0xb0] sm:$0xff] %vm644_vm2, %v593_v38  ;;  %v745_v63 = vpop.permute.xlu2 %744  ;;  %v7029_v38 = vld [vmem:[#allocation9_spill] sm:$0xff] }
 0x116   : > { %668 = vst.msk [vmem:[#allocation3 + $0xb8] sm:$0xff] %vm644_vm2, %v595_v41 }
 0x117   : > { %840 = vst.msk [vmem:[#allocation3 + $0x8] sm:$0xff] %vm838_vm3, %v745_v63 }
 0x11a   : > { %941 = vrot.lane.b32.xlu0 %v4586_v5, %s4509_s27  ;;  %943 = vrot.lane.b32.xlu1 %v4594_v6, %s4509_s27 }
 0x11b   : > { %945 = vrot.lane.b32.xlu2 %v4597_v7, %s4509_s27 }
 0x11c   : > { %v599_v1 = vpop.permute.xlu0 %598  ;;  %v601_v4 = vpop.permute.xlu1 %600 }
 0x11d   : > { %670 = vst.msk [vmem:[#allocation3 + $0xc8] sm:$0xff] %vm644_vm2, %v599_v1  ;;  %v751_v2 = vpop.permute.xlu2 %750  ;;  %v7030_v1 = vld [vmem:[#allocation10_spill] sm:$0xff] }
 0x11e   : > { %671 = vst.msk [vmem:[#allocation3 + $0xd0] sm:$0xff] %vm644_vm2, %v601_v4 }
 0x11f   : > { %843 = vst.msk [vmem:[#allocation3 + $0x20] sm:$0xff] %vm838_vm3, %v751_v2  ;;  %v7031_v2 = vld [vmem:[#allocation11_spill] sm:$0xff] }
 0x122   : > { %947 = vrot.lane.b32.xlu0 %v4600_v8, %s4509_s27  ;;  %949 = vrot.lane.b32.xlu1 %v4609_v9, %s4509_s27 }
 0x123   : > { %951 = vrot.lane.b32.xlu2 %v4612_v10, %s4509_s27 }
 0x124   : > { %v605_v5 = vpop.permute.xlu0 %604  ;;  %v607_v6 = vpop.permute.xlu1 %606 }
 0x125   : > { %673 = vst.msk [vmem:[#allocation3 + $0xe0] sm:$0xff] %vm644_vm2, %v605_v5  ;;  %v757_v7 = vpop.permute.xlu2 %756  ;;  %v7032_v5 = vld [vmem:[#allocation12_spill] sm:$0xff] }
 0x126   : > { %674 = vst.msk [vmem:[#allocation3 + $0xe8] sm:$0xff] %vm644_vm2, %v607_v6 }
 0x127   : > { %846 = vst.msk [vmem:[#allocation3 + $0x38] sm:$0xff] %vm838_vm3, %v757_v7 }
 0x12a   : > { %953 = vrot.lane.b32.xlu0 %v4615_v11, %s4509_s27  ;;  %955 = vrot.lane.b32.xlu1 %v4624_v12, %s4509_s27 }
 0x12b   : > { %957 = vrot.lane.b32.xlu2 %v4627_v13, %s4509_s27 }
 0x12c   : > { %v611_v8 = vpop.permute.xlu0 %610  ;;  %v743_v9 = vpop.permute.xlu1 %742 }
 0x12d   : > { %676 = vst.msk [vmem:[#allocation3 + $0xf8] sm:$0xff] %vm644_vm2, %v611_v8  ;;  %v763_v10 = vpop.permute.xlu2 %762  ;;  %v7033_v8 = vld [vmem:[#allocation13_spill] sm:$0xff]  ;;  %vm3166_vm2 = vcmask 786048  }
 0x12e   : > { %839 = vst.msk [vmem:[#allocation3] sm:$0xff] %vm838_vm3, %v743_v9 }
 0x12f   : > { %849 = vst.msk [vmem:[#allocation3 + $0x50] sm:$0xff] %vm838_vm3, %v763_v10  ;;  %v7034_v10 = vld [vmem:[#allocation14_spill] sm:$0xff] }
 0x132   : > { %959 = vrot.lane.b32.xlu0 %v4630_v14, %s4509_s27  ;;  %961 = vrot.lane.b32.xlu1 %v4639_v15, %s4509_s27 }
 0x133   : > { %963 = vrot.lane.b32.xlu2 %v4642_v16, %s4509_s27 }
 0x134   : > { %v747_v11 = vpop.permute.xlu0 %746  ;;  %v749_v12 = vpop.permute.xlu1 %748 }
 0x135   : > { %841 = vst.msk [vmem:[#allocation3 + $0x10] sm:$0xff] %vm838_vm3, %v747_v11  ;;  %v769_v13 = vpop.permute.xlu2 %768  ;;  %v7035_v11 = vld [vmem:[#allocation15_spill] sm:$0xff] }
 0x136   : > { %842 = vst.msk [vmem:[#allocation3 + $0x18] sm:$0xff] %vm838_vm3, %v749_v12 }
 0x137   : > { %852 = vst.msk [vmem:[#allocation3 + $0x68] sm:$0xff] %vm838_vm3, %v769_v13 }
 0x13a   : > { %965 = vrot.lane.b32.xlu0 %v4645_v17, %s4509_s27  ;;  %967 = vrot.lane.b32.xlu1 %v4654_v18, %s4509_s27 }
 0x13b   : > { %969 = vrot.lane.b32.xlu2 %v4657_v19, %s4509_s27 }
 0x13c   : > { %v753_v14 = vpop.permute.xlu0 %752  ;;  %v755_v15 = vpop.permute.xlu1 %754 }
 0x13d   : > { %844 = vst.msk [vmem:[#allocation3 + $0x28] sm:$0xff] %vm838_vm3, %v753_v14  ;;  %v775_v16 = vpop.permute.xlu2 %774  ;;  %v7036_v14 = vld [vmem:[#allocation16_spill] sm:$0xff] }
 0x13e   : > { %845 = vst.msk [vmem:[#allocation3 + $0x30] sm:$0xff] %vm838_vm3, %v755_v15 }
 0x13f   : > { %855 = vst.msk [vmem:[#allocation3 + $0x80] sm:$0xff] %vm838_vm3, %v775_v16  ;;  %v7037_v16 = vld [vmem:[#allocation17_spill] sm:$0xff] }
 0x142   : > { %971 = vrot.lane.b32.xlu0 %v4660_v20, %s4509_s27  ;;  %973 = vrot.lane.b32.xlu1 %v4669_v21, %s4509_s27 }
 0x143   : > { %975 = vrot.lane.b32.xlu2 %v4672_v22, %s4509_s27 }
 0x144   : > { %v759_v17 = vpop.permute.xlu0 %758  ;;  %v761_v18 = vpop.permute.xlu1 %760 }
 0x145   : > { %847 = vst.msk [vmem:[#allocation3 + $0x40] sm:$0xff] %vm838_vm3, %v759_v17  ;;  %v781_v19 = vpop.permute.xlu2 %780  ;;  %v7038_v17 = vld [vmem:[#allocation18_spill] sm:$0xff] }
 0x146   : > { %848 = vst.msk [vmem:[#allocation3 + $0x48] sm:$0xff] %vm838_vm3, %v761_v18 }
 0x147   : > { %858 = vst.msk [vmem:[#allocation3 + $0x98] sm:$0xff] %vm838_vm3, %v781_v19 }
 0x14a   : > { %977 = vrot.lane.b32.xlu0 %v4675_v23, %s4509_s27  ;;  %979 = vrot.lane.b32.xlu1 %v4684_v24, %s4509_s27 }
 0x14b   : > { %981 = vrot.lane.b32.xlu2 %v4687_v25, %s4509_s27 }
 0x14c   : > { %v765_v20 = vpop.permute.xlu0 %764  ;;  %v767_v21 = vpop.permute.xlu1 %766 }
 0x14d   : > { %850 = vst.msk [vmem:[#allocation3 + $0x58] sm:$0xff] %vm838_vm3, %v765_v20  ;;  %v787_v22 = vpop.permute.xlu2 %786  ;;  %v7039_v20 = vld [vmem:[#allocation19_spill] sm:$0xff] }
 0x14e   : > { %851 = vst.msk [vmem:[#allocation3 + $0x60] sm:$0xff] %vm838_vm3, %v767_v21 }
 0x14f   : > { %861 = vst.msk [vmem:[#allocation3 + $0xb0] sm:$0xff] %vm838_vm3, %v787_v22  ;;  %v7040_v22 = vld [vmem:[#allocation20_spill] sm:$0xff] }
 0x152   : > { %983 = vrot.lane.b32.xlu0 %v4690_v26, %s4509_s27  ;;  %985 = vrot.lane.b32.xlu1 %v4699_v27, %s4509_s27 }
 0x153   : > { %987 = vrot.lane.b32.xlu2 %v4702_v28, %s4509_s27 }
 0x154   : > { %v771_v23 = vpop.permute.xlu0 %770  ;;  %v773_v24 = vpop.permute.xlu1 %772 }
 0x155   : > { %853 = vst.msk [vmem:[#allocation3 + $0x70] sm:$0xff] %vm838_vm3, %v771_v23  ;;  %v793_v25 = vpop.permute.xlu2 %792  ;;  %v7041_v23 = vld [vmem:[#allocation21_spill] sm:$0xff] }
 0x156   : > { %854 = vst.msk [vmem:[#allocation3 + $0x78] sm:$0xff] %vm838_vm3, %v773_v24 }
 0x157   : > { %864 = vst.msk [vmem:[#allocation3 + $0xc8] sm:$0xff] %vm838_vm3, %v793_v25 }
 0x15a   : > { %989 = vrot.lane.b32.xlu0 %v4705_v29, %s4509_s27  ;;  %991 = vrot.lane.b32.xlu1 %v4714_v30, %s4509_s27 }
 0x15b   : > { %993 = vrot.lane.b32.xlu2 %v4717_v31, %s4509_s27 }
 0x15c   : > { %v777_v26 = vpop.permute.xlu0 %776  ;;  %v779_v27 = vpop.permute.xlu1 %778 }
 0x15d   : > { %856 = vst.msk [vmem:[#allocation3 + $0x88] sm:$0xff] %vm838_vm3, %v777_v26  ;;  %v799_v28 = vpop.permute.xlu2 %798  ;;  %v7042_v26 = vld [vmem:[#allocation22_spill] sm:$0xff] }
 0x15e   : > { %857 = vst.msk [vmem:[#allocation3 + $0x90] sm:$0xff] %vm838_vm3, %v779_v27 }
 0x15f   : > { %867 = vst.msk [vmem:[#allocation3 + $0xe0] sm:$0xff] %vm838_vm3, %v799_v28  ;;  %v7043_v28 = vld [vmem:[#allocation23_spill] sm:$0xff] }
 0x162   : > { %995 = vrot.lane.b32.xlu0 %v5248_v51, %s4509_s27  ;;  %997 = vrot.lane.b32.xlu1 %v5251_v57, %s4509_s27  ;;  %s4522_s27 = smov 112  }
 0x163   : > { %1128 = vrot.lane.b32.xlu2 %v4729_v35, %s4510_s28 }
 0x164   : > { %v783_v29 = vpop.permute.xlu0 %782  ;;  %v785_v30 = vpop.permute.xlu1 %784 }
 0x165   : > { %859 = vst.msk [vmem:[#allocation3 + $0xa0] sm:$0xff] %vm838_vm3, %v783_v29  ;;  %v805_v31 = vpop.permute.xlu2 %804  ;;  %v7044_v29 = vld [vmem:[#allocation24_spill] sm:$0xff] }
 0x166   : > { %860 = vst.msk [vmem:[#allocation3 + $0xa8] sm:$0xff] %vm838_vm3, %v785_v30 }
 0x167   : > { %870 = vst.msk [vmem:[#allocation3 + $0xf8] sm:$0xff] %vm838_vm3, %v805_v31 }
 0x16a   : > { %1130 = vrot.lane.b32.xlu0 %v7025_v60, %s4510_s28  ;;  %1132 = vrot.lane.b32.xlu1 %v7026_v37, %s4510_s28  ;;  %v7045_v60 = vld [vmem:[#allocation25_spill] sm:$0xff] }
 0x16b   : > { %1134 = vrot.lane.b32.xlu2 %v7027_v36, %s4510_s28 }
 0x16c   : > { %v789_v32 = vpop.permute.xlu0 %788  ;;  %v791_v62 = vpop.permute.xlu1 %790 }
 0x16d   : > { %862 = vst.msk [vmem:[#allocation3 + $0xb8] sm:$0xff] %vm838_vm3, %v789_v32  ;;  %v940_v35 = vpop.permute.xlu2 %939  ;;  %v7046_v32 = vld [vmem:[#allocation26_spill] sm:$0xff] }
 0x16e   : > { %863 = vst.msk [vmem:[#allocation3 + $0xc0] sm:$0xff] %vm838_vm3, %v791_v62  ;;  %v7047_v62 = vld [vmem:[#allocation27_spill] sm:$0xff] }
 0x16f   : > { %1034 = vst.msk [vmem:[#allocation3 + $0x10] sm:$0xff] %vm1031_vm4, %v940_v35 }
 0x172   : > { %1136 = vrot.lane.b32.xlu0 %v7028_v50, %s4510_s28  ;;  %1138 = vrot.lane.b32.xlu1 %v7029_v38, %s4510_s28  ;;  %v7048_v50 = vld [vmem:[#allocation28_spill] sm:$0xff] }
 0x173   : > { %1140 = vrot.lane.b32.xlu2 %v7030_v1, %s4510_s28 }
 0x174   : > { %v795_v41 = vpop.permute.xlu0 %794  ;;  %v797_v63 = vpop.permute.xlu1 %796 }
 0x175   : > { %865 = vst.msk [vmem:[#allocation3 + $0xd0] sm:$0xff] %vm838_vm3, %v795_v41  ;;  %v946_v4 = vpop.permute.xlu2 %945  ;;  %v7049_v41 = vld [vmem:[#allocation29_spill] sm:$0xff] }
 0x176   : > { %866 = vst.msk [vmem:[#allocation3 + $0xd8] sm:$0xff] %vm838_vm3, %v797_v63  ;;  %v7050_v63 = vld [vmem:[#allocation30_spill] sm:$0xff] }
 0x177   : > { %1037 = vst.msk [vmem:[#allocation3 + $0x28] sm:$0xff] %vm1031_vm4, %v946_v4 }
 0x17a   : > { %1142 = vrot.lane.b32.xlu0 %v7031_v2, %s4510_s28  ;;  %1144 = vrot.lane.b32.xlu1 %v7032_v5, %s4510_s28  ;;  %v7051_v2 = vld [vmem:[#allocation31_spill] sm:$0xff] }
 0x17b   : > { %1146 = vrot.lane.b32.xlu2 %v7033_v8, %s4510_s28  ;;  %v7053_v8 = vld [vmem:[#allocation33_spill] sm:$0xff] }
 0x17c   : > { %v801_v6 = vpop.permute.xlu0 %800  ;;  %v803_v7 = vpop.permute.xlu1 %802 }
 0x17d   : > { %868 = vst.msk [vmem:[#allocation3 + $0xe8] sm:$0xff] %vm838_vm3, %v801_v6  ;;  %v952_v9 = vpop.permute.xlu2 %951  ;;  %v5345_v6 = vld [vmem:[%s4567_s23 + $0x182] sm:$0xff] }
 0x17e   : > { %869 = vst.msk [vmem:[#allocation3 + $0xf0] sm:$0xff] %vm838_vm3, %v803_v7  ;;  %v7052_v7 = vld [vmem:[#allocation32_spill] sm:$0xff]  ;;  %vm3360_vm3 = vcmask 917248  }
 0x17f   : > { %1040 = vst.msk [vmem:[#allocation3 + $0x40] sm:$0xff] %vm1031_vm4, %v952_v9 }
 0x182   : > { %1148 = vrot.lane.b32.xlu0 %v7034_v10, %s4510_s28  ;;  %1150 = vrot.lane.b32.xlu1 %v7035_v11, %s4510_s28 }
 0x183   : > { %1152 = vrot.lane.b32.xlu2 %v7036_v14, %s4510_s28  ;;  %v4272_v14 = vld [vmem:[%s4567_s23 + $0x38] sm:$0xff] }
 0x184   : > { %v936_v12 = vpop.permute.xlu0 %935  ;;  %v938_v13 = vpop.permute.xlu1 %937 }
 0x185   : > { %1032 = vst.msk [vmem:[#allocation3] sm:$0xff] %vm1031_vm4, %v936_v12  ;;  %v958_v15 = vpop.permute.xlu2 %957  ;;  %v5356_v12 = vld [vmem:[%s4567_s23 + $0x18a] sm:$0xff] }
 0x186   : > { %1033 = vst.msk [vmem:[#allocation3 + $0x8] sm:$0xff] %vm1031_vm4, %v938_v13  ;;  %v4271_v13 = vld [vmem:[%s4567_s23 + $0x30] sm:$0xff] }
 0x187   : > { %1043 = vst.msk [vmem:[#allocation3 + $0x58] sm:$0xff] %vm1031_vm4, %v958_v15 }
 0x18a   : > { %1154 = vrot.lane.b32.xlu0 %v7037_v16, %s4510_s28  ;;  %1156 = vrot.lane.b32.xlu1 %v7038_v17, %s4510_s28 }
 0x18b   : > { %1158 = vrot.lane.b32.xlu2 %v7039_v20, %s4510_s28 }
 0x18c   : > { %v942_v18 = vpop.permute.xlu0 %941  ;;  %v944_v19 = vpop.permute.xlu1 %943 }
 0x18d   : > { %1035 = vst.msk [vmem:[#allocation3 + $0x18] sm:$0xff] %vm1031_vm4, %v942_v18  ;;  %v964_v21 = vpop.permute.xlu2 %963  ;;  %v4275_v18 = vld [vmem:[%s4567_s23 + $0x60] sm:$0xff] }
 0x18e   : > { %1036 = vst.msk [vmem:[#allocation3 + $0x20] sm:$0xff] %vm1031_vm4, %v944_v19 }
 0x18f   : > { %1046 = vst.msk [vmem:[#allocation3 + $0x70] sm:$0xff] %vm1031_vm4, %v964_v21 }
 0x192   : > { %1160 = vrot.lane.b32.xlu0 %v7040_v22, %s4510_s28  ;;  %1162 = vrot.lane.b32.xlu1 %v7041_v23, %s4510_s28  ;;  %v4278_v22 = vld [vmem:[%s4567_s23 + $0x80] sm:$0xff] }
 0x193   : > { %1164 = vrot.lane.b32.xlu2 %v7042_v26, %s4510_s28  ;;  %v4284_v26 = vld [vmem:[%s4567_s23 + $0xc8] sm:$0xff] }
 0x194   : > { %v948_v24 = vpop.permute.xlu0 %947  ;;  %v950_v25 = vpop.permute.xlu1 %949 }
 0x195   : > { %1038 = vst.msk [vmem:[#allocation3 + $0x30] sm:$0xff] %vm1031_vm4, %v948_v24  ;;  %v970_v27 = vpop.permute.xlu2 %969  ;;  %v4281_v24 = vld [vmem:[%s4567_s23 + $0xa8] sm:$0xff] }
 0x196   : > { %1039 = vst.msk [vmem:[#allocation3 + $0x38] sm:$0xff] %vm1031_vm4, %v950_v25 }
 0x197   : > { %1049 = vst.msk [vmem:[#allocation3 + $0x88] sm:$0xff] %vm1031_vm4, %v970_v27 }
 0x19a   : > { %1166 = vrot.lane.b32.xlu0 %v7043_v28, %s4510_s28  ;;  %1168 = vrot.lane.b32.xlu1 %v7044_v29, %s4510_s28  ;;  %v4287_v28 = vld [vmem:[%s4567_s23 + $0xf0] sm:$0xff] }
 0x19b   : > { %1170 = vrot.lane.b32.xlu2 %v7045_v60, %s4510_s28 }
 0x19c   : > { %v954_v30 = vpop.permute.xlu0 %953  ;;  %v956_v31 = vpop.permute.xlu1 %955 }
 0x19d   : > { %1041 = vst.msk [vmem:[#allocation3 + $0x48] sm:$0xff] %vm1031_vm4, %v954_v30  ;;  %v976_v37 = vpop.permute.xlu2 %975  ;;  %v4290_v30 = vld [vmem:[%s4567_s23 + $0x110] sm:$0xff] }
 0x19e   : > { %1042 = vst.msk [vmem:[#allocation3 + $0x50] sm:$0xff] %vm1031_vm4, %v956_v31 }
 0x19f   : > { %1052 = vst.msk [vmem:[#allocation3 + $0xa0] sm:$0xff] %vm1031_vm4, %v976_v37  ;;  %v4301_v37 = vld [vmem:[%s4567_s23 + $0x198] sm:$0xff] }
 0x1a2   : > { %1172 = vrot.lane.b32.xlu0 %v7046_v32, %s4510_s28  ;;  %1174 = vrot.lane.b32.xlu1 %v7047_v62, %s4510_s28  ;;  %v4303_v62 = vld [vmem:[%s4567_s23 + $0x31] sm:$0xff] }
 0x1a3   : > { %1176 = vrot.lane.b32.xlu2 %v7048_v50, %s4510_s28 }
 0x1a4   : > { %v960_v36 = vpop.permute.xlu0 %959  ;;  %v962_v35 = vpop.permute.xlu1 %961 }
 0x1a5   : > { %1044 = vst.msk [vmem:[#allocation3 + $0x60] sm:$0xff] %vm1031_vm4, %v960_v36  ;;  %v982_v38 = vpop.permute.xlu2 %981  ;;  %v4304_v36 = vld [vmem:[%s4567_s23 + $0x39] sm:$0xff] }
 0x1a6   : > { %1045 = vst.msk [vmem:[#allocation3 + $0x68] sm:$0xff] %vm1031_vm4, %v962_v35  ;;  %v4305_v35 = vld [vmem:[%s4567_s23 + $0x49] sm:$0xff] }
 0x1a7   : > { %1055 = vst.msk [vmem:[#allocation3 + $0xb8] sm:$0xff] %vm1031_vm4, %v982_v38 }
 0x1aa   : > { %1178 = vrot.lane.b32.xlu0 %v7049_v41, %s4510_s28  ;;  %1180 = vrot.lane.b32.xlu1 %v7050_v63, %s4510_s28  ;;  %v4306_v41 = vld [vmem:[%s4567_s23 + $0x51] sm:$0xff]  ;;  %v4307_v63 = vld [vmem:[%s4567_s23 + $0x61] sm:$0xff] }
 0x1ab   : > { %1182 = vrot.lane.b32.xlu2 %v7051_v2, %s4510_s28 }
 0x1ac   : > { %v966_v1 = vpop.permute.xlu0 %965  ;;  %v968_v4 = vpop.permute.xlu1 %967 }
 0x1ad   : > { %1047 = vst.msk [vmem:[#allocation3 + $0x78] sm:$0xff] %vm1031_vm4, %v966_v1  ;;  %v988_v5 = vpop.permute.xlu2 %987  ;;  %v4308_v1 = vld [vmem:[%s4567_s23 + $0x69] sm:$0xff] }
 0x1ae   : > { %1048 = vst.msk [vmem:[#allocation3 + $0x80] sm:$0xff] %vm1031_vm4, %v968_v4 }
 0x1af   : > { %1058 = vst.msk [vmem:[#allocation3 + $0xd0] sm:$0xff] %vm1031_vm4, %v988_v5 }
 0x1b2   : > { %1184 = vrot.lane.b32.xlu0 %v7052_v7, %s4510_s28  ;;  %1186 = vrot.lane.b32.xlu1 %v7053_v8, %s4510_s28  ;;  %v4309_v7 = vld [vmem:[%s4567_s23 + $0x79] sm:$0xff]  ;;  %v4310_v8 = vld [vmem:[%s4567_s23 + $0x81] sm:$0xff] }
 0x1b3   : > { %1188 = vrot.lane.b32.xlu2 %v5345_v6, %s4510_s28 }
 0x1b4   : > { %v972_v9 = vpop.permute.xlu0 %971  ;;  %v974_v10 = vpop.permute.xlu1 %973 }
 0x1b5   : > { %1050 = vst.msk [vmem:[#allocation3 + $0x90] sm:$0xff] %vm1031_vm4, %v972_v9  ;;  %v994_v11 = vpop.permute.xlu2 %993  ;;  %v4311_v9 = vld [vmem:[%s4567_s23 + $0x91] sm:$0xff] }
 0x1b6   : > { %1051 = vst.msk [vmem:[#allocation3 + $0x98] sm:$0xff] %vm1031_vm4, %v974_v10 }
 0x1b7   : > { %1061 = vst.msk [vmem:[#allocation3 + $0xe8] sm:$0xff] %vm1031_vm4, %v994_v11 }
 0x1ba   : > { %1190 = vrot.lane.b32.xlu0 %v5356_v12, %s4510_s28  ;;  %1322 = vrot.lane.b32.xlu1 %v4271_v13, %s4511_s29 }
 0x1bb   : > { %1324 = vrot.lane.b32.xlu2 %v4272_v14, %s4511_s29  ;;  %v4312_v14 = vld [vmem:[%s4567_s23 + $0x99] sm:$0xff] }
 0x1bc   : > { %v978_v15 = vpop.permute.xlu0 %977  ;;  %v980_v16 = vpop.permute.xlu1 %979 }
 0x1bd   : > { %1053 = vst.msk [vmem:[#allocation3 + $0xa8] sm:$0xff] %vm1031_vm4, %v978_v15  ;;  %v1129_v17 = vpop.permute.xlu2 %1128  ;;  %v4313_v15 = vld [vmem:[%s4567_s23 + $0xa9] sm:$0xff] }
 0x1be   : > { %1054 = vst.msk [vmem:[#allocation3 + $0xb0] sm:$0xff] %vm1031_vm4, %v980_v16  ;;  %v4314_v16 = vld [vmem:[%s4567_s23 + $0xb1] sm:$0xff] }
 0x1bf   : > { %1225 = vst.msk [vmem:[#allocation3] sm:$0xff] %vm1224_vm5, %v1129_v17 }
 0x1c2   : > { %1326 = vrot.lane.b32.xlu0 %v4769_v45, %s4511_s29  ;;  %1328 = vrot.lane.b32.xlu1 %v4826_v58, %s4511_s29 }
 0x1c3   : > { %1330 = vrot.lane.b32.xlu2 %v4275_v18, %s4511_s29 }
 0x1c4   : > { %v984_v19 = vpop.permute.xlu0 %983  ;;  %v986_v20 = vpop.permute.xlu1 %985 }
 0x1c5   : > { %1056 = vst.msk [vmem:[#allocation3 + $0xc0] sm:$0xff] %vm1031_vm4, %v984_v19  ;;  %v1135_v21 = vpop.permute.xlu2 %1134 }
 0x1c6   : > { %1057 = vst.msk [vmem:[#allocation3 + $0xc8] sm:$0xff] %vm1031_vm4, %v986_v20  ;;  %v4315_v20 = vld [vmem:[%s4567_s23 + $0xc1] sm:$0xff] }
 0x1c7   : > { %1228 = vst.msk [vmem:[#allocation3 + $0x18] sm:$0xff] %vm1224_vm5, %v1135_v21  ;;  %v4316_v21 = vld [vmem:[%s4567_s23 + $0xc9] sm:$0xff] }
 0x1ca   : > { %1332 = vrot.lane.b32.xlu0 %v4800_v52, %s4511_s29  ;;  %1334 = vrot.lane.b32.xlu1 %v4859_v33, %s4511_s29 }
 0x1cb   : > { %1336 = vrot.lane.b32.xlu2 %v4278_v22, %s4511_s29  ;;  %v4317_v22 = vld [vmem:[%s4567_s23 + $0xd9] sm:$0xff] }
 0x1cc   : > { %v990_v45 = vpop.permute.xlu0 %989  ;;  %v992_v58 = vpop.permute.xlu1 %991 }
 0x1cd   : > { %1059 = vst.msk [vmem:[#allocation3 + $0xd8] sm:$0xff] %vm1031_vm4, %v990_v45  ;;  %v1141_v23 = vpop.permute.xlu2 %1140 }
 0x1ce   : > { %1060 = vst.msk [vmem:[#allocation3 + $0xe0] sm:$0xff] %vm1031_vm4, %v992_v58 }
 0x1cf   : > { %1231 = vst.msk [vmem:[#allocation3 + $0x30] sm:$0xff] %vm1224_vm5, %v1141_v23 }
 0x1d2   : > { %1338 = vrot.lane.b32.xlu0 %v4836_v61, %s4511_s29  ;;  %1340 = vrot.lane.b32.xlu1 %v4892_v34, %s4511_s29 }
 0x1d3   : > { %1342 = vrot.lane.b32.xlu2 %v4281_v24, %s4511_s29  ;;  %v4318_v24 = vld [vmem:[%s4567_s23 + $0xe1] sm:$0xff] }
 0x1d4   : > { %v996_v52 = vpop.permute.xlu0 %995  ;;  %v998_v33 = vpop.permute.xlu1 %997 }
 0x1d5   : > { %1062 = vst.msk [vmem:[#allocation3 + $0xf0] sm:$0xff] %vm1031_vm4, %v996_v52  ;;  %v1147_v25 = vpop.permute.xlu2 %1146  ;;  %v4319_v52 = vld [vmem:[%s4567_s23 + $0xf1] sm:$0xff] }
 0x1d6   : > { %1063 = vst.msk [vmem:[#allocation3 + $0xf8] sm:$0xff] %vm1031_vm4, %v998_v33  ;;  %v4320_v33 = vld [vmem:[%s4567_s23 + $0xf9] sm:$0xff]  ;;  %vm3553_vm4 = vcmask 1048448  }
 0x1d7   : > { %1234 = vst.msk [vmem:[#allocation3 + $0x48] sm:$0xff] %vm1224_vm5, %v1147_v25 }
 0x1da   : > { %1344 = vrot.lane.b32.xlu0 %v4869_v39, %s4511_s29  ;;  %1346 = vrot.lane.b32.xlu1 %v4925_v46, %s4511_s29 }
 0x1db   : > { %1348 = vrot.lane.b32.xlu2 %v4284_v26, %s4511_s29 }
 0x1dc   : > { %v1131_v61 = vpop.permute.xlu0 %1130  ;;  %v1133_v34 = vpop.permute.xlu1 %1132 }
 0x1dd   : > { %1226 = vst.msk [vmem:[#allocation3 + $0x8] sm:$0xff] %vm1224_vm5, %v1131_v61  ;;  %v1153_v27 = vpop.permute.xlu2 %1152 }
 0x1de   : > { %1227 = vst.msk [vmem:[#allocation3 + $0x10] sm:$0xff] %vm1224_vm5, %v1133_v34  ;;  %v4321_v34 = vld [vmem:[%s4567_s23 + $0x109] sm:$0xff] }
 0x1df   : > { %1237 = vst.msk [vmem:[#allocation3 + $0x60] sm:$0xff] %vm1224_vm5, %v1153_v27  ;;  %v4322_v27 = vld [vmem:[%s4567_s23 + $0x111] sm:$0xff] }
 0x1e2   : > { %1350 = vrot.lane.b32.xlu0 %v4902_v59, %s4511_s29  ;;  %1352 = vrot.lane.b32.xlu1 %v4958_v53, %s4511_s29 }
 0x1e3   : > { %1354 = vrot.lane.b32.xlu2 %v4287_v28, %s4511_s29  ;;  %v4323_v28 = vld [vmem:[%s4567_s23 + $0x121] sm:$0xff] }
 0x1e4   : > { %v1137_v39 = vpop.permute.xlu0 %1136  ;;  %v1139_v46 = vpop.permute.xlu1 %1138 }
 0x1e5   : > { %1229 = vst.msk [vmem:[#allocation3 + $0x20] sm:$0xff] %vm1224_vm5, %v1137_v39  ;;  %v1159_v29 = vpop.permute.xlu2 %1158 }
 0x1e6   : > { %1230 = vst.msk [vmem:[#allocation3 + $0x28] sm:$0xff] %vm1224_vm5, %v1139_v46 }
 0x1e7   : > { %1240 = vst.msk [vmem:[#allocation3 + $0x78] sm:$0xff] %vm1224_vm5, %v1159_v29 }
 0x1ea   : > { %1356 = vrot.lane.b32.xlu0 %v4935_v0, %s4511_s29  ;;  %1358 = vrot.lane.b32.xlu1 %v4991_v3, %s4511_s29 }
 0x1eb   : > { %1360 = vrot.lane.b32.xlu2 %v4290_v30, %s4511_s29  ;;  %v4324_v30 = vld [vmem:[%s4567_s23 + $0x129] sm:$0xff] }
 0x1ec   : > { %v1143_v59 = vpop.permute.xlu0 %1142  ;;  %v1145_v53 = vpop.permute.xlu1 %1144 }
 0x1ed   : > { %1232 = vst.msk [vmem:[#allocation3 + $0x38] sm:$0xff] %vm1224_vm5, %v1143_v59  ;;  %v1165_v31 = vpop.permute.xlu2 %1164  ;;  %v4325_v59 = vld [vmem:[%s4567_s23 + $0x139] sm:$0xff] }
 0x1ee   : > { %1233 = vst.msk [vmem:[#allocation3 + $0x40] sm:$0xff] %vm1224_vm5, %v1145_v53  ;;  %v4326_v53 = vld [vmem:[%s4567_s23 + $0x141] sm:$0xff] }
 0x1ef   : > { %1243 = vst.msk [vmem:[#allocation3 + $0x90] sm:$0xff] %vm1224_vm5, %v1165_v31 }
 0x1f2   : > { %1362 = vrot.lane.b32.xlu0 %v4968_v55, %s4511_s29  ;;  %1364 = vrot.lane.b32.xlu1 %v5024_v56, %s4511_s29 }
 0x1f3   : > { %1366 = vrot.lane.b32.xlu2 %v4988_v54, %s4511_s29 }
 0x1f4   : > { %v1149_v0 = vpop.permute.xlu0 %1148  ;;  %v1151_v60 = vpop.permute.xlu1 %1150 }
 0x1f5   : > { %1235 = vst.msk [vmem:[#allocation3 + $0x50] sm:$0xff] %vm1224_vm5, %v1149_v0  ;;  %v1171_v3 = vpop.permute.xlu2 %1170 }
 0x1f6   : > { %1236 = vst.msk [vmem:[#allocation3 + $0x58] sm:$0xff] %vm1224_vm5, %v1151_v60 }
 0x1f7   : > { %1246 = vst.msk [vmem:[#allocation3 + $0xa8] sm:$0xff] %vm1224_vm5, %v1171_v3  ;;  %v4327_v3 = vld [vmem:[%s4567_s23 + $0x151] sm:$0xff] }
 0x1fa   : > { %1368 = vrot.lane.b32.xlu0 %v5001_v48, %s4511_s29  ;;  %1370 = vrot.lane.b32.xlu1 %v5048_v49, %s4511_s29 }
 0x1fb   : > { %1372 = vrot.lane.b32.xlu2 %v5021_v47, %s4511_s29 }
 0x1fc   : > { %v1155_v55 = vpop.permute.xlu0 %1154  ;;  %v1157_v56 = vpop.permute.xlu1 %1156 }
 0x1fd   : > { %1238 = vst.msk [vmem:[#allocation3 + $0x68] sm:$0xff] %vm1224_vm5, %v1155_v55  ;;  %v1177_v54 = vpop.permute.xlu2 %1176  ;;  %v4328_v55 = vld [vmem:[%s4567_s23 + $0x159] sm:$0xff] }
 0x1fe   : > { %1239 = vst.msk [vmem:[#allocation3 + $0x70] sm:$0xff] %vm1224_vm5, %v1157_v56  ;;  %v4329_v56 = vld [vmem:[%s4567_s23 + $0x169] sm:$0xff] }
 0x1ff   : > { %1249 = vst.msk [vmem:[#allocation3 + $0xc0] sm:$0xff] %vm1224_vm5, %v1177_v54 }
 0x202   : > { %1374 = vrot.lane.b32.xlu0 %v5034_v42, %s4511_s29  ;;  %1376 = vrot.lane.b32.xlu1 %v5062_v44, %s4511_s29  ;;  %v4302_v42 = vld [vmem:[%s4567_s23 + $0x1a0] sm:$0xff] }
 0x203   : > { %1378 = vrot.lane.b32.xlu2 %v5143_v43, %s4511_s29 }
 0x204   : > { %v1161_v48 = vpop.permute.xlu0 %1160  ;;  %v1163_v49 = vpop.permute.xlu1 %1162 }
 0x205   : > { %1241 = vst.msk [vmem:[#allocation3 + $0x80] sm:$0xff] %vm1224_vm5, %v1161_v48  ;;  %v1183_v47 = vpop.permute.xlu2 %1182 }
 0x206   : > { %1242 = vst.msk [vmem:[#allocation3 + $0x88] sm:$0xff] %vm1224_vm5, %v1163_v49 }
 0x207   : > { %1252 = vst.msk [vmem:[#allocation3 + $0xd8] sm:$0xff] %vm1224_vm5, %v1183_v47  ;;  %v4330_v47 = vld [vmem:[%s4567_s23 + $0x171] sm:$0xff] }
 0x20a   : > { %1380 = vrot.lane.b32.xlu0 %v5147_v40, %s4511_s29  ;;  %1382 = vrot.lane.b32.xlu1 %v4301_v37, %s4511_s29 }
 0x20b   : > { %1384 = vrot.lane.b32.xlu2 %v4302_v42, %s4511_s29  ;;  %s4445_s29 = sshll.u32 %s7071_s19, 8 }
 0x20c   : > { %v1167_v44 = vpop.permute.xlu0 %1166  ;;  %v1169_v32 = vpop.permute.xlu1 %1168  ;;  %s6736_s7 = scalar_lea.vmem %s6954_s5, %s4445_s29 }
 0x20d   : > { %1244 = vst.msk [vmem:[#allocation3 + $0x98] sm:$0xff] %vm1224_vm5, %v1167_v44  ;;  %v1189_v43 = vpop.permute.xlu2 %1188 }
 0x20e   : > { %1245 = vst.msk [vmem:[#allocation3 + $0xa0] sm:$0xff] %vm1224_vm5, %v1169_v32  ;;  %v4333_v32 = vld [vmem:[%s4567_s23 + $0x199] sm:$0xff] }
 0x20f   : > { %1255 = vst.msk [vmem:[#allocation3 + $0xf0] sm:$0xff] %vm1224_vm5, %v1189_v43  ;;  %v4334_v43 = vld [vmem:[%s4567_s23 + $0x1a1] sm:$0xff] }
 0x212   : > { %1515 = vrot.lane.b32.xlu0 %v4303_v62, %s4512_s30  ;;  %1517 = vrot.lane.b32.xlu1 %v4304_v36, %s4512_s30  ;;  %v4335_v62 = vld [vmem:[%s4567_s23 + $0x32] sm:$0xff] }
 0x213   : > { %1519 = vrot.lane.b32.xlu2 %v4305_v35, %s4512_s30  ;;  %v4336_v35 = vld [vmem:[%s4567_s23 + $0x3a] sm:$0xff] }
 0x214   : > { %v1173_v40 = vpop.permute.xlu0 %1172  ;;  %v1175_v50 = vpop.permute.xlu1 %1174 }
 0x215   : > { %1247 = vst.msk [vmem:[#allocation3 + $0xb0] sm:$0xff] %vm1224_vm5, %v1173_v40  ;;  %v1325_v38 = vpop.permute.xlu2 %1324  ;;  %v4337_v40 = vld [vmem:[%s4567_s23 + $0x4a] sm:$0xff] }
 0x216   : > { %1248 = vst.msk [vmem:[#allocation3 + $0xb8] sm:$0xff] %vm1224_vm5, %v1175_v50 }
 0x217   : > { %1420 = vst.msk [vmem:[#allocation3 + $0x8] sm:$0xff] %vm1418_vm6, %v1325_v38 }
 0x21a   : > { %1521 = vrot.lane.b32.xlu0 %v4306_v41, %s4512_s30  ;;  %1523 = vrot.lane.b32.xlu1 %v4307_v63, %s4512_s30  ;;  %v4338_v41 = vld [vmem:[%s4567_s23 + $0x52] sm:$0xff] }
 0x21b   : > { %1525 = vrot.lane.b32.xlu2 %v4308_v1, %s4512_s30  ;;  %v4340_v1 = vld [vmem:[%s4567_s23 + $0x6a] sm:$0xff] }
 0x21c   : > { %v1179_v4 = vpop.permute.xlu0 %1178  ;;  %v1181_v2 = vpop.permute.xlu1 %1180 }
 0x21d   : > { %1250 = vst.msk [vmem:[#allocation3 + $0xc8] sm:$0xff] %vm1224_vm5, %v1179_v4  ;;  %v1331_v5 = vpop.permute.xlu2 %1330  ;;  %v4339_v4 = vld [vmem:[%s4567_s23 + $0x62] sm:$0xff] }
 0x21e   : > { %1251 = vst.msk [vmem:[#allocation3 + $0xd0] sm:$0xff] %vm1224_vm5, %v1181_v2 }
 0x21f   : > { %1423 = vst.msk [vmem:[#allocation3 + $0x20] sm:$0xff] %vm1418_vm6, %v1331_v5 }
 0x222   : > { %1527 = vrot.lane.b32.xlu0 %v4309_v7, %s4512_s30  ;;  %1529 = vrot.lane.b32.xlu1 %v4310_v8, %s4512_s30  ;;  %v4342_v8 = vld [vmem:[%s4567_s23 + $0x82] sm:$0xff] }
 0x223   : > { %1531 = vrot.lane.b32.xlu2 %v4311_v9, %s4512_s30 }
 0x224   : > { %v1185_v10 = vpop.permute.xlu0 %1184  ;;  %v1187_v11 = vpop.permute.xlu1 %1186 }
 0x225   : > { %1253 = vst.msk [vmem:[#allocation3 + $0xe0] sm:$0xff] %vm1224_vm5, %v1185_v10  ;;  %v1337_v13 = vpop.permute.xlu2 %1336 }
 0x226   : > { %1254 = vst.msk [vmem:[#allocation3 + $0xe8] sm:$0xff] %vm1224_vm5, %v1187_v11 }
 0x227   : > { %1426 = vst.msk [vmem:[#allocation3 + $0x38] sm:$0xff] %vm1418_vm6, %v1337_v13 }
 0x22a   : > { %1533 = vrot.lane.b32.xlu0 %v4312_v14, %s4512_s30  ;;  %1535 = vrot.lane.b32.xlu1 %v4313_v15, %s4512_s30  ;;  %v4343_v15 = vld [vmem:[%s4567_s23 + $0x92] sm:$0xff] }
 0x22b   : > { %1537 = vrot.lane.b32.xlu2 %v4314_v16, %s4512_s30 }
 0x22c   : > { %v1191_v17 = vpop.permute.xlu0 %1190  ;;  %v1323_v18 = vpop.permute.xlu1 %1322 }
 0x22d   : > { %1256 = vst.msk [vmem:[#allocation3 + $0xf8] sm:$0xff] %vm1224_vm5, %v1191_v17  ;;  %v1343_v19 = vpop.permute.xlu2 %1342 }
 0x22e   : > { %1419 = vst.msk [vmem:[#allocation3] sm:$0xff] %vm1418_vm6, %v1323_v18 }
 0x22f   : > { %1429 = vst.msk [vmem:[#allocation3 + $0x50] sm:$0xff] %vm1418_vm6, %v1343_v19  ;;  %v4341_v19 = vld [vmem:[%s4567_s23 + $0x7a] sm:$0xff] }
 0x232   : > { %1539 = vrot.lane.b32.xlu0 %v4315_v20, %s4512_s30  ;;  %1541 = vrot.lane.b32.xlu1 %v4316_v21, %s4512_s30 }
 0x233   : > { %1543 = vrot.lane.b32.xlu2 %v4317_v22, %s4512_s30 }
 0x234   : > { %v1327_v45 = vpop.permute.xlu0 %1326  ;;  %v1329_v58 = vpop.permute.xlu1 %1328 }
 0x235   : > { %1421 = vst.msk [vmem:[#allocation3 + $0x10] sm:$0xff] %vm1418_vm6, %v1327_v45  ;;  %v1349_v23 = vpop.permute.xlu2 %1348  ;;  %v4346_v45 = vld [vmem:[%s4567_s23 + $0xb2] sm:$0xff] }
 0x236   : > { %1422 = vst.msk [vmem:[#allocation3 + $0x18] sm:$0xff] %vm1418_vm6, %v1329_v58  ;;  %v4345_v58 = vld [vmem:[%s4567_s23 + $0xaa] sm:$0xff] }
 0x237   : > { %1432 = vst.msk [vmem:[#allocation3 + $0x68] sm:$0xff] %vm1418_vm6, %v1349_v23 }
 0x23a   : > { %1545 = vrot.lane.b32.xlu0 %v4318_v24, %s4512_s30  ;;  %1547 = vrot.lane.b32.xlu1 %v4319_v52, %s4512_s30 }
 0x23b   : > { %1549 = vrot.lane.b32.xlu2 %v4320_v33, %s4512_s30  ;;  %v4344_v33 = vld [vmem:[%s4567_s23 + $0x9a] sm:$0xff] }
 0x23c   : > { %v1333_v25 = vpop.permute.xlu0 %1332  ;;  %v1335_v26 = vpop.permute.xlu1 %1334 }
 0x23d   : > { %1424 = vst.msk [vmem:[#allocation3 + $0x28] sm:$0xff] %vm1418_vm6, %v1333_v25  ;;  %v1355_v61 = vpop.permute.xlu2 %1354 }
 0x23e   : > { %1425 = vst.msk [vmem:[#allocation3 + $0x30] sm:$0xff] %vm1418_vm6, %v1335_v26 }
 0x23f   : > { %1435 = vst.msk [vmem:[#allocation3 + $0x80] sm:$0xff] %vm1418_vm6, %v1355_v61 }
 0x242   : > { %1551 = vrot.lane.b32.xlu0 %v4321_v34, %s4512_s30  ;;  %1553 = vrot.lane.b32.xlu1 %v4322_v27, %s4512_s30  ;;  %v4348_v34 = vld [vmem:[%s4567_s23 + $0xca] sm:$0xff] }
 0x243   : > { %1555 = vrot.lane.b32.xlu2 %v4323_v28, %s4512_s30 }
 0x244   : > { %v1339_v39 = vpop.permute.xlu0 %1338  ;;  %v1341_v46 = vpop.permute.xlu1 %1340 }
 0x245   : > { %1427 = vst.msk [vmem:[#allocation3 + $0x40] sm:$0xff] %vm1418_vm6, %v1339_v39  ;;  %v1361_v29 = vpop.permute.xlu2 %1360 }
 0x246   : > { %1428 = vst.msk [vmem:[#allocation3 + $0x48] sm:$0xff] %vm1418_vm6, %v1341_v46 }
 0x247   : > { %1438 = vst.msk [vmem:[#allocation3 + $0x98] sm:$0xff] %vm1418_vm6, %v1361_v29 }
 0x24a   : > { %1557 = vrot.lane.b32.xlu0 %v4324_v30, %s4512_s30  ;;  %1559 = vrot.lane.b32.xlu1 %v4325_v59, %s4512_s30  ;;  %v4349_v59 = vld [vmem:[%s4567_s23 + $0xda] sm:$0xff] }
 0x24b   : > { %1561 = vrot.lane.b32.xlu2 %v4326_v53, %s4512_s30 }
 0x24c   : > { %v1345_v31 = vpop.permute.xlu0 %1344  ;;  %v1347_v0 = vpop.permute.xlu1 %1346 }
 0x24d   : > { %1430 = vst.msk [vmem:[#allocation3 + $0x58] sm:$0xff] %vm1418_vm6, %v1345_v31  ;;  %v1367_v60 = vpop.permute.xlu2 %1366  ;;  %v4373_v31 = vld [vmem:[%s6950_s1 + $0x8] sm:$0xf] }
 0x24e   : > { %1431 = vst.msk [vmem:[#allocation3 + $0x60] sm:$0xff] %vm1418_vm6, %v1347_v0  ;;  %v4447_v0 = vld [vmem:[%s6950_s1 + $0x8] sm:$0x30] }
 0x24f   : > { %1441 = vst.msk [vmem:[#allocation3 + $0xb0] sm:$0xff] %vm1418_vm6, %v1367_v60 }
 0x252   : > { %1563 = vrot.lane.b32.xlu0 %v4327_v3, %s4512_s30  ;;  %1565 = vrot.lane.b32.xlu1 %v4328_v55, %s4512_s30  ;;  %v4374_v55 = vor.u32 %v4447_v0, %v4373_v31 }
 0x253   : > { %1567 = vrot.lane.b32.xlu2 %v4329_v56, %s4512_s30  ;;  %v4514_v56 = vmov 65535  }
 0x254   : > { %v1351_v54 = vpop.permute.xlu0 %1350  ;;  %v1353_v48 = vpop.permute.xlu1 %1352 }
 0x255   : > { %1433 = vst.msk [vmem:[#allocation3 + $0x70] sm:$0xff] %vm1418_vm6, %v1351_v54  ;;  %v1373_v49 = vpop.permute.xlu2 %1372  ;;  %v1955_v54 = vsel %vm1953_vm8, 4294967295, %v4514_v56  ;;  %v4515_v56 = vmov 0.0  }
 0x256   : > { %1434 = vst.msk [vmem:[#allocation3 + $0x78] sm:$0xff] %vm1418_vm6, %v1353_v48  ;;  %v1956_v48 = vsel %vm1954_vm10, %v1955_v54, 0  ;;  %v4366_v54 = vld [vmem:[%s4567_s23 + $0x1a2] sm:$0xff] }
 0x257   : > { %1444 = vst.msk [vmem:[#allocation3 + $0xc8] sm:$0xff] %vm1418_vm6, %v1373_v49  ;;  %v4347_v49 = vld [vmem:[%s4567_s23 + $0xc2] sm:$0xff] }
 0x258   : > { %2086 = vst.msk [vmem:[#allocation2 + $0x18] sm:$0xff] %vm2081_vm12, %v4515_v56 }
 0x259   : > { %2087 = vst.msk [vmem:[#allocation2 + $0x20] sm:$0xff] %vm2081_vm12, %v4515_v56 }
 0x25a   : > { %1569 = vrot.lane.b32.xlu0 %v4330_v47, %s4512_s30  ;;  %1571 = vrot.lane.b32.xlu1 %v5248_v51, %s4512_s30  ;;  %2082 = vst.msk [vmem:[#allocation2] sm:$0xff] %vm2081_vm12, %v4515_v56 }
 0x25b   : > { %1573 = vrot.lane.b32.xlu2 %v5251_v57, %s4512_s30  ;;  %2083 = vst.msk [vmem:[#allocation2 + $0x8] sm:$0xff] %vm2081_vm12, %v4515_v56 }
 0x25c   : > { %v1357_v37 = vpop.permute.xlu0 %1356  ;;  %v1359_v42 = vpop.permute.xlu1 %1358  ;;  %2089 = vst.msk [vmem:[#allocation2 + $0x30] sm:$0xff] %vm2081_vm12, %v4515_v56 }
 0x25d   : > { %1436 = vst.msk [vmem:[#allocation3 + $0x88] sm:$0xff] %vm1418_vm6, %v1357_v37  ;;  %v1379_v44 = vpop.permute.xlu2 %1378  ;;  %v1958_v37 = vand.u32 %v4374_v55, %v1956_v48 }
 0x25e   : > { %1437 = vst.msk [vmem:[#allocation3 + $0x90] sm:$0xff] %vm1418_vm6, %v1359_v42  ;;  %v4446_v42 = vld [vmem:[%s6950_s1] sm:$0xff] }
 0x25f   : > { %1447 = vst.msk [vmem:[#allocation3 + $0xe0] sm:$0xff] %vm1418_vm6, %v1379_v44  ;;  %1966 = vmatpush.bf16.msra.mxu0 %v1958_v37  ;;  %4457 = vmatpush.bf16.msra.mxu3 %v1958_v37 }
 0x260   : > { %2090 = vst.msk [vmem:[#allocation2 + $0x38] sm:$0xff] %vm2081_vm12, %v4515_v56 }
 0x261   : > { %2092 = vst.msk [vmem:[#allocation2 + $0x48] sm:$0xff] %vm2081_vm12, %v4515_v56 }
 0x262   : > { %1575 = vrot.lane.b32.xlu0 %v4333_v32, %s4512_s30  ;;  %1577 = vrot.lane.b32.xlu1 %v4334_v43, %s4512_s30  ;;  %v4352_v43 = vld [vmem:[%s4567_s23 + $0xfa] sm:$0xff]  ;;  %2093 = vst.msk [vmem:[#allocation2 + $0x50] sm:$0xff] %vm2081_vm12, %v4515_v56 }
 0x263   : > { %1708 = vrot.lane.b32.xlu2 %v4335_v62, %s4513_s6  ;;  %1967 = vmatpush.bf16.msra.mxu0 %v4446_v42  ;;  %v4351_v62 = vld [vmem:[%s4567_s23 + $0xf2] sm:$0xff]  ;;  %2095 = vst.msk [vmem:[#allocation2 + $0x60] sm:$0xff] %vm2081_vm12, %v4515_v56  ;;  %v2234_v37 = vld [vmem:[#allocation2 + $0x1] sm:$0xff] }
 0x264   : > { %v1363_v51 = vpop.permute.xlu0 %1362  ;;  %v1365_v36 = vpop.permute.xlu1 %1364  ;;  %4458 = vmatpush.bf16.msra.mxu3 %v4446_v42  ;;  %2096 = vst.msk [vmem:[#allocation2 + $0x68] sm:$0xff] %vm2081_vm12, %v4515_v56 }
 0x265   : > { %1439 = vst.msk [vmem:[#allocation3 + $0xa0] sm:$0xff] %vm1418_vm6, %v1363_v51  ;;  %v1385_v57 = vpop.permute.xlu2 %1384  ;;  %v4350_v51 = vld [vmem:[%s4567_s23 + $0xe2] sm:$0xff] }
 0x266   : > { %1440 = vst.msk [vmem:[#allocation3 + $0xa8] sm:$0xff] %vm1418_vm6, %v1365_v36 }
 0x267   : > { %1450 = vst.msk [vmem:[#allocation3 + $0xf8] sm:$0xff] %vm1418_vm6, %v1385_v57 }
 0x268   : > { %2098 = vst.msk [vmem:[#allocation2 + $0x78] sm:$0xff] %vm2081_vm12, %v4515_v56 }
 0x269   : > { %2099 = vst.msk [vmem:[#allocation2 + $0x80] sm:$0xff] %vm2081_vm12, %v4515_v56 }
 0x26a   : > { %1710 = vrot.lane.b32.xlu0 %v4336_v35, %s4513_s6  ;;  %1712 = vrot.lane.b32.xlu1 %v4337_v40, %s4513_s6  ;;  %2101 = vst.msk [vmem:[#allocation2 + $0x90] sm:$0xff] %vm2081_vm12, %v4515_v56 }
 0x26b   : > { %1714 = vrot.lane.b32.xlu2 %v4338_v41, %s4513_s6  ;;  %v4355_v41 = vld [vmem:[%s4567_s23 + $0x122] sm:$0xff]  ;;  %2102 = vst.msk [vmem:[#allocation2 + $0x98] sm:$0xff] %vm2081_vm12, %v4515_v56 }
 0x26c   : > { %v1369_v50 = vpop.permute.xlu0 %1368  ;;  %v1371_v38 = vpop.permute.xlu1 %1370  ;;  %2104 = vst.msk [vmem:[#allocation2 + $0xa8] sm:$0xff] %vm2081_vm12, %v4515_v56 }
 0x26d   : > { %1442 = vst.msk [vmem:[#allocation3 + $0xb8] sm:$0xff] %vm1418_vm6, %v1369_v50  ;;  %v1520_v63 = vpop.permute.xlu2 %1519 }
 0x26e   : > { %1443 = vst.msk [vmem:[#allocation3 + $0xc0] sm:$0xff] %vm1418_vm6, %v1371_v38  ;;  %v4354_v38 = vld [vmem:[%s4567_s23 + $0x112] sm:$0xff] }
 0x26f   : > { %1614 = vst.msk [vmem:[#allocation3 + $0x10] sm:$0xff] %vm1611_vm7, %v1520_v63 }
 0x270   : > { %2105 = vst.msk [vmem:[#allocation2 + $0xb0] sm:$0xff] %vm2081_vm12, %v4515_v56 }
 0x271   : > { %2107 = vst.msk [vmem:[#allocation2 + $0xc0] sm:$0xff] %vm2081_vm12, %v4515_v56 }
 0x272   : > { %1718 = vrot.lane.b32.xlu1 %v4340_v1, %s4513_s6  ;;  %1716 = vrot.lane.b32.xlu0 %v4339_v4, %s4513_s6  ;;  %2108 = vst.msk [vmem:[#allocation2 + $0xc8] sm:$0xff] %vm2081_vm12, %v4515_v56 }
 0x273   : > { %1720 = vrot.lane.b32.xlu2 %v4341_v19, %s4513_s6  ;;  %v4356_v19 = vld [vmem:[%s4567_s23 + $0x12a] sm:$0xff]  ;;  %2110 = vst.msk [vmem:[#allocation2 + $0xd8] sm:$0xff] %vm2081_vm12, %v4515_v56 }
 0x274   : > { %v1375_v2 = vpop.permute.xlu0 %1374  ;;  %v1377_v5 = vpop.permute.xlu1 %1376  ;;  %2111 = vst.msk [vmem:[#allocation2 + $0xe0] sm:$0xff] %vm2081_vm12, %v4515_v56 }
 0x275   : > { %1445 = vst.msk [vmem:[#allocation3 + $0xd0] sm:$0xff] %vm1418_vm6, %v1375_v2  ;;  %v1526_v7 = vpop.permute.xlu2 %1525 }
 0x276   : > { %1446 = vst.msk [vmem:[#allocation3 + $0xd8] sm:$0xff] %vm1418_vm6, %v1377_v5 }
 0x277   : > { %1617 = vst.msk [vmem:[#allocation3 + $0x28] sm:$0xff] %vm1611_vm7, %v1526_v7 }
 0x278   : > { %2113 = vst.msk [vmem:[#allocation2 + $0xf0] sm:$0xff] %vm2081_vm12, %v4515_v56 }
 0x279   : > { %2114 = vst.msk [vmem:[#allocation2 + $0xf8] sm:$0xff] %vm2081_vm12, %v4515_v56 }
 0x27a   : > { %1722 = vrot.lane.b32.xlu0 %v4342_v8, %s4513_s6  ;;  %1724 = vrot.lane.b32.xlu1 %v4343_v15, %s4513_s6  ;;  %v4361_v15 = vld [vmem:[%s4567_s23 + $0x16a] sm:$0xff]  ;;  %2116 = vst.msk [vmem:[#allocation2 + $0x108] sm:$0xff] %vm2081_vm12, %v4515_v56 }
 0x27b   : > { %1726 = vrot.lane.b32.xlu2 %v4344_v33, %s4513_s6  ;;  %2117 = vst.msk [vmem:[#allocation2 + $0x110] sm:$0xff] %vm2081_vm12, %v4515_v56 }
 0x27c   : > { %v1381_v9 = vpop.permute.xlu0 %1380  ;;  %v1383_v10 = vpop.permute.xlu1 %1382  ;;  %2119 = vst.msk [vmem:[#allocation2 + $0x120] sm:$0xff] %vm2081_vm12, %v4515_v56 }
 0x27d   : > { %1448 = vst.msk [vmem:[#allocation3 + $0xe8] sm:$0xff] %vm1418_vm6, %v1381_v9  ;;  %v1532_v11 = vpop.permute.xlu2 %1531  ;;  %v4358_v9 = vld [vmem:[%s4567_s23 + $0x142] sm:$0xff] }
 0x27e   : > { %1449 = vst.msk [vmem:[#allocation3 + $0xf0] sm:$0xff] %vm1418_vm6, %v1383_v10  ;;  %v4353_v10 = vld [vmem:[%s4567_s23 + $0x10a] sm:$0xff] }
 0x27f   : > { %1620 = vst.msk [vmem:[#allocation3 + $0x40] sm:$0xff] %vm1611_vm7, %v1532_v11 }
 0x280   : > { %2120 = vst.msk [vmem:[#allocation2 + $0x128] sm:$0xff] %vm2081_vm12, %v4515_v56 }
 0x281   : > { %2122 = vst.msk [vmem:[#allocation2 + $0x138] sm:$0xff] %vm2081_vm12, %v4515_v56 }
 0x282   : > { %1730 = vrot.lane.b32.xlu1 %v4346_v45, %s4513_s6  ;;  %1728 = vrot.lane.b32.xlu0 %v4345_v58, %s4513_s6  ;;  %v4359_v45 = vld [vmem:[%s4567_s23 + $0x152] sm:$0xff]  ;;  %2123 = vst.msk [vmem:[#allocation2 + $0x140] sm:$0xff] %vm2081_vm12, %v4515_v56 }
 0x283   : > { %1732 = vrot.lane.b32.xlu2 %v4347_v49, %s4513_s6  ;;  %2125 = vst.msk [vmem:[#allocation2 + $0x150] sm:$0xff] %vm2081_vm12, %v4515_v56 }
 0x284   : > { %v1516_v13 = vpop.permute.xlu0 %1515  ;;  %v1518_v14 = vpop.permute.xlu1 %1517  ;;  %2126 = vst.msk [vmem:[#allocation2 + $0x158] sm:$0xff] %vm2081_vm12, %v4515_v56 }
 0x285   : > { %1612 = vst.msk [vmem:[#allocation3] sm:$0xff] %vm1611_vm7, %v1516_v13  ;;  %v1538_v16 = vpop.permute.xlu2 %1537  ;;  %v4357_v13 = vld [vmem:[%s4567_s23 + $0x13a] sm:$0xff] }
 0x286   : > { %1613 = vst.msk [vmem:[#allocation3 + $0x8] sm:$0xff] %vm1611_vm7, %v1518_v14 }
 0x287   : > { %1623 = vst.msk [vmem:[#allocation3 + $0x58] sm:$0xff] %vm1611_vm7, %v1538_v16 }
 0x288   : > { %2128 = vst.msk [vmem:[#allocation2 + $0x168] sm:$0xff] %vm2081_vm12, %v4515_v56 }
 0x289   : > { %2129 = vst.msk [vmem:[#allocation2 + $0x170] sm:$0xff] %vm2081_vm12, %v4515_v56 }
 0x28a   : > { %1734 = vrot.lane.b32.xlu0 %v4348_v34, %s4513_s6  ;;  %1736 = vrot.lane.b32.xlu1 %v4349_v59, %s4513_s6  ;;  %2131 = vst.msk [vmem:[#allocation2 + $0x180] sm:$0xff] %vm2081_vm12, %v4515_v56 }
 0x28b   : > { %1738 = vrot.lane.b32.xlu2 %v4350_v51, %s4513_s6  ;;  %2132 = vst.msk [vmem:[#allocation2 + $0x188] sm:$0xff] %vm2081_vm12, %v4515_v56 }
 0x28c   : > { %v1522_v17 = vpop.permute.xlu0 %1521  ;;  %v1524_v18 = vpop.permute.xlu1 %1523  ;;  %2134 = vst.msk [vmem:[#allocation2 + $0x198] sm:$0xff] %vm2081_vm12, %v4515_v56 }
 0x28d   : > { %1615 = vst.msk [vmem:[#allocation3 + $0x18] sm:$0xff] %vm1611_vm7, %v1522_v17  ;;  %v1544_v20 = vpop.permute.xlu2 %1543 }
 0x28e   : > { %1616 = vst.msk [vmem:[#allocation3 + $0x20] sm:$0xff] %vm1611_vm7, %v1524_v18 }
 0x28f   : > { %1626 = vst.msk [vmem:[#allocation3 + $0x70] sm:$0xff] %vm1611_vm7, %v1544_v20  ;;  %v4360_v20 = vld [vmem:[%s4567_s23 + $0x15a] sm:$0xff] }
 0x290   : > { %2135 = vst.msk [vmem:[#allocation2 + $0x1a0] sm:$0xff] %vm2081_vm12, %v4515_v56 }
 0x291   : > { %2088 = vst.msk [vmem:[#allocation2 + $0x28] sm:$0x3] %vm2084_vm13, %v4515_v56 }
 0x292   : > { %1742 = vrot.lane.b32.xlu1 %v4352_v43, %s4513_s6  ;;  %1740 = vrot.lane.b32.xlu0 %v4351_v62, %s4513_s6  ;;  %v5746_v43 = vld [vmem:[%s6951_s2] ss:$0 sm:$0xff]  ;;  %2085 = vst.msk [vmem:[#allocation2 + $0x10] sm:$0x3] %vm2084_vm13, %v4515_v56 }
 0x293   : > { %1744 = vrot.lane.b32.xlu2 %v4353_v10, %s4513_s6  ;;  %2091 = vst.msk [vmem:[#allocation2 + $0x40] sm:$0x3] %vm2084_vm13, %v4515_v56 }
 0x294   : > { %v1528_v21 = vpop.permute.xlu0 %1527  ;;  %v1530_v22 = vpop.permute.xlu1 %1529  ;;  %2094 = vst.msk [vmem:[#allocation2 + $0x58] sm:$0x3] %vm2084_vm13, %v4515_v56 }
 0x295   : > { %1618 = vst.msk [vmem:[#allocation3 + $0x30] sm:$0xff] %vm1611_vm7, %v1528_v21  ;;  %v1550_v23 = vpop.permute.xlu2 %1549 }
 0x296   : > { %1619 = vst.msk [vmem:[#allocation3 + $0x38] sm:$0xff] %vm1611_vm7, %v1530_v22 }
 0x297   : > { %1629 = vst.msk [vmem:[#allocation3 + $0x88] sm:$0xff] %vm1611_vm7, %v1550_v23 }
 0x298   : > { %2097 = vst.msk [vmem:[#allocation2 + $0x70] sm:$0x3] %vm2084_vm13, %v4515_v56 }
 0x299   : > { %2100 = vst.msk [vmem:[#allocation2 + $0x88] sm:$0x3] %vm2084_vm13, %v4515_v56  ;;  %v2235_v10 = vld [vmem:[#allocation2 + $0x9] sm:$0xff] }
 0x29a   : > { %1746 = vrot.lane.b32.xlu0 %v4354_v38, %s4513_s6  ;;  %1748 = vrot.lane.b32.xlu1 %v4355_v41, %s4513_s6  ;;  %2103 = vst.msk [vmem:[#allocation2 + $0xa0] sm:$0x3] %vm2084_vm13, %v4515_v56 }
 0x29b   : > { %1750 = vrot.lane.b32.xlu2 %v4356_v19, %s4513_s6  ;;  %2106 = vst.msk [vmem:[#allocation2 + $0xb8] sm:$0x3] %vm2084_vm13, %v4515_v56 }
 0x29c   : > { %v1534_v24 = vpop.permute.xlu0 %1533  ;;  %v1536_v52 = vpop.permute.xlu1 %1535  ;;  %2109 = vst.msk [vmem:[#allocation2 + $0xd0] sm:$0x3] %vm2084_vm13, %v4515_v56 }
 0x29d   : > { %1621 = vst.msk [vmem:[#allocation3 + $0x48] sm:$0xff] %vm1611_vm7, %v1534_v24  ;;  %v1556_v25 = vpop.permute.xlu2 %1555 }
 0x29e   : > { %1622 = vst.msk [vmem:[#allocation3 + $0x50] sm:$0xff] %vm1611_vm7, %v1536_v52  ;;  %v4362_v52 = vld [vmem:[%s4567_s23 + $0x172] sm:$0xff] }
 0x29f   : > { %1632 = vst.msk [vmem:[#allocation3 + $0xa0] sm:$0xff] %vm1611_vm7, %v1556_v25 }
 0x2a0   : > { %2112 = vst.msk [vmem:[#allocation2 + $0xe8] sm:$0x3] %vm2084_vm13, %v4515_v56 }
 0x2a1   : > { %2115 = vst.msk [vmem:[#allocation2 + $0x100] sm:$0x3] %vm2084_vm13, %v4515_v56 }
 0x2a2   : > { %1754 = vrot.lane.b32.xlu1 %v4358_v9, %s4513_s6  ;;  %1752 = vrot.lane.b32.xlu0 %v4357_v13, %s4513_s6  ;;  %2118 = vst.msk [vmem:[#allocation2 + $0x118] sm:$0x3] %vm2084_vm13, %v4515_v56 }
 0x2a3   : > { %1756 = vrot.lane.b32.xlu2 %v4359_v45, %s4513_s6  ;;  %2121 = vst.msk [vmem:[#allocation2 + $0x130] sm:$0x3] %vm2084_vm13, %v4515_v56 }
 0x2a4   : > { %v1540_v26 = vpop.permute.xlu0 %1539  ;;  %v1542_v61 = vpop.permute.xlu1 %1541  ;;  %2124 = vst.msk [vmem:[#allocation2 + $0x148] sm:$0x3] %vm2084_vm13, %v4515_v56 }
 0x2a5   : > { %1624 = vst.msk [vmem:[#allocation3 + $0x60] sm:$0xff] %vm1611_vm7, %v1540_v26  ;;  %v1562_v27 = vpop.permute.xlu2 %1561 }
 0x2a6   : > { %1625 = vst.msk [vmem:[#allocation3 + $0x68] sm:$0xff] %vm1611_vm7, %v1542_v61 }
 0x2a7   : > { %1635 = vst.msk [vmem:[#allocation3 + $0xb8] sm:$0xff] %vm1611_vm7, %v1562_v27 }
 0x2a8   : > { %2127 = vst.msk [vmem:[#allocation2 + $0x160] sm:$0x3] %vm2084_vm13, %v4515_v56 }
 0x2a9   : > { %2130 = vst.msk [vmem:[#allocation2 + $0x178] sm:$0x3] %vm2084_vm13, %v4515_v56 }
 0x2aa   : > { %1760 = vrot.lane.b32.xlu1 %v4361_v15, %s4513_s6  ;;  %1758 = vrot.lane.b32.xlu0 %v4360_v20, %s4513_s6  ;;  %2133 = vst.msk [vmem:[#allocation2 + $0x190] sm:$0x3] %vm2084_vm13, %v4515_v56 }
 0x2ab   : > { %1762 = vrot.lane.b32.xlu2 %v4362_v52, %s4513_s6  ;;  %2136 = vst.msk [vmem:[#allocation2 + $0x1a8] sm:$0x3] %vm2084_vm13, %v4515_v56 }
 0x2ac   : > { %v1546_v28 = vpop.permute.xlu0 %1545  ;;  %v1548_v39 = vpop.permute.xlu1 %1547 }
 0x2ad   : > { %1627 = vst.msk [vmem:[#allocation3 + $0x78] sm:$0xff] %vm1611_vm7, %v1546_v28  ;;  %v1568_v46 = vpop.permute.xlu2 %1567 }
 0x2ae   : > { %1628 = vst.msk [vmem:[#allocation3 + $0x80] sm:$0xff] %vm1611_vm7, %v1548_v39 }
 0x2af   : > { %1638 = vst.msk [vmem:[#allocation3 + $0xd0] sm:$0xff] %vm1611_vm7, %v1568_v46 }
 0x2b2   : > { %1766 = vrot.lane.b32.xlu1 %v5356_v12, %s4513_s6  ;;  %1764 = vrot.lane.b32.xlu0 %v5345_v6, %s4513_s6 }
 0x2b4   : > { %v1552_v29 = vpop.permute.xlu0 %1551  ;;  %v1554_v30 = vpop.permute.xlu1 %1553 }
 0x2b5   : > { %1630 = vst.msk [vmem:[#allocation3 + $0x90] sm:$0xff] %vm1611_vm7, %v1552_v29  ;;  %v1574_v53 = vpop.permute.xlu2 %1573 }
 0x2b6   : > { %1631 = vst.msk [vmem:[#allocation3 + $0x98] sm:$0xff] %vm1611_vm7, %v1554_v30 }
 0x2b7   : > { %1641 = vst.msk [vmem:[#allocation3 + $0xe8] sm:$0xff] %vm1611_vm7, %v1574_v53 }
 0x2ba   : > { %1770 = vrot.lane.b32.xlu0 %v4366_v54, %s4513_s6  ;;  %2298 = vrot.lane.b32.xlu1 %v2234_v37, %s4516_s13 }
 0x2bc   : > { %v1558_v60 = vpop.permute.xlu0 %1557  ;;  %v1560_v3 = vpop.permute.xlu1 %1559 }
 0x2bd   : > { %1633 = vst.msk [vmem:[#allocation3 + $0xa8] sm:$0xff] %vm1611_vm7, %v1558_v60  ;;  %v1709_v47 = vpop.permute.xlu2 %1708 }
 0x2be   : > { %1634 = vst.msk [vmem:[#allocation3 + $0xb0] sm:$0xff] %vm1611_vm7, %v1560_v3 }
 0x2bf   : > { %1805 = vst.msk [vmem:[#allocation3] sm:$0xff] %vm1804_vm9, %v1709_v47  ;;  %v4365_v47 = vld [vmem:[%s4567_s23 + $0x19a] sm:$0xff] }
 0x2c0   : > { %1768 = vrot.lane.b32.xlu2 %v4365_v47, %s4513_s6 }
 0x2c4   : > { %v1564_v44 = vpop.permute.xlu0 %1563  ;;  %v1566_v32 = vpop.permute.xlu1 %1565 }
 0x2c5   : > { %1636 = vst.msk [vmem:[#allocation3 + $0xc0] sm:$0xff] %vm1611_vm7, %v1564_v44  ;;  %v1715_v36 = vpop.permute.xlu2 %1714 }
 0x2c6   : > { %1637 = vst.msk [vmem:[#allocation3 + $0xc8] sm:$0xff] %vm1611_vm7, %v1566_v32  ;;  %v1837_v4 = vld [vmem:[#allocation3] sm:$0xff] }
 0x2c7   : > { %1808 = vst.msk [vmem:[#allocation3 + $0x18] sm:$0xff] %vm1804_vm9, %v1715_v36 }
 0x2c8   : > { %2300 = vrot.lane.b32.xlu2 %v2235_v10, %s4516_s13 }
 0x2cc   : > { %v1570_v57 = vpop.permute.xlu0 %1569  ;;  %v1572_v35 = vpop.permute.xlu1 %1571 }
 0x2cd   : > { %1639 = vst.msk [vmem:[#allocation3 + $0xd8] sm:$0xff] %vm1611_vm7, %v1570_v57  ;;  %v1721_v11 = vpop.permute.xlu2 %1720 }
 0x2ce   : > { %1640 = vst.msk [vmem:[#allocation3 + $0xe0] sm:$0xff] %vm1611_vm7, %v1572_v35  ;;  %v1840_v17 = vld [vmem:[#allocation3 + $0x18] sm:$0xff] }
 0x2cf   : > { %1811 = vst.msk [vmem:[#allocation3 + $0x30] sm:$0xff] %vm1804_vm9, %v1721_v11 }
 0x2d4   : > { %v1576_v40 = vpop.permute.xlu0 %1575  ;;  %v1578_v50 = vpop.permute.xlu1 %1577 }
 0x2d5   : > { %1642 = vst.msk [vmem:[#allocation3 + $0xf0] sm:$0xff] %vm1611_vm7, %v1576_v40  ;;  %v1727_v21 = vpop.permute.xlu2 %1726 }
 0x2d6   : > { %1643 = vst.msk [vmem:[#allocation3 + $0xf8] sm:$0xff] %vm1611_vm7, %v1578_v50  ;;  %v1843_v12 = vld [vmem:[#allocation3 + $0x30] sm:$0xff] }
 0x2d7   : > { %1814 = vst.msk [vmem:[#allocation3 + $0x48] sm:$0xff] %vm1804_vm9, %v1727_v21 }
 0x2dc   : > { %v1711_v63 = vpop.permute.xlu0 %1710  ;;  %v1713_v1 = vpop.permute.xlu1 %1712 }
 0x2dd   : > { %1806 = vst.msk [vmem:[#allocation3 + $0x8] sm:$0xff] %vm1804_vm9, %v1711_v63  ;;  %v1733_v34 = vpop.permute.xlu2 %1732 }
 0x2de   : > { %1807 = vst.msk [vmem:[#allocation3 + $0x10] sm:$0xff] %vm1804_vm9, %v1713_v1  ;;  %v1846_v28 = vld [vmem:[#allocation3 + $0x48] sm:$0xff] }
 0x2df   : > { %1817 = vst.msk [vmem:[#allocation3 + $0x60] sm:$0xff] %vm1804_vm9, %v1733_v34 }
 0x2e4   : > { %v1838_v2 = vld [vmem:[#allocation3 + $0x8] sm:$0xff]  ;;  %v1719_v5 = vpop.permute.xlu1 %1718  ;;  %v1717_v7 = vpop.permute.xlu0 %1716 }
 0x2e5   : > { %v1869_v8 = vpack.c.bf16 %v1838_v2, %v1837_v4  ;;  %1810 = vst.msk [vmem:[#allocation3 + $0x28] sm:$0xff] %vm1804_vm9, %v1719_v5  ;;  %v1839_v16 = vld [vmem:[#allocation3 + $0x10] sm:$0xff]  ;;  %v1739_v46 = vpop.permute.xlu2 %1738 }
 0x2e6   : > { %1809 = vst.msk [vmem:[#allocation3 + $0x20] sm:$0xff] %vm1804_vm9, %v1717_v7  ;;  %v1870_v18 = vpack.c.bf16 %v1840_v17, %v1839_v16  ;;  %v1849_v60 = vld [vmem:[#allocation3 + $0x60] sm:$0xff]  ;;  %v4456_v2 = vld [vmem:[%s6952_s3 + $0x40] sm:$0xff] }
 0x2e7   : > { %4375 = vmatmul.msk.bf16.vlgmr.msra.gmra.mxu0 %vm1904_vm11, %v1869_v8  ;;  %1820 = vst.msk [vmem:[#allocation3 + $0x78] sm:$0xff] %vm1804_vm9, %v1739_v46  ;;  %3966 = vmatpush.bf16.msra.mxu2 %v4456_v2 }
 0x2ec   : > { %v1723_v14 = vpop.permute.xlu0 %1722  ;;  %v1725_v22 = vpop.permute.xlu1 %1724  ;;  %v1842_v23 = vld [vmem:[#allocation3 + $0x28] sm:$0xff] }
 0x2ed   : > { %1812 = vst.msk [vmem:[#allocation3 + $0x38] sm:$0xff] %vm1804_vm9, %v1723_v14  ;;  %v1841_v58 = vld [vmem:[#allocation3 + $0x20] sm:$0xff]  ;;  %v1745_v35 = vpop.permute.xlu2 %1744 }
 0x2ee   : > { %1813 = vst.msk [vmem:[#allocation3 + $0x40] sm:$0xff] %vm1804_vm9, %v1725_v22  ;;  %v1871_v24 = vpack.c.bf16 %v1842_v23, %v1841_v58  ;;  %v1852_v49 = vld [vmem:[#allocation3 + $0x78] sm:$0xff] }
 0x2ef   : > { %1823 = vst.msk [vmem:[#allocation3 + $0x90] sm:$0xff] %vm1804_vm9, %v1745_v35 }
 0x2f4   : > { %v1731_v33 = vpop.permute.xlu1 %1730  ;;  %v1729_v25 = vpop.permute.xlu0 %1728  ;;  %v1844_v26 = vld [vmem:[#allocation3 + $0x38] sm:$0xff] }
 0x2f5   : > { %1816 = vst.msk [vmem:[#allocation3 + $0x58] sm:$0xff] %vm1804_vm9, %v1731_v33  ;;  %v1872_v61 = vpack.c.bf16 %v1844_v26, %v1843_v12  ;;  %v1845_v6 = vld [vmem:[#allocation3 + $0x40] sm:$0xff]  ;;  %v1751_v4 = vpop.permute.xlu2 %1750 }
 0x2f6   : > { %1815 = vst.msk [vmem:[#allocation3 + $0x50] sm:$0xff] %vm1804_vm9, %v1729_v25  ;;  %v1873_v39 = vpack.c.bf16 %v1846_v28, %v1845_v6  ;;  %v1855_v7 = vld [vmem:[#allocation3 + $0x90] sm:$0xff] }
 0x2f7   : > { %4376 = vmatmul.msk.bf16.gmra.mxu0 %vm1904_vm11, %v1870_v18  ;;  %1826 = vst.msk [vmem:[#allocation3 + $0xa8] sm:$0xff] %vm1804_vm9, %v1751_v4 }
 0x2fc   : > { %v1735_v27 = vpop.permute.xlu0 %1734  ;;  %v1737_v29 = vpop.permute.xlu1 %1736  ;;  %v1848_v59 = vld [vmem:[#allocation3 + $0x58] sm:$0xff] }
 0x2fd   : > { %1818 = vst.msk [vmem:[#allocation3 + $0x68] sm:$0xff] %vm1804_vm9, %v1735_v27  ;;  %v1847_v30 = vld [vmem:[#allocation3 + $0x50] sm:$0xff]  ;;  %v1757_v16 = vpop.permute.xlu2 %1756 }
 0x2fe   : > { %1819 = vst.msk [vmem:[#allocation3 + $0x70] sm:$0xff] %vm1804_vm9, %v1737_v29  ;;  %v1874_v53 = vpack.c.bf16 %v1848_v59, %v1847_v30  ;;  %v1858_v33 = vld [vmem:[#allocation3 + $0xa8] sm:$0xff] }
 0x2ff   : > { %1829 = vst.msk [vmem:[#allocation3 + $0xc0] sm:$0xff] %vm1804_vm9, %v1757_v16 }
 0x304   : > { %v1743_v31 = vpop.permute.xlu1 %1742  ;;  %v1741_v0 = vpop.permute.xlu0 %1740  ;;  %v1850_v3 = vld [vmem:[#allocation3 + $0x68] sm:$0xff] }
 0x305   : > { %1822 = vst.msk [vmem:[#allocation3 + $0x88] sm:$0xff] %vm1804_vm9, %v1743_v31  ;;  %v1875_v55 = vpack.c.bf16 %v1850_v3, %v1849_v60  ;;  %v1851_v48 = vld [vmem:[#allocation3 + $0x70] sm:$0xff]  ;;  %v1763_v23 = vpop.permute.xlu2 %1762 }
 0x306   : > { %1821 = vst.msk [vmem:[#allocation3 + $0x80] sm:$0xff] %vm1804_vm9, %v1741_v0  ;;  %v1876_v42 = vpack.c.bf16 %v1852_v49, %v1851_v48 }
 0x307   : > { %4377 = vmatmul.msk.bf16.gmra.mxu0 %vm1904_vm11, %v1871_v24  ;;  %1832 = vst.msk [vmem:[#allocation3 + $0xd8] sm:$0xff] %vm1804_vm9, %v1763_v23  ;;  %v2171_v23 = vld [vmem:[#allocation2 + $0x8] sm:$0xff] }
 0x308   : > { %2203 = vst.msk [vmem:[#allocation4 + $0x10] sm:$0xff] %vm2081_vm12, %v2171_v23 }
 0x30c   : > { %v1854_v32 = vld [vmem:[#allocation3 + $0x88] sm:$0xff]  ;;  %v1747_v40 = vpop.permute.xlu0 %1746  ;;  %v1749_v1 = vpop.permute.xlu1 %1748 }
 0x30d   : > { %v1853_v44 = vld [vmem:[#allocation3 + $0x80] sm:$0xff]  ;;  %1824 = vst.msk [vmem:[#allocation3 + $0x98] sm:$0xff] %vm1804_vm9, %v1747_v40 }
 0x30e   : > { %v1877_v62 = vpack.c.bf16 %v1854_v32, %v1853_v44  ;;  %1825 = vst.msk [vmem:[#allocation3 + $0xa0] sm:$0xff] %vm1804_vm9, %v1749_v1  ;;  %v1864_v29 = vld [vmem:[#allocation3 + $0xd8] sm:$0xff] }
 0x314   : > { %v1856_v8 = vld [vmem:[#allocation3 + $0x98] sm:$0xff]  ;;  %v1753_v13 = vpop.permute.xlu0 %1752  ;;  %v1755_v15 = vpop.permute.xlu1 %1754 }
 0x315   : > { %v1878_v9 = vpack.c.bf16 %v1856_v8, %v1855_v7  ;;  %1828 = vst.msk [vmem:[#allocation3 + $0xb8] sm:$0xff] %vm1804_vm9, %v1755_v15  ;;  %v1857_v25 = vld [vmem:[#allocation3 + $0xa0] sm:$0xff] }
 0x316   : > { %1827 = vst.msk [vmem:[#allocation3 + $0xb0] sm:$0xff] %vm1804_vm9, %v1753_v13  ;;  %v1879_v12 = vpack.c.bf16 %v1858_v33, %v1857_v25  ;;  %v1861_v15 = vld [vmem:[#allocation3 + $0xc0] sm:$0xff] }
 0x317   : > { %4378 = vmatmul.msk.bf16.gmra.mxu0 %vm1904_vm11, %v1872_v61 }
 0x31c   : > { %v1759_v21 = vpop.permute.xlu0 %1758  ;;  %v1761_v45 = vpop.permute.xlu1 %1760  ;;  %v1860_v44 = vld [vmem:[#allocation3 + $0xb8] sm:$0xff] }
 0x31d   : > { %1831 = vst.msk [vmem:[#allocation3 + $0xd0] sm:$0xff] %vm1804_vm9, %v1761_v45 }
 0x31e   : > { %1830 = vst.msk [vmem:[#allocation3 + $0xc8] sm:$0xff] %vm1804_vm9, %v1759_v21 }
 0x324   : > { %v1767_v6 = vpop.permute.xlu1 %1766  ;;  %v1863_v31 = vld [vmem:[#allocation3 + $0xd0] sm:$0xff] }
 0x325   : > { %1834 = vst.msk [vmem:[#allocation3 + $0xe8] sm:$0xff] %vm1804_vm9, %v1767_v6  ;;  %v1882_v60 = vpack.c.bf16 %v1864_v29, %v1863_v31  ;;  %v1862_v16 = vld [vmem:[#allocation3 + $0xc8] sm:$0xff] }
 0x327   : > { %4379 = vmatmul.msk.bf16.gmra.mxu0 %vm1904_vm11, %v1873_v39  ;;  %v1765_v39 = vpop.permute.xlu0 %1764  ;;  %4388 = vmatmul.msk.bf16.vlgmr.msra.gmra.mxu3 %vm1904_vm11, %v1882_v60 }
 0x328   : > { %1833 = vst.msk [vmem:[#allocation3 + $0xe0] sm:$0xff] %vm1804_vm9, %v1765_v39 }
 0x337   : > { %4380 = vmatmul.msk.bf16.gmra.mxu0 %vm1904_vm11, %v1874_v53 }
 0x347   : > { %4381 = vmatmul.msk.bf16.gmra.mxu0 %vm1904_vm11, %v1875_v55 }
 0x357   : > { %4382 = vmatmul.msk.bf16.gmra.mxu0 %vm1904_vm11, %v1876_v42  ;;  %v1859_v42 = vld [vmem:[#allocation3 + $0xb0] sm:$0xff] }
 0x364   : > { %v1969_v51 = vpop.f32.mrf.mxu0 }
 0x365   : > { %v1970_v36 = vadd.f32 %v5746_v43, %v1969_v51 }
 0x367   : > { %v2049_v57 = vmax.f32 %v1970_v36, 0.0  ;;  %4383 = vmatmul.msk.bf16.gmra.mxu0 %vm1904_vm11, %v1877_v62  ;;  %v1880_v36 = vpack.c.bf16 %v1860_v44, %v1859_v42  ;;  %v2170_v42 = vld [vmem:[#allocation2] sm:$0xff]  ;;  %v2299_v44 = vpop.permute.xlu1 %2298 }
 0x368   : > { %2202 = vst.msk [vmem:[#allocation4] sm:$0xff] %vm2081_vm12, %v2170_v42 }
 0x369   : > { %2138 = vst.msk [vmem:[#allocation2 + $0x19] sm:$0xff] %vm2081_vm12, %v2049_v57 }
 0x36a   : > { %2395 = vst.msk [vmem:[#allocation4] sm:$0xff] %vm2394_vm14, %v2299_v44 }
 0x36c   : > { %v1971_v50 = vpop.f32.mrf.mxu0 }
 0x36d   : > { %v1972_v38 = vadd.f32 %v5746_v43, %v1971_v50  ;;  %v1865_v50 = vld [vmem:[#allocation3 + $0xe0] sm:$0xff] }
 0x36f   : > { %v2050_v41 = vmax.f32 %v1972_v38, 0.0  ;;  %v1866_v38 = vld [vmem:[#allocation3 + $0xe8] sm:$0xff] }
 0x370   : > { %v2236_v63 = vld [vmem:[#allocation2 + $0x19] sm:$0xff] }
 0x371   : > { %2139 = vst.msk [vmem:[#allocation2 + $0x21] sm:$0xff] %vm2081_vm12, %v2050_v41  ;;  %2302 = vrot.lane.b32.xlu0 %v2236_v63, %s4516_s13  ;;  %v5850_v53 = vld [vmem:[#allocation2 + $0x18] sm:$0xff]  ;;  %v1883_v63 = vpack.c.bf16 %v1866_v38, %v1865_v50 }
 0x372   : > { %2204 = vst.msk [vmem:[#allocation4 + $0x20] sm:$0xff] %vm2081_vm12, %v5850_v53 }
 0x373   : > { %4389 = vmatmul.msk.bf16.gmra.mxu3 %vm1904_vm11, %v1883_v63 }
 0x374   : > { %v1974_v5 = vpop.f32.mrf.mxu0 }
 0x375   : > { %v1975_v14 = vadd.f32 %v5746_v43, %v1974_v5 }
 0x377   : > { %4384 = vmatmul.msk.bf16.gmra.mxu0 %vm1904_vm11, %v1878_v9  ;;  %v2051_v19 = vmax.f32 %v1975_v14, 0.0 }
 0x378   : > { %v2237_v11 = vld [vmem:[#allocation2 + $0x21] sm:$0xff] }
 0x379   : > { %2304 = vrot.lane.b32.xlu1 %v2237_v11, %s4516_s13  ;;  %2140 = vst.msk [vmem:[#allocation2 + $0x31] sm:$0xff] %vm2081_vm12, %v2051_v19  ;;  %v5854_v0 = vld [vmem:[#allocation2 + $0x20] sm:$0xff] }
 0x37a   : > { %2205 = vst.msk [vmem:[#allocation4 + $0x30] sm:$0xff] %vm2081_vm12, %v5854_v0 }
 0x37c   : > { %v1976_v17 = vpop.f32.mrf.mxu0 }
 0x37d   : > { %v1977_v18 = vadd.f32 %v5746_v43, %v1976_v17 }
 0x37f   : > { %v2052_v20 = vmax.f32 %v1977_v18, 0.0  ;;  %v1881_v18 = vpack.c.bf16 %v1862_v16, %v1861_v15 }
 0x380   : > { %v2238_v52 = vld [vmem:[#allocation2 + $0x31] sm:$0xff] }
 0x381   : > { %2141 = vst.msk [vmem:[#allocation2 + $0x39] sm:$0xff] %vm2081_vm12, %v2052_v20  ;;  %2306 = vrot.lane.b32.xlu2 %v2238_v52, %s4516_s13  ;;  %v5847_v30 = vld [vmem:[#allocation2 + $0x30] sm:$0xff]  ;;  %v1769_v20 = vpop.permute.xlu2 %1768 }
 0x382   : > { %2206 = vst.msk [vmem:[#allocation4 + $0x40] sm:$0xff] %vm2081_vm12, %v5847_v30 }
 0x383   : > { %1835 = vst.msk [vmem:[#allocation3 + $0xf0] sm:$0xff] %vm1804_vm9, %v1769_v20 }
 0x384   : > { %v1979_v22 = vpop.f32.mrf.mxu0 }
 0x385   : > { %v1980_v58 = vadd.f32 %v5746_v43, %v1979_v22 }
 0x387   : > { %v2053_v24 = vmax.f32 %v1980_v58, 0.0  ;;  %4385 = vmatmul.msk.bf16.gmra.mxu0 %vm1904_vm11, %v1879_v12 }
 0x388   : > { %v2239_v26 = vld [vmem:[#allocation2 + $0x39] sm:$0xff] }
 0x389   : > { %2142 = vst.msk [vmem:[#allocation2 + $0x49] sm:$0xff] %vm2081_vm12, %v2053_v24  ;;  %v5835_v34 = vld [vmem:[#allocation2 + $0x32] sm:$0xff]  ;;  %v5837_v27 = vld [vmem:[#allocation2 + $0x3a] sm:$0xff]  ;;  %2308 = vrot.lane.b32.xlu0 %v2239_v26, %s4516_s13 }
 0x38a   : > { %3618 = vst.msk [vmem:[#allocation4 + $0x8] sm:$0xff] %vm2081_vm12, %v5835_v34  ;;  %v5858_v3 = vld [vmem:[#allocation2 + $0x38] sm:$0xff] }
 0x38b   : > { %3619 = vst.msk [vmem:[#allocation4 + $0x18] sm:$0xff] %vm2081_vm12, %v5837_v27 }
 0x38c   : > { %v1981_v61 = vpop.f32.mrf.mxu0  ;;  %2207 = vst.msk [vmem:[#allocation4 + $0x50] sm:$0xff] %vm2081_vm12, %v5858_v3 }
 0x38d   : > { %v1982_v28 = vadd.f32 %v5746_v43, %v1981_v61 }
 0x38f   : > { %v2054_v46 = vmax.f32 %v1982_v28, 0.0 }
 0x390   : > { %v2240_v59 = vld [vmem:[#allocation2 + $0x49] sm:$0xff] }
 0x391   : > { %2143 = vst.msk [vmem:[#allocation2 + $0x51] sm:$0xff] %vm2081_vm12, %v2054_v46  ;;  %2310 = vrot.lane.b32.xlu1 %v2240_v59, %s4516_s13  ;;  %v5862_v55 = vld [vmem:[#allocation2 + $0x48] sm:$0xff]  ;;  %v3651_v56 = vld [vmem:[#allocation4 + $0x8] sm:$0xff]  ;;  %v1771_v46 = vpop.permute.xlu0 %1770 }
 0x392   : > { %v3653_v48 = vld [vmem:[#allocation4 + $0x18] sm:$0xff]  ;;  %2208 = vst.msk [vmem:[#allocation4 + $0x60] sm:$0xff] %vm2081_vm12, %v5862_v55 }
 0x393   : > { %v3715_v47 = vpack.c.bf16 %v3653_v48, %v3651_v56  ;;  %1836 = vst.msk [vmem:[#allocation3 + $0xf8] sm:$0xff] %vm1804_vm9, %v1771_v46 }
 0x394   : > { %v1984_v54 = vpop.f32.mrf.mxu0 }
 0x395   : > { %v1985_v49 = vadd.f32 %v5746_v43, %v1984_v54  ;;  %4427 = vmatmul.msk.bf16.vlgmr.msra.gmra.mxu2 %vm2081_vm12, %v3715_v47 }
 0x397   : > { %v2055_v37 = vmax.f32 %v1985_v49, 0.0  ;;  %4386 = vmatmul.msk.bf16.gmra.mxu0 %vm1904_vm11, %v1880_v36 }
 0x398   : > { %v2241_v32 = vld [vmem:[#allocation2 + $0x51] sm:$0xff] }
 0x399   : > { %v5873_v62 = vld [vmem:[#allocation2 + $0x4a] sm:$0xff]  ;;  %v5875_v51 = vld [vmem:[#allocation2 + $0x52] sm:$0xff]  ;;  %2144 = vst.msk [vmem:[#allocation2 + $0x61] sm:$0xff] %vm2081_vm12, %v2055_v37  ;;  %2312 = vrot.lane.b32.xlu2 %v2241_v32, %s4516_s13 }
 0x39a   : > { %3620 = vst.msk [vmem:[#allocation4 + $0x28] sm:$0xff] %vm2081_vm12, %v5873_v62  ;;  %v5881_v57 = vld [vmem:[#allocation2 + $0x50] sm:$0xff] }
 0x39b   : > { %3621 = vst.msk [vmem:[#allocation4 + $0x38] sm:$0xff] %vm2081_vm12, %v5875_v51 }
 0x39c   : > { %v1986_v35 = vpop.f32.mrf.mxu0  ;;  %2209 = vst.msk [vmem:[#allocation4 + $0x70] sm:$0xff] %vm2081_vm12, %v5881_v57 }
 0x39d   : > { %v1987_v40 = vadd.f32 %v5746_v43, %v1986_v35 }
 0x39f   : > { %v2056_v41 = vmax.f32 %v1987_v40, 0.0 }
 0x3a0   : > { %v2242_v1 = vld [vmem:[#allocation2 + $0x61] sm:$0xff] }
 0x3a1   : > { %2145 = vst.msk [vmem:[#allocation2 + $0x69] sm:$0xff] %vm2081_vm12, %v2056_v41  ;;  %2314 = vrot.lane.b32.xlu0 %v2242_v1, %s4516_s13  ;;  %v3655_v4 = vld [vmem:[#allocation4 + $0x28] sm:$0xff]  ;;  %v5891_v5 = vld [vmem:[#allocation2 + $0x60] sm:$0xff] }
 0x3a2   : > { %v3657_v2 = vld [vmem:[#allocation4 + $0x38] sm:$0xff]  ;;  %2210 = vst.msk [vmem:[#allocation4 + $0x80] sm:$0xff] %vm2081_vm12, %v5891_v5 }
 0x3a3   : > { %v3717_v7 = vpack.c.bf16 %v3657_v2, %v3655_v4  ;;  %v2301_v2 = vpop.permute.xlu2 %2300 }
 0x3a4   : > { %v1989_v8 = vpop.f32.mrf.mxu0  ;;  %2396 = vst.msk [vmem:[#allocation4 + $0x10] sm:$0xff] %vm2394_vm14, %v2301_v2 }
 0x3a5   : > { %v1990_v9 = vadd.f32 %v5746_v43, %v1989_v8  ;;  %4428 = vmatmul.msk.bf16.gmra.mxu2 %vm2081_vm12, %v3717_v7 }
 0x3a7   : > { %v2057_v10 = vmax.f32 %v1990_v9, 0.0  ;;  %4387 = vmatmul.msk.bf16.gmra.mxu0 %vm1904_vm11, %v1881_v18 }
 0x3a8   : > { %v2243_v11 = vld [vmem:[#allocation2 + $0x69] sm:$0xff] }
 0x3a9   : > { %v5898_v13 = vld [vmem:[#allocation2 + $0x62] sm:$0xff]  ;;  %v5900_v14 = vld [vmem:[#allocation2 + $0x6a] sm:$0xff]  ;;  %2146 = vst.msk [vmem:[#allocation2 + $0x79] sm:$0xff] %vm2081_vm12, %v2057_v10  ;;  %2316 = vrot.lane.b32.xlu1 %v2243_v11, %s4516_s13 }
 0x3aa   : > { %3622 = vst.msk [vmem:[#allocation4 + $0x48] sm:$0xff] %vm2081_vm12, %v5898_v13  ;;  %v5906_v17 = vld [vmem:[#allocation2 + $0x68] sm:$0xff] }
 0x3ab   : > { %3623 = vst.msk [vmem:[#allocation4 + $0x58] sm:$0xff] %vm2081_vm12, %v5900_v14 }
 0x3ac   : > { %v1991_v19 = vpop.f32.mrf.mxu0  ;;  %2211 = vst.msk [vmem:[#allocation4 + $0x90] sm:$0xff] %vm2081_vm12, %v5906_v17 }
 0x3ad   : > { %v1992_v21 = vadd.f32 %v5746_v43, %v1991_v19 }
 0x3af   : > { %v2058_v22 = vmax.f32 %v1992_v21, 0.0 }
 0x3b0   : > { %v2244_v45 = vld [vmem:[#allocation2 + $0x79] sm:$0xff] }
 0x3b1   : > { %2147 = vst.msk [vmem:[#allocation2 + $0x81] sm:$0xff] %vm2081_vm12, %v2058_v22  ;;  %2318 = vrot.lane.b32.xlu2 %v2244_v45, %s4516_s13  ;;  %v3659_v58 = vld [vmem:[#allocation4 + $0x48] sm:$0xff] }
 0x3b2   : > { %v3661_v24 = vld [vmem:[#allocation4 + $0x58] sm:$0xff]  ;;  %v5918_v52 = vld [vmem:[#allocation2 + $0x78] sm:$0xff] }
 0x3b3   : > { %2212 = vst.msk [vmem:[#allocation4 + $0xa0] sm:$0xff] %vm2081_vm12, %v5918_v52  ;;  %v3719_v33 = vpack.c.bf16 %v3661_v24, %v3659_v58 }
 0x3b4   : > { %v1994_v25 = vpop.f32.mrf.mxu0 }
 0x3b5   : > { %v1995_v12 = vadd.f32 %v5746_v43, %v1994_v25  ;;  %4429 = vmatmul.msk.bf16.gmra.mxu2 %vm2081_vm12, %v3719_v33 }
 0x3b7   : > { %v2059_v26 = vmax.f32 %v1995_v12, 0.0 }
 0x3b8   : > { %v2245_v61 = vld [vmem:[#allocation2 + $0x81] sm:$0xff] }
 0x3b9   : > { %v5924_v6 = vld [vmem:[#allocation2 + $0x7a] sm:$0xff]  ;;  %v5926_v28 = vld [vmem:[#allocation2 + $0x82] sm:$0xff]  ;;  %2148 = vst.msk [vmem:[#allocation2 + $0x91] sm:$0xff] %vm2081_vm12, %v2059_v26  ;;  %2320 = vrot.lane.b32.xlu0 %v2245_v61, %s4516_s13 }
 0x3ba   : > { %3624 = vst.msk [vmem:[#allocation4 + $0x68] sm:$0xff] %vm2081_vm12, %v5924_v6  ;;  %v5932_v39 = vld [vmem:[#allocation2 + $0x80] sm:$0xff] }
 0x3bb   : > { %3625 = vst.msk [vmem:[#allocation4 + $0x78] sm:$0xff] %vm2081_vm12, %v5926_v28 }
 0x3bc   : > { %v1996_v29 = vpop.f32.mrf.mxu0  ;;  %2213 = vst.msk [vmem:[#allocation4 + $0xb0] sm:$0xff] %vm2081_vm12, %v5932_v39 }
 0x3bd   : > { %v1997_v59 = vadd.f32 %v5746_v43, %v1996_v29 }
 0x3bf   : > { %v2060_v31 = vmax.f32 %v1997_v59, 0.0 }
 0x3c0   : > { %v2246_v60 = vld [vmem:[#allocation2 + $0x91] sm:$0xff] }
 0x3c1   : > { %2149 = vst.msk [vmem:[#allocation2 + $0x99] sm:$0xff] %vm2081_vm12, %v2060_v31  ;;  %2322 = vrot.lane.b32.xlu1 %v2246_v60, %s4516_s13  ;;  %v3663_v56 = vld [vmem:[#allocation4 + $0x68] sm:$0xff]  ;;  %v5942_v48 = vld [vmem:[#allocation2 + $0x90] sm:$0xff] }
 0x3c2   : > { %v3665_v54 = vld [vmem:[#allocation4 + $0x78] sm:$0xff]  ;;  %2214 = vst.msk [vmem:[#allocation4 + $0xc0] sm:$0xff] %vm2081_vm12, %v5942_v48 }
 0x3c3   : > { %v3721_v49 = vpack.c.bf16 %v3665_v54, %v3663_v56 }
 0x3c4   : > { %v1999_v47 = vpop.f32.mrf.mxu0 }
 0x3c5   : > { %v2000_v37 = vadd.f32 %v5746_v43, %v1999_v47  ;;  %4430 = vmatmul.msk.bf16.gmra.mxu2 %vm2081_vm12, %v3721_v49 }
 0x3c7   : > { %v2061_v32 = vmax.f32 %v2000_v37, 0.0 }
 0x3c8   : > { %v2247_v36 = vld [vmem:[#allocation2 + $0x99] sm:$0xff] }
 0x3c9   : > { %v5950_v35 = vld [vmem:[#allocation2 + $0x92] sm:$0xff]  ;;  %v5952_v40 = vld [vmem:[#allocation2 + $0x9a] sm:$0xff]  ;;  %2150 = vst.msk [vmem:[#allocation2 + $0xa9] sm:$0xff] %vm2081_vm12, %v2061_v32  ;;  %2324 = vrot.lane.b32.xlu2 %v2247_v36, %s4516_s13 }
 0x3ca   : > { %3626 = vst.msk [vmem:[#allocation4 + $0x88] sm:$0xff] %vm2081_vm12, %v5950_v35  ;;  %v5958_v50 = vld [vmem:[#allocation2 + $0x98] sm:$0xff] }
 0x3cb   : > { %3627 = vst.msk [vmem:[#allocation4 + $0x98] sm:$0xff] %vm2081_vm12, %v5952_v40 }
 0x3cc   : > { %v2001_v38 = vpop.f32.mrf.mxu0  ;;  %2215 = vst.msk [vmem:[#allocation4 + $0xd0] sm:$0xff] %vm2081_vm12, %v5958_v50 }
 0x3cd   : > { %v2002_v41 = vadd.f32 %v5746_v43, %v2001_v38 }
 0x3cf   : > { %v2062_v63 = vmax.f32 %v2002_v41, 0.0 }
 0x3d0   : > { %v2248_v1 = vld [vmem:[#allocation2 + $0xa9] sm:$0xff] }
 0x3d1   : > { %2151 = vst.msk [vmem:[#allocation2 + $0xb1] sm:$0xff] %vm2081_vm12, %v2062_v63  ;;  %2326 = vrot.lane.b32.xlu0 %v2248_v1, %s4516_s13  ;;  %v3667_v4 = vld [vmem:[#allocation4 + $0x88] sm:$0xff]  ;;  %v5967_v8 = vld [vmem:[#allocation2 + $0xa8] sm:$0xff] }
 0x3d2   : > { %v3669_v7 = vld [vmem:[#allocation4 + $0x98] sm:$0xff]  ;;  %2216 = vst.msk [vmem:[#allocation4 + $0xe0] sm:$0xff] %vm2081_vm12, %v5967_v8 }
 0x3d3   : > { %v3723_v9 = vpack.c.bf16 %v3669_v7, %v3667_v4 }
 0x3d4   : > { %v2004_v10 = vpop.f32.mrf.mxu0 }
 0x3d5   : > { %v2005_v11 = vadd.f32 %v5746_v43, %v2004_v10  ;;  %4431 = vmatmul.msk.bf16.gmra.mxu2 %vm2081_vm12, %v3723_v9 }
 0x3d7   : > { %v2063_v15 = vmax.f32 %v2005_v11, 0.0 }
 0x3d8   : > { %v2249_v16 = vld [vmem:[#allocation2 + $0xb1] sm:$0xff] }
 0x3d9   : > { %v5974_v18 = vld [vmem:[#allocation2 + $0xaa] sm:$0xff]  ;;  %v5976_v19 = vld [vmem:[#allocation2 + $0xb2] sm:$0xff]  ;;  %2152 = vst.msk [vmem:[#allocation2 + $0xc1] sm:$0xff] %vm2081_vm12, %v2063_v15  ;;  %2328 = vrot.lane.b32.xlu1 %v2249_v16, %s4516_s13 }
 0x3da   : > { %3628 = vst.msk [vmem:[#allocation4 + $0xa8] sm:$0xff] %vm2081_vm12, %v5974_v18  ;;  %v5982_v20 = vld [vmem:[#allocation2 + $0xb0] sm:$0xff] }
 0x3db   : > { %3629 = vst.msk [vmem:[#allocation4 + $0xb8] sm:$0xff] %vm2081_vm12, %v5976_v19  ;;  %v2307_v12 = vpop.permute.xlu2 %2306 }
 0x3dc   : > { %v2006_v21 = vpop.f32.mrf.mxu0  ;;  %2217 = vst.msk [vmem:[#allocation4 + $0xf0] sm:$0xff] %vm2081_vm12, %v5982_v20 }
 0x3dd   : > { %v2007_v22 = vadd.f32 %v5746_v43, %v2006_v21  ;;  %2399 = vst.msk [vmem:[#allocation4 + $0x40] sm:$0xff] %vm2394_vm14, %v2307_v12 }
 0x3df   : > { %v2064_v45 = vmax.f32 %v2007_v22, 0.0 }
 0x3e0   : > { %v2250_v58 = vld [vmem:[#allocation2 + $0xc1] sm:$0xff] }
 0x3e1   : > { %2153 = vst.msk [vmem:[#allocation2 + $0xc9] sm:$0xff] %vm2081_vm12, %v2064_v45  ;;  %2330 = vrot.lane.b32.xlu2 %v2250_v58, %s4516_s13  ;;  %v3671_v23 = vld [vmem:[#allocation4 + $0xa8] sm:$0xff]  ;;  %v5991_v33 = vld [vmem:[#allocation2 + $0xc0] sm:$0xff] }
 0x3e2   : > { %v3673_v24 = vld [vmem:[#allocation4 + $0xb8] sm:$0xff]  ;;  %2218 = vst.msk [vmem:[#allocation4 + $0x100] sm:$0xff] %vm2081_vm12, %v5991_v33 }
 0x3e3   : > { %v2303_v25 = vpop.permute.xlu0 %2302  ;;  %v3725_v26 = vpack.c.bf16 %v3673_v24, %v3671_v23 }
 0x3e4   : > { %2397 = vst.msk [vmem:[#allocation4 + $0x20] sm:$0xff] %vm2394_vm14, %v2303_v25  ;;  %v2009_v61 = vpop.f32.mrf.mxu0 }
 0x3e5   : > { %v2010_v46 = vadd.f32 %v5746_v43, %v2009_v61  ;;  %4432 = vmatmul.msk.bf16.gmra.mxu2 %vm2081_vm12, %v3725_v26 }
 0x3e7   : > { %v2065_v29 = vmax.f32 %v2010_v46, 0.0 }
 0x3e8   : > { %v2251_v59 = vld [vmem:[#allocation2 + $0xc9] sm:$0xff] }
 0x3e9   : > { %v5999_v31 = vld [vmem:[#allocation2 + $0xc2] sm:$0xff]  ;;  %v6001_v60 = vld [vmem:[#allocation2 + $0xca] sm:$0xff]  ;;  %2154 = vst.msk [vmem:[#allocation2 + $0xd9] sm:$0xff] %vm2081_vm12, %v2065_v29  ;;  %2332 = vrot.lane.b32.xlu0 %v2251_v59, %s4516_s13 }
 0x3ea   : > { %3630 = vst.msk [vmem:[#allocation4 + $0xc8] sm:$0xff] %vm2081_vm12, %v5999_v31  ;;  %v6007_v56 = vld [vmem:[#allocation2 + $0xc8] sm:$0xff] }
 0x3eb   : > { %v2305_v54 = vpop.permute.xlu1 %2304  ;;  %3631 = vst.msk [vmem:[#allocation4 + $0xd8] sm:$0xff] %vm2081_vm12, %v6001_v60 }
 0x3ec   : > { %2398 = vst.msk [vmem:[#allocation4 + $0x30] sm:$0xff] %vm2394_vm14, %v2305_v54  ;;  %v2011_v49 = vpop.f32.mrf.mxu0 }
 0x3ed   : > { %v2012_v47 = vadd.f32 %v5746_v43, %v2011_v49  ;;  %2219 = vst.msk [vmem:[#allocation4 + $0x110] sm:$0xff] %vm2081_vm12, %v6007_v56 }
 0x3ef   : > { %v2066_v37 = vmax.f32 %v2012_v47, 0.0 }
 0x3f0   : > { %v2252_v42 = vld [vmem:[#allocation2 + $0xd9] sm:$0xff] }
 0x3f1   : > { %2155 = vst.msk [vmem:[#allocation2 + $0xe1] sm:$0xff] %vm2081_vm12, %v2066_v37  ;;  %2334 = vrot.lane.b32.xlu1 %v2252_v42, %s4516_s13  ;;  %v3675_v44 = vld [vmem:[#allocation4 + $0xc8] sm:$0xff] }
 0x3f2   : > { %v3677_v32 = vld [vmem:[#allocation4 + $0xd8] sm:$0xff]  ;;  %v6017_v36 = vld [vmem:[#allocation2 + $0xd8] sm:$0xff] }
 0x3f3   : > { %v2313_v38 = vpop.permute.xlu2 %2312  ;;  %2220 = vst.msk [vmem:[#allocation4 + $0x120] sm:$0xff] %vm2081_vm12, %v6017_v36  ;;  %v3727_v41 = vpack.c.bf16 %v3677_v32, %v3675_v44 }
 0x3f4   : > { %2402 = vst.msk [vmem:[#allocation4 + $0x70] sm:$0xff] %vm2394_vm14, %v2313_v38  ;;  %v2014_v63 = vpop.f32.mrf.mxu0 }
 0x3f5   : > { %v2015_v1 = vadd.f32 %v5746_v43, %v2014_v63  ;;  %4433 = vmatmul.msk.bf16.gmra.mxu2 %vm2081_vm12, %v3727_v41 }
 0x3f7   : > { %v2067_v4 = vmax.f32 %v2015_v1, 0.0  ;;  %v2034_v1 = vpop.f32.mrf.mxu3 }
 0x3f8   : > { %v2253_v2 = vld [vmem:[#allocation2 + $0xe1] sm:$0xff] }
 0x3f9   : > { %v6024_v7 = vld [vmem:[#allocation2 + $0xda] sm:$0xff]  ;;  %v6026_v9 = vld [vmem:[#allocation2 + $0xe2] sm:$0xff]  ;;  %2336 = vrot.lane.b32.xlu2 %v2253_v2, %s4516_s13  ;;  %2156 = vst.msk [vmem:[#allocation2 + $0xf1] sm:$0xff] %vm2081_vm12, %v2067_v4  ;;  %v2035_v2 = vadd.f32 %v5746_v43, %v2034_v1 }
 0x3fa   : > { %3632 = vst.msk [vmem:[#allocation4 + $0xe8] sm:$0xff] %vm2081_vm12, %v6024_v7  ;;  %v6032_v10 = vld [vmem:[#allocation2 + $0xe0] sm:$0xff] }
 0x3fb   : > { %3633 = vst.msk [vmem:[#allocation4 + $0xf8] sm:$0xff] %vm2081_vm12, %v6026_v9  ;;  %v2309_v16 = vpop.permute.xlu0 %2308 }
 0x3fc   : > { %2221 = vst.msk [vmem:[#allocation4 + $0x130] sm:$0xff] %vm2081_vm12, %v6032_v10  ;;  %v2016_v11 = vpop.f32.mrf.mxu0 }
 0x3fd   : > { %v2017_v15 = vadd.f32 %v5746_v43, %v2016_v11  ;;  %2400 = vst.msk [vmem:[#allocation4 + $0x50] sm:$0xff] %vm2394_vm14, %v2309_v16  ;;  %v2075_v11 = vmax.f32 %v2035_v2, 0.0 }
 0x3ff   : > { %v2068_v21 = vmax.f32 %v2017_v15, 0.0  ;;  %2164 = vst.msk [vmem:[#allocation2 + $0x151] sm:$0xff] %vm2081_vm12, %v2075_v11 }
 0x400   : > { %v2254_v22 = vld [vmem:[#allocation2 + $0xf1] sm:$0xff] }
 0x401   : > { %v3679_v45 = vld [vmem:[#allocation4 + $0xe8] sm:$0xff]  ;;  %2157 = vst.msk [vmem:[#allocation2 + $0xf9] sm:$0xff] %vm2081_vm12, %v2068_v21  ;;  %2338 = vrot.lane.b32.xlu0 %v2254_v22, %s4516_s13  ;;  %v6042_v23 = vld [vmem:[#allocation2 + $0xf0] sm:$0xff] }
 0x402   : > { %v3681_v58 = vld [vmem:[#allocation4 + $0xf8] sm:$0xff]  ;;  %2222 = vst.msk [vmem:[#allocation4 + $0x140] sm:$0xff] %vm2081_vm12, %v6042_v23 }
 0x403   : > { %v2311_v24 = vpop.permute.xlu1 %2310  ;;  %v3729_v25 = vpack.c.bf16 %v3681_v58, %v3679_v45  ;;  %v2036_v58 = vpop.f32.mrf.mxu3 }
 0x404   : > { %2401 = vst.msk [vmem:[#allocation4 + $0x60] sm:$0xff] %vm2394_vm14, %v2311_v24  ;;  %v2019_v29 = vpop.f32.mrf.mxu0 }
 0x405   : > { %4434 = vmatmul.msk.bf16.gmra.mxu2 %vm2081_vm12, %v3729_v25  ;;  %v2020_v54 = vadd.f32 %v5746_v43, %v2019_v29 }
 0x407   : > { %v2069_v49 = vmax.f32 %v2020_v54, 0.0 }
 0x408   : > { %v2255_v12 = vld [vmem:[#allocation2 + $0xf9] sm:$0xff] }
 0x409   : > { %v6048_v26 = vld [vmem:[#allocation2 + $0xf2] sm:$0xff]  ;;  %v6050_v61 = vld [vmem:[#allocation2 + $0xfa] sm:$0xff]  ;;  %2340 = vrot.lane.b32.xlu1 %v2255_v12, %s4516_s13  ;;  %2158 = vst.msk [vmem:[#allocation2 + $0x109] sm:$0xff] %vm2081_vm12, %v2069_v49  ;;  %v2037_v12 = vadd.f32 %v5746_v43, %v2036_v58 }
 0x40a   : > { %3634 = vst.msk [vmem:[#allocation4 + $0x108] sm:$0xff] %vm2081_vm12, %v6048_v26  ;;  %v6055_v46 = vld [vmem:[#allocation2 + $0xf8] sm:$0xff] }
 0x40b   : > { %v2319_v59 = vpop.permute.xlu2 %2318  ;;  %3635 = vst.msk [vmem:[#allocation4 + $0x118] sm:$0xff] %vm2081_vm12, %v6050_v61 }
 0x40c   : > { %2405 = vst.msk [vmem:[#allocation4 + $0xa0] sm:$0xff] %vm2394_vm14, %v2319_v59  ;;  %v2021_v42 = vpop.f32.mrf.mxu0  ;;  %v2076_v59 = vmax.f32 %v2037_v12, 0.0 }
 0x40d   : > { %2223 = vst.msk [vmem:[#allocation4 + $0x150] sm:$0xff] %vm2081_vm12, %v6055_v46  ;;  %v2022_v32 = vadd.f32 %v5746_v43, %v2021_v42 }
 0x40e   : > { %2165 = vst.msk [vmem:[#allocation2 + $0x159] sm:$0xff] %vm2081_vm12, %v2076_v59 }
 0x40f   : > { %v2070_v41 = vmax.f32 %v2022_v32, 0.0 }
 0x410   : > { %v2256_v63 = vld [vmem:[#allocation2 + $0x109] sm:$0xff] }
 0x411   : > { %v3683_v47 = vld [vmem:[#allocation4 + $0x108] sm:$0xff]  ;;  %v6066_v4 = vld [vmem:[#allocation2 + $0x108] sm:$0xff]  ;;  %2159 = vst.msk [vmem:[#allocation2 + $0x111] sm:$0xff] %vm2081_vm12, %v2070_v41  ;;  %2342 = vrot.lane.b32.xlu2 %v2256_v63, %s4516_s13 }
 0x412   : > { %v3685_v37 = vld [vmem:[#allocation4 + $0x118] sm:$0xff]  ;;  %2224 = vst.msk [vmem:[#allocation4 + $0x160] sm:$0xff] %vm2081_vm12, %v6066_v4 }
 0x413   : > { %v2315_v44 = vpop.permute.xlu0 %2314  ;;  %v3731_v38 = vpack.c.bf16 %v3685_v37, %v3683_v47 }
 0x414   : > { %2403 = vst.msk [vmem:[#allocation4 + $0x80] sm:$0xff] %vm2394_vm14, %v2315_v44  ;;  %v2024_v15 = vpop.f32.mrf.mxu0  ;;  %v2039_v44 = vpop.f32.mrf.mxu3 }
 0x415   : > { %4435 = vmatmul.msk.bf16.gmra.mxu2 %vm2081_vm12, %v3731_v38  ;;  %v2025_v16 = vadd.f32 %v5746_v43, %v2024_v15  ;;  %v2040_v41 = vadd.f32 %v5746_v43, %v2039_v44  ;;  %v6105_v11 = vld [vmem:[#allocation2 + $0x152] sm:$0xff]  ;;  %v6107_v15 = vld [vmem:[#allocation2 + $0x15a] sm:$0xff] }
 0x416   : > { %3642 = vst.msk [vmem:[#allocation4 + $0x188] sm:$0xff] %vm2081_vm12, %v6105_v11 }
 0x417   : > { %v2071_v22 = vmax.f32 %v2025_v16, 0.0  ;;  %v2077_v2 = vmax.f32 %v2040_v41, 0.0  ;;  %3643 = vst.msk [vmem:[#allocation4 + $0x198] sm:$0xff] %vm2081_vm12, %v6107_v15  ;;  %v1868_v41 = vld [vmem:[#allocation3 + $0xf8] sm:$0xff] }
 0x418   : > { %v2257_v45 = vld [vmem:[#allocation2 + $0x111] sm:$0xff] }
 0x419   : > { %v6077_v24 = vld [vmem:[#allocation2 + $0x10a] sm:$0xff]  ;;  %v6079_v25 = vld [vmem:[#allocation2 + $0x112] sm:$0xff]  ;;  %2160 = vst.msk [vmem:[#allocation2 + $0x121] sm:$0xff] %vm2081_vm12, %v2071_v22  ;;  %2344 = vrot.lane.b32.xlu0 %v2257_v45, %s4516_s13 }
 0x41a   : > { %v6084_v29 = vld [vmem:[#allocation2 + $0x110] sm:$0xff]  ;;  %3636 = vst.msk [vmem:[#allocation4 + $0x128] sm:$0xff] %vm2081_vm12, %v6077_v24 }
 0x41b   : > { %v2317_v21 = vpop.permute.xlu1 %2316  ;;  %3637 = vst.msk [vmem:[#allocation4 + $0x138] sm:$0xff] %vm2081_vm12, %v6079_v25 }
 0x41c   : > { %2404 = vst.msk [vmem:[#allocation4 + $0x90] sm:$0xff] %vm2394_vm14, %v2317_v21  ;;  %v2026_v54 = vpop.f32.mrf.mxu0  ;;  %v2041_v12 = vpop.f32.mrf.mxu3 }
 0x41d   : > { %2225 = vst.msk [vmem:[#allocation4 + $0x170] sm:$0xff] %vm2081_vm12, %v6084_v29  ;;  %v2027_v49 = vadd.f32 %v5746_v43, %v2026_v54 }
 0x41e   : > { %2166 = vst.msk [vmem:[#allocation2 + $0x169] sm:$0xff] %vm2081_vm12, %v2077_v2 }
 0x41f   : > { %v2072_v37 = vmax.f32 %v2027_v49, 0.0  ;;  %v2042_v49 = vadd.f32 %v5746_v43, %v2041_v12 }
 0x420   : > { %v6095_v42 = vld [vmem:[#allocation2 + $0x121] sm:$0xff] }
 0x421   : > { %7054 = vst [vmem:[#allocation5_spill] sm:$0xff] %v6095_v42  ;;  %v6097_v32 = vld [vmem:[#allocation2 + $0x120] sm:$0xff]  ;;  %2346 = vrot.lane.b32.xlu1 %v6095_v42, %s4516_s13  ;;  %v3687_v38 = vld [vmem:[#allocation4 + $0x128] sm:$0xff] }
 0x422   : > { %2161 = vst.msk [vmem:[#allocation2 + $0x129] sm:$0xff] %vm2081_vm12, %v2072_v37  ;;  %v3689_v63 = vld [vmem:[#allocation4 + $0x138] sm:$0xff]  ;;  %v2078_v37 = vmax.f32 %v2042_v49, 0.0 }
 0x423   : > { %v2325_v47 = vpop.permute.xlu2 %2324  ;;  %2226 = vst.msk [vmem:[#allocation4 + $0x180] sm:$0xff] %vm2081_vm12, %v6097_v32  ;;  %v3733_v1 = vpack.c.bf16 %v3689_v63, %v3687_v38  ;;  %v1867_v38 = vld [vmem:[#allocation3 + $0xf0] sm:$0xff]  ;;  %v6135_v63 = vld [vmem:[#allocation2 + $0x150] sm:$0xff] }
 0x424   : > { %2408 = vst.msk [vmem:[#allocation4 + $0xd0] sm:$0xff] %vm2394_vm14, %v2325_v47  ;;  %v2029_v16 = vpop.f32.mrf.mxu0 }
 0x425   : > { %4436 = vmatmul.msk.bf16.gmra.mxu2 %vm2081_vm12, %v3733_v1  ;;  %v2030_v21 = vadd.f32 %v5746_v43, %v2029_v16  ;;  %7056 = vst [vmem:[#allocation7_spill] sm:$0xff] %v6135_v63  ;;  %v1884_v16 = vpack.c.bf16 %v1868_v41, %v1867_v38 }
 0x426   : > { %2167 = vst.msk [vmem:[#allocation2 + $0x171] sm:$0xff] %vm2081_vm12, %v2078_v37 }
 0x427   : > { %v2073_v45 = vmax.f32 %v2030_v21, 0.0  ;;  %v6139_v21 = vld [vmem:[#allocation2 + $0x158] sm:$0xff]  ;;  %4390 = vmatmul.msk.bf16.gmra.mxu3 %vm1904_vm11, %v1884_v16  ;;  %2230 = vst.msk [vmem:[#allocation4 + $0x1c0] sm:$0xff] %vm2081_vm12, %v6135_v63 }
 0x428   : > { %2231 = vst.msk [vmem:[#allocation4 + $0x1d0] sm:$0xff] %vm2081_vm12, %v6139_v21 }
 0x429   : > { %v6116_v58 = vld [vmem:[#allocation2 + $0x129] sm:$0xff]  ;;  %2162 = vst.msk [vmem:[#allocation2 + $0x139] sm:$0xff] %vm2081_vm12, %v2073_v45 }
 0x42a   : > { %7055 = vst [vmem:[#allocation6_spill] sm:$0xff] %v6116_v58  ;;  %v6119_v59 = vld [vmem:[#allocation2 + $0x122] sm:$0xff]  ;;  %v6121_v54 = vld [vmem:[#allocation2 + $0x12a] sm:$0xff]  ;;  %2348 = vrot.lane.b32.xlu2 %v6116_v58, %s4516_s13 }
 0x42b   : > { %v2321_v22 = vpop.permute.xlu0 %2320  ;;  %v6127_v47 = vld [vmem:[#allocation2 + $0x128] sm:$0xff]  ;;  %3638 = vst.msk [vmem:[#allocation4 + $0x148] sm:$0xff] %vm2081_vm12, %v6119_v59 }
 0x42c   : > { %2406 = vst.msk [vmem:[#allocation4 + $0xb0] sm:$0xff] %vm2394_vm14, %v2321_v22  ;;  %v2031_v44 = vpop.f32.mrf.mxu0  ;;  %v2262_v22 = vld [vmem:[#allocation2 + $0x151] sm:$0xff] }
 0x42d   : > { %3639 = vst.msk [vmem:[#allocation4 + $0x158] sm:$0xff] %vm2081_vm12, %v6121_v54  ;;  %v2032_v1 = vadd.f32 %v5746_v43, %v2031_v44  ;;  %v6157_v38 = vld [vmem:[#allocation2 + $0x16a] sm:$0xff]  ;;  %v6159_v41 = vld [vmem:[#allocation2 + $0x172] sm:$0xff] }
 0x42e   : > { %2227 = vst.msk [vmem:[#allocation4 + $0x190] sm:$0xff] %vm2081_vm12, %v6127_v47 }
 0x42f   : > { %v2074_v45 = vmax.f32 %v2032_v1, 0.0  ;;  %3644 = vst.msk [vmem:[#allocation4 + $0x1a8] sm:$0xff] %vm2081_vm12, %v6157_v38 }
 0x430   : > { %v6145_v12 = vld [vmem:[#allocation2 + $0x139] sm:$0xff]  ;;  %3645 = vst.msk [vmem:[#allocation4 + $0x1b8] sm:$0xff] %vm2081_vm12, %v6159_v41 }
 0x431   : > { %7057 = vst [vmem:[#allocation8_spill] sm:$0xff] %v6145_v12  ;;  %v6147_v49 = vld [vmem:[#allocation2 + $0x138] sm:$0xff]  ;;  %2350 = vrot.lane.b32.xlu0 %v6145_v12, %s4516_s13 }
 0x432   : > { %2163 = vst.msk [vmem:[#allocation2 + $0x141] sm:$0xff] %vm2081_vm12, %v2074_v45  ;;  %2354 = vrot.lane.b32.xlu2 %v2262_v22, %s4516_s13  ;;  %v3691_v43 = vld [vmem:[#allocation4 + $0x148] sm:$0xff] }
 0x433   : > { %v2323_v2 = vpop.permute.xlu1 %2322  ;;  %2228 = vst.msk [vmem:[#allocation4 + $0x1a0] sm:$0xff] %vm2081_vm12, %v6147_v49  ;;  %v6197_v12 = vld [vmem:[#allocation2 + $0x1a] sm:$0xff] }
 0x434   : > { %2407 = vst.msk [vmem:[#allocation4 + $0xc0] sm:$0xff] %vm2394_vm14, %v2323_v2  ;;  %v3693_v37 = vld [vmem:[#allocation4 + $0x158] sm:$0xff]  ;;  %v2265_v2 = vld [vmem:[#allocation2 + $0x171] sm:$0xff] }
 0x435   : > { %v3735_v44 = vpack.c.bf16 %v3693_v37, %v3691_v43  ;;  %v6176_v43 = vld [vmem:[#allocation2 + $0x159] sm:$0xff]  ;;  %7061 = vst [vmem:[#allocation12_spill] sm:$0xff] %v6197_v12 }
 0x436   : > { %7059 = vst [vmem:[#allocation10_spill] sm:$0xff] %v6176_v43 }
 0x437   : > { %4437 = vmatmul.msk.bf16.gmra.mxu2 %vm2081_vm12, %v3735_v44  ;;  %v6186_v44 = vld [vmem:[#allocation2 + $0x170] sm:$0xff] }
 0x438   : > { %7060 = vst [vmem:[#allocation11_spill] sm:$0xff] %v6186_v44 }
 0x439   : > { %v6167_v16 = vld [vmem:[#allocation2 + $0x141] sm:$0xff]  ;;  %2356 = vrot.lane.b32.xlu0 %v6176_v43, %s4516_s13  ;;  %2233 = vst.msk [vmem:[#allocation4 + $0x1f0] sm:$0xff] %vm2081_vm12, %v6186_v44 }
 0x43a   : > { %7058 = vst [vmem:[#allocation9_spill] sm:$0xff] %v6167_v16  ;;  %v6169_v22 = vld [vmem:[#allocation2 + $0x13a] sm:$0xff]  ;;  %v6171_v45 = vld [vmem:[#allocation2 + $0x142] sm:$0xff]  ;;  %2360 = vrot.lane.b32.xlu2 %v2265_v2, %s4516_s13  ;;  %2352 = vrot.lane.b32.xlu1 %v6167_v16, %s4516_s13 }
 0x43b   : > { %v2331_v1 = vpop.permute.xlu2 %2330  ;;  %3640 = vst.msk [vmem:[#allocation4 + $0x168] sm:$0xff] %vm2081_vm12, %v6169_v22  ;;  %v6180_v37 = vld [vmem:[#allocation2 + $0x140] sm:$0xff]  ;;  %v2264_v16 = vld [vmem:[#allocation2 + $0x169] sm:$0xff] }
 0x43c   : > { %2411 = vst.msk [vmem:[#allocation4 + $0x100] sm:$0xff] %vm2394_vm14, %v2331_v1  ;;  %v6190_v1 = vld [vmem:[#allocation2 + $0x168] sm:$0xff] }
 0x43d   : > { %3641 = vst.msk [vmem:[#allocation4 + $0x178] sm:$0xff] %vm2081_vm12, %v6171_v45  ;;  %v2427_v43 = vld [vmem:[#allocation2 + $0x2] sm:$0xff] }
 0x43e   : > { %2229 = vst.msk [vmem:[#allocation4 + $0x1b0] sm:$0xff] %vm2081_vm12, %v6180_v37 }
 0x43f   : > { %2232 = vst.msk [vmem:[#allocation4 + $0x1e0] sm:$0xff] %vm2081_vm12, %v6190_v1 }
 0x441   : > { %2491 = vrot.lane.b32.xlu0 %v2427_v43, %s4517_s20 }
 0x442   : > { %v3695_v58 = vld [vmem:[#allocation4 + $0x168] sm:$0xff]  ;;  %2358 = vrot.lane.b32.xlu1 %v2264_v16, %s4516_s13  ;;  %2495 = vrot.lane.b32.xlu2 %v6197_v12, %s4517_s20  ;;  %v6208_v16 = vld [vmem:[#allocation2 + $0x22] sm:$0xff]  ;;  %v6212_v12 = vpop.f32.mrf.mxu2 }
 0x443   : > { %v2327_v2 = vpop.permute.xlu0 %2326 }
 0x444   : > { %2409 = vst.msk [vmem:[#allocation4 + $0xe0] sm:$0xff] %vm2394_vm14, %v2327_v2  ;;  %v3697_v42 = vld [vmem:[#allocation4 + $0x178] sm:$0xff] }
 0x445   : > { %v3737_v44 = vpack.c.bf16 %v3697_v42, %v3695_v58  ;;  %v2428_v2 = vld [vmem:[#allocation2 + $0xa] sm:$0xff]  ;;  %v3699_v42 = vld [vmem:[#allocation4 + $0x188] sm:$0xff] }
 0x446   : > { %v3701_v58 = vld [vmem:[#allocation4 + $0x198] sm:$0xff] }
 0x447   : > { %4438 = vmatmul.msk.bf16.gmra.mxu2 %vm2081_vm12, %v3737_v44 }
 0x449   : > { %2497 = vrot.lane.b32.xlu0 %v6208_v16, %s4517_s20 }
 0x44a   : > { %2493 = vrot.lane.b32.xlu1 %v2428_v2, %s4517_s20  ;;  %2501 = vrot.lane.b32.xlu2 %v5837_v27, %s4517_s20  ;;  %v3739_v27 = vpack.c.bf16 %v3701_v58, %v3699_v42  ;;  %v6221_v44 = vpop.f32.mrf.mxu2  ;;  %v7062_v2 = vld [vmem:[#allocation7_spill] sm:$0xff] }
 0x44b   : > { %v2329_v63 = vpop.permute.xlu1 %2328 }
 0x44c   : > { %2410 = vst.msk [vmem:[#allocation4 + $0xf0] sm:$0xff] %vm2394_vm14, %v2329_v63 }
 0x451   : > { %2503 = vrot.lane.b32.xlu0 %v5873_v62, %s4517_s20 }
 0x452   : > { %2499 = vrot.lane.b32.xlu1 %v5835_v34, %s4517_s20  ;;  %2507 = vrot.lane.b32.xlu2 %v5898_v13, %s4517_s20 }
 0x453   : > { %v2337_v43 = vpop.permute.xlu2 %2336 }
 0x454   : > { %2414 = vst.msk [vmem:[#allocation4 + $0x130] sm:$0xff] %vm2394_vm14, %v2337_v43 }
 0x457   : > { %4439 = vmatmul.msk.bf16.gmra.mxu2 %vm2081_vm12, %v3739_v27 }
 0x459   : > { %2509 = vrot.lane.b32.xlu0 %v5900_v14, %s4517_s20 }
 0x45a   : > { %2505 = vrot.lane.b32.xlu1 %v5875_v51, %s4517_s20  ;;  %2513 = vrot.lane.b32.xlu2 %v5926_v28, %s4517_s20 }
 0x45b   : > { %v2333_v63 = vpop.permute.xlu0 %2332 }
 0x45c   : > { %2412 = vst.msk [vmem:[#allocation4 + $0x110] sm:$0xff] %vm2394_vm14, %v2333_v63 }
 0x461   : > { %2515 = vrot.lane.b32.xlu0 %v5950_v35, %s4517_s20 }
 0x462   : > { %2511 = vrot.lane.b32.xlu1 %v5924_v6, %s4517_s20  ;;  %2519 = vrot.lane.b32.xlu2 %v5974_v18, %s4517_s20 }
 0x463   : > { %v2335_v34 = vpop.permute.xlu1 %2334 }
 0x464   : > { %2413 = vst.msk [vmem:[#allocation4 + $0x120] sm:$0xff] %vm2394_vm14, %v2335_v34  ;;  %v2814_v34 = vld [vmem:[#allocation2 + $0x21] sm:$0xff] }
 0x469   : > { %2521 = vrot.lane.b32.xlu0 %v5976_v19, %s4517_s20 }
 0x46a   : > { %2517 = vrot.lane.b32.xlu1 %v5952_v40, %s4517_s20  ;;  %2525 = vrot.lane.b32.xlu2 %v6001_v60, %s4517_s20 }
 0x46b   : > { %v2343_v62 = vpop.permute.xlu2 %2342 }
 0x46c   : > { %2417 = vst.msk [vmem:[#allocation4 + $0x160] sm:$0xff] %vm2394_vm14, %v2343_v62  ;;  %v7063_v62 = vld [vmem:[#allocation11_spill] sm:$0xff] }
 0x471   : > { %2527 = vrot.lane.b32.xlu0 %v6024_v7, %s4517_s20 }
 0x472   : > { %2523 = vrot.lane.b32.xlu1 %v5999_v31, %s4517_s20  ;;  %2531 = vrot.lane.b32.xlu2 %v6048_v26, %s4517_s20 }
 0x473   : > { %v2339_v51 = vpop.permute.xlu0 %2338 }
 0x474   : > { %2415 = vst.msk [vmem:[#allocation4 + $0x140] sm:$0xff] %vm2394_vm14, %v2339_v51 }
 0x479   : > { %2533 = vrot.lane.b32.xlu0 %v6050_v61, %s4517_s20 }
 0x47a   : > { %2529 = vrot.lane.b32.xlu1 %v6026_v9, %s4517_s20  ;;  %2537 = vrot.lane.b32.xlu2 %v6079_v25, %s4517_s20  ;;  %v4496_v9 = vld [vmem:[%s6951_s2] ss:$0 sm:$0xff] }
 0x47b   : > { %v2341_v13 = vpop.permute.xlu1 %2340 }
 0x47c   : > { %2416 = vst.msk [vmem:[#allocation4 + $0x150] sm:$0xff] %vm2394_vm14, %v2341_v13 }
 0x481   : > { %2539 = vrot.lane.b32.xlu0 %v6119_v59, %s4517_s20 }
 0x482   : > { %2535 = vrot.lane.b32.xlu1 %v6077_v24, %s4517_s20  ;;  %2543 = vrot.lane.b32.xlu2 %v6169_v22, %s4517_s20 }
 0x484   : > { %v2349_v14 = vpop.permute.xlu2 %2348 }
 0x485   : > { %2420 = vst.msk [vmem:[#allocation4 + $0x190] sm:$0xff] %vm2394_vm14, %v2349_v14 }
 0x489   : > { %2545 = vrot.lane.b32.xlu0 %v6171_v45, %s4517_s20 }
 0x48a   : > { %2541 = vrot.lane.b32.xlu1 %v6121_v54, %s4517_s20  ;;  %2549 = vrot.lane.b32.xlu2 %v6107_v15, %s4517_s20 }
 0x48b   : > { %v2345_v28 = vpop.permute.xlu0 %2344 }
 0x48c   : > { %v2355_v6 = vpop.permute.xlu2 %2354  ;;  %2418 = vst.msk [vmem:[#allocation4 + $0x170] sm:$0xff] %vm2394_vm14, %v2345_v28  ;;  %v6394_v28 = vld [vmem:[#allocation2 + $0x49] sm:$0xff] }
 0x48d   : > { %2423 = vst.msk [vmem:[#allocation4 + $0x1c0] sm:$0xff] %vm2394_vm14, %v2355_v6  ;;  %v2813_v6 = vld [vmem:[#allocation2 + $0x19] sm:$0xff] }
 0x491   : > { %2551 = vrot.lane.b32.xlu0 %v6157_v38, %s4517_s20 }
 0x492   : > { %2547 = vrot.lane.b32.xlu1 %v6105_v11, %s4517_s20  ;;  %2684 = vrot.lane.b32.xlu2 %v5850_v53, %s4518_s21 }
 0x493   : > { %v2347_v40 = vpop.permute.xlu1 %2346 }
 0x494   : > { %v2361_v35 = vpop.permute.xlu2 %2360  ;;  %2419 = vst.msk [vmem:[#allocation4 + $0x180] sm:$0xff] %vm2394_vm14, %v2347_v40 }
 0x495   : > { %2426 = vst.msk [vmem:[#allocation4 + $0x1f0] sm:$0xff] %vm2394_vm14, %v2361_v35  ;;  %v2815_v35 = vld [vmem:[#allocation2 + $0x31] sm:$0xff] }
 0x499   : > { %2686 = vrot.lane.b32.xlu0 %v5854_v0, %s4518_s21 }
 0x49a   : > { %2553 = vrot.lane.b32.xlu1 %v6159_v41, %s4517_s20  ;;  %2690 = vrot.lane.b32.xlu2 %v5858_v3, %s4518_s21 }
 0x49c   : > { %v2496_v53 = vpop.permute.xlu2 %2495 }
 0x49d   : > { %2590 = vst.msk [vmem:[#allocation4 + $0x20] sm:$0xff] %vm2587_vm15, %v2496_v53 }
 0x4a1   : > { %2692 = vrot.lane.b32.xlu0 %v5862_v55, %s4518_s21 }
 0x4a2   : > { %2688 = vrot.lane.b32.xlu1 %v5847_v30, %s4518_s21  ;;  %2696 = vrot.lane.b32.xlu2 %v5891_v5, %s4518_s21 }
 0x4a3   : > { %v2351_v19 = vpop.permute.xlu0 %2350 }
 0x4a4   : > { %v2502_v18 = vpop.permute.xlu2 %2501  ;;  %2421 = vst.msk [vmem:[#allocation4 + $0x1a0] sm:$0xff] %vm2394_vm14, %v2351_v19  ;;  %v2816_v19 = vld [vmem:[#allocation2 + $0x39] sm:$0xff] }
 0x4a5   : > { %2593 = vst.msk [vmem:[#allocation4 + $0x50] sm:$0xff] %vm2587_vm15, %v2502_v18 }
 0x4a9   : > { %2698 = vrot.lane.b32.xlu0 %v5906_v17, %s4518_s21 }
 0x4aa   : > { %2694 = vrot.lane.b32.xlu1 %v5881_v57, %s4518_s21  ;;  %2702 = vrot.lane.b32.xlu2 %v5932_v39, %s4518_s21  ;;  %v2044_v57 = vpop.f32.mrf.mxu3 }
 0x4ab   : > { %v2357_v31 = vpop.permute.xlu0 %2356  ;;  %v2045_v26 = vadd.f32 %v4496_v9, %v2044_v57 }
 0x4ac   : > { %v2353_v30 = vpop.permute.xlu1 %2352  ;;  %v2508_v0 = vpop.permute.xlu2 %2507  ;;  %2424 = vst.msk [vmem:[#allocation4 + $0x1d0] sm:$0xff] %vm2394_vm14, %v2357_v31 }
 0x4ad   : > { %2422 = vst.msk [vmem:[#allocation4 + $0x1b0] sm:$0xff] %vm2394_vm14, %v2353_v30  ;;  %v6403_v30 = vld [vmem:[#allocation2 + $0x69] sm:$0xff] }
 0x4ae   : > { %2596 = vst.msk [vmem:[#allocation4 + $0x80] sm:$0xff] %vm2587_vm15, %v2508_v0  ;;  %v2818_v0 = vld [vmem:[#allocation2 + $0x51] sm:$0xff] }
 0x4b1   : > { %2704 = vrot.lane.b32.xlu0 %v5942_v48, %s4518_s21 }
 0x4b2   : > { %2700 = vrot.lane.b32.xlu1 %v5918_v52, %s4518_s21  ;;  %2708 = vrot.lane.b32.xlu2 %v5967_v8, %s4518_s21  ;;  %v2079_v52 = vmax.f32 %v2045_v26, 0.0  ;;  %v2046_v48 = vpop.f32.mrf.mxu3  ;;  %v6420_v26 = vld [vmem:[#allocation2 + $0x79] sm:$0xff] }
 0x4b3   : > { %v2492_v61 = vpop.permute.xlu0 %2491  ;;  %v2047_v25 = vadd.f32 %v4496_v9, %v2046_v48  ;;  %v6414_v9 = vld [vmem:[#allocation2 + $0x91] sm:$0xff] }
 0x4b4   : > { %v2359_v60 = vpop.permute.xlu1 %2358  ;;  %v2514_v7 = vpop.permute.xlu2 %2513  ;;  %2588 = vst.msk [vmem:[#allocation4] sm:$0xff] %vm2587_vm15, %v2492_v61 }
 0x4b5   : > { %2425 = vst.msk [vmem:[#allocation4 + $0x1e0] sm:$0xff] %vm2394_vm14, %v2359_v60  ;;  %v2080_v15 = vmax.f32 %v2047_v25, 0.0  ;;  %v7064_v25 = vld [vmem:[#allocation12_spill] sm:$0xff] }
 0x4b6   : > { %2599 = vst.msk [vmem:[#allocation4 + $0xb0] sm:$0xff] %vm2587_vm15, %v2514_v7  ;;  %v6412_v7 = vld [vmem:[#allocation2 + $0x61] sm:$0xff] }
 0x4b7   : > { %2168 = vst.msk [vmem:[#allocation2 + $0x181] sm:$0xff] %vm2081_vm12, %v2079_v52 }
 0x4b8   : > { %2169 = vst.msk [vmem:[#allocation2 + $0x189] sm:$0xff] %vm2081_vm12, %v2080_v15 }
 0x4b9   : > { %2710 = vrot.lane.b32.xlu0 %v5982_v20, %s4518_s21 }
 0x4ba   : > { %2706 = vrot.lane.b32.xlu1 %v5958_v50, %s4518_s21  ;;  %2714 = vrot.lane.b32.xlu2 %v6007_v56, %s4518_s21 }
 0x4bb   : > { %v2498_v11 = vpop.permute.xlu0 %2497 }
 0x4bc   : > { %v2494_v8 = vpop.permute.xlu1 %2493  ;;  %v2520_v24 = vpop.permute.xlu2 %2519  ;;  %2591 = vst.msk [vmem:[#allocation4 + $0x30] sm:$0xff] %vm2587_vm15, %v2498_v11 }
 0x4bd   : > { %2589 = vst.msk [vmem:[#allocation4 + $0x10] sm:$0xff] %vm2587_vm15, %v2494_v8  ;;  %v6427_v8 = vld [vmem:[#allocation2 + $0x81] sm:$0xff] }
 0x4be   : > { %2602 = vst.msk [vmem:[#allocation4 + $0xe0] sm:$0xff] %vm2587_vm15, %v2520_v24  ;;  %v6365_v41 = vld [vmem:[#allocation2 + $0x180] sm:$0xff]  ;;  %v3200_v24 = vld [vmem:[#allocation2 + $0x30] sm:$0xff] }
 0x4bf   : > { %v6378_v27 = vld [vmem:[#allocation2 + $0x182] sm:$0xff] }
 0x4c0   : > { %v6382_v63 = vld [vmem:[#allocation2 + $0x188] sm:$0xff]  ;;  %3646 = vst.msk [vmem:[#allocation4 + $0x1c8] sm:$0xff] %vm2081_vm12, %v6378_v27 }
 0x4c1   : > { %2716 = vrot.lane.b32.xlu0 %v6017_v36, %s4518_s21 }
 0x4c2   : > { %2712 = vrot.lane.b32.xlu1 %v5991_v33, %s4518_s21  ;;  %2720 = vrot.lane.b32.xlu2 %v6042_v23, %s4518_s21 }
 0x4c3   : > { %v2504_v56 = vpop.permute.xlu0 %2503 }
 0x4c4   : > { %v2500_v50 = vpop.permute.xlu1 %2499  ;;  %v2526_v20 = vpop.permute.xlu2 %2525  ;;  %2594 = vst.msk [vmem:[#allocation4 + $0x60] sm:$0xff] %vm2587_vm15, %v2504_v56 }
 0x4c5   : > { %2592 = vst.msk [vmem:[#allocation4 + $0x40] sm:$0xff] %vm2587_vm15, %v2500_v50 }
 0x4c6   : > { %2605 = vst.msk [vmem:[#allocation4 + $0x110] sm:$0xff] %vm2587_vm15, %v2526_v20 }
 0x4c9   : > { %2722 = vrot.lane.b32.xlu0 %v6055_v46, %s4518_s21 }
 0x4ca   : > { %2718 = vrot.lane.b32.xlu1 %v6032_v10, %s4518_s21  ;;  %2726 = vrot.lane.b32.xlu2 %v6084_v29, %s4518_s21 }
 0x4cb   : > { %v2510_v23 = vpop.permute.xlu0 %2509 }
 0x4cc   : > { %v2506_v33 = vpop.permute.xlu1 %2505  ;;  %v2532_v36 = vpop.permute.xlu2 %2531  ;;  %2597 = vst.msk [vmem:[#allocation4 + $0x90] sm:$0xff] %vm2587_vm15, %v2510_v23 }
 0x4cd   : > { %2595 = vst.msk [vmem:[#allocation4 + $0x70] sm:$0xff] %vm2587_vm15, %v2506_v33 }
 0x4ce   : > { %2608 = vst.msk [vmem:[#allocation4 + $0x140] sm:$0xff] %vm2587_vm15, %v2532_v36 }
 0x4d1   : > { %2728 = vrot.lane.b32.xlu0 %v6097_v32, %s4518_s21 }
 0x4d2   : > { %2724 = vrot.lane.b32.xlu1 %v6066_v4, %s4518_s21  ;;  %2732 = vrot.lane.b32.xlu2 %v6147_v49, %s4518_s21 }
 0x4d3   : > { %v2516_v29 = vpop.permute.xlu0 %2515 }
 0x4d4   : > { %v2512_v10 = vpop.permute.xlu1 %2511  ;;  %v2538_v46 = vpop.permute.xlu2 %2537  ;;  %2600 = vst.msk [vmem:[#allocation4 + $0xc0] sm:$0xff] %vm2587_vm15, %v2516_v29 }
 0x4d5   : > { %2598 = vst.msk [vmem:[#allocation4 + $0xa0] sm:$0xff] %vm2587_vm15, %v2512_v10  ;;  %v3009_v10 = vld [vmem:[#allocation2 + $0x3a] sm:$0xff] }
 0x4d6   : > { %2611 = vst.msk [vmem:[#allocation4 + $0x170] sm:$0xff] %vm2587_vm15, %v2538_v46  ;;  %v3203_v46 = vld [vmem:[#allocation2 + $0x50] sm:$0xff] }
 0x4d9   : > { %2734 = vrot.lane.b32.xlu0 %v6180_v37, %s4518_s21 }
 0x4da   : > { %2730 = vrot.lane.b32.xlu1 %v6127_v47, %s4518_s21  ;;  %2738 = vrot.lane.b32.xlu2 %v6139_v21, %s4518_s21  ;;  %v6373_v47 = vld [vmem:[#allocation2 + $0x18a] sm:$0xff] }
 0x4db   : > { %v2522_v38 = vpop.permute.xlu0 %2521  ;;  %3647 = vst.msk [vmem:[#allocation4 + $0x1d8] sm:$0xff] %vm2081_vm12, %v6373_v47 }
 0x4dc   : > { %v2518_v4 = vpop.permute.xlu1 %2517  ;;  %v2544_v32 = vpop.permute.xlu2 %2543  ;;  %2603 = vst.msk [vmem:[#allocation4 + $0xf0] sm:$0xff] %vm2587_vm15, %v2522_v38 }
 0x4dd   : > { %2601 = vst.msk [vmem:[#allocation4 + $0xd0] sm:$0xff] %vm2587_vm15, %v2518_v4 }
 0x4de   : > { %2614 = vst.msk [vmem:[#allocation4 + $0x1a0] sm:$0xff] %vm2587_vm15, %v2544_v32  ;;  %v3010_v32 = vld [vmem:[#allocation2 + $0x4a] sm:$0xff] }
 0x4e1   : > { %2740 = vrot.lane.b32.xlu0 %v6190_v1, %s4518_s21 }
 0x4e2   : > { %2736 = vrot.lane.b32.xlu1 %v7062_v2, %s4518_s21  ;;  %2744 = vrot.lane.b32.xlu2 %v6365_v41, %s4518_s21 }
 0x4e3   : > { %v2528_v58 = vpop.permute.xlu0 %2527 }
 0x4e4   : > { %v2524_v43 = vpop.permute.xlu1 %2523  ;;  %v2550_v42 = vpop.permute.xlu2 %2549  ;;  %2606 = vst.msk [vmem:[#allocation4 + $0x120] sm:$0xff] %vm2587_vm15, %v2528_v58  ;;  %v3011_v58 = vld [vmem:[#allocation2 + $0x52] sm:$0xff] }
 0x4e5   : > { %2604 = vst.msk [vmem:[#allocation4 + $0x100] sm:$0xff] %vm2587_vm15, %v2524_v43 }
 0x4e6   : > { %2617 = vst.msk [vmem:[#allocation4 + $0x1d0] sm:$0xff] %vm2587_vm15, %v2550_v42 }
 0x4e9   : > { %2746 = vrot.lane.b32.xlu0 %v6382_v63, %s4518_s21 }
 0x4ea   : > { %2742 = vrot.lane.b32.xlu1 %v7063_v62, %s4518_s21  ;;  %2879 = vrot.lane.b32.xlu2 %v2814_v34, %s4519_s24 }
 0x4eb   : > { %v2534_v14 = vpop.permute.xlu0 %2533 }
 0x4ec   : > { %v2530_v51 = vpop.permute.xlu1 %2529  ;;  %v2685_v13 = vpop.permute.xlu2 %2684  ;;  %2609 = vst.msk [vmem:[#allocation4 + $0x150] sm:$0xff] %vm2587_vm15, %v2534_v14 }
 0x4ed   : > { %2607 = vst.msk [vmem:[#allocation4 + $0x130] sm:$0xff] %vm2587_vm15, %v2530_v51 }
 0x4ee   : > { %2781 = vst.msk [vmem:[#allocation4] sm:$0xff] %vm2780_vm0, %v2685_v13  ;;  %v7065_v13 = vld [vmem:[#allocation5_spill] sm:$0xff] }
 0x4f1   : > { %2881 = vrot.lane.b32.xlu0 %v2815_v35, %s4519_s24 }
 0x4f2   : > { %2877 = vrot.lane.b32.xlu1 %v2813_v6, %s4519_s24  ;;  %2885 = vrot.lane.b32.xlu2 %v6394_v28, %s4519_s24 }
 0x4f3   : > { %v2540_v18 = vpop.permute.xlu0 %2539 }
 0x4f4   : > { %v2536_v40 = vpop.permute.xlu1 %2535  ;;  %v2691_v53 = vpop.permute.xlu2 %2690  ;;  %2612 = vst.msk [vmem:[#allocation4 + $0x180] sm:$0xff] %vm2587_vm15, %v2540_v18 }
 0x4f5   : > { %2610 = vst.msk [vmem:[#allocation4 + $0x160] sm:$0xff] %vm2587_vm15, %v2536_v40 }
 0x4f6   : > { %2784 = vst.msk [vmem:[#allocation4 + $0x30] sm:$0xff] %vm2780_vm0, %v2691_v53  ;;  %v3012_v53 = vld [vmem:[#allocation2 + $0x62] sm:$0xff] }
 0x4f9   : > { %2887 = vrot.lane.b32.xlu0 %v2818_v0, %s4519_s24 }
 0x4fa   : > { %2883 = vrot.lane.b32.xlu1 %v2816_v19, %s4519_s24  ;;  %2891 = vrot.lane.b32.xlu2 %v6403_v30, %s4519_s24 }
 0x4fb   : > { %v2546_v60 = vpop.permute.xlu0 %2545 }
 0x4fc   : > { %v2542_v31 = vpop.permute.xlu1 %2541  ;;  %v2697_v57 = vpop.permute.xlu2 %2696  ;;  %2615 = vst.msk [vmem:[#allocation4 + $0x1b0] sm:$0xff] %vm2587_vm15, %v2546_v60  ;;  %v4455_v60 = vld [vmem:[%s6952_s3 + $0x38] sm:$0xff] }
 0x4fd   : > { %2613 = vst.msk [vmem:[#allocation4 + $0x190] sm:$0xff] %vm2587_vm15, %v2542_v31  ;;  %3870 = vmatpush.bf16.msra.mxu1 %v4455_v60  ;;  %4459 = vmatpush.bf16.msrb.mxu3 %v4455_v60  ;;  %v3210_v60 = vld [vmem:[#allocation2 + $0xa8] sm:$0xff] }
 0x4fe   : > { %2787 = vst.msk [vmem:[#allocation4 + $0x60] sm:$0xff] %vm2780_vm0, %v2697_v57 }
 0x501   : > { %2893 = vrot.lane.b32.xlu0 %v6420_v26, %s4519_s24 }
 0x502   : > { %2889 = vrot.lane.b32.xlu1 %v6412_v7, %s4519_s24  ;;  %2897 = vrot.lane.b32.xlu2 %v6414_v9, %s4519_s24 }
 0x503   : > { %v2552_v48 = vpop.permute.xlu0 %2551 }
 0x504   : > { %v2548_v61 = vpop.permute.xlu1 %2547  ;;  %v2703_v52 = vpop.permute.xlu2 %2702  ;;  %2618 = vst.msk [vmem:[#allocation4 + $0x1e0] sm:$0xff] %vm2587_vm15, %v2552_v48 }
 0x505   : > { %2616 = vst.msk [vmem:[#allocation4 + $0x1c0] sm:$0xff] %vm2587_vm15, %v2548_v61 }
 0x506   : > { %2790 = vst.msk [vmem:[#allocation4 + $0x90] sm:$0xff] %vm2780_vm0, %v2703_v52 }
 0x509   : > { %3070 = vrot.lane.b32.xlu0 %v7064_v25, %s4521_s26 }
 0x50a   : > { %2895 = vrot.lane.b32.xlu1 %v6427_v8, %s4519_s24  ;;  %3264 = vrot.lane.b32.xlu2 %v3200_v24, %s4520_s25  ;;  %v4453_v24 = vld [vmem:[%s6952_s3 + $0x28] sm:$0xff] }
 0x50b   : > { %v2687_v50 = vpop.permute.xlu0 %2686 }
 0x50c   : > { %v2554_v11 = vpop.permute.xlu1 %2553  ;;  %v2709_v15 = vpop.permute.xlu2 %2708  ;;  %2782 = vst.msk [vmem:[#allocation4 + $0x10] sm:$0xff] %vm2780_vm0, %v2687_v50  ;;  %v4450_v50 = vld [vmem:[%s6952_s3 + $0x10] sm:$0xff] }
 0x50d   : > { %2619 = vst.msk [vmem:[#allocation4 + $0x1f0] sm:$0xff] %vm2587_vm15, %v2554_v11 }
 0x50e   : > { %2793 = vst.msk [vmem:[#allocation4 + $0xc0] sm:$0xff] %vm2780_vm0, %v2709_v15 }
 0x511   : > { %3266 = vrot.lane.b32.xlu0 %v5858_v3, %s4520_s25 }
 0x512   : > { %3072 = vrot.lane.b32.xlu1 %v6208_v16, %s4521_s26  ;;  %3459 = vrot.lane.b32.xlu2 %v2816_v19, %s4522_s27  ;;  %v3008_v16 = vld [vmem:[#allocation2 + $0x32] sm:$0xff] }
 0x513   : > { %v2693_v33 = vpop.permute.xlu0 %2692 }
 0x514   : > { %v2689_v20 = vpop.permute.xlu1 %2688  ;;  %v2715_v56 = vpop.permute.xlu2 %2714  ;;  %2785 = vst.msk [vmem:[#allocation4 + $0x40] sm:$0xff] %vm2780_vm0, %v2693_v33 }
 0x515   : > { %2783 = vst.msk [vmem:[#allocation4 + $0x20] sm:$0xff] %vm2780_vm0, %v2689_v20 }
 0x516   : > { %2796 = vst.msk [vmem:[#allocation4 + $0xf0] sm:$0xff] %vm2780_vm0, %v2715_v56 }
 0x519   : > { %3074 = vrot.lane.b32.xlu0 %v3008_v16, %s4521_s26  ;;  %v3015_v16 = vld [vmem:[#allocation2 + $0x82] sm:$0xff] }
 0x51a   : > { %3457 = vrot.lane.b32.xlu1 %v2815_v35, %s4522_s27  ;;  %3268 = vrot.lane.b32.xlu2 %v5862_v55, %s4520_s25 }
 0x51b   : > { %v2699_v3 = vpop.permute.xlu0 %2698 }
 0x51c   : > { %v2695_v36 = vpop.permute.xlu1 %2694  ;;  %v2721_v23 = vpop.permute.xlu2 %2720  ;;  %2788 = vst.msk [vmem:[#allocation4 + $0x70] sm:$0xff] %vm2780_vm0, %v2699_v3 }
 0x51d   : > { %2786 = vst.msk [vmem:[#allocation4 + $0x50] sm:$0xff] %vm2780_vm0, %v2695_v36  ;;  %v4448_v36 = vld [vmem:[%s6952_s3] sm:$0xff] }
 0x51e   : > { %2799 = vst.msk [vmem:[#allocation4 + $0x120] sm:$0xff] %vm2780_vm0, %v2721_v23 }
 0x521   : > { %3270 = vrot.lane.b32.xlu0 %v3203_v46, %s4520_s25  ;;  %v3014_v46 = vld [vmem:[#allocation2 + $0x7a] sm:$0xff] }
 0x522   : > { %3076 = vrot.lane.b32.xlu1 %v3009_v10, %s4521_s26  ;;  %3463 = vrot.lane.b32.xlu2 %v2818_v0, %s4522_s27 }
 0x523   : > { %v2705_v4 = vpop.permute.xlu0 %2704 }
 0x524   : > { %v2701_v55 = vpop.permute.xlu1 %2700  ;;  %v2727_v29 = vpop.permute.xlu2 %2726  ;;  %2791 = vst.msk [vmem:[#allocation4 + $0xa0] sm:$0xff] %vm2780_vm0, %v2705_v4 }
 0x525   : > { %2789 = vst.msk [vmem:[#allocation4 + $0x80] sm:$0xff] %vm2780_vm0, %v2701_v55  ;;  %v3208_v55 = vld [vmem:[#allocation2 + $0x90] sm:$0xff] }
 0x526   : > { %2802 = vst.msk [vmem:[#allocation4 + $0x150] sm:$0xff] %vm2780_vm0, %v2727_v29 }
 0x529   : > { %3078 = vrot.lane.b32.xlu0 %v3010_v32, %s4521_s26 }
 0x52a   : > { %3461 = vrot.lane.b32.xlu1 %v6394_v28, %s4522_s27  ;;  %3272 = vrot.lane.b32.xlu2 %v5891_v5, %s4520_s25  ;;  %v7066_v28 = vld [vmem:[#allocation6_spill] sm:$0xff] }
 0x52b   : > { %v2711_v42 = vpop.permute.xlu0 %2710 }
 0x52c   : > { %v2707_v38 = vpop.permute.xlu1 %2706  ;;  %v2733_v43 = vpop.permute.xlu2 %2732  ;;  %2794 = vst.msk [vmem:[#allocation4 + $0xd0] sm:$0xff] %vm2780_vm0, %v2711_v42 }
 0x52d   : > { %2792 = vst.msk [vmem:[#allocation4 + $0xb0] sm:$0xff] %vm2780_vm0, %v2707_v38  ;;  %v3209_v38 = vld [vmem:[#allocation2 + $0x98] sm:$0xff] }
 0x52e   : > { %2805 = vst.msk [vmem:[#allocation4 + $0x180] sm:$0xff] %vm2780_vm0, %v2733_v43  ;;  %v2840_v43 = vld [vmem:[#allocation2 + $0x159] sm:$0xff] }
 0x531   : > { %3274 = vrot.lane.b32.xlu0 %v5906_v17, %s4520_s25 }
 0x532   : > { %3080 = vrot.lane.b32.xlu1 %v3011_v58, %s4521_s26  ;;  %3467 = vrot.lane.b32.xlu2 %v6403_v30, %s4522_s27  ;;  %v7068_v30 = vld [vmem:[#allocation9_spill] sm:$0xff] }
 0x533   : > { %v2717_v51 = vpop.permute.xlu0 %2716 }
 0x534   : > { %v2713_v5 = vpop.permute.xlu1 %2712  ;;  %v2739_v34 = vpop.permute.xlu2 %2738  ;;  %2797 = vst.msk [vmem:[#allocation4 + $0x100] sm:$0xff] %vm2780_vm0, %v2717_v51  ;;  %v3032_v51 = vld [vmem:[#allocation2 + $0x152] sm:$0xff] }
 0x535   : > { %2795 = vst.msk [vmem:[#allocation4 + $0xe0] sm:$0xff] %vm2780_vm0, %v2713_v5  ;;  %v6575_v5 = vpop.f32.mrf.mxu2 }
 0x536   : > { %2808 = vst.msk [vmem:[#allocation4 + $0x1b0] sm:$0xff] %vm2780_vm0, %v2739_v34 }
 0x539   : > { %2921 = vrot.lane.b32.xlu0 %v7065_v13, %s4519_s24 }
 0x53a   : > { %3465 = vrot.lane.b32.xlu1 %v6412_v7, %s4522_s27  ;;  %3114 = vrot.lane.b32.xlu2 %v6119_v59, %s4521_s26  ;;  %v3206_v7 = vld [vmem:[#allocation2 + $0x78] sm:$0xff] }
 0x53b   : > { %v2723_v6 = vpop.permute.xlu0 %2722 }
 0x53c   : > { %v2719_v14 = vpop.permute.xlu1 %2718  ;;  %v2745_v17 = vpop.permute.xlu2 %2744  ;;  %2800 = vst.msk [vmem:[#allocation4 + $0x130] sm:$0xff] %vm2780_vm0, %v2723_v6 }
 0x53d   : > { %2798 = vst.msk [vmem:[#allocation4 + $0x110] sm:$0xff] %vm2780_vm0, %v2719_v14  ;;  %v6586_v6 = vpop.f32.mrf.mxu2 }
 0x53e   : > { %2811 = vst.msk [vmem:[#allocation4 + $0x1e0] sm:$0xff] %vm2780_vm0, %v2745_v17 }
 0x541   : > { %3116 = vrot.lane.b32.xlu0 %v6121_v54, %s4521_s26 }
 0x542   : > { %2923 = vrot.lane.b32.xlu1 %v7066_v28, %s4519_s24  ;;  %3310 = vrot.lane.b32.xlu2 %v6180_v37, %s4520_s25  ;;  %v7067_v37 = vld [vmem:[#allocation8_spill] sm:$0xff]  ;;  %v3033_v28 = vld [vmem:[#allocation2 + $0x15a] sm:$0xff] }
 0x543   : > { %v2729_v40 = vpop.permute.xlu0 %2728 }
 0x544   : > { %v2725_v59 = vpop.permute.xlu1 %2724  ;;  %v2880_v35 = vpop.permute.xlu2 %2879  ;;  %2803 = vst.msk [vmem:[#allocation4 + $0x160] sm:$0xff] %vm2780_vm0, %v2729_v40 }
 0x545   : > { %2801 = vst.msk [vmem:[#allocation4 + $0x140] sm:$0xff] %vm2780_vm0, %v2725_v59  ;;  %v3420_v59 = vld [vmem:[#allocation2 + $0x171] sm:$0xff] }
 0x546   : > { %2975 = vst.msk [vmem:[#allocation4 + $0x10] sm:$0xff] %vm2973_vm1, %v2880_v35 }
 0x549   : > { %3501 = vrot.lane.b32.xlu0 %v7067_v37, %s4522_s27 }
 0x54a   : > { %3308 = vrot.lane.b32.xlu1 %v6147_v49, %s4520_s25  ;;  %3082 = vrot.lane.b32.xlu2 %v3012_v53, %s4521_s26  ;;  %v3013_v49 = vld [vmem:[#allocation2 + $0x6a] sm:$0xff] }
 0x54b   : > { %v2735_v19 = vpop.permute.xlu0 %2734 }
 0x54c   : > { %v2731_v54 = vpop.permute.xlu1 %2730  ;;  %v2886_v18 = vpop.permute.xlu2 %2885  ;;  %2806 = vst.msk [vmem:[#allocation4 + $0x190] sm:$0xff] %vm2780_vm0, %v2735_v19  ;;  %v3419_v19 = vld [vmem:[#allocation2 + $0x169] sm:$0xff] }
 0x54d   : > { %2804 = vst.msk [vmem:[#allocation4 + $0x170] sm:$0xff] %vm2780_vm0, %v2731_v54 }
 0x54e   : > { %2978 = vst.msk [vmem:[#allocation4 + $0x40] sm:$0xff] %vm2973_vm1, %v2886_v18  ;;  %v6596_v18 = vpop.f32.mrf.mxu2 }
 0x551   : > { %3084 = vrot.lane.b32.xlu0 %v3013_v49, %s4521_s26 }
 0x552   : > { %3503 = vrot.lane.b32.xlu1 %v7068_v30, %s4522_s27  ;;  %3278 = vrot.lane.b32.xlu2 %v5932_v39, %s4520_s25  ;;  %v4454_v39 = vld [vmem:[%s6952_s3 + $0x30] sm:$0xff] }
 0x553   : > { %v2741_v57 = vpop.permute.xlu0 %2740  ;;  %3871 = vmatpush.bf16.msra.mxu1 %v4454_v39  ;;  %4460 = vmatpush.bf16.msrb.mxu3 %v4454_v39 }
 0x554   : > { %v2737_v0 = vpop.permute.xlu1 %2736  ;;  %v2892_v31 = vpop.permute.xlu2 %2891  ;;  %2809 = vst.msk [vmem:[#allocation4 + $0x1c0] sm:$0xff] %vm2780_vm0, %v2741_v57  ;;  %v3403_v57 = vld [vmem:[#allocation2 + $0xa9] sm:$0xff] }
 0x555   : > { %2807 = vst.msk [vmem:[#allocation4 + $0x1a0] sm:$0xff] %vm2780_vm0, %v2737_v0 }
 0x556   : > { %2981 = vst.msk [vmem:[#allocation4 + $0x70] sm:$0xff] %vm2973_vm1, %v2892_v31  ;;  %v3016_v31 = vld [vmem:[#allocation2 + $0x92] sm:$0xff] }
 0x557   : > { %3872 = vmatpush.bf16.msra.mxu1 %v4453_v24  ;;  %4461 = vmatpush.bf16.msrb.mxu3 %v4453_v24 }
 0x559   : > { %3469 = vrot.lane.b32.xlu0 %v6420_v26, %s4522_s27  ;;  %v4452_v26 = vld [vmem:[%s6952_s3 + $0x20] sm:$0xff] }
 0x55a   : > { %3276 = vrot.lane.b32.xlu1 %v3206_v7, %s4520_s25  ;;  %2925 = vrot.lane.b32.xlu2 %v7067_v37, %s4519_s24  ;;  %v6606_v7 = vpop.f32.mrf.mxu2 }
 0x55b   : > { %v2747_v48 = vpop.permute.xlu0 %2746  ;;  %3873 = vmatpush.bf16.msra.mxu1 %v4452_v26  ;;  %4462 = vmatpush.bf16.msrb.mxu3 %v4452_v26 }
 0x55c   : > { %v2743_v61 = vpop.permute.xlu1 %2742  ;;  %v2898_v52 = vpop.permute.xlu2 %2897  ;;  %2812 = vst.msk [vmem:[#allocation4 + $0x1f0] sm:$0xff] %vm2780_vm0, %v2747_v48 }
 0x55d   : > { %2810 = vst.msk [vmem:[#allocation4 + $0x1d0] sm:$0xff] %vm2780_vm0, %v2743_v61 }
 0x55e   : > { %2984 = vst.msk [vmem:[#allocation4 + $0xa0] sm:$0xff] %vm2973_vm1, %v2898_v52 }
 0x561   : > { %2927 = vrot.lane.b32.xlu0 %v7068_v30, %s4519_s24  ;;  %v3017_v30 = vld [vmem:[#allocation2 + $0x9a] sm:$0xff] }
 0x562   : > { %3471 = vrot.lane.b32.xlu1 %v6427_v8, %s4522_s27  ;;  %3120 = vrot.lane.b32.xlu2 %v6171_v45, %s4521_s26  ;;  %v4451_v45 = vld [vmem:[%s6952_s3 + $0x18] sm:$0xff] }
 0x563   : > { %v2882_v15 = vpop.permute.xlu0 %2881  ;;  %v3417_v8 = vld [vmem:[#allocation2 + $0x151] sm:$0xff]  ;;  %3874 = vmatpush.bf16.msra.mxu1 %v4451_v45  ;;  %4463 = vmatpush.bf16.msrb.mxu3 %v4451_v45 }
 0x564   : > { %v2878_v25 = vpop.permute.xlu1 %2877  ;;  %v3265_v11 = vpop.permute.xlu2 %3264  ;;  %2976 = vst.msk [vmem:[#allocation4 + $0x20] sm:$0xff] %vm2973_vm1, %v2882_v15 }
 0x565   : > { %2974 = vst.msk [vmem:[#allocation4] sm:$0xff] %vm2973_vm1, %v2878_v25  ;;  %v3211_v25 = vld [vmem:[#allocation2 + $0xb0] sm:$0xff] }
 0x567   : > { %3875 = vmatpush.bf16.msra.mxu1 %v4450_v50  ;;  %4464 = vmatpush.bf16.msrb.mxu3 %v4450_v50 }
 0x569   : > { %3312 = vrot.lane.b32.xlu0 %v7062_v2, %s4520_s25  ;;  %v7069_v2 = vld [vmem:[#allocation10_spill] sm:$0xff] }
 0x56a   : > { %3118 = vrot.lane.b32.xlu1 %v6169_v22, %s4521_s26  ;;  %3505 = vrot.lane.b32.xlu2 %v3417_v8, %s4522_s27  ;;  %v4449_v22 = vld [vmem:[%s6952_s3 + $0x8] sm:$0xff] }
 0x56b   : > { %v2888_v33 = vpop.permute.xlu0 %2887  ;;  %3876 = vmatpush.bf16.msra.mxu1 %v4449_v22  ;;  %4465 = vmatpush.bf16.msrb.mxu3 %v4449_v22 }
 0x56c   : > { %v2884_v20 = vpop.permute.xlu1 %2883  ;;  %v3460_v56 = vpop.permute.xlu2 %3459  ;;  %2979 = vst.msk [vmem:[#allocation4 + $0x50] sm:$0xff] %vm2973_vm1, %v2888_v33 }
 0x56d   : > { %2977 = vst.msk [vmem:[#allocation4 + $0x30] sm:$0xff] %vm2973_vm1, %v2884_v20  ;;  %v3034_v20 = vld [vmem:[#allocation2 + $0x16a] sm:$0xff] }
 0x56f   : > { %3877 = vmatpush.bf16.msra.mxu1 %v4448_v36  ;;  %4466 = vmatpush.bf16.msrb.mxu3 %v4448_v36 }
 0x571   : > { %3507 = vrot.lane.b32.xlu0 %v7069_v2, %s4522_s27 }
 0x572   : > { %3314 = vrot.lane.b32.xlu1 %v6139_v21, %s4520_s25  ;;  %3088 = vrot.lane.b32.xlu2 %v3015_v16, %s4521_s26  ;;  %v4497_v21 = vld [vmem:[%s6952_s3 + $0x40] sm:$0xff] }
 0x573   : > { %v2894_v10 = vpop.permute.xlu0 %2893  ;;  %4467 = vmatpush.bf16.msra.mxu3 %v4497_v21 }
 0x574   : > { %v2890_v23 = vpop.permute.xlu1 %2889  ;;  %v3269_v3 = vpop.permute.xlu2 %3268  ;;  %2982 = vst.msk [vmem:[#allocation4 + $0x80] sm:$0xff] %vm2973_vm1, %v2894_v10 }
 0x575   : > { %2980 = vst.msk [vmem:[#allocation4 + $0x60] sm:$0xff] %vm2973_vm1, %v2890_v23 }
 0x579   : > { %3280 = vrot.lane.b32.xlu0 %v3208_v55, %s4520_s25 }
 0x57a   : > { %3086 = vrot.lane.b32.xlu1 %v3014_v46, %s4521_s26  ;;  %3473 = vrot.lane.b32.xlu2 %v6414_v9, %s4522_s27  ;;  %v3402_v9 = vld [vmem:[#allocation2 + $0x99] sm:$0xff] }
 0x57b   : > { %v3071_v32 = vpop.permute.xlu0 %3070 }
 0x57c   : > { %v2896_v29 = vpop.permute.xlu1 %2895  ;;  %v3464_v4 = vpop.permute.xlu2 %3463  ;;  %3167 = vst.msk [vmem:[#allocation4] sm:$0xff] %vm3166_vm2, %v3071_v32 }
 0x57d   : > { %2983 = vst.msk [vmem:[#allocation4 + $0x90] sm:$0xff] %vm2973_vm1, %v2896_v29  ;;  %v3421_v29 = vld [vmem:[#allocation2 + $0x181] sm:$0xff] }
 0x57e   : > { %3361 = vst.msk [vmem:[#allocation4] sm:$0xff] %vm3360_vm3, %v3265_v11  ;;  %v3404_v11 = vld [vmem:[#allocation2 + $0xb1] sm:$0xff] }
 0x581   : > { %3475 = vrot.lane.b32.xlu0 %v3402_v9, %s4522_s27 }
 0x582   : > { %3282 = vrot.lane.b32.xlu1 %v3209_v38, %s4520_s25  ;;  %2931 = vrot.lane.b32.xlu2 %v2840_v43, %s4519_s24  ;;  %v3213_v43 = vld [vmem:[#allocation2 + $0xc8] sm:$0xff] }
 0x583   : > { %v3267_v34 = vpop.permute.xlu0 %3266 }
 0x584   : > { %v3073_v42 = vpop.permute.xlu1 %3072  ;;  %v3273_v58 = vpop.permute.xlu2 %3272 }
 0x585   : > { %3168 = vst.msk [vmem:[#allocation4 + $0x10] sm:$0xff] %vm3166_vm2, %v3073_v42 }
 0x586   : > { %3362 = vst.msk [vmem:[#allocation4 + $0x10] sm:$0xff] %vm3360_vm3, %v3267_v34 }
 0x587   : > { %3555 = vst.msk [vmem:[#allocation4 + $0x10] sm:$0xff] %vm3553_vm4, %v3460_v56 }
 0x589   : > { %3122 = vrot.lane.b32.xlu0 %v3032_v51, %s4521_s26 }
 0x58a   : > { %2929 = vrot.lane.b32.xlu1 %v3417_v8, %s4519_s24  ;;  %3316 = vrot.lane.b32.xlu2 %v6190_v1, %s4520_s25  ;;  %v6616_v8 = vpop.f32.mrf.mxu2 }
 0x58b   : > { %v3075_v17 = vpop.permute.xlu0 %3074 }
 0x58c   : > { %v3458_v13 = vpop.permute.xlu1 %3457  ;;  %v3468_v14 = vpop.permute.xlu2 %3467  ;;  %3169 = vst.msk [vmem:[#allocation4 + $0x20] sm:$0xff] %vm3166_vm2, %v3075_v17 }
 0x58d   : > { %3554 = vst.msk [vmem:[#allocation4] sm:$0xff] %vm3553_vm4, %v3458_v13 }
 0x58e   : > { %3363 = vst.msk [vmem:[#allocation4 + $0x20] sm:$0xff] %vm3360_vm3, %v3269_v3  ;;  %v3652_v53 = vld [vmem:[#allocation4 + $0x10] sm:$0xff]  ;;  %v3422_v3 = vld [vmem:[#allocation2 + $0x189] sm:$0xff] }
 0x591   : > { %3318 = vrot.lane.b32.xlu0 %v7063_v62, %s4520_s25 }
 0x592   : > { %3124 = vrot.lane.b32.xlu1 %v3033_v28, %s4521_s26  ;;  %3511 = vrot.lane.b32.xlu2 %v3420_v59, %s4522_s27  ;;  %v6627_v23 = vpop.f32.mrf.mxu2  ;;  %v3212_v28 = vld [vmem:[#allocation2 + $0xc0] sm:$0xff] }
 0x593   : > { %v3271_v37 = vpop.permute.xlu0 %3270 }
 0x594   : > { %v3077_v1 = vpop.permute.xlu1 %3076  ;;  %v3115_v35 = vpop.permute.xlu2 %3114  ;;  %v3650_v40 = vld [vmem:[#allocation4] sm:$0xff] }
 0x595   : > { %3170 = vst.msk [vmem:[#allocation4 + $0x30] sm:$0xff] %vm3166_vm2, %v3077_v1  ;;  %v3714_v54 = vpack.c.bf16 %v3652_v53, %v3650_v40 }
 0x596   : > { %3364 = vst.msk [vmem:[#allocation4 + $0x30] sm:$0xff] %vm3360_vm3, %v3271_v37  ;;  %v3406_v37 = vld [vmem:[#allocation2 + $0xc9] sm:$0xff] }
 0x597   : > { %3557 = vst.msk [vmem:[#allocation4 + $0x30] sm:$0xff] %vm3553_vm4, %v3464_v4  ;;  %3878 = vmatmul.bf16.vlgmr.msra.gmra.mxu1 %v3714_v54  ;;  %v3018_v4 = vld [vmem:[#allocation2 + $0xaa] sm:$0xff] }
 0x599   : > { %2899 = vrot.lane.b32.xlu0 %v3402_v9, %s4519_s24  ;;  %v3019_v9 = vld [vmem:[#allocation2 + $0xb2] sm:$0xff] }
 0x59a   : > { %3509 = vrot.lane.b32.xlu1 %v3419_v19, %s4522_s27  ;;  %3092 = vrot.lane.b32.xlu2 %v3017_v30, %s4521_s26  ;;  %v6637_v55 = vpop.f32.mrf.mxu2 }
 0x59b   : > { %v3079_v0 = vpop.permute.xlu0 %3078 }
 0x59c   : > { %v3462_v62 = vpop.permute.xlu1 %3461  ;;  %v3311_v49 = vpop.permute.xlu2 %3310  ;;  %3171 = vst.msk [vmem:[#allocation4 + $0x40] sm:$0xff] %vm3166_vm2, %v3079_v0 }
 0x59d   : > { %3556 = vst.msk [vmem:[#allocation4 + $0x20] sm:$0xff] %vm3553_vm4, %v3462_v62 }
 0x59e   : > { %3365 = vst.msk [vmem:[#allocation4 + $0x40] sm:$0xff] %vm3360_vm3, %v3273_v58  ;;  %v3656_v48 = vld [vmem:[#allocation4 + $0x30] sm:$0xff] }
 0x5a1   : > { %3284 = vrot.lane.b32.xlu0 %v3210_v60, %s4520_s25 }
 0x5a2   : > { %3090 = vrot.lane.b32.xlu1 %v3016_v31, %s4521_s26  ;;  %3477 = vrot.lane.b32.xlu2 %v3403_v57, %s4522_s27  ;;  %v6647_v42 = vpop.f32.mrf.mxu2 }
 0x5a3   : > { %v3275_v24 = vpop.permute.xlu0 %3274 }
 0x5a4   : > { %v3081_v39 = vpop.permute.xlu1 %3080  ;;  %v3083_v61 = vpop.permute.xlu2 %3082  ;;  %v3654_v52 = vld [vmem:[#allocation4 + $0x20] sm:$0xff] }
 0x5a5   : > { %3172 = vst.msk [vmem:[#allocation4 + $0x50] sm:$0xff] %vm3166_vm2, %v3081_v39  ;;  %v3716_v26 = vpack.c.bf16 %v3656_v48, %v3654_v52  ;;  %v3231_v52 = vld [vmem:[#allocation2 + $0x1a0] sm:$0xff] }
 0x5a6   : > { %3173 = vst.msk [vmem:[#allocation4 + $0x60] sm:$0xff] %vm3166_vm2, %v3083_v61  ;;  %v3424_v48 = vld [vmem:[#allocation2 + $0x1a1] sm:$0xff] }
 0x5a7   : > { %3366 = vst.msk [vmem:[#allocation4 + $0x50] sm:$0xff] %vm3360_vm3, %v3275_v24  ;;  %3883 = vmatmul.bf16.gmra.mxu1 %v3716_v26 }
 0x5a8   : > { %3559 = vst.msk [vmem:[#allocation4 + $0x50] sm:$0xff] %vm3553_vm4, %v3468_v14 }
 0x5a9   : > { %3479 = vrot.lane.b32.xlu0 %v3404_v11, %s4522_s27 }
 0x5aa   : > { %3286 = vrot.lane.b32.xlu1 %v3211_v25, %s4520_s25  ;;  %2935 = vrot.lane.b32.xlu2 %v3420_v59, %s4519_s24  ;;  %v3405_v59 = vld [vmem:[#allocation2 + $0xc1] sm:$0xff]  ;;  %v6656_v40 = vpop.f32.mrf.mxu2 }
 0x5ab   : > { %v2922_v50 = vpop.permute.xlu0 %2921 }
 0x5ac   : > { %v3466_v15 = vpop.permute.xlu1 %3465  ;;  %v3279_v45 = vpop.permute.xlu2 %3278  ;;  %2996 = vst.msk [vmem:[#allocation4 + $0x160] sm:$0xff] %vm2973_vm1, %v2922_v50  ;;  %v3214_v50 = vld [vmem:[#allocation2 + $0xd8] sm:$0xff] }
 0x5ad   : > { %3558 = vst.msk [vmem:[#allocation4 + $0x40] sm:$0xff] %vm3553_vm4, %v3466_v15 }
 0x5ae   : > { %3189 = vst.msk [vmem:[#allocation4 + $0x160] sm:$0xff] %vm3166_vm2, %v3115_v35 }
 0x5af   : > { %v3660_v16 = vld [vmem:[#allocation4 + $0x50] sm:$0xff] }
 0x5b1   : > { %3126 = vrot.lane.b32.xlu0 %v3034_v20, %s4521_s26  ;;  %v3020_v20 = vld [vmem:[#allocation2 + $0xc2] sm:$0xff] }
 0x5b2   : > { %2933 = vrot.lane.b32.xlu1 %v3419_v19, %s4519_s24  ;;  %3320 = vrot.lane.b32.xlu2 %v6365_v41, %s4520_s25  ;;  %v3035_v41 = vld [vmem:[#allocation2 + $0x172] sm:$0xff]  ;;  %v6667_v31 = vpop.f32.mrf.mxu2 }
 0x5b3   : > { %v3117_v2 = vpop.permute.xlu0 %3116 }
 0x5b4   : > { %v2924_v56 = vpop.permute.xlu1 %2923  ;;  %v2926_v33 = vpop.permute.xlu2 %2925  ;;  %v3658_v22 = vld [vmem:[#allocation4 + $0x40] sm:$0xff] }
 0x5b5   : > { %2997 = vst.msk [vmem:[#allocation4 + $0x170] sm:$0xff] %vm2973_vm1, %v2924_v56  ;;  %v3718_v36 = vpack.c.bf16 %v3660_v16, %v3658_v22 }
 0x5b6   : > { %2998 = vst.msk [vmem:[#allocation4 + $0x180] sm:$0xff] %vm2973_vm1, %v2926_v33 }
 0x5b7   : > { %3190 = vst.msk [vmem:[#allocation4 + $0x170] sm:$0xff] %vm3166_vm2, %v3117_v2  ;;  %3888 = vmatmul.bf16.gmra.mxu1 %v3718_v36  ;;  %v3021_v2 = vld [vmem:[#allocation2 + $0xca] sm:$0xff]  ;;  %v3408_v36 = vld [vmem:[#allocation2 + $0xe1] sm:$0xff] }
 0x5b8   : > { %3384 = vst.msk [vmem:[#allocation4 + $0x170] sm:$0xff] %vm3360_vm3, %v3311_v49 }
 0x5b9   : > { %3322 = vrot.lane.b32.xlu0 %v6382_v63, %s4520_s25 }
 0x5ba   : > { %3128 = vrot.lane.b32.xlu1 %v3035_v41, %s4521_s26  ;;  %3515 = vrot.lane.b32.xlu2 %v3422_v3, %s4522_s27  ;;  %v6677_v24 = vpop.f32.mrf.mxu2  ;;  %v3215_v41 = vld [vmem:[#allocation2 + $0xe0] sm:$0xff] }
 0x5bb   : > { %v3502_v46 = vpop.permute.xlu0 %3501 }
 0x5bc   : > { %v3309_v10 = vpop.permute.xlu1 %3308  ;;  %v3121_v21 = vpop.permute.xlu2 %3120 }
 0x5bd   : > { %3383 = vst.msk [vmem:[#allocation4 + $0x160] sm:$0xff] %vm3360_vm3, %v3309_v10 }
 0x5be   : > { %3576 = vst.msk [vmem:[#allocation4 + $0x160] sm:$0xff] %vm3553_vm4, %v3502_v46 }
 0x5c1   : > { %2901 = vrot.lane.b32.xlu0 %v3403_v57, %s4519_s24  ;;  %v3423_v57 = vld [vmem:[#allocation2 + $0x199] sm:$0xff] }
 0x5c2   : > { %3513 = vrot.lane.b32.xlu1 %v3421_v29, %s4522_s27  ;;  %3094 = vrot.lane.b32.xlu2 %v3018_v4, %s4521_s26  ;;  %v6687_v56 = vpop.f32.mrf.mxu2 }
 0x5c3   : > { %v3085_v63 = vpop.permute.xlu0 %3084 }
 0x5c4   : > { %v3504_v32 = vpop.permute.xlu1 %3503  ;;  %v3506_v38 = vpop.permute.xlu2 %3505  ;;  %3174 = vst.msk [vmem:[#allocation4 + $0x70] sm:$0xff] %vm3166_vm2, %v3085_v63  ;;  %v3022_v63 = vld [vmem:[#allocation2 + $0xda] sm:$0xff] }
 0x5c5   : > { %3577 = vst.msk [vmem:[#allocation4 + $0x170] sm:$0xff] %vm3553_vm4, %v3504_v32  ;;  %v3694_v51 = vld [vmem:[#allocation4 + $0x160] sm:$0xff] }
 0x5c6   : > { %3368 = vst.msk [vmem:[#allocation4 + $0x70] sm:$0xff] %vm3360_vm3, %v3279_v45 }
 0x5c9   : > { %3096 = vrot.lane.b32.xlu0 %v3019_v9, %s4521_s26 }
 0x5ca   : > { %2903 = vrot.lane.b32.xlu1 %v3404_v11, %s4519_s24  ;;  %3290 = vrot.lane.b32.xlu2 %v3213_v43, %s4520_s25 }
 0x5cb   : > { %v3470_v14 = vpop.permute.xlu0 %3469 }
 0x5cc   : > { %v3277_v58 = vpop.permute.xlu1 %3276  ;;  %v3089_v34 = vpop.permute.xlu2 %3088  ;;  %v3696_v13 = vld [vmem:[#allocation4 + $0x170] sm:$0xff] }
 0x5cd   : > { %3367 = vst.msk [vmem:[#allocation4 + $0x60] sm:$0xff] %vm3360_vm3, %v3277_v58  ;;  %v3736_v17 = vpack.c.bf16 %v3696_v13, %v3694_v51  ;;  %v3217_v51 = vld [vmem:[#allocation2 + $0xf8] sm:$0xff]  ;;  %v3023_v13 = vld [vmem:[#allocation2 + $0xe2] sm:$0xff] }
 0x5ce   : > { %3176 = vst.msk [vmem:[#allocation4 + $0x90] sm:$0xff] %vm3166_vm2, %v3089_v34 }
 0x5cf   : > { %3560 = vst.msk [vmem:[#allocation4 + $0x60] sm:$0xff] %vm3553_vm4, %v3470_v14  ;;  %3933 = vmatmul.bf16.vlgmr.msrb.gmra.mxu3 %v3736_v17 }
 0x5d1   : > { %3481 = vrot.lane.b32.xlu0 %v3405_v59, %s4522_s27 }
 0x5d2   : > { %3288 = vrot.lane.b32.xlu1 %v3212_v28, %s4520_s25  ;;  %2937 = vrot.lane.b32.xlu2 %v3421_v29, %s4519_s24 }
 0x5d3   : > { %v2928_v53 = vpop.permute.xlu0 %2927 }
 0x5d4   : > { %v3472_v1 = vpop.permute.xlu1 %3471  ;;  %v3474_v35 = vpop.permute.xlu2 %3473  ;;  %2999 = vst.msk [vmem:[#allocation4 + $0x190] sm:$0xff] %vm2973_vm1, %v2928_v53  ;;  %v6722_v53 = vld [vmem:[%s6953_s4] ss:$0 sm:$0xff] }
 0x5d5   : > { %3561 = vst.msk [vmem:[#allocation4 + $0x70] sm:$0xff] %vm3553_vm4, %v3472_v1  ;;  %v3216_v1 = vld [vmem:[#allocation2 + $0xf0] sm:$0xff] }
 0x5d6   : > { %3192 = vst.msk [vmem:[#allocation4 + $0x190] sm:$0xff] %vm3166_vm2, %v3121_v21  ;;  %v3662_v30 = vld [vmem:[#allocation4 + $0x60] sm:$0xff]  ;;  %v6695_v21 = vpop.f32.mrf.mxu2 }
 0x5d9   : > { %2939 = vrot.lane.b32.xlu0 %v3422_v3, %s4519_s24 }
 0x5da   : > { %3483 = vrot.lane.b32.xlu1 %v3406_v37, %s4522_s27  ;;  %3132 = vrot.lane.b32.xlu2 %v6373_v47, %s4521_s26  ;;  %v3230_v47 = vld [vmem:[#allocation2 + $0x198] sm:$0xff] }
 0x5db   : > { %v3313_v49 = vpop.permute.xlu0 %3312 }
 0x5dc   : > { %v3119_v54 = vpop.permute.xlu1 %3118  ;;  %v2932_v19 = vpop.permute.xlu2 %2931  ;;  %v3664_v62 = vld [vmem:[#allocation4 + $0x70] sm:$0xff] }
 0x5dd   : > { %3191 = vst.msk [vmem:[#allocation4 + $0x180] sm:$0xff] %vm3166_vm2, %v3119_v54  ;;  %v3720_v0 = vpack.c.bf16 %v3664_v62, %v3662_v30 }
 0x5de   : > { %3001 = vst.msk [vmem:[#allocation4 + $0x1b0] sm:$0xff] %vm2973_vm1, %v2932_v19  ;;  %v6705_v34 = vpop.f32.mrf.mxu2 }
 0x5df   : > { %3385 = vst.msk [vmem:[#allocation4 + $0x180] sm:$0xff] %vm3360_vm3, %v3313_v49  ;;  %3893 = vmatmul.bf16.gmra.mxu1 %v3720_v0 }
 0x5e0   : > { %3578 = vst.msk [vmem:[#allocation4 + $0x180] sm:$0xff] %vm3553_vm4, %v3506_v38  ;;  %v3407_v38 = vld [vmem:[#allocation2 + $0xd9] sm:$0xff] }
 0x5e1   : > { %3324 = vrot.lane.b32.xlu0 %v3230_v47, %s4520_s25 }
 0x5e2   : > { %3130 = vrot.lane.b32.xlu1 %v6378_v27, %s4521_s26  ;;  %3517 = vrot.lane.b32.xlu2 %v3423_v57, %s4522_s27 }
 0x5e3   : > { %v3508_v61 = vpop.permute.xlu0 %3507 }
 0x5e4   : > { %v3315_v60 = vpop.permute.xlu1 %3314  ;;  %v3317_v39 = vpop.permute.xlu2 %3316 }
 0x5e5   : > { %3386 = vst.msk [vmem:[#allocation4 + $0x190] sm:$0xff] %vm3360_vm3, %v3315_v60  ;;  %v3410_v60 = vld [vmem:[#allocation2 + $0xf9] sm:$0xff] }
 0x5e6   : > { %3579 = vst.msk [vmem:[#allocation4 + $0x190] sm:$0xff] %vm3553_vm4, %v3508_v61 }
 0x5e7   : > { %v3698_v11 = vld [vmem:[#allocation4 + $0x180] sm:$0xff] }
 0x5e9   : > { %3519 = vrot.lane.b32.xlu0 %v3424_v48, %s4522_s27 }
 0x5ea   : > { %3326 = vrot.lane.b32.xlu1 %v3231_v52, %s4520_s25  ;;  %2907 = vrot.lane.b32.xlu2 %v3406_v37, %s4519_s24 }
 0x5eb   : > { %v3281_v25 = vpop.permute.xlu0 %3280 }
 0x5ec   : > { %v3087_v27 = vpop.permute.xlu1 %3086  ;;  %v3512_v26 = vpop.permute.xlu2 %3511 }
 0x5ed   : > { %3175 = vst.msk [vmem:[#allocation4 + $0x80] sm:$0xff] %vm3166_vm2, %v3087_v27  ;;  %v3700_v15 = vld [vmem:[#allocation4 + $0x190] sm:$0xff] }
 0x5ee   : > { %3369 = vst.msk [vmem:[#allocation4 + $0x80] sm:$0xff] %vm3360_vm3, %v3281_v25  ;;  %v3738_v45 = vpack.c.bf16 %v3700_v15, %v3698_v11  ;;  %v3024_v15 = vld [vmem:[#allocation2 + $0xf2] sm:$0xff] }
 0x5ef   : > { %3562 = vst.msk [vmem:[#allocation4 + $0x80] sm:$0xff] %vm3553_vm4, %v3474_v35  ;;  %v2831_v35 = vld [vmem:[#allocation2 + $0xf1] sm:$0xff] }
 0x5f0   : > { %3938 = vmatmul.bf16.gmra.mxu3 %v3738_v45  ;;  %v3411_v45 = vld [vmem:[#allocation2 + $0x109] sm:$0xff] }
 0x5f1   : > { %3098 = vrot.lane.b32.xlu0 %v3020_v20, %s4521_s26  ;;  %v3218_v20 = vld [vmem:[#allocation2 + $0x108] sm:$0xff] }
 0x5f2   : > { %2905 = vrot.lane.b32.xlu1 %v3405_v59, %s4519_s24  ;;  %3292 = vrot.lane.b32.xlu2 %v3214_v50, %s4520_s25  ;;  %v6715_v59 = vpop.f32.mrf.mxu2 }
 0x5f3   : > { %v3476_v16 = vpop.permute.xlu0 %3475 }
 0x5f4   : > { %v3283_v33 = vpop.permute.xlu1 %3282  ;;  %v3093_v22 = vpop.permute.xlu2 %3092 }
 0x5f5   : > { %3370 = vst.msk [vmem:[#allocation4 + $0x90] sm:$0xff] %vm3360_vm3, %v3283_v33 }
 0x5f6   : > { %3563 = vst.msk [vmem:[#allocation4 + $0x90] sm:$0xff] %vm3553_vm4, %v3476_v16  ;;  %v3666_v29 = vld [vmem:[#allocation4 + $0x80] sm:$0xff] }
 0x5f9   : > { %3294 = vrot.lane.b32.xlu0 %v3215_v41, %s4520_s25 }
 0x5fa   : > { %3100 = vrot.lane.b32.xlu1 %v3021_v2, %s4521_s26  ;;  %3487 = vrot.lane.b32.xlu2 %v3408_v36, %s4522_s27  ;;  %v6740_v52 = vpop.f32.mrf.mxu2 }
 0x5fb   : > { %v3123_v46 = vpop.permute.xlu0 %3122 }
 0x5fc   : > { %v2930_v3 = vpop.permute.xlu1 %2929  ;;  %v3478_v10 = vpop.permute.xlu2 %3477 }
 0x5fd   : > { %3000 = vst.msk [vmem:[#allocation4 + $0x1a0] sm:$0xff] %vm2973_vm1, %v2930_v3  ;;  %v3668_v4 = vld [vmem:[#allocation4 + $0x90] sm:$0xff] }
 0x5fe   : > { %3193 = vst.msk [vmem:[#allocation4 + $0x1a0] sm:$0xff] %vm3166_vm2, %v3123_v46  ;;  %v3722_v32 = vpack.c.bf16 %v3668_v4, %v3666_v29  ;;  %v3219_v29 = vld [vmem:[#allocation2 + $0x110] sm:$0xff] }
 0x5ff   : > { %3387 = vst.msk [vmem:[#allocation4 + $0x1a0] sm:$0xff] %vm3360_vm3, %v3317_v39  ;;  %v3025_v39 = vld [vmem:[#allocation2 + $0xfa] sm:$0xff]  ;;  %v2834_v4 = vld [vmem:[#allocation2 + $0x111] sm:$0xff] }
 0x600   : > { %3898 = vmatmul.bf16.gmra.mxu1 %v3722_v32 }
 0x601   : > { %2909 = vrot.lane.b32.xlu0 %v3407_v38, %s4519_s24 }
 0x602   : > { %3485 = vrot.lane.b32.xlu1 %v3407_v38, %s4522_s27  ;;  %3102 = vrot.lane.b32.xlu2 %v3022_v63, %s4521_s26 }
 0x603   : > { %v3319_v58 = vpop.permute.xlu0 %3318 }
 0x604   : > { %v3125_v43 = vpop.permute.xlu1 %3124  ;;  %v2936_v9 = vpop.permute.xlu2 %2935 }
 0x605   : > { %3194 = vst.msk [vmem:[#allocation4 + $0x1b0] sm:$0xff] %vm3166_vm2, %v3125_v43 }
 0x606   : > { %3003 = vst.msk [vmem:[#allocation4 + $0x1d0] sm:$0xff] %vm2973_vm1, %v2936_v9 }
 0x607   : > { %3388 = vst.msk [vmem:[#allocation4 + $0x1b0] sm:$0xff] %vm3360_vm3, %v3319_v58 }
 0x608   : > { %3581 = vst.msk [vmem:[#allocation4 + $0x1b0] sm:$0xff] %vm3553_vm4, %v3512_v26 }
 0x609   : > { %3104 = vrot.lane.b32.xlu0 %v3023_v13, %s4521_s26  ;;  %v3220_v13 = vld [vmem:[#allocation2 + $0x120] sm:$0xff] }
 0x60a   : > { %2911 = vrot.lane.b32.xlu1 %v3408_v36, %s4519_s24  ;;  %3298 = vrot.lane.b32.xlu2 %v3217_v51, %s4520_s25 }
 0x60b   : > { %v2900_v28 = vpop.permute.xlu0 %2899 }
 0x60c   : > { %v3510_v14 = vpop.permute.xlu1 %3509  ;;  %v3321_v17 = vpop.permute.xlu2 %3320  ;;  %2985 = vst.msk [vmem:[#allocation4 + $0xb0] sm:$0xff] %vm2973_vm1, %v2900_v28 }
 0x60d   : > { %3580 = vst.msk [vmem:[#allocation4 + $0x1a0] sm:$0xff] %vm3553_vm4, %v3510_v14 }
 0x60e   : > { %3178 = vst.msk [vmem:[#allocation4 + $0xb0] sm:$0xff] %vm3166_vm2, %v3093_v22 }
 0x60f   : > { %v3704_v30 = vld [vmem:[#allocation4 + $0x1b0] sm:$0xff] }
 0x611   : > { %3489 = vrot.lane.b32.xlu0 %v2831_v35, %s4522_s27 }
 0x612   : > { %3296 = vrot.lane.b32.xlu1 %v3216_v1, %s4520_s25  ;;  %2913 = vrot.lane.b32.xlu2 %v2831_v35, %s4519_s24 }
 0x613   : > { %v3285_v49 = vpop.permute.xlu0 %3284 }
 0x614   : > { %v3091_v37 = vpop.permute.xlu1 %3090  ;;  %v6725_v54 = vpop.permute.xlu2 %3515  ;;  %v3702_v19 = vld [vmem:[#allocation4 + $0x1a0] sm:$0xff] }
 0x615   : > { %3177 = vst.msk [vmem:[#allocation4 + $0xa0] sm:$0xff] %vm3166_vm2, %v3091_v37  ;;  %v3879_v62 = vpop.f32.mrf.mxu1  ;;  %v3740_v0 = vpack.c.bf16 %v3704_v30, %v3702_v19  ;;  %v3027_v19 = vld [vmem:[#allocation2 + $0x112] sm:$0xff]  ;;  %v3414_v30 = vld [vmem:[#allocation2 + $0x129] sm:$0xff] }
 0x616   : > { %v3880_v57 = vadd.f32 %v6722_v53, %v3879_v62  ;;  %3371 = vst.msk [vmem:[#allocation4 + $0xa0] sm:$0xff] %vm3360_vm3, %v3285_v49  ;;  %v3221_v49 = vld [vmem:[#allocation2 + $0x128] sm:$0xff] }
 0x617   : > { %3564 = vst.msk [vmem:[#allocation4 + $0xa0] sm:$0xff] %vm3553_vm4, %v3478_v10  ;;  %3943 = vmatmul.bf16.gmra.mxu3 %v3740_v0  ;;  %v6759_v10 = vpop.f32.mrf.mxu2 }
 0x618   : > { %v3969_v47 = vadd.f32 %v6212_v12, %v3880_v57 }
 0x619   : > { %2915 = vrot.lane.b32.xlu0 %v3410_v60, %s4519_s24 }
 0x61a   : > { %v4048_v61 = vmax.f32 %v3969_v47, 0.0  ;;  %3491 = vrot.lane.b32.xlu1 %v3410_v60, %s4522_s27  ;;  %3108 = vrot.lane.b32.xlu2 %v3025_v39, %s4521_s26 }
 0x61b   : > { %v3480_v26 = vpop.permute.xlu0 %3479 }
 0x61c   : > { %4080 = vst.msk [vmem:[%s6736_s7] sm:$0xff] %vm2081_vm12, %v4048_v61  ;;  %v3287_v12 = vpop.permute.xlu1 %3286  ;;  %v3095_v48 = vpop.permute.xlu2 %3094 }
 0x61d   : > { %3372 = vst.msk [vmem:[#allocation4 + $0xb0] sm:$0xff] %vm3360_vm3, %v3287_v12  ;;  %v3881_v27 = vpop.f32.mrf.mxu1 }
 0x61e   : > { %v3882_v25 = vadd.f32 %v6722_v53, %v3881_v27  ;;  %3565 = vst.msk [vmem:[#allocation4 + $0xb0] sm:$0xff] %vm3553_vm4, %v3480_v26  ;;  %v3413_v26 = vld [vmem:[#allocation2 + $0x121] sm:$0xff] }
 0x61f   : > { %v6775_v51 = vpop.f32.mrf.mxu2 }
 0x620   : > { %v3971_v11 = vadd.f32 %v6221_v44, %v3882_v25  ;;  %v3670_v44 = vld [vmem:[#allocation4 + $0xa0] sm:$0xff] }
 0x621   : > { %3300 = vrot.lane.b32.xlu0 %v3218_v20, %s4520_s25 }
 0x622   : > { %v4049_v50 = vmax.f32 %v3971_v11, 0.0  ;;  %3106 = vrot.lane.b32.xlu1 %v3024_v15, %s4521_s26  ;;  %3493 = vrot.lane.b32.xlu2 %v3411_v45, %s4522_s27 }
 0x623   : > { %v3127_v16 = vpop.permute.xlu0 %3126 }
 0x624   : > { %4081 = vst.msk [vmem:[%s6736_s7 + $0x8] sm:$0xff] %vm2081_vm12, %v4049_v50  ;;  %v2934_v33 = vpop.permute.xlu1 %2933  ;;  %v6754_v22 = vpop.permute.xlu2 %3290 }
 0x625   : > { %3002 = vst.msk [vmem:[#allocation4 + $0x1c0] sm:$0xff] %vm2973_vm1, %v2934_v33  ;;  %v3884_v2 = vpop.f32.mrf.mxu1  ;;  %v3672_v36 = vld [vmem:[#allocation4 + $0xb0] sm:$0xff] }
 0x626   : > { %3195 = vst.msk [vmem:[#allocation4 + $0x1c0] sm:$0xff] %vm3166_vm2, %v3127_v16  ;;  %v3885_v41 = vadd.f32 %v6722_v53, %v3884_v2  ;;  %v3724_v3 = vpack.c.bf16 %v3672_v36, %v3670_v44 }
 0x627   : > { %3389 = vst.msk [vmem:[#allocation4 + $0x1c0] sm:$0xff] %vm3360_vm3, %v3321_v17  ;;  %v3026_v17 = vld [vmem:[#allocation2 + $0x10a] sm:$0xff]  ;;  %v6789_v0 = vpop.f32.mrf.mxu2 }
 0x628   : > { %v3974_v46 = vadd.f32 %v6575_v5, %v3885_v41  ;;  %3903 = vmatmul.bf16.gmra.mxu1 %v3724_v3 }
 0x629   : > { %3495 = vrot.lane.b32.xlu0 %v2834_v4, %s4522_s27 }
 0x62a   : > { %v4050_v32 = vmax.f32 %v3974_v46, 0.0  ;;  %3302 = vrot.lane.b32.xlu1 %v3219_v29, %s4520_s25  ;;  %2919 = vrot.lane.b32.xlu2 %v2834_v4, %s4519_s24 }
 0x62b   : > { %v3323_v43 = vpop.permute.xlu0 %3322 }
 0x62c   : > { %4082 = vst.msk [vmem:[%s6736_s7 + $0x10] sm:$0xff] %vm2081_vm12, %v4050_v32  ;;  %v3129_v38 = vpop.permute.xlu1 %3128  ;;  %v2938_v63 = vpop.permute.xlu2 %2937 }
 0x62d   : > { %3196 = vst.msk [vmem:[#allocation4 + $0x1d0] sm:$0xff] %vm3166_vm2, %v3129_v38  ;;  %v3886_v9 = vpop.f32.mrf.mxu1 }
 0x62e   : > { %3004 = vst.msk [vmem:[#allocation4 + $0x1e0] sm:$0xff] %vm2973_vm1, %v2938_v63  ;;  %v3887_v5 = vadd.f32 %v6722_v53, %v3886_v9 }
 0x62f   : > { %3390 = vst.msk [vmem:[#allocation4 + $0x1d0] sm:$0xff] %vm3360_vm3, %v3323_v43  ;;  %v6805_v50 = vpop.f32.mrf.mxu2 }
 0x630   : > { %3583 = vst.msk [vmem:[#allocation4 + $0x1d0] sm:$0xff] %vm3553_vm4, %v6725_v54  ;;  %v3976_v58 = vadd.f32 %v6586_v6, %v3887_v5 }
 0x631   : > { %3110 = vrot.lane.b32.xlu0 %v3026_v17, %s4521_s26 }
 0x632   : > { %v4051_v14 = vmax.f32 %v3976_v58, 0.0  ;;  %2917 = vrot.lane.b32.xlu1 %v3411_v45, %s4519_s24  ;;  %3304 = vrot.lane.b32.xlu2 %v3220_v13, %s4520_s25 }
 0x633   : > { %v2902_v35 = vpop.permute.xlu0 %2901 }
 0x634   : > { %4083 = vst.msk [vmem:[%s6736_s7 + $0x18] sm:$0xff] %vm2081_vm12, %v4051_v14  ;;  %v3514_v28 = vpop.permute.xlu1 %3513  ;;  %v3133_v1 = vpop.permute.xlu2 %3132 }
 0x635   : > { %3582 = vst.msk [vmem:[#allocation4 + $0x1c0] sm:$0xff] %vm3553_vm4, %v3514_v28  ;;  %v3889_v6 = vpop.f32.mrf.mxu1 }
 0x636   : > { %2986 = vst.msk [vmem:[#allocation4 + $0xc0] sm:$0xff] %vm2973_vm1, %v2902_v35  ;;  %v3890_v37 = vadd.f32 %v6722_v53, %v3889_v6 }
 0x637   : > { %3179 = vst.msk [vmem:[#allocation4 + $0xc0] sm:$0xff] %vm3166_vm2, %v3095_v48  ;;  %v3708_v39 = vld [vmem:[#allocation4 + $0x1d0] sm:$0xff] }
 0x638   : > { %v3979_v54 = vadd.f32 %v6596_v18, %v3890_v37 }
 0x639   : > { %3306 = vrot.lane.b32.xlu0 %v3221_v49, %s4520_s25 }
 0x63a   : > { %v4052_v62 = vmax.f32 %v3979_v54, 0.0  ;;  %3112 = vrot.lane.b32.xlu1 %v3027_v19, %s4521_s26  ;;  %3499 = vrot.lane.b32.xlu2 %v3414_v30, %s4522_s27 }
 0x63b   : > { %v3097_v18 = vpop.permute.xlu0 %3096 }
 0x63c   : > { %4084 = vst.msk [vmem:[%s6736_s7 + $0x20] sm:$0xff] %vm2081_vm12, %v4052_v62  ;;  %v2904_v57 = vpop.permute.xlu1 %2903  ;;  %v3518_v47 = vpop.permute.xlu2 %3517  ;;  %v3706_v60 = vld [vmem:[#allocation4 + $0x1c0] sm:$0xff] }
 0x63d   : > { %2987 = vst.msk [vmem:[#allocation4 + $0xd0] sm:$0xff] %vm2973_vm1, %v2904_v57  ;;  %v3891_v61 = vpop.f32.mrf.mxu1  ;;  %v3742_v12 = vpack.c.bf16 %v3708_v39, %v3706_v60 }
 0x63e   : > { %3180 = vst.msk [vmem:[#allocation4 + $0xd0] sm:$0xff] %vm3166_vm2, %v3097_v18  ;;  %v3892_v48 = vadd.f32 %v6722_v53, %v3891_v61 }
 0x63f   : > { %3374 = vst.msk [vmem:[#allocation4 + $0xd0] sm:$0xff] %vm3360_vm3, %v6754_v22  ;;  %3948 = vmatmul.bf16.gmra.mxu3 %v3742_v12  ;;  %v4023_v22 = vpop.f32.mrf.mxu2 }
 0x640   : > { %v3981_v27 = vadd.f32 %v6606_v7, %v3892_v48  ;;  %v3703_v48 = vld [vmem:[#allocation4 + $0x1a8] sm:$0xff] }
 0x642   : > { %v4053_v25 = vmax.f32 %v3981_v27, 0.0  ;;  %3497 = vrot.lane.b32.xlu1 %v3413_v26, %s4522_s27  ;;  %v3705_v27 = vld [vmem:[#allocation4 + $0x1b8] sm:$0xff] }
 0x643   : > { %v3482_v45 = vpop.permute.xlu0 %3481 }
 0x644   : > { %4085 = vst.msk [vmem:[%s6736_s7 + $0x28] sm:$0xff] %vm2081_vm12, %v4053_v25  ;;  %v3289_v11 = vpop.permute.xlu1 %3288  ;;  %v2908_v15 = vpop.permute.xlu2 %2907 }
 0x645   : > { %3373 = vst.msk [vmem:[#allocation4 + $0xc0] sm:$0xff] %vm3360_vm3, %v3289_v11 }
 0x646   : > { %2989 = vst.msk [vmem:[#allocation4 + $0xf0] sm:$0xff] %vm2973_vm1, %v2908_v15 }
 0x647   : > { %3566 = vst.msk [vmem:[#allocation4 + $0xc0] sm:$0xff] %vm3553_vm4, %v3482_v45  ;;  %v4025_v63 = vpop.f32.mrf.mxu2  ;;  %v3741_v45 = vpack.c.bf16 %v3705_v27, %v3703_v48 }
 0x64b   : > { %v2940_v7 = vpop.permute.xlu0 %2939 }
 0x64c   : > { %v3484_v20 = vpop.permute.xlu1 %3483  ;;  %v3293_v33 = vpop.permute.xlu2 %3292  ;;  %3005 = vst.msk [vmem:[#allocation4 + $0x1f0] sm:$0xff] %vm2973_vm1, %v2940_v7 }
 0x64d   : > { %3567 = vst.msk [vmem:[#allocation4 + $0xd0] sm:$0xff] %vm3553_vm4, %v3484_v20  ;;  %v3616_v20 = vld [vmem:[#allocation2 + $0x19a] sm:$0xff] }
 0x64e   : > { %3198 = vst.msk [vmem:[#allocation4 + $0x1f0] sm:$0xff] %vm3166_vm2, %v3133_v1  ;;  %v3674_v41 = vld [vmem:[#allocation4 + $0xc0] sm:$0xff] }
 0x64f   : > { %v4028_v61 = vpop.f32.mrf.mxu2  ;;  %3648 = vst.msk [vmem:[#allocation4 + $0x1e8] sm:$0xff] %vm2081_vm12, %v3616_v20 }
 0x652   : > { %v3934_v16 = vpop.f32.mrf.mxu3 }
 0x653   : > { %v3935_v2 = vadd.f32 %v6722_v53, %v3934_v16  ;;  %v3325_v29 = vpop.permute.xlu0 %3324 }
 0x654   : > { %v3131_v44 = vpop.permute.xlu1 %3130  ;;  %v3488_v36 = vpop.permute.xlu2 %3487  ;;  %v3676_v3 = vld [vmem:[#allocation4 + $0xd0] sm:$0xff] }
 0x655   : > { %v4024_v46 = vadd.f32 %v4023_v22, %v3935_v2  ;;  %3197 = vst.msk [vmem:[#allocation4 + $0x1e0] sm:$0xff] %vm3166_vm2, %v3131_v44  ;;  %v3726_v4 = vpack.c.bf16 %v3676_v3, %v3674_v41 }
 0x656   : > { %3391 = vst.msk [vmem:[#allocation4 + $0x1e0] sm:$0xff] %vm3360_vm3, %v3325_v29 }
 0x657   : > { %v4070_v32 = vmax.f32 %v4024_v46, 0.0  ;;  %3584 = vst.msk [vmem:[#allocation4 + $0x1e0] sm:$0xff] %vm3553_vm4, %v3518_v47  ;;  %3908 = vmatmul.bf16.gmra.mxu1 %v3726_v4  ;;  %v4030_v22 = vpop.f32.mrf.mxu2 }
 0x659   : > { %4102 = vst.msk [vmem:[%s6736_s7 + $0xb0] sm:$0xff] %vm2081_vm12, %v4070_v32 }
 0x65a   : > { %v3936_v38 = vpop.f32.mrf.mxu3 }
 0x65b   : > { %v3937_v43 = vadd.f32 %v6722_v53, %v3936_v38  ;;  %v3520_v13 = vpop.permute.xlu0 %3519 }
 0x65c   : > { %v3327_v9 = vpop.permute.xlu1 %3326  ;;  %v3103_v5 = vpop.permute.xlu2 %3102 }
 0x65d   : > { %v4026_v58 = vadd.f32 %v4025_v63, %v3937_v43  ;;  %3392 = vst.msk [vmem:[#allocation4 + $0x1f0] sm:$0xff] %vm3360_vm3, %v3327_v9  ;;  %v3894_v14 = vpop.f32.mrf.mxu1 }
 0x65e   : > { %3585 = vst.msk [vmem:[#allocation4 + $0x1f0] sm:$0xff] %vm3553_vm4, %v3520_v13  ;;  %v3895_v17 = vadd.f32 %v6722_v53, %v3894_v14  ;;  %v3710_v6 = vld [vmem:[#allocation4 + $0x1e0] sm:$0xff] }
 0x65f   : > { %v4071_v28 = vmax.f32 %v4026_v58, 0.0  ;;  %v3709_v58 = vld [vmem:[#allocation4 + $0x1d8] sm:$0xff] }
 0x660   : > { %v3984_v1 = vadd.f32 %v6616_v8, %v3895_v17 }
 0x661   : > { %4103 = vst.msk [vmem:[%s6736_s7 + $0xb8] sm:$0xff] %vm2081_vm12, %v4071_v28 }
 0x662   : > { %v4054_v35 = vmax.f32 %v3984_v1, 0.0 }
 0x663   : > { %v3099_v19 = vpop.permute.xlu0 %3098 }
 0x664   : > { %4086 = vst.msk [vmem:[%s6736_s7 + $0x30] sm:$0xff] %vm2081_vm12, %v4054_v35  ;;  %v2906_v37 = vpop.permute.xlu1 %2905  ;;  %v3299_v54 = vpop.permute.xlu2 %3298 }
 0x665   : > { %2988 = vst.msk [vmem:[#allocation4 + $0xe0] sm:$0xff] %vm2973_vm1, %v2906_v37  ;;  %v3896_v30 = vpop.f32.mrf.mxu1  ;;  %v3712_v62 = vld [vmem:[#allocation4 + $0x1f0] sm:$0xff] }
 0x666   : > { %3181 = vst.msk [vmem:[#allocation4 + $0xe0] sm:$0xff] %vm3166_vm2, %v3099_v19  ;;  %v3897_v49 = vadd.f32 %v6722_v53, %v3896_v30  ;;  %v3744_v57 = vpack.c.bf16 %v3712_v62, %v3710_v6  ;;  %v3711_v19 = vld [vmem:[#allocation4 + $0x1e8] sm:$0xff] }
 0x667   : > { %3375 = vst.msk [vmem:[#allocation4 + $0xe0] sm:$0xff] %vm3360_vm3, %v3293_v33  ;;  %v3617_v33 = vld [vmem:[#allocation2 + $0x1a2] sm:$0xff] }
 0x668   : > { %v3986_v8 = vadd.f32 %v6627_v23, %v3897_v49  ;;  %3953 = vmatmul.bf16.gmra.mxu3 %v3744_v57  ;;  %3649 = vst.msk [vmem:[#allocation4 + $0x1f8] sm:$0xff] %vm2081_vm12, %v3617_v33 }
 0x66a   : > { %v4055_v47 = vmax.f32 %v3986_v8, 0.0 }
 0x66b   : > { %v3295_v18 = vpop.permute.xlu0 %3294 }
 0x66c   : > { %4087 = vst.msk [vmem:[%s6736_s7 + $0x38] sm:$0xff] %vm2081_vm12, %v4055_v47  ;;  %v3101_v60 = vpop.permute.xlu1 %3100  ;;  %v2914_v39 = vpop.permute.xlu2 %2913 }
 0x66d   : > { %3182 = vst.msk [vmem:[#allocation4 + $0xf0] sm:$0xff] %vm3166_vm2, %v3101_v60 }
 0x66e   : > { %2992 = vst.msk [vmem:[#allocation4 + $0x120] sm:$0xff] %vm2973_vm1, %v2914_v39 }
 0x66f   : > { %3376 = vst.msk [vmem:[#allocation4 + $0xf0] sm:$0xff] %vm3360_vm3, %v3295_v18  ;;  %v3713_v30 = vld [vmem:[#allocation4 + $0x1f8] sm:$0xff] }
 0x670   : > { %3569 = vst.msk [vmem:[#allocation4 + $0xf0] sm:$0xff] %vm3553_vm4, %v3488_v36  ;;  %v3745_v8 = vpack.c.bf16 %v3713_v30, %v3711_v19 }
 0x673   : > { %v3939_v12 = vpop.f32.mrf.mxu3  ;;  %v2910_v11 = vpop.permute.xlu0 %2909 }
 0x674   : > { %v3940_v23 = vadd.f32 %v6722_v53, %v3939_v12  ;;  %v3486_v26 = vpop.permute.xlu1 %3485  ;;  %v3109_v25 = vpop.permute.xlu2 %3108  ;;  %2990 = vst.msk [vmem:[#allocation4 + $0x100] sm:$0xff] %vm2973_vm1, %v2910_v11 }
 0x675   : > { %3568 = vst.msk [vmem:[#allocation4 + $0xe0] sm:$0xff] %vm3553_vm4, %v3486_v26 }
 0x676   : > { %v4029_v15 = vadd.f32 %v4028_v61, %v3940_v23  ;;  %3183 = vst.msk [vmem:[#allocation4 + $0x100] sm:$0xff] %vm3166_vm2, %v3103_v5  ;;  %v3707_v5 = vld [vmem:[#allocation4 + $0x1c8] sm:$0xff] }
 0x677   : > { %v3680_v3 = vld [vmem:[#allocation4 + $0xf0] sm:$0xff]  ;;  %v3743_v35 = vpack.c.bf16 %v3709_v58, %v3707_v5 }
 0x678   : > { %v4072_v7 = vmax.f32 %v4029_v15, 0.0  ;;  %4440 = vmatmul.msk.bf16.vlgmr.msra.gmra.mxu3 %vm2081_vm12, %v3741_v45 }
 0x67a   : > { %4104 = vst.msk [vmem:[%s6736_s7 + $0xc0] sm:$0xff] %vm2081_vm12, %v4072_v7 }
 0x67b   : > { %v3941_v16 = vpop.f32.mrf.mxu3  ;;  %v3105_v46 = vpop.permute.xlu0 %3104 }
 0x67c   : > { %v3942_v2 = vadd.f32 %v6722_v53, %v3941_v16  ;;  %v2912_v44 = vpop.permute.xlu1 %2911  ;;  %v3494_v36 = vpop.permute.xlu2 %3493  ;;  %v3678_v41 = vld [vmem:[#allocation4 + $0xe0] sm:$0xff] }
 0x67d   : > { %2991 = vst.msk [vmem:[#allocation4 + $0x110] sm:$0xff] %vm2973_vm1, %v2912_v44  ;;  %v3899_v29 = vpop.f32.mrf.mxu1  ;;  %v3728_v4 = vpack.c.bf16 %v3680_v3, %v3678_v41 }
 0x67e   : > { %v4031_v32 = vadd.f32 %v4030_v22, %v3942_v2  ;;  %3184 = vst.msk [vmem:[#allocation4 + $0x110] sm:$0xff] %vm3166_vm2, %v3105_v46  ;;  %v3900_v38 = vadd.f32 %v6722_v53, %v3899_v29 }
 0x67f   : > { %3378 = vst.msk [vmem:[#allocation4 + $0x110] sm:$0xff] %vm3360_vm3, %v3299_v54  ;;  %3913 = vmatmul.bf16.gmra.mxu1 %v3728_v4 }
 0x680   : > { %v4073_v63 = vmax.f32 %v4031_v32, 0.0  ;;  %v3989_v43 = vadd.f32 %v6637_v55, %v3900_v38 }
 0x682   : > { %4105 = vst.msk [vmem:[%s6736_s7 + $0xc8] sm:$0xff] %vm2081_vm12, %v4073_v63  ;;  %v4056_v9 = vmax.f32 %v3989_v43, 0.0 }
 0x683   : > { %v3490_v17 = vpop.permute.xlu0 %3489 }
 0x684   : > { %4088 = vst.msk [vmem:[%s6736_s7 + $0x40] sm:$0xff] %vm2081_vm12, %v4056_v9  ;;  %v3297_v13 = vpop.permute.xlu1 %3296  ;;  %v2920_v14 = vpop.permute.xlu2 %2919 }
 0x685   : > { %3377 = vst.msk [vmem:[#allocation4 + $0x100] sm:$0xff] %vm3360_vm3, %v3297_v13  ;;  %v3901_v28 = vpop.f32.mrf.mxu1 }
 0x686   : > { %2995 = vst.msk [vmem:[#allocation4 + $0x150] sm:$0xff] %vm2973_vm1, %v2920_v14  ;;  %v3902_v1 = vadd.f32 %v6722_v53, %v3901_v28 }
 0x687   : > { %3570 = vst.msk [vmem:[#allocation4 + $0x100] sm:$0xff] %vm3553_vm4, %v3490_v17 }
 0x688   : > { %v3991_v55 = vadd.f32 %v6647_v42, %v3902_v1  ;;  %4441 = vmatmul.msk.bf16.gmra.mxu3 %vm2081_vm12, %v3743_v35 }
 0x68a   : > { %v4057_v6 = vmax.f32 %v3991_v55, 0.0 }
 0x68b   : > { %v2916_v54 = vpop.permute.xlu0 %2915 }
 0x68c   : > { %4089 = vst.msk [vmem:[%s6736_s7 + $0x48] sm:$0xff] %vm2081_vm12, %v4057_v6  ;;  %v3492_v37 = vpop.permute.xlu1 %3491  ;;  %v3305_v18 = vpop.permute.xlu2 %3304 }
 0x68d   : > { %3571 = vst.msk [vmem:[#allocation4 + $0x110] sm:$0xff] %vm3553_vm4, %v3492_v37 }
 0x68e   : > { %2993 = vst.msk [vmem:[#allocation4 + $0x130] sm:$0xff] %vm2973_vm1, %v2916_v54  ;;  %v3682_v49 = vld [vmem:[#allocation4 + $0x100] sm:$0xff] }
 0x68f   : > { %3186 = vst.msk [vmem:[#allocation4 + $0x130] sm:$0xff] %vm3166_vm2, %v3109_v25 }
 0x693   : > { %v3301_v42 = vpop.permute.xlu0 %3300 }
 0x694   : > { %v3107_v62 = vpop.permute.xlu1 %3106  ;;  %v3684_v57 = vld [vmem:[#allocation4 + $0x110] sm:$0xff]  ;;  %v3500_v7 = vpop.permute.xlu2 %3499 }
 0x695   : > { %3185 = vst.msk [vmem:[#allocation4 + $0x120] sm:$0xff] %vm3166_vm2, %v3107_v62  ;;  %v3730_v47 = vpack.c.bf16 %v3684_v57, %v3682_v49 }
 0x696   : > { %3379 = vst.msk [vmem:[#allocation4 + $0x120] sm:$0xff] %vm3360_vm3, %v3301_v42 }
 0x697   : > { %3572 = vst.msk [vmem:[#allocation4 + $0x120] sm:$0xff] %vm3553_vm4, %v3494_v36  ;;  %3918 = vmatmul.bf16.gmra.mxu1 %v3730_v47 }
 0x698   : > { %4442 = vmatmul.msk.bf16.gmra.mxu3 %vm2081_vm12, %v3745_v8 }
 0x69a   : > { %v3944_v3 = vpop.f32.mrf.mxu3 }
 0x69b   : > { %v3496_v39 = vpop.permute.xlu0 %3495  ;;  %v3945_v17 = vadd.f32 %v6722_v53, %v3944_v3 }
 0x69c   : > { %v3303_v60 = vpop.permute.xlu1 %3302 }
 0x69d   : > { %3380 = vst.msk [vmem:[#allocation4 + $0x130] sm:$0xff] %vm3360_vm3, %v3303_v60 }
 0x69e   : > { %3573 = vst.msk [vmem:[#allocation4 + $0x130] sm:$0xff] %vm3553_vm4, %v3496_v39  ;;  %v3686_v27 = vld [vmem:[#allocation4 + $0x120] sm:$0xff] }
 0x6a2   : > { %v3946_v46 = vpop.f32.mrf.mxu3 }
 0x6a3   : > { %v3111_v12 = vpop.permute.xlu0 %3110  ;;  %v3947_v37 = vadd.f32 %v6722_v53, %v3946_v46 }
 0x6a4   : > { %v2918_v61 = vpop.permute.xlu1 %2917 }
 0x6a5   : > { %2994 = vst.msk [vmem:[#allocation4 + $0x140] sm:$0xff] %vm2973_vm1, %v2918_v61  ;;  %v3904_v48 = vpop.f32.mrf.mxu1  ;;  %v3688_v23 = vld [vmem:[#allocation4 + $0x130] sm:$0xff] }
 0x6a6   : > { %3187 = vst.msk [vmem:[#allocation4 + $0x140] sm:$0xff] %vm3166_vm2, %v3111_v12  ;;  %v3905_v26 = vadd.f32 %v6722_v53, %v3904_v48  ;;  %v3732_v25 = vpack.c.bf16 %v3688_v23, %v3686_v27 }
 0x6a7   : > { %3381 = vst.msk [vmem:[#allocation4 + $0x140] sm:$0xff] %vm3360_vm3, %v3305_v18 }
 0x6a8   : > { %v3994_v11 = vadd.f32 %v6656_v40, %v3905_v26  ;;  %3923 = vmatmul.bf16.gmra.mxu1 %v3732_v25 }
 0x6aa   : > { %v4058_v15 = vmax.f32 %v3994_v11, 0.0 }
 0x6ab   : > { %v3307_v20 = vpop.permute.xlu0 %3306 }
 0x6ac   : > { %4090 = vst.msk [vmem:[%s6736_s7 + $0x50] sm:$0xff] %vm2081_vm12, %v4058_v15  ;;  %v3113_v45 = vpop.permute.xlu1 %3112 }
 0x6ad   : > { %3188 = vst.msk [vmem:[#allocation4 + $0x150] sm:$0xff] %vm3166_vm2, %v3113_v45  ;;  %v3906_v33 = vpop.f32.mrf.mxu1 }
 0x6ae   : > { %3382 = vst.msk [vmem:[#allocation4 + $0x150] sm:$0xff] %vm3360_vm3, %v3307_v20  ;;  %v3907_v22 = vadd.f32 %v6722_v53, %v3906_v33 }
 0x6af   : > { %3575 = vst.msk [vmem:[#allocation4 + $0x150] sm:$0xff] %vm3553_vm4, %v3500_v7 }
 0x6b0   : > { %v3996_v16 = vadd.f32 %v6667_v31, %v3907_v22 }
 0x6b2   : > { %v4059_v40 = vmax.f32 %v3996_v16, 0.0 }
 0x6b4   : > { %4091 = vst.msk [vmem:[%s6736_s7 + $0x58] sm:$0xff] %vm2081_vm12, %v4059_v40  ;;  %v3498_v2 = vpop.permute.xlu1 %3497 }
 0x6b5   : > { %3574 = vst.msk [vmem:[#allocation4 + $0x140] sm:$0xff] %vm3553_vm4, %v3498_v2 }
 0x6b6   : > { %v3692_v36 = vld [vmem:[#allocation4 + $0x150] sm:$0xff] }
 0x6bc   : > { %v3690_v44 = vld [vmem:[#allocation4 + $0x140] sm:$0xff] }
 0x6bd   : > { %v3734_v41 = vpack.c.bf16 %v3692_v36, %v3690_v44 }
 0x6bf   : > { %3928 = vmatmul.bf16.gmra.mxu1 %v3734_v41 }
 0x6c2   : > { %v3949_v31 = vpop.f32.mrf.mxu3 }
 0x6c3   : > { %v3950_v8 = vadd.f32 %v6722_v53, %v3949_v31 }
 0x6ca   : > { %v3951_v58 = vpop.f32.mrf.mxu3 }
 0x6cb   : > { %v3952_v39 = vadd.f32 %v6722_v53, %v3951_v58 }
 0x6d4   : > { %v3909_v29 = vpop.f32.mrf.mxu1 }
 0x6d5   : > { %v3910_v4 = vadd.f32 %v6722_v53, %v3909_v29 }
 0x6d7   : > { %v3999_v32 = vadd.f32 %v6677_v24, %v3910_v4 }
 0x6d9   : > { %v4060_v38 = vmax.f32 %v3999_v32, 0.0 }
 0x6db   : > { %4092 = vst.msk [vmem:[%s6736_s7 + $0x60] sm:$0xff] %vm2081_vm12, %v4060_v38 }
 0x6dc   : > { %v3911_v63 = vpop.f32.mrf.mxu1 }
 0x6dd   : > { %v3912_v43 = vadd.f32 %v6722_v53, %v3911_v63 }
 0x6df   : > { %v4001_v9 = vadd.f32 %v6687_v56, %v3912_v43 }
 0x6e1   : > { %v4061_v5 = vmax.f32 %v4001_v9, 0.0 }
 0x6e3   : > { %4093 = vst.msk [vmem:[%s6736_s7 + $0x68] sm:$0xff] %vm2081_vm12, %v4061_v5 }
 0x6eb   : > { %v3954_v13 = vpop.f32.mrf.mxu3 }
 0x6ec   : > { %v3955_v26 = vadd.f32 %v6722_v53, %v3954_v13 }
 0x6f3   : > { %v3956_v14 = vpop.f32.mrf.mxu3 }
 0x6f4   : > { %v3957_v7 = vadd.f32 %v6722_v53, %v3956_v14 }
 0x6fb   : > { %v4033_v24 = vpop.f32.mrf.mxu3 }
 0x6fc   : > { %v4034_v28 = vadd.f32 %v4033_v24, %v3945_v17  ;;  %v3914_v1 = vpop.f32.mrf.mxu1 }
 0x6fd   : > { %v3915_v35 = vadd.f32 %v6722_v53, %v3914_v1 }
 0x6fe   : > { %v4074_v55 = vmax.f32 %v4034_v28, 0.0 }
 0x6ff   : > { %v4004_v6 = vadd.f32 %v6695_v21, %v3915_v35 }
 0x700   : > { %4106 = vst.msk [vmem:[%s6736_s7 + $0xd0] sm:$0xff] %vm2081_vm12, %v4074_v55 }
 0x701   : > { %v4062_v56 = vmax.f32 %v4004_v6, 0.0 }
 0x703   : > { %4094 = vst.msk [vmem:[%s6736_s7 + $0x70] sm:$0xff] %vm2081_vm12, %v4062_v56  ;;  %v4035_v54 = vpop.f32.mrf.mxu3 }
 0x704   : > { %v4036_v19 = vadd.f32 %v4035_v54, %v3947_v37  ;;  %v3916_v30 = vpop.f32.mrf.mxu1 }
 0x705   : > { %v3917_v62 = vadd.f32 %v6722_v53, %v3916_v30 }
 0x706   : > { %v4075_v49 = vmax.f32 %v4036_v19, 0.0 }
 0x707   : > { %v4006_v57 = vadd.f32 %v6705_v34, %v3917_v62 }
 0x708   : > { %4107 = vst.msk [vmem:[%s6736_s7 + $0xd8] sm:$0xff] %vm2081_vm12, %v4075_v49 }
 0x709   : > { %v4063_v21 = vmax.f32 %v4006_v57, 0.0 }
 0x70b   : > { %4095 = vst.msk [vmem:[%s6736_s7 + $0x78] sm:$0xff] %vm2081_vm12, %v4063_v21  ;;  %v4038_v42 = vpop.f32.mrf.mxu3 }
 0x70c   : > { %v4039_v47 = vadd.f32 %v4038_v42, %v3950_v8 }
 0x70e   : > { %v4076_v60 = vmax.f32 %v4039_v47, 0.0 }
 0x710   : > { %4108 = vst.msk [vmem:[%s6736_s7 + $0xe0] sm:$0xff] %vm2081_vm12, %v4076_v60 }
 0x713   : > { %v4040_v18 = vpop.f32.mrf.mxu3 }
 0x714   : > { %v4041_v61 = vadd.f32 %v4040_v18, %v3952_v39  ;;  %v3919_v34 = vpop.f32.mrf.mxu1 }
 0x715   : > { %v3920_v12 = vadd.f32 %v6722_v53, %v3919_v34 }
 0x716   : > { %v4077_v48 = vmax.f32 %v4041_v61, 0.0 }
 0x717   : > { %v4009_v27 = vadd.f32 %v6715_v59, %v3920_v12 }
 0x718   : > { %4109 = vst.msk [vmem:[%s6736_s7 + $0xe8] sm:$0xff] %vm2081_vm12, %v4077_v48 }
 0x719   : > { %v4064_v23 = vmax.f32 %v4009_v27, 0.0 }
 0x71b   : > { %4096 = vst.msk [vmem:[%s6736_s7 + $0x80] sm:$0xff] %vm2081_vm12, %v4064_v23  ;;  %v4043_v25 = vpop.f32.mrf.mxu3 }
 0x71c   : > { %v4044_v11 = vadd.f32 %v4043_v25, %v3955_v26  ;;  %v3921_v15 = vpop.f32.mrf.mxu1 }
 0x71d   : > { %v3922_v45 = vadd.f32 %v6722_v53, %v3921_v15 }
 0x71e   : > { %v4078_v20 = vmax.f32 %v4044_v11, 0.0 }
 0x71f   : > { %v4011_v33 = vadd.f32 %v6740_v52, %v3922_v45 }
 0x720   : > { %4110 = vst.msk [vmem:[%s6736_s7 + $0xf0] sm:$0xff] %vm2081_vm12, %v4078_v20 }
 0x721   : > { %v4065_v59 = vmax.f32 %v4011_v33, 0.0 }
 0x723   : > { %4097 = vst.msk [vmem:[%s6736_s7 + $0x88] sm:$0xff] %vm2081_vm12, %v4065_v59  ;;  %v4045_v22 = vpop.f32.mrf.mxu3 }
 0x724   : > { %v4046_v16 = vadd.f32 %v4045_v22, %v3957_v7 }
 0x725   : > { %v3924_v40 = vpop.f32.mrf.mxu1 }
 0x726   : > { %v4079_v2 = vmax.f32 %v4046_v16, 0.0  ;;  %v3925_v44 = vadd.f32 %v6722_v53, %v3924_v40 }
 0x728   : > { %4111 = vst.msk [vmem:[%s6736_s7 + $0xf8] sm:$0xff] %vm2081_vm12, %v4079_v2  ;;  %v4014_v36 = vadd.f32 %v6759_v10, %v3925_v44 }
 0x72a   : > { %v4066_v52 = vmax.f32 %v4014_v36, 0.0 }
 0x72c   : > { %4098 = vst.msk [vmem:[%s6736_s7 + $0x90] sm:$0xff] %vm2081_vm12, %v4066_v52 }
 0x72d   : > { %v3926_v41 = vpop.f32.mrf.mxu1 }
 0x72e   : > { %v3927_v3 = vadd.f32 %v6722_v53, %v3926_v41 }
 0x730   : > { %v4016_v46 = vadd.f32 %v6775_v51, %v3927_v3 }
 0x732   : > { %v4067_v29 = vmax.f32 %v4016_v46, 0.0 }
 0x734   : > { %4099 = vst.msk [vmem:[%s6736_s7 + $0x98] sm:$0xff] %vm2081_vm12, %v4067_v29 }
 0x73c   : > { %v3929_v4 = vpop.f32.mrf.mxu1 }
 0x73d   : > { %v3930_v32 = vadd.f32 %v6722_v53, %v3929_v4 }
 0x73f   : > { %v4019_v31 = vadd.f32 %v6789_v0, %v3930_v32 }
 0x741   : > { %v4068_v38 = vmax.f32 %v4019_v31, 0.0 }
 0x743   : > { %4100 = vst.msk [vmem:[%s6736_s7 + $0xa0] sm:$0xff] %vm2081_vm12, %v4068_v38 }
 0x744   : > { %v3931_v10 = vpop.f32.mrf.mxu1 }
 0x745   : > { %v3932_v63 = vadd.f32 %v6722_v53, %v3931_v10 }
 0x747   : > { %v4021_v43 = vadd.f32 %v6805_v50, %v3932_v63 }
 0x749   : > { %v4069_v9 = vmax.f32 %v4021_v43, 0.0 }
 0x74b   : > { %4101 = vst.msk [vmem:[%s6736_s7 + $0xa8] sm:$0xff] %vm2081_vm12, %v4069_v9 }
 0x74c PF: > { %s15_s18 = sadd.s32 1, %s4504_s18  }
 0x74d   : > { %p12_p4 = scmp.ge.s32.totalorder %s15_s18, 4  }
 0x74f   :  { %14 = sbr.rel (!%p12_p4) target bundleno = 1 (0x1), region = 74 }

// kernel: feature_loss.15
= control target key start
LH: loop header
LB: loop body
LE: loop exit
PB: predicated region body
PF: predicated region fallthrough
CT: control target
= control target key end

     0   :  { %s1687_s18 = smov 0   ;;  %s1980_s0 = inlined_call_operand.vmem [shape: f32[2,6,6,32], index: 0, kind: input, shape index: {}]   ;;  %s1981_s1 = inlined_call_operand.vmem [shape: bf16[288,64], index: 1, kind: input, shape index: {}]   ;;  %s1982_s2 = inlined_call_operand.vmem [shape: f32[1,64], index: 2, kind: input, shape index: {}]   ;;  %s1983_s3 = inlined_call_operand.vmem [shape: bf16[576,64], index: 3, kind: input, shape index: {}]   ;;  %s1984_s4 = inlined_call_operand.vmem [shape: f32[1,64], index: 4, kind: input, shape index: {}]   ;;  %s1985_s5 = inlined_call_operand.vmem [shape: f32[2,4,4,64], index: 5, kind: output, shape index: {}]  }
   0x1 LB: > { %s1323_s19 = sadd.s32 4294967295, %s1651_s18   ;;  %p1327_p0 = scmp.ge.s32.totalorder %s1651_s18, 1  ;;  %s1651_s18 = sphi %s1687_s18, %s15_s18  }
   0x2   : > { %p187_p1 = scmp.lt.s32.totalorder %s1651_s18, 3 }
   0x4   : > { %p188_p2 = pnand %p1327_p0, %p187_p1 }
   0x5   : > { %p215_p3 = scmp.lt.s32.totalorder (!%p188_p2), %s1323_s19, 1  ;;  %s1653_s24 = smov (!%p188_p2), 32  }
   0x6   : > { %191 = sbr.rel (%p188_p2) target bundleno = 704 (0x2c0), region = 40  ;;  %s1654_s25 = smov (!%p188_p2), 64  }
   0x7   : > { %s1655_s26 = smov (!%p188_p2), 96  }
   0xb   : > { %s1987_s19 = smov (!%p215_p3, %s1323_s19), 1  ;;  %v1583_v29 = vld [vmem:[%s1981_s1 + $0x38] sm:$0xff]  ;;  %vm245_vm0 = vcmask 261120   ;;  %v1582_v33 = vld [vmem:[%s1981_s1 + $0x30] sm:$0xff]  ;;  %v1581_v36 = vld [vmem:[%s1981_s1 + $0x28] sm:$0xff]  ;;  %vm271_vm1 = vcmask 523520  }
   0xc   : > { %s1630_s20 = smul.u32 48, %s1987_s19  ;;  %605 = vmatpush.bf16.msra.mxu0 %v1583_v29  ;;  %v1580_v57 = vld [vmem:[%s1981_s1 + $0x20] sm:$0xff]  ;;  %v1579_v58 = vld [vmem:[%s1981_s1 + $0x18] sm:$0xff]  ;;  %v1578_v59 = vld [vmem:[%s1981_s1 + $0x10] sm:$0xff]  ;;  %vm297_vm2 = vcmask 785920   ;;  %vm324_vm3 = vcmask 1048320  }
   0xd   : > { %v1577_v60 = vld [vmem:[%s1981_s1 + $0x8] sm:$0xff]  ;;  %v1576_v61 = vld [vmem:[%s1981_s1] sm:$0xff]  ;;  %v1591_v62 = vld [vmem:[%s1981_s1 + $0x78] sm:$0xff]  ;;  %vm649_vm4 = vcmask 521216   ;;  %v1656_v29 = vmov 0.0   ;;  %vm663_vm5 = vcmask 519168  }
   0xe   : > { %s1701_s23 = scalar_lea.vmem %s1980_s0, %s1630_s20  ;;  %619 = vmatpush.bf16.msra.mxu1 %v1591_v62  ;;  %v1590_v63 = vld [vmem:[%s1981_s1 + $0x70] sm:$0xff]  ;;  %650 = vst.msk [vmem:[#allocation2] sm:$0x3f] %vm649_vm4, %v1656_v29  ;;  %vm687_vm6 = vcmask 523264   ;;  %vm713_vm7 = vcmask 1048064  }
   0xf   : > { %v226_v0 = vld [vmem:[%s1701_s23] sm:$0xf]  ;;  %v227_v1 = vld [vmem:[%s1701_s23 + $0x8] sm:$0xf]  ;;  %v228_v2 = vld [vmem:[%s1701_s23 + $0x10] sm:$0xf] }
  0x10   : > { %234 = vst [vmem:[#allocation1] ss:$2 sm:$0xff] %v226_v0  ;;  %v229_v3 = vld [vmem:[%s1701_s23 + $0x18] sm:$0xf]  ;;  %v248_v4 = vld [vmem:[%s1701_s23 + $0x1] sm:$0xf]  ;;  %606 = vmatpush.bf16.msra.mxu0 %v1582_v33 }
  0x11   : > { %236 = vst [vmem:[#allocation1 + $0x1] ss:$2 sm:$0xff] %v227_v1  ;;  %v249_v5 = vld [vmem:[%s1701_s23 + $0x9] sm:$0xf]  ;;  %v250_v7 = vld [vmem:[%s1701_s23 + $0x11] sm:$0xf] }
  0x12   : > { %238 = vst [vmem:[#allocation1 + $0x10] ss:$2 sm:$0xff] %v228_v2  ;;  %v251_v8 = vld [vmem:[%s1701_s23 + $0x19] sm:$0xf]  ;;  %v274_v10 = vld [vmem:[%s1701_s23 + $0x2] sm:$0xf]  ;;  %620 = vmatpush.bf16.msra.mxu1 %v1590_v63 }
  0x13   : > { %240 = vst [vmem:[#allocation1 + $0x11] ss:$2 sm:$0xff] %v229_v3  ;;  %v275_v11 = vld [vmem:[%s1701_s23 + $0xa] sm:$0xf]  ;;  %v276_v13 = vld [vmem:[%s1701_s23 + $0x12] sm:$0xf] }
  0x14   : > { %v277_v14 = vld [vmem:[%s1701_s23 + $0x1a] sm:$0xf]  ;;  %v1331_v16 = vld [vmem:[%s1701_s23 + $0x8] sm:$0xf]  ;;  %v1332_v17 = vld [vmem:[%s1701_s23 + $0x10] sm:$0xf]  ;;  %607 = vmatpush.bf16.msra.mxu0 %v1581_v36 }
  0x15   : > { %v1333_v19 = vld [vmem:[%s1701_s23 + $0x18] sm:$0xf]  ;;  %v1334_v20 = vld [vmem:[%s1701_s23 + $0x20] sm:$0xf]  ;;  %v1335_v22 = vld [vmem:[%s1701_s23 + $0x9] sm:$0xf] }
  0x16   : > { %v1336_v23 = vld [vmem:[%s1701_s23 + $0x11] sm:$0xf]  ;;  %v1337_v25 = vld [vmem:[%s1701_s23 + $0x19] sm:$0xf]  ;;  %v1338_v26 = vld [vmem:[%s1701_s23 + $0x21] sm:$0xf] }
  0x17   : > { %v1339_v28 = vld [vmem:[%s1701_s23 + $0xa] sm:$0xf]  ;;  %v1340_v30 = vld [vmem:[%s1701_s23 + $0x12] sm:$0xf]  ;;  %v1341_v31 = vld [vmem:[%s1701_s23 + $0x1a] sm:$0xf] }
  0x18   : > { %v241_v6 = vld.sshfl [vmem:[#allocation1] sm:$0xff pattern:$0x75316420]  ;;  %v1343_v37 = vld [vmem:[%s1701_s23 + $0x10] sm:$0xf]  ;;  %608 = vmatpush.bf16.msra.mxu0 %v1580_v57  ;;  %v1589_v1 = vld [vmem:[%s1981_s1 + $0x68] sm:$0xff] }
  0x19   : > { %256 = vst [vmem:[#allocation1] ss:$2 sm:$0xff] %v248_v4  ;;  %v1342_v34 = vld [vmem:[%s1701_s23 + $0x22] sm:$0xf]  ;;  %v1344_v38 = vld [vmem:[%s1701_s23 + $0x18] sm:$0xf]  ;;  %621 = vmatpush.bf16.msra.mxu1 %v1589_v1 }
  0x1a   : > { %258 = vst [vmem:[#allocation1 + $0x1] ss:$2 sm:$0xff] %v249_v5  ;;  %v242_v9 = vld.sshfl [vmem:[#allocation1 + $0x10] sm:$0xff pattern:$0x75316420]  ;;  %v1593_v2 = vld [vmem:[%s1981_s1 + $0x88] sm:$0xff] }
  0x1b   : > { %260 = vst [vmem:[#allocation1 + $0x10] ss:$2 sm:$0xff] %v250_v7  ;;  %v1345_v40 = vld [vmem:[%s1701_s23 + $0x20] sm:$0xf]  ;;  %v1346_v41 = vld [vmem:[%s1701_s23 + $0x28] sm:$0xf]  ;;  %639 = vmatpush.bf16.msra.mxu2 %v1593_v2 }
  0x1c   : > { %262 = vst [vmem:[#allocation1 + $0x11] ss:$2 sm:$0xff] %v251_v8  ;;  %v1347_v43 = vld [vmem:[%s1701_s23 + $0x11] sm:$0xf]  ;;  %v1348_v44 = vld [vmem:[%s1701_s23 + $0x19] sm:$0xf]  ;;  %609 = vmatpush.bf16.msra.mxu0 %v1579_v58 }
  0x1d   : > { %246 = vst.msk [vmem:[#allocation3] sm:$0xff] %vm245_vm0, %v241_v6  ;;  %v1349_v46 = vld [vmem:[%s1701_s23 + $0x21] sm:$0xf]  ;;  %v1350_v47 = vld [vmem:[%s1701_s23 + $0x29] sm:$0xf]  ;;  %v1587_v8 = vld [vmem:[%s1981_s1 + $0x58] sm:$0xff] }
  0x1e   : > { %247 = vst.msk [vmem:[#allocation3 + $0x18] sm:$0xff] %vm245_vm0, %v242_v9  ;;  %v1351_v49 = vld [vmem:[%s1701_s23 + $0x12] sm:$0xf]  ;;  %v1352_v50 = vld [vmem:[%s1701_s23 + $0x1a] sm:$0xf]  ;;  %v1588_v4 = vld [vmem:[%s1981_s1 + $0x60] sm:$0xff] }
  0x1f   : > { %v1353_v52 = vld [vmem:[%s1701_s23 + $0x22] sm:$0xf]  ;;  %v1354_v53 = vld [vmem:[%s1701_s23 + $0x2a] sm:$0xf]  ;;  %622 = vmatpush.bf16.msra.mxu1 %v1588_v4  ;;  %651 = vst.msk [vmem:[#allocation2 + $0x8] sm:$0x3f] %vm649_vm4, %v1656_v29 }
  0x20   : > { %610 = vmatpush.bf16.msra.mxu0 %v1578_v59  ;;  %v1592_v5 = vld [vmem:[%s1981_s1 + $0x80] sm:$0xff]  ;;  %652 = vst.msk [vmem:[#allocation2 + $0x10] sm:$0x3f] %vm649_vm4, %v1656_v29 }
  0x21   : > { %v263_v12 = vld.sshfl [vmem:[#allocation1] sm:$0xff pattern:$0x75316420]  ;;  %640 = vmatpush.bf16.msra.mxu2 %v1592_v5  ;;  %655 = vst.msk [vmem:[#allocation2 + $0x28] sm:$0x3f] %vm649_vm4, %v1656_v29 }
  0x22   : > { %265 = vrot.lane.b32.xlu0 %v263_v12, %s1653_s24  ;;  %282 = vst [vmem:[#allocation1] ss:$2 sm:$0xff] %v274_v10  ;;  %v1586_v12 = vld [vmem:[%s1981_s1 + $0x50] sm:$0xff] }
  0x23   : > { %284 = vst [vmem:[#allocation1 + $0x1] ss:$2 sm:$0xff] %v275_v11  ;;  %v264_v15 = vld.sshfl [vmem:[#allocation1 + $0x10] sm:$0xff pattern:$0x75316420]  ;;  %623 = vmatpush.bf16.msra.mxu1 %v1587_v8 }
  0x24   : > { %286 = vst [vmem:[#allocation1 + $0x10] ss:$2 sm:$0xff] %v276_v13  ;;  %611 = vmatpush.bf16.msra.mxu0 %v1577_v60 }
  0x25   : > { %288 = vst [vmem:[#allocation1 + $0x11] ss:$2 sm:$0xff] %v277_v14 }
  0x26   : > { %653 = vst.msk [vmem:[#allocation2 + $0x18] sm:$0x3f] %vm649_vm4, %v1656_v29 }
  0x27   : > { %624 = vmatpush.bf16.msra.mxu1 %v1586_v12  ;;  %654 = vst.msk [vmem:[#allocation2 + $0x20] sm:$0x3f] %vm649_vm4, %v1656_v29 }
  0x28   : > { %612 = vmatpush.bf16.msra.mxu0 %v1576_v61 }
  0x2a   : > { %v289_v18 = vld.sshfl [vmem:[#allocation1] sm:$0xff pattern:$0x75316420]  ;;  %267 = vrot.lane.b32.xlu0 %v264_v15, %s1653_s24  ;;  %v1585_v15 = vld [vmem:[%s1981_s1 + $0x48] sm:$0xff] }
  0x2b   : > { %291 = vrot.lane.b32.xlu1 %v289_v18, %s1654_s25  ;;  %309 = vst [vmem:[#allocation1] ss:$2 sm:$0xff] %v1331_v16  ;;  %625 = vmatpush.bf16.msra.mxu1 %v1585_v15 }
  0x2c   : > { %v290_v21 = vld.sshfl [vmem:[#allocation1 + $0x10] sm:$0xff pattern:$0x75316420]  ;;  %311 = vst [vmem:[#allocation1 + $0x1] ss:$2 sm:$0xff] %v1332_v17  ;;  %v1584_v17 = vld [vmem:[%s1981_s1 + $0x40] sm:$0xff] }
  0x2d   : > { %313 = vst [vmem:[#allocation1 + $0x10] ss:$2 sm:$0xff] %v1333_v19 }
  0x2e   : > { %315 = vst [vmem:[#allocation1 + $0x11] ss:$2 sm:$0xff] %v1334_v20 }
  0x2f   : > { %626 = vmatpush.bf16.msra.mxu1 %v1584_v17 }
  0x33   : > { %293 = vrot.lane.b32.xlu1 %v290_v21, %s1654_s25  ;;  %v316_v24 = vld.sshfl [vmem:[#allocation1] sm:$0xff pattern:$0x75316420] }
  0x34   : > { %318 = vrot.lane.b32.xlu2 %v316_v24, %s1655_s26  ;;  %335 = vst [vmem:[#allocation1] ss:$2 sm:$0xff] %v1335_v22 }
  0x35   : > { %337 = vst [vmem:[#allocation1 + $0x1] ss:$2 sm:$0xff] %v1336_v23  ;;  %v317_v27 = vld.sshfl [vmem:[#allocation1 + $0x10] sm:$0xff pattern:$0x75316420] }
  0x36   : > { %339 = vst [vmem:[#allocation1 + $0x10] ss:$2 sm:$0xff] %v1337_v25 }
  0x37   : > { %341 = vst [vmem:[#allocation1 + $0x11] ss:$2 sm:$0xff] %v1338_v26 }
  0x3c   : > { %v342_v32 = vld.sshfl [vmem:[#allocation1] sm:$0xff pattern:$0x75316420]  ;;  %320 = vrot.lane.b32.xlu2 %v317_v27, %s1655_s26 }
  0x3d   : > { %356 = vst [vmem:[#allocation1] ss:$2 sm:$0xff] %v1339_v28 }
  0x3e   : > { %358 = vst [vmem:[#allocation1 + $0x1] ss:$2 sm:$0xff] %v1340_v30  ;;  %v343_v35 = vld.sshfl [vmem:[#allocation1 + $0x10] sm:$0xff pattern:$0x75316420] }
  0x3f   : > { %360 = vst [vmem:[#allocation1 + $0x10] ss:$2 sm:$0xff] %v1341_v31  ;;  %v668_v30 = vld [vmem:[#allocation2] sm:$0xf] }
  0x40   : > { %362 = vst [vmem:[#allocation1 + $0x11] ss:$2 sm:$0xff] %v1342_v34 }
  0x41   : > { %346 = vst.msk [vmem:[#allocation3 + $0x8] sm:$0xff] %vm245_vm0, %v342_v32  ;;  %v1643_v32 = vld [vmem:[%s1982_s2] ss:$0 sm:$0xff] }
  0x42   : > { %347 = vst.msk [vmem:[#allocation3 + $0x20] sm:$0xff] %vm245_vm0, %v343_v35 }
  0x45   : > { %v363_v39 = vld.sshfl [vmem:[#allocation1] sm:$0xff pattern:$0x75316420] }
  0x46   : > { %365 = vrot.lane.b32.xlu0 %v363_v39, %s1653_s24  ;;  %382 = vst [vmem:[#allocation1] ss:$2 sm:$0xff] %v1343_v37 }
  0x47   : > { %v364_v42 = vld.sshfl [vmem:[#allocation1 + $0x10] sm:$0xff pattern:$0x75316420]  ;;  %384 = vst [vmem:[#allocation1 + $0x1] ss:$2 sm:$0xff] %v1344_v38 }
  0x48   : > { %367 = vrot.lane.b32.xlu1 %v364_v42, %s1653_s24  ;;  %386 = vst [vmem:[#allocation1 + $0x10] ss:$2 sm:$0xff] %v1345_v40 }
  0x49   : > { %388 = vst [vmem:[#allocation1 + $0x11] ss:$2 sm:$0xff] %v1346_v41 }
  0x4e   : > { %v389_v45 = vld.sshfl [vmem:[#allocation1] sm:$0xff pattern:$0x75316420] }
  0x4f   : > { %407 = vst [vmem:[#allocation1] ss:$2 sm:$0xff] %v1347_v43  ;;  %391 = vrot.lane.b32.xlu2 %v389_v45, %s1654_s25 }
  0x50   : > { %v390_v48 = vld.sshfl [vmem:[#allocation1 + $0x10] sm:$0xff pattern:$0x75316420]  ;;  %409 = vst [vmem:[#allocation1 + $0x1] ss:$2 sm:$0xff] %v1348_v44 }
  0x51   : > { %393 = vrot.lane.b32.xlu0 %v390_v48, %s1654_s25  ;;  %411 = vst [vmem:[#allocation1 + $0x10] ss:$2 sm:$0xff] %v1349_v46 }
  0x52   : > { %413 = vst [vmem:[#allocation1 + $0x11] ss:$2 sm:$0xff] %v1350_v47 }
  0x57   : > { %v414_v51 = vld.sshfl [vmem:[#allocation1] sm:$0xff pattern:$0x75316420] }
  0x58   : > { %416 = vrot.lane.b32.xlu1 %v414_v51, %s1655_s26  ;;  %432 = vst [vmem:[#allocation1] ss:$2 sm:$0xff] %v1351_v49 }
  0x59   : > { %v415_v54 = vld.sshfl [vmem:[#allocation1 + $0x10] sm:$0xff pattern:$0x75316420]  ;;  %434 = vst [vmem:[#allocation1 + $0x1] ss:$2 sm:$0xff] %v1352_v50 }
  0x5a   : > { %418 = vrot.lane.b32.xlu2 %v415_v54, %s1655_s26  ;;  %436 = vst [vmem:[#allocation1 + $0x10] ss:$2 sm:$0xff] %v1353_v52  ;;  %v690_v50 = vld [vmem:[#allocation2 + $0x1] sm:$0xf]  ;;  %s1575_s26 = sshll.u32 %s1987_s19, 4 }
  0x5b   : > { %438 = vst [vmem:[#allocation1 + $0x11] ss:$2 sm:$0xff] %v1354_v53  ;;  %v716_v54 = vld [vmem:[#allocation2 + $0x2] sm:$0xf]  ;;  %s224_s29 = scalar_lea.vmem %s1985_s5, %s1575_s26 }
  0x60   : > { %v439_v56 = vld.sshfl [vmem:[#allocation1] sm:$0xff pattern:$0x75316420] }
  0x61   : > { %443 = vst.msk [vmem:[#allocation3 + $0x10] sm:$0xff] %vm245_vm0, %v439_v56 }
  0x62   : > { %v440_v55 = vld.sshfl [vmem:[#allocation1 + $0x10] sm:$0xff pattern:$0x75316420]  ;;  %676 = vst [vmem:[#allocation1] ss:$2 sm:$0xff] %v668_v30 }
  0x63   : > { %444 = vst.msk [vmem:[#allocation3 + $0x28] sm:$0xff] %vm245_vm0, %v440_v55 }
  0x68   : > { %v447_v10 = vld [vmem:[#allocation3 + $0x10] sm:$0xff] }
  0x6a   : > { %v450_v11 = vld [vmem:[#allocation3 + $0x28] sm:$0xff] }
  0x6b   : > { %v453_v14 = vpack.c.bf16 %v450_v11, %v447_v10 }
  0x6d   : > { %1427 = vmatmul.msk.bf16.vlgmr.msra.gmra.mxu2 %vm245_vm0, %v453_v14 }
  0x8e   : > { %v319_v3 = vpop.permute.xlu2 %318 }
  0x94   : > { %v266_v0 = vpop.permute.xlu0 %265 }
  0x95   : > { %272 = vst.msk [vmem:[#allocation3] sm:$0xff] %vm271_vm1, %v266_v0 }
  0x96   : > { %v321_v9 = vpop.permute.xlu2 %320 }
  0x9c   : > { %v268_v6 = vpop.permute.xlu0 %267 }
  0x9d   : > { %v292_v7 = vpop.permute.xlu1 %291  ;;  %273 = vst.msk [vmem:[#allocation3 + $0x18] sm:$0xff] %vm271_vm1, %v268_v6 }
  0x9e   : > { %298 = vst.msk [vmem:[#allocation3] sm:$0xff] %vm297_vm2, %v292_v7 }
  0x9f   : > { %325 = vst.msk [vmem:[#allocation3] sm:$0xff] %vm324_vm3, %v319_v3 }
  0xa5   : > { %v294_v13 = vpop.permute.xlu1 %293 }
  0xa6   : > { %299 = vst.msk [vmem:[#allocation3 + $0x18] sm:$0xff] %vm297_vm2, %v294_v13  ;;  %v445_v16 = vld [vmem:[#allocation3] sm:$0xff] }
  0xa7   : > { %326 = vst.msk [vmem:[#allocation3 + $0x18] sm:$0xff] %vm324_vm3, %v321_v9 }
  0xa9   : > { %v392_v20 = vpop.permute.xlu2 %391 }
  0xae   : > { %v448_v18 = vld [vmem:[#allocation3 + $0x18] sm:$0xff] }
  0xaf   : > { %v451_v19 = vpack.c.bf16 %v448_v18, %v445_v16  ;;  %v1601_v16 = vld [vmem:[%s1983_s3 + $0x38] sm:$0xff]  ;;  %v1600_v18 = vld [vmem:[%s1983_s3 + $0x30] sm:$0xff] }
  0xb0   : > { %1186 = vmatpush.bf16.msra.mxu3 %v1601_v16  ;;  %v1619_v16 = vld [vmem:[%s1983_s3 + $0xc8] sm:$0xff] }
  0xb1   : > { %613 = vmatmul.bf16.vlgmr.msra.gmra.mxu0 %v451_v19 }
  0xb4   : > { %v419_v23 = vpop.permute.xlu2 %418  ;;  %1187 = vmatpush.bf16.msra.mxu3 %v1600_v18 }
  0xb8   : > { %v366_v21 = vpop.permute.xlu0 %365 }
  0xb9   : > { %371 = vst.msk [vmem:[#allocation3 + $0x8] sm:$0xff] %vm271_vm1, %v366_v21 }
  0xba   : > { %v368_v22 = vpop.permute.xlu1 %367  ;;  %397 = vst.msk [vmem:[#allocation3 + $0x8] sm:$0xff] %vm297_vm2, %v392_v20 }
  0xbb   : > { %372 = vst.msk [vmem:[#allocation3 + $0x20] sm:$0xff] %vm271_vm1, %v368_v22 }
  0xc3   : > { %v394_v24 = vpop.permute.xlu0 %393 }
  0xc4   : > { %398 = vst.msk [vmem:[#allocation3 + $0x20] sm:$0xff] %vm297_vm2, %v394_v24 }
  0xc5   : > { %423 = vst.msk [vmem:[#allocation3 + $0x20] sm:$0xff] %vm324_vm3, %v419_v23 }
  0xca   : > { %v417_v25 = vpop.permute.xlu1 %416 }
  0xcb   : > { %422 = vst.msk [vmem:[#allocation3 + $0x8] sm:$0xff] %vm324_vm3, %v417_v25  ;;  %v812_v25 = vld [vmem:[#allocation2 + $0x28] sm:$0xf] }
  0xcc   : > { %v449_v26 = vld [vmem:[#allocation3 + $0x20] sm:$0xff] }
  0xd2   : > { %v446_v27 = vld [vmem:[#allocation3 + $0x8] sm:$0xff] }
  0xd3   : > { %v452_v28 = vpack.c.bf16 %v449_v26, %v446_v27 }
  0xd5   : > { %627 = vmatmul.bf16.vlgmr.msra.gmra.mxu1 %v452_v28 }
  0xf0   : > { %v642_v34 = vpop.f32.mrf.mxu2 }
  0xf8   : > { %v644_v44 = vpop.f32.mrf.mxu2 }
 0x12e   : > { %v614_v31 = vpop.f32.mrf.mxu0 }
 0x12f   : > { %v615_v33 = vadd.f32 %v1643_v32, %v614_v31  ;;  %v833_v31 = vld [vmem:[#allocation2 + $0x29] sm:$0xf] }
 0x136   : > { %v616_v38 = vpop.f32.mrf.mxu0 }
 0x137   : > { %v617_v40 = vadd.f32 %v1643_v32, %v616_v38 }
 0x152   : > { %v628_v35 = vpop.f32.mrf.mxu1 }
 0x153   : > { %v629_v36 = vadd.f32 %v628_v35, %v615_v33  ;;  %v858_v35 = vld [vmem:[#allocation2 + $0x2a] sm:$0xf] }
 0x155   : > { %v643_v37 = vadd.f32 %v642_v34, %v629_v36 }
 0x157   : > { %v647_v39 = vmax.f32 %v643_v37, 0.0 }
 0x159   : > { %v658_v41 = vrot.slane %v647_v39, 4  ;;  %664 = vst.msk [vmem:[#allocation2 + $0x9] sm:$0xf] %vm663_vm5, %v647_v39  ;;  %v1599_v39 = vld [vmem:[%s1983_s3 + $0x28] sm:$0xff] }
 0x15a   : > { %v630_v42 = vpop.f32.mrf.mxu1  ;;  %1188 = vmatpush.bf16.msra.mxu3 %v1599_v39 }
 0x15b   : > { %665 = vst.msk [vmem:[#allocation2 + $0x11] sm:$0xf] %vm663_vm5, %v658_v41  ;;  %v631_v43 = vadd.f32 %v630_v42, %v617_v40  ;;  %v1598_v40 = vld [vmem:[%s1983_s3 + $0x20] sm:$0xff]  ;;  %v1597_v41 = vld [vmem:[%s1983_s3 + $0x18] sm:$0xff] }
 0x15c   : > { %v1609_v42 = vld [vmem:[%s1983_s3 + $0x78] sm:$0xff] }
 0x15d   : > { %v645_v45 = vadd.f32 %v644_v44, %v631_v43  ;;  %1200 = vmatpush.bf16.msrb.mxu2 %v1609_v42  ;;  %v1608_v43 = vld [vmem:[%s1983_s3 + $0x70] sm:$0xff] }
 0x15e   : > { %1189 = vmatpush.bf16.msra.mxu3 %v1598_v40  ;;  %v1596_v44 = vld [vmem:[%s1983_s3 + $0x10] sm:$0xff] }
 0x15f   : > { %v648_v47 = vmax.f32 %v645_v45, 0.0  ;;  %v1595_v45 = vld [vmem:[%s1983_s3 + $0x8] sm:$0xff] }
 0x160   : > { %v669_v46 = vld [vmem:[#allocation2 + $0x8] sm:$0xf] }
 0x161   : > { %678 = vst [vmem:[#allocation1 + $0x1] ss:$2 sm:$0xff] %v669_v46  ;;  %v659_v49 = vrot.slane %v648_v47, 4  ;;  %v691_v52 = vld [vmem:[#allocation2 + $0x9] sm:$0xf]  ;;  %1201 = vmatpush.bf16.msrb.mxu2 %v1608_v43  ;;  %v1607_v46 = vld [vmem:[%s1983_s3 + $0x68] sm:$0xff] }
 0x162   : > { %v670_v48 = vld [vmem:[#allocation2 + $0x10] sm:$0xf]  ;;  %666 = vst.msk [vmem:[#allocation2 + $0x19] sm:$0xf] %vm663_vm5, %v648_v47  ;;  %v717_v56 = vld [vmem:[#allocation2 + $0xa] sm:$0xf]  ;;  %1190 = vmatpush.bf16.msra.mxu3 %v1597_v41 }
 0x163   : > { %680 = vst [vmem:[#allocation1 + $0x10] ss:$2 sm:$0xff] %v670_v48  ;;  %v692_v59 = vld [vmem:[#allocation2 + $0x11] sm:$0xf]  ;;  %v737_v60 = vld [vmem:[#allocation2 + $0x8] sm:$0xf] }
 0x164   : > { %667 = vst.msk [vmem:[#allocation2 + $0x21] sm:$0xf] %vm663_vm5, %v659_v49  ;;  %v738_v62 = vld [vmem:[#allocation2 + $0x10] sm:$0xf]  ;;  %v762_v2 = vld [vmem:[#allocation2 + $0x9] sm:$0xf] }
 0x165   : > { %v718_v63 = vld [vmem:[#allocation2 + $0x12] sm:$0xf]  ;;  %v783_v8 = vld [vmem:[#allocation2 + $0xa] sm:$0xf]  ;;  %1202 = vmatpush.bf16.msrb.mxu2 %v1607_v46  ;;  %v1594_v48 = vld [vmem:[%s1983_s3] sm:$0xff] }
 0x166   : > { %v763_v4 = vld [vmem:[#allocation2 + $0x11] sm:$0xf]  ;;  %1191 = vmatpush.bf16.msra.mxu3 %v1596_v44  ;;  %v1606_v49 = vld [vmem:[%s1983_s3 + $0x60] sm:$0xff] }
 0x167   : > { %v784_v10 = vld [vmem:[#allocation2 + $0x12] sm:$0xf] }
 0x168   : > { %v683_v51 = vld.sshfl [vmem:[#allocation1] sm:$0xff pattern:$0x75316420]  ;;  %v809_v14 = vld [vmem:[#allocation2 + $0x10] sm:$0xf] }
 0x169   : > { %700 = vst [vmem:[#allocation1 + $0x1] ss:$2 sm:$0xff] %v691_v52  ;;  %v671_v53 = vld [vmem:[#allocation2 + $0x18] sm:$0xf]  ;;  %v830_v22 = vld [vmem:[#allocation2 + $0x11] sm:$0xf]  ;;  %1203 = vmatpush.bf16.msrb.mxu2 %v1606_v49 }
 0x16a   : > { %698 = vst [vmem:[#allocation1] ss:$2 sm:$0xff] %v690_v50  ;;  %v693_v58 = vld [vmem:[#allocation2 + $0x19] sm:$0xf]  ;;  %v855_v28 = vld [vmem:[#allocation2 + $0x12] sm:$0xf]  ;;  %1192 = vmatpush.bf16.msra.mxu3 %v1595_v45 }
 0x16b   : > { %688 = vst.msk [vmem:[#allocation4] sm:$0xff] %vm687_vm6, %v683_v51  ;;  %v719_v1 = vld [vmem:[#allocation2 + $0x1a] sm:$0xf]  ;;  %v740_v7 = vld [vmem:[#allocation2 + $0x20] sm:$0xf]  ;;  %v1617_v47 = vld [vmem:[%s1983_s3 + $0xb8] sm:$0xff] }
 0x16c   : > { %682 = vst [vmem:[#allocation1 + $0x11] ss:$2 sm:$0xff] %v671_v53  ;;  %v739_v5 = vld [vmem:[#allocation2 + $0x18] sm:$0xf]  ;;  %v765_v13 = vld [vmem:[#allocation2 + $0x21] sm:$0xf]  ;;  %1214 = vmatpush.bf16.msrb.mxu0 %v1617_v47 }
 0x16d   : > { %v764_v11 = vld [vmem:[#allocation2 + $0x19] sm:$0xf]  ;;  %v786_v21 = vld [vmem:[#allocation2 + $0x22] sm:$0xf]  ;;  %v1616_v50 = vld [vmem:[%s1983_s3 + $0xb0] sm:$0xff] }
 0x16e   : > { %v810_v17 = vld [vmem:[#allocation2 + $0x18] sm:$0xf]  ;;  %v811_v26 = vld [vmem:[#allocation2 + $0x20] sm:$0xf]  ;;  %1193 = vmatpush.bf16.msra.mxu3 %v1594_v48  ;;  %v1605_v51 = vld [vmem:[%s1983_s3 + $0x58] sm:$0xff] }
 0x16f   : > { %v785_v19 = vld [vmem:[#allocation2 + $0x1a] sm:$0xf]  ;;  %v832_v32 = vld [vmem:[#allocation2 + $0x21] sm:$0xf]  ;;  %v1629_v53 = vld [vmem:[%s1983_s3 + $0x118] sm:$0xff]  ;;  %1204 = vmatpush.bf16.msrb.mxu2 %v1605_v51 }
 0x170   : > { %v831_v24 = vld [vmem:[#allocation2 + $0x19] sm:$0xf]  ;;  %v857_v36 = vld [vmem:[#allocation2 + $0x22] sm:$0xf]  ;;  %1215 = vmatpush.bf16.msrb.mxu0 %v1616_v50 }
 0x171   : > { %v705_v55 = vld.sshfl [vmem:[#allocation1] sm:$0xff pattern:$0x75316420]  ;;  %v1615_v52 = vld [vmem:[%s1983_s3 + $0xa8] sm:$0xff] }
 0x172   : > { %707 = vrot.lane.b32.xlu0 %v705_v55, %s1654_s25  ;;  %724 = vst [vmem:[#allocation1] ss:$2 sm:$0xff] %v716_v54  ;;  %v856_v30 = vld [vmem:[#allocation2 + $0x1a] sm:$0xf]  ;;  %v1604_v55 = vld [vmem:[%s1983_s3 + $0x50] sm:$0xff]  ;;  %1246 = vmatpush.bf16.msrb.mxu3 %v1629_v53 }
 0x173   : > { %726 = vst [vmem:[#allocation1 + $0x1] ss:$2 sm:$0xff] %v717_v56  ;;  %v684_v57 = vld.sshfl [vmem:[#allocation1 + $0x10] sm:$0xff pattern:$0x75316420]  ;;  %v1614_v56 = vld [vmem:[%s1983_s3 + $0xa0] sm:$0xff]  ;;  %1205 = vmatpush.bf16.msrb.mxu2 %v1604_v55 }
 0x174   : > { %704 = vst [vmem:[#allocation1 + $0x11] ss:$2 sm:$0xff] %v693_v58  ;;  %1216 = vmatpush.bf16.msrb.mxu0 %v1615_v52  ;;  %v1603_v58 = vld [vmem:[%s1983_s3 + $0x48] sm:$0xff] }
 0x175   : > { %702 = vst [vmem:[#allocation1 + $0x10] ss:$2 sm:$0xff] %v692_v59  ;;  %v1613_v59 = vld [vmem:[%s1983_s3 + $0x98] sm:$0xff] }
 0x176   : > { %689 = vst.msk [vmem:[#allocation4 + $0x28] sm:$0xff] %vm687_vm6, %v684_v57  ;;  %v1628_v57 = vld [vmem:[%s1983_s3 + $0x110] sm:$0xff] }
 0x177   : > { %1247 = vmatpush.bf16.msrb.mxu3 %v1628_v57  ;;  %1206 = vmatpush.bf16.msrb.mxu2 %v1603_v58 }
 0x178   : > { %1217 = vmatpush.bf16.msrb.mxu0 %v1614_v56 }
 0x17a   : > { %v731_v61 = vld.sshfl [vmem:[#allocation1] sm:$0xff pattern:$0x75316420] }
 0x17b   : > { %745 = vst [vmem:[#allocation1] ss:$2 sm:$0xff] %v737_v60 }
 0x17c   : > { %747 = vst [vmem:[#allocation1 + $0x1] ss:$2 sm:$0xff] %v738_v62  ;;  %v706_v0 = vld.sshfl [vmem:[#allocation1 + $0x10] sm:$0xff pattern:$0x75316420]  ;;  %1218 = vmatpush.bf16.msrb.mxu0 %v1613_v59  ;;  %v1602_v62 = vld [vmem:[%s1983_s3 + $0x40] sm:$0xff] }
 0x17d   : > { %735 = vst.msk [vmem:[#allocation4 + $0x8] sm:$0xff] %vm687_vm6, %v731_v61  ;;  %709 = vrot.lane.b32.xlu1 %v706_v0, %s1654_s25  ;;  %v1627_v61 = vld [vmem:[%s1983_s3 + $0x108] sm:$0xff]  ;;  %v1626_v0 = vld [vmem:[%s1983_s3 + $0x100] sm:$0xff]  ;;  %1207 = vmatpush.bf16.msrb.mxu2 %v1602_v62 }
 0x17e   : > { %728 = vst [vmem:[#allocation1 + $0x10] ss:$2 sm:$0xff] %v718_v63  ;;  %v1612_v63 = vld [vmem:[%s1983_s3 + $0x90] sm:$0xff]  ;;  %1248 = vmatpush.bf16.msrb.mxu3 %v1627_v61 }
 0x17f   : > { %730 = vst [vmem:[#allocation1 + $0x11] ss:$2 sm:$0xff] %v719_v1  ;;  %v1611_v1 = vld [vmem:[%s1983_s3 + $0x88] sm:$0xff] }
 0x180   : > { %1219 = vmatpush.bf16.msrb.mxu0 %v1612_v63 }
 0x182   : > { %1249 = vmatpush.bf16.msrb.mxu3 %v1626_v0 }
 0x183   : > { %v752_v3 = vld.sshfl [vmem:[#allocation1] sm:$0xff pattern:$0x75316420] }
 0x184   : > { %754 = vrot.lane.b32.xlu2 %v752_v3, %s1654_s25  ;;  %770 = vst [vmem:[#allocation1] ss:$2 sm:$0xff] %v762_v2  ;;  %v1625_v2 = vld [vmem:[%s1983_s3 + $0xf8] sm:$0xff]  ;;  %1220 = vmatpush.bf16.msrb.mxu0 %v1611_v1  ;;  %v1610_v3 = vld [vmem:[%s1983_s3 + $0x80] sm:$0xff] }
 0x185   : > { %772 = vst [vmem:[#allocation1 + $0x1] ss:$2 sm:$0xff] %v763_v4  ;;  %1228 = vmatpush.bf16.msrb.mxu1 %v1625_v2  ;;  %v1624_v4 = vld [vmem:[%s1983_s3 + $0xf0] sm:$0xff] }
 0x186   : > { %v732_v6 = vld.sshfl [vmem:[#allocation1 + $0x10] sm:$0xff pattern:$0x75316420] }
 0x187   : > { %749 = vst [vmem:[#allocation1 + $0x10] ss:$2 sm:$0xff] %v739_v5 }
 0x188   : > { %751 = vst [vmem:[#allocation1 + $0x11] ss:$2 sm:$0xff] %v740_v7  ;;  %1221 = vmatpush.bf16.msrb.mxu0 %v1610_v3  ;;  %v1622_v7 = vld [vmem:[%s1983_s3 + $0xe0] sm:$0xff] }
 0x189   : > { %736 = vst.msk [vmem:[#allocation4 + $0x30] sm:$0xff] %vm687_vm6, %v732_v6  ;;  %1229 = vmatpush.bf16.msrb.mxu1 %v1624_v4  ;;  %v1623_v6 = vld [vmem:[%s1983_s3 + $0xe8] sm:$0xff] }
 0x18c   : > { %v777_v9 = vld.sshfl [vmem:[#allocation1] sm:$0xff pattern:$0x75316420] }
 0x18d   : > { %791 = vst [vmem:[#allocation1] ss:$2 sm:$0xff] %v783_v8  ;;  %1230 = vmatpush.bf16.msrb.mxu1 %v1623_v6 }
 0x18e   : > { %793 = vst [vmem:[#allocation1 + $0x1] ss:$2 sm:$0xff] %v784_v10 }
 0x18f   : > { %v753_v12 = vld.sshfl [vmem:[#allocation1 + $0x10] sm:$0xff pattern:$0x75316420]  ;;  %781 = vst.msk [vmem:[#allocation4 + $0x10] sm:$0xff] %vm687_vm6, %v777_v9 }
 0x190   : > { %756 = vrot.lane.b32.xlu0 %v753_v12, %s1654_s25  ;;  %774 = vst [vmem:[#allocation1 + $0x10] ss:$2 sm:$0xff] %v764_v11  ;;  %v1621_v11 = vld [vmem:[%s1983_s3 + $0xd8] sm:$0xff] }
 0x191   : > { %776 = vst [vmem:[#allocation1 + $0x11] ss:$2 sm:$0xff] %v765_v13  ;;  %1231 = vmatpush.bf16.msrb.mxu1 %v1622_v7  ;;  %v1620_v13 = vld [vmem:[%s1983_s3 + $0xd0] sm:$0xff] }
 0x195   : > { %v798_v15 = vld.sshfl [vmem:[#allocation1] sm:$0xff pattern:$0x75316420]  ;;  %1232 = vmatpush.bf16.msrb.mxu1 %v1621_v11 }
 0x196   : > { %817 = vst [vmem:[#allocation1] ss:$2 sm:$0xff] %v809_v14  ;;  %800 = vrot.lane.b32.xlu1 %v798_v15, %s1654_s25 }
 0x197   : > { %819 = vst [vmem:[#allocation1 + $0x1] ss:$2 sm:$0xff] %v810_v17 }
 0x198   : > { %v778_v20 = vld.sshfl [vmem:[#allocation1 + $0x10] sm:$0xff pattern:$0x75316420] }
 0x199   : > { %795 = vst [vmem:[#allocation1 + $0x10] ss:$2 sm:$0xff] %v785_v19  ;;  %1233 = vmatpush.bf16.msrb.mxu1 %v1620_v13 }
 0x19a   : > { %797 = vst [vmem:[#allocation1 + $0x11] ss:$2 sm:$0xff] %v786_v21 }
 0x19b   : > { %782 = vst.msk [vmem:[#allocation4 + $0x38] sm:$0xff] %vm687_vm6, %v778_v20  ;;  %v1618_v20 = vld [vmem:[%s1983_s3 + $0xc0] sm:$0xff] }
 0x19d   : > { %1234 = vmatpush.bf16.msrb.mxu1 %v1619_v16 }
 0x19e   : > { %v824_v23 = vld.sshfl [vmem:[#allocation1] sm:$0xff pattern:$0x75316420] }
 0x19f   : > { %838 = vst [vmem:[#allocation1] ss:$2 sm:$0xff] %v830_v22 }
 0x1a0   : > { %840 = vst [vmem:[#allocation1 + $0x1] ss:$2 sm:$0xff] %v831_v24 }
 0x1a1   : > { %v799_v27 = vld.sshfl [vmem:[#allocation1 + $0x10] sm:$0xff pattern:$0x75316420]  ;;  %828 = vst.msk [vmem:[#allocation4 + $0x18] sm:$0xff] %vm687_vm6, %v824_v23  ;;  %1235 = vmatpush.bf16.msrb.mxu1 %v1618_v20 }
 0x1a2   : > { %802 = vrot.lane.b32.xlu2 %v799_v27, %s1654_s25  ;;  %821 = vst [vmem:[#allocation1 + $0x10] ss:$2 sm:$0xff] %v811_v26 }
 0x1a3   : > { %823 = vst [vmem:[#allocation1 + $0x11] ss:$2 sm:$0xff] %v812_v25 }
 0x1a7   : > { %v845_v29 = vld.sshfl [vmem:[#allocation1] sm:$0xff pattern:$0x75316420] }
 0x1a8   : > { %847 = vrot.lane.b32.xlu0 %v845_v29, %s1654_s25  ;;  %863 = vst [vmem:[#allocation1] ss:$2 sm:$0xff] %v855_v28 }
 0x1a9   : > { %865 = vst [vmem:[#allocation1 + $0x1] ss:$2 sm:$0xff] %v856_v30 }
 0x1aa   : > { %v825_v33 = vld.sshfl [vmem:[#allocation1 + $0x10] sm:$0xff pattern:$0x75316420] }
 0x1ab   : > { %842 = vst [vmem:[#allocation1 + $0x10] ss:$2 sm:$0xff] %v832_v32 }
 0x1ac   : > { %844 = vst [vmem:[#allocation1 + $0x11] ss:$2 sm:$0xff] %v833_v31 }
 0x1ad   : > { %829 = vst.msk [vmem:[#allocation4 + $0x40] sm:$0xff] %vm687_vm6, %v825_v33  ;;  %v1644_v33 = vld [vmem:[%s1984_s4] ss:$0 sm:$0xff] }
 0x1b0   : > { %v870_v34 = vld.sshfl [vmem:[#allocation1] sm:$0xff pattern:$0x75316420] }
 0x1b1   : > { %874 = vst.msk [vmem:[#allocation4 + $0x20] sm:$0xff] %vm687_vm6, %v870_v34 }
 0x1b3   : > { %v846_v37 = vld.sshfl [vmem:[#allocation1 + $0x10] sm:$0xff pattern:$0x75316420] }
 0x1b4   : > { %849 = vrot.lane.b32.xlu1 %v846_v37, %s1654_s25  ;;  %867 = vst [vmem:[#allocation1 + $0x10] ss:$2 sm:$0xff] %v857_v36 }
 0x1b5   : > { %869 = vst [vmem:[#allocation1 + $0x11] ss:$2 sm:$0xff] %v858_v35 }
 0x1b8   : > { %v880_v18 = vld [vmem:[#allocation4 + $0x20] sm:$0xff] }
 0x1bc   : > { %v871_v38 = vld.sshfl [vmem:[#allocation1 + $0x10] sm:$0xff pattern:$0x75316420] }
 0x1bd   : > { %875 = vst.msk [vmem:[#allocation4 + $0x48] sm:$0xff] %vm687_vm6, %v871_v38 }
 0x1c4   : > { %v885_v15 = vld [vmem:[#allocation4 + $0x48] sm:$0xff] }
 0x1c5   : > { %v890_v19 = vpack.c.bf16 %v885_v15, %v880_v18 }
 0x1de   : > { %v755_v54 = vpop.permute.xlu2 %754 }
 0x1df   : > { %760 = vst.msk [vmem:[#allocation4 + $0x8] sm:$0xff] %vm713_vm7, %v755_v54 }
 0x1e4   : > { %v708_v60 = vpop.permute.xlu0 %707 }
 0x1e5   : > { %714 = vst.msk [vmem:[#allocation4] sm:$0xff] %vm713_vm7, %v708_v60 }
 0x1e6   : > { %v877_v21 = vld [vmem:[#allocation4 + $0x8] sm:$0xff] }
 0x1ec   : > { %v876_v8 = vld [vmem:[#allocation4] sm:$0xff] }
 0x1ef   : > { %v710_v5 = vpop.permute.xlu1 %709 }
 0x1f0   : > { %715 = vst.msk [vmem:[#allocation4 + $0x28] sm:$0xff] %vm713_vm7, %v710_v5 }
 0x1f7   : > { %v881_v9 = vld [vmem:[#allocation4 + $0x28] sm:$0xff] }
 0x1f8   : > { %v886_v10 = vpack.c.bf16 %v881_v9, %v876_v8 }
 0x1fa   : > { %1194 = vmatmul.bf16.vlgmr.msra.gmra.mxu3 %v886_v10 }
 0x1fc   : > { %v803_v12 = vpop.permute.xlu2 %802 }
 0x1fd   : > { %807 = vst.msk [vmem:[#allocation4 + $0x38] sm:$0xff] %vm713_vm7, %v803_v12 }
 0x202   : > { %v757_v14 = vpop.permute.xlu0 %756 }
 0x203   : > { %761 = vst.msk [vmem:[#allocation4 + $0x30] sm:$0xff] %vm713_vm7, %v757_v14 }
 0x204   : > { %v883_v25 = vld [vmem:[#allocation4 + $0x38] sm:$0xff] }
 0x208   : > { %v801_v17 = vpop.permute.xlu1 %800 }
 0x209   : > { %806 = vst.msk [vmem:[#allocation4 + $0x10] sm:$0xff] %vm713_vm7, %v801_v17 }
 0x20a   : > { %v882_v22 = vld [vmem:[#allocation4 + $0x30] sm:$0xff]  ;;  %1572 = vmatmul.msk.bf16.vlgmr.msrb.gmra.mxu3 %vm687_vm6, %v890_v19 }
 0x20b   : > { %v887_v23 = vpack.c.bf16 %v882_v22, %v877_v21 }
 0x20d   : > { %1208 = vmatmul.bf16.vlgmr.msrb.gmra.mxu2 %v887_v23 }
 0x210   : > { %v878_v24 = vld [vmem:[#allocation4 + $0x10] sm:$0xff] }
 0x211   : > { %v888_v26 = vpack.c.bf16 %v883_v25, %v878_v24 }
 0x213   : > { %1222 = vmatmul.bf16.vlgmr.msrb.gmra.mxu0 %v888_v26 }
 0x21a   : > { %v848_v27 = vpop.permute.xlu0 %847 }
 0x21b   : > { %853 = vst.msk [vmem:[#allocation4 + $0x18] sm:$0xff] %vm713_vm7, %v848_v27 }
 0x222   : > { %v879_v29 = vld [vmem:[#allocation4 + $0x18] sm:$0xff] }
 0x226   : > { %v850_v28 = vpop.permute.xlu1 %849 }
 0x227   : > { %854 = vst.msk [vmem:[#allocation4 + $0x40] sm:$0xff] %vm713_vm7, %v850_v28 }
 0x22e   : > { %v884_v30 = vld [vmem:[#allocation4 + $0x40] sm:$0xff] }
 0x22f   : > { %v889_v31 = vpack.c.bf16 %v884_v30, %v879_v29 }
 0x231   : > { %1236 = vmatmul.bf16.vlgmr.msrb.gmra.mxu1 %v889_v31 }
 0x27d   : > { %v1195_v32 = vpop.f32.mrf.mxu3 }
 0x27e   : > { %v1196_v36 = vadd.f32 %v1644_v33, %v1195_v32 }
 0x285   : > { %v1197_v34 = vpop.f32.mrf.mxu3 }
 0x286   : > { %v1198_v43 = vadd.f32 %v1644_v33, %v1197_v34 }
 0x28d   : > { %v1251_v39 = vpop.f32.mrf.mxu3 }
 0x290   : > { %v1209_v35 = vpop.f32.mrf.mxu2  ;;  %v1223_v37 = vpop.f32.mrf.mxu0 }
 0x291   : > { %v1210_v38 = vadd.f32 %v1209_v35, %v1196_v36 }
 0x293   : > { %v1224_v40 = vadd.f32 %v1223_v37, %v1210_v38 }
 0x295   : > { %v1253_v53 = vpop.f32.mrf.mxu3 }
 0x298   : > { %v1211_v41 = vpop.f32.mrf.mxu2  ;;  %v1225_v47 = vpop.f32.mrf.mxu0 }
 0x299   : > { %v1212_v45 = vadd.f32 %v1211_v41, %v1198_v43 }
 0x29b   : > { %v1226_v49 = vadd.f32 %v1225_v47, %v1212_v45 }
 0x2ae   : > { %v1237_v42 = vpop.f32.mrf.mxu1 }
 0x2af   : > { %v1238_v44 = vadd.f32 %v1237_v42, %v1224_v40 }
 0x2b1   : > { %v1252_v46 = vadd.f32 %v1251_v39, %v1238_v44 }
 0x2b3   : > { %v1256_v48 = vmax.f32 %v1252_v46, 0.0 }
 0x2b5   : > { %v1260_v50 = vrot.slane %v1256_v48, 4  ;;  %1264 = vst.msk [vmem:[%s224_s29] sm:$0xf] %vm663_vm5, %v1256_v48 }
 0x2b6   : > { %v1239_v51 = vpop.f32.mrf.mxu1 }
 0x2b7   : > { %1265 = vst.msk [vmem:[%s224_s29 + $0x4] sm:$0xf] %vm663_vm5, %v1260_v50  ;;  %v1240_v52 = vadd.f32 %v1239_v51, %v1226_v49 }
 0x2b9   : > { %v1254_v54 = vadd.f32 %v1253_v53, %v1240_v52 }
 0x2bb   : > { %v1257_v55 = vmax.f32 %v1254_v54, 0.0 }
 0x2bd   : > { %v1261_v56 = vrot.slane %v1257_v55, 4  ;;  %1266 = vst.msk [vmem:[%s224_s29 + $0x8] sm:$0xf] %vm663_vm5, %v1257_v55 }
 0x2bf   : > { %1267 = vst.msk [vmem:[%s224_s29 + $0xc] sm:$0xf] %vm663_vm5, %v1261_v56 }
 0x2c0 PF: > { %s15_s18 = sadd.s32 1, %s1651_s18  }
 0x2c1   : > { %p12_p4 = scmp.ge.s32.totalorder %s15_s18, 4  }
 0x2c3   :  { %14 = sbr.rel (!%p12_p4) target bundleno = 1 (0x1), region = 128 }

</bundles_post_ra>
